<compile_context>
chip_gen: v5e
topology: v5e:2x2
jax: 0.10.0
libtpu: 0.0.40
codegen_flags: <defaults>
</compile_context>

<pallas_src>
import functools

import jax
import jax.numpy as jnp
from jax.experimental import pallas as pl
from jax.experimental.pallas import tpu as pltpu

LANE = 128        # channel / node padding target (lane width)
EDGE_SPLIT = 2    # leading "parallel" axis of the edge kernel (v7x: 2 TensorCores/chip)


def _tpu_budget():
    """Per-generation VMEM limit and edge-tile size."""
    vmem_phys = 64 * 1024 * 1024
    try:
        vmem_phys = int(getattr(pltpu.get_tpu_info(), "vmem_capacity_bytes", vmem_phys))
    except Exception:
        pass
    if vmem_phys >= 128 * 1024 * 1024:      # v4 / v5e / v5p / v6e: 128 MiB physical
        return 96 * 1024 * 1024, 512
    return 48 * 1024 * 1024, 256            # v7x: 64 MiB physical -> leave headroom


VMEM_LIMIT, TILE_E = _tpu_budget()


def _round_up(x, m):
    return (x + m - 1) // m * m


def _fast_recip(x):
    """EUP approximate reciprocal (free VLIW slot) + one Newton step (~f32 exact)."""
    r = pl.reciprocal(x, approx=True)
    return r * (2.0 - x * r)


def _const_spec(block_shape, index_map):
    """Constant-index resident block -> a single VMEM buffer suffices."""
    try:
        return pl.BlockSpec(block_shape, index_map, pipeline_mode=pl.Buffered(1))
    except Exception:  # pragma: no cover - pallas build without pipeline_mode/Buffered
        return pl.BlockSpec(block_shape, index_map)


# --------------------------------------------------------------------------- #
# Kernel 1: fused node projection  h @ [B1 | A2 | B2 | A3 | A1] + bias  (bf16 out)
# --------------------------------------------------------------------------- #
def _node_proj_kernel(h_ref, w_ref, b_ref, o_ref):
    acc = jnp.dot(h_ref[...].astype(jnp.bfloat16), w_ref[...],
                  preferred_element_type=jnp.float32) + b_ref[...]
    o_ref[...] = acc.astype(jnp.bfloat16)


# --------------------------------------------------------------------------- #
# Kernel 2: edge-streamed gate + symmetric gated aggregation (partial accs per half)
# --------------------------------------------------------------------------- #
def _edge_agg_kernel(src_ref, dst_ref, e_ref, proj_ref, w_b3_ref, b_gate_ref,
                     e_out_ref, num_f_ref, den_f_ref, num_b_ref, den_b_ref):
    f32, bf16 = jnp.float32, jnp.bfloat16
    te, c_pad = e_ref.shape
    n_pad = proj_ref.shape[0]

    # Accumulator outputs are resident across the inner ("arbitrary") edge axis; each
    # "parallel" half p owns its own block -> init at the first inner step of each half.
    @pl.when(pl.program_id(1) == 0)
    def _init():
        num_f_ref[...] = jnp.zeros_like(num_f_ref)
        den_f_ref[...] = jnp.zeros_like(den_f_ref)
        num_b_ref[...] = jnp.zeros_like(num_b_ref)
        den_b_ref[...] = jnp.zeros_like(den_b_ref)

    # ---- per-tile one-hot gather/scatter matrices built on-chip (bf16 is exact) ----
    src = src_ref[...]                                             # [te, 1] int32
    dst = dst_ref[...]
    iota_lane = jax.lax.broadcasted_iota(jnp.int32, (te, n_pad), 1)
    onehot_src = (iota_lane == src).astype(bf16)                   # [te, n_pad]
    onehot_dst = (iota_lane == dst).astype(bf16)

    # ---- gather per-edge node projections on the MXU (bf16 in, f32 accumulate) -----
    # proj column layout: [B1h | A2h | B2h | A3h | A1h]
    gath_src = jnp.dot(onehot_src, proj_ref[:, 0:2 * c_pad],
                       preferred_element_type=f32)                 # [te,2Cp] = [B1h|A2h][src]
    gath_dst = jnp.dot(onehot_dst, proj_ref[:, 2 * c_pad:4 * c_pad],
                       preferred_element_type=f32)                 # [te,2Cp] = [B2h|A3h][dst]
    b1h_src, a2h_src = gath_src[:, :c_pad], gath_src[:, c_pad:]
    b2h_dst, a3h_dst = gath_dst[:, :c_pad], gath_dst[:, c_pad:]

    # ---- edge gate (bB1 + bB2 + bB3 folded into the single gate bias) --------------
    e_tile = e_ref[...]
    b3e = jnp.dot(e_tile.astype(bf16), w_b3_ref[...],
                  preferred_element_type=f32) + b_gate_ref[...]
    gate = jnp.maximum(b1h_src + b2h_dst + b3e, 0.0) + e_tile      # ReLU + edge residual
    e_out_ref[...] = gate
    sigma = 0.5 * jnp.tanh(0.5 * gate) + 0.5                       # sigmoid on the EUP

    # ---- scatter-accumulate: contract over the edge dim of the SAME one-hots -------
    sigma_bf = sigma.astype(bf16)
    msg_f = (sigma * a2h_src).astype(bf16)
    msg_b = (sigma * a3h_dst).astype(bf16)
    dn = (((0,), (0,)), ((), ()))                                  # onehot^T @ msg
    num_f_ref[0] += jax.lax.dot_general(onehot_dst, msg_f, dn, preferred_element_type=f32)
    den_f_ref[0] += jax.lax.dot_general(onehot_dst, sigma_bf, dn, preferred_element_type=f32)
    num_b_ref[0] += jax.lax.dot_general(onehot_src, msg_b, dn, preferred_element_type=f32)
    den_b_ref[0] += jax.lax.dot_general(onehot_src, sigma_bf, dn, preferred_element_type=f32)


# --------------------------------------------------------------------------- #
# Kernel 3: combine halves + divide + LayerNorm + ReLU + node residual
# --------------------------------------------------------------------------- #
def _finalize_kernel(num_f_ref, den_f_ref, num_b_ref, den_b_ref,
                     a1h_ref, h_ref, gamma_ref, beta_ref, h_out_ref, *, c_real):
    f32 = jnp.float32
    num_f = jnp.sum(num_f_ref[...], axis=0)                        # combine EDGE_SPLIT halves
    den_f = jnp.sum(den_f_ref[...], axis=0)
    num_b = jnp.sum(num_b_ref[...], axis=0)
    den_b = jnp.sum(den_b_ref[...], axis=0)
    h_fwd = num_f * _fast_recip(den_f + 1e-6)
    h_bwd = num_b * _fast_recip(den_b + 1e-6)
    h_pre = a1h_ref[...].astype(f32) + h_fwd + h_bwd               # A1h + fwd + bwd

    # LayerNorm over the real channel count; padded lanes explicitly masked so the
    # statistics never depend on what the padding holds (two-pass variance).
    lane = jax.lax.broadcasted_iota(jnp.int32, h_pre.shape, 1)
    valid = lane < c_real
    h_pre = jnp.where(valid, h_pre, 0.0)
    inv_c = 1.0 / c_real
    mean = jnp.sum(h_pre, axis=-1, keepdims=True) * inv_c
    diff = jnp.where(valid, h_pre - mean, 0.0)
    var = jnp.sum(diff * diff, axis=-1, keepdims=True) * inv_c
    h_hat = diff * jax.lax.rsqrt(var + 1e-5)
    h_norm = h_hat * gamma_ref[...] + beta_ref[...]
    h_out_ref[...] = jnp.maximum(h_norm, 0.0) + h_ref[...]         # ReLU + node residual
    # dropout = 0.0 (eval) -> identity


# --------------------------------------------------------------------------- #
# Wrapper
# --------------------------------------------------------------------------- #
@jax.jit
def sym_gated_gcn(h, e, src, dst, params):
    """h: [N, C] node feats, e: [E, C] edge feats, src/dst: [E] int32 edge endpoints."""
    f32, bf16 = jnp.float32, jnp.bfloat16
    n, c = h.shape
    n_edges = e.shape[0]
    c_pad = _round_up(c, LANE)
    n_pad = _round_up(n, LANE)
    tile_n = 256 if n_pad % 256 == 0 else 128        # fill the 256x256 MXU when possible
    e_pad_len = _round_up(n_edges, EDGE_SPLIT * TILE_E)
    inner = e_pad_len // (EDGE_SPLIT * TILE_E)

    # ---- pad features; padded edges point at node index n_pad (out of range), so
    #      their one-hot rows are all-zero: they neither gather nor scatter anything.
    h_p = jnp.zeros((n_pad, c_pad), f32).at[:n, :c].set(h.astype(f32))
    e_p = jnp.zeros((e_pad_len, c_pad), f32).at[:n_edges, :c].set(e.astype(f32))
    src_p = jnp.full((e_pad_len,), n_pad, jnp.int32).at[:n_edges].set(src.astype(jnp.int32))
    dst_p = jnp.full((e_pad_len,), n_pad, jnp.int32).at[:n_edges].set(dst.astype(jnp.int32))
    src_col, dst_col = src_p[:, None], dst_p[:, None]               # [Ep, 1]

    def pad_w(w):
        return jnp.zeros((c_pad, c_pad), f32).at[:c, :c].set(w)

    def pad_b(b):
        return jnp.zeros((1, c_pad), f32).at[:, :c].set(b)

    zero_b = jnp.zeros((1, c_pad), f32)
    # Fused 5-way node projection; B1/B2 biases are folded into the gate bias.
    # Note: padded columns of all weights/biases are exactly zero, so padded channels of
    # A2h/A3h (and hence the aggregation numerators) stay zero.
    w_node = jnp.concatenate(
        [pad_w(params["wB1"]), pad_w(params["wA2"]), pad_w(params["wB2"]),
         pad_w(params["wA3"]), pad_w(params["wA1"])], axis=1).astype(bf16)   # [Cp, 5Cp]
    b_node = jnp.concatenate(
        [zero_b, pad_b(params["bA2"]), zero_b,
         pad_b(params["bA3"]), pad_b(params["bA1"])], axis=1)                # [1, 5Cp]
    w_b3 = pad_w(params["wB3"]).astype(bf16)
    b_gate = pad_b(params["bB1"] + params["bB2"] + params["bB3"])
    gamma = pad_b(params["gamma_h"])
    beta = pad_b(params["beta_h"])

    # ---- kernel 1: fused node projections (N-tiled, megacore-parallel) -------------
    proj = pl.pallas_call(
        _node_proj_kernel,
        out_shape=jax.ShapeDtypeStruct((n_pad, 5 * c_pad), bf16),
        grid=(n_pad // tile_n,),
        in_specs=[pl.BlockSpec((tile_n, c_pad), lambda i: (i, 0)),
                  _const_spec((c_pad, 5 * c_pad), lambda i: (0, 0)),
                  _const_spec((1, 5 * c_pad), lambda i: (0, 0))],
        out_specs=pl.BlockSpec((tile_n, 5 * c_pad), lambda i: (i, 0)),
        compiler_params=pltpu.CompilerParams(
            dimension_semantics=("parallel",), vmem_limit_bytes=VMEM_LIMIT),
    )(h_p, w_node, b_node)

    # ---- kernel 2: edge-streamed gate + aggregation, 2-way parallel edge split -----
    acc_shape = jax.ShapeDtypeStruct((EDGE_SPLIT, n_pad, c_pad), f32)
    acc_spec = pl.BlockSpec((1, n_pad, c_pad), lambda p, i: (p, 0, 0))
    edge_spec = pl.BlockSpec((TILE_E, c_pad), lambda p, i: (p * inner + i, 0))
    idx_spec = pl.BlockSpec((TILE_E, 1), lambda p, i: (p * inner + i, 0))
    e_out, num_f, den_f, num_b, den_b = pl.pallas_call(
        _edge_agg_kernel,
        out_shape=(jax.ShapeDtypeStruct((e_pad_len, c_pad), f32),
                   acc_shape, acc_shape, acc_shape, acc_shape),
        grid=(EDGE_SPLIT, inner),
        in_specs=[idx_spec,                                          # src (column form)
                  idx_spec,                                          # dst (column form)
                  edge_spec,                                         # e tile
                  _const_spec((n_pad, 5 * c_pad), lambda p, i: (0, 0)),   # proj (resident)
                  _const_spec((c_pad, c_pad), lambda p, i: (0, 0)),       # W_B3
                  _const_spec((1, c_pad), lambda p, i: (0, 0))],          # folded gate bias
        out_specs=(edge_spec, acc_spec, acc_spec, acc_spec, acc_spec),
        input_output_aliases={2: 0},                                 # e_p -> e_out
        compiler_params=pltpu.CompilerParams(
            dimension_semantics=("parallel", "arbitrary"),
            vmem_limit_bytes=VMEM_LIMIT),
    )(src_col, dst_col, e_p, proj, w_b3, b_gate)

    # ---- kernel 3: combine halves + divide + LayerNorm + ReLU + residual -----------
    acc_in_spec = pl.BlockSpec((EDGE_SPLIT, tile_n, c_pad), lambda j: (0, j, 0))
    h_out = pl.pallas_call(
        functools.partial(_finalize_kernel, c_real=c),
        out_shape=jax.ShapeDtypeStruct((n_pad, c_pad), f32),
        grid=(n_pad // tile_n,),
        in_specs=[acc_in_spec, acc_in_spec, acc_in_spec, acc_in_spec,
                  pl.BlockSpec((tile_n, c_pad), lambda j: (j, 4)),   # A1h column block of proj
                  pl.BlockSpec((tile_n, c_pad), lambda j: (j, 0)),   # h (residual)
                  _const_spec((1, c_pad), lambda j: (0, 0)),         # gamma
                  _const_spec((1, c_pad), lambda j: (0, 0))],        # beta
        out_specs=pl.BlockSpec((tile_n, c_pad), lambda j: (j, 0)),
        input_output_aliases={5: 0},                                 # h_p -> h_out
        compiler_params=pltpu.CompilerParams(
            dimension_semantics=("parallel",), vmem_limit_bytes=VMEM_LIMIT),
    )(num_f, den_f, num_b, den_b, proj, h_p, gamma, beta)

    return h_out[:n, :c], e_out[:n_edges, :c]


# --------------------------------------------------------------------------- #
# Pure-JAX reference mirroring the PyTorch forward()
# --------------------------------------------------------------------------- #
def _reference(h, e, src, dst, params):
    hp = jax.lax.Precision.HIGHEST

    def lin(x, w, b):
        return jnp.dot(x, w, precision=hp) + b

    a1h = lin(h, params["wA1"], params["bA1"])
    a2h = lin(h, params["wA2"], params["bA2"])
    a3h = lin(h, params["wA3"], params["bA3"])
    b1h = lin(h, params["wB1"], params["bB1"])
    b2h = lin(h, params["wB2"], params["bB2"])
    b3e = lin(e, params["wB3"], params["bB3"])

    e_ji = jax.nn.relu(b1h[src] + b2h[dst] + b3e) + e
    sigma = jax.nn.sigmoid(e_ji)

    n = h.shape[0]
    num_f = jax.ops.segment_sum(sigma * a2h[src], dst, num_segments=n)
    den_f = jax.ops.segment_sum(sigma, dst, num_segments=n)
    h_fwd = num_f / (den_f + 1e-6)
    num_b = jax.ops.segment_sum(sigma * a3h[dst], src, num_segments=n)
    den_b = jax.ops.segment_sum(sigma, src, num_segments=n)
    h_bwd = num_b / (den_b + 1e-6)

    h_pre = a1h + h_fwd + h_bwd
    mean = jnp.mean(h_pre, axis=-1, keepdims=True)
    var = jnp.mean((h_pre - mean) ** 2, axis=-1, keepdims=True)
    h_norm = (h_pre - mean) / jnp.sqrt(var + 1e-5) * params["gamma_h"] + params["beta_h"]
    h_new = jax.nn.relu(h_norm) + h
    return h_new, e_ji


def _init_params(key, c_in, c_out):
    ks = jax.random.split(key, 12)
    scale = 1.0 / jnp.sqrt(c_in)
    names = ["A1", "A2", "A3", "B1", "B2", "B3"]
    params = {}
    for i, nm in enumerate(names):
        # weights stored pre-transposed: [C_in, C_out]
        params["w" + nm] = jax.random.uniform(
            ks[2 * i], (c_in, c_out), minval=-scale, maxval=scale).astype(jnp.float32)
        params["b" + nm] = jax.random.uniform(
            ks[2 * i + 1], (1, c_out), minval=-scale, maxval=scale).astype(jnp.float32)
    params["gamma_h"] = jnp.ones((1, c_out), jnp.float32)
    params["beta_h"] = jnp.zeros((1, c_out), jnp.float32)
    return params


if __name__ == "__main__":
    key = jax.random.PRNGKey(0)
    # Small but non-trivial: exercises channel padding (64 -> 128), node padding
    # (300 -> 384) and a multi-tile, 2-way-split edge grid (1000 -> 1024 edges).
    N, E, C = 300, 1000, 64

    k_h, k_e, k_src, k_dst, k_p = jax.random.split(key, 5)
    h = jax.random.normal(k_h, (N, C), dtype=jnp.float32)
    e = jax.random.normal(k_e, (E, C), dtype=jnp.float32)
    src = jax.random.randint(k_src, (E,), 0, N, dtype=jnp.int32)
    dst = jax.random.randint(k_dst, (E,), 0, N, dtype=jnp.int32)
    params = _init_params(k_p, C, C)

    h_out, e_out = jax.block_until_ready(sym_gated_gcn(h, e, src, dst, params))

    h_ref, e_ref = _reference(h, e, src, dst, params)
    assert h_out.shape == (N, C) and e_out.shape == (E, C)
    # Tolerance covers bf16 MXU operands (the main error source, ~4e-3 rel), the EUP
    # approx-reciprocal (+Newton) path, and MXU summation order.
    assert jnp.allclose(e_out, e_ref, atol=3e-2, rtol=3e-2), "e mismatch"
    assert jnp.allclose(h_out, h_ref, atol=3e-2, rtol=3e-2), "h mismatch"

    print("KERNEL_OK")
</pallas_src>

<mosaic_0001>
module attributes {stable_mosaic.version = 11 : i64} {
  func.func @_node_proj_kernel(%arg0: i32, %arg1: memref<128x128xf32, #tpu.memory_space<vmem>>, %arg2: memref<128x640xbf16, #tpu.memory_space<vmem>>, %arg3: memref<1x640xf32, #tpu.memory_space<vmem>>, %arg4: memref<128x640xbf16, #tpu.memory_space<vmem>>) attributes {dimension_semantics = [#tpu.dimension_semantics<parallel>], iteration_bounds = array<i64: 3>, scalar_prefetch = 0 : i64, scratch_operands = 0 : i64, tpu.core_type = #tpu.core_type<tc>, window_params = [{transform_indices = @transform_0, window_bounds = array<i64: 128, 128>}, {pipeline_mode = #tpu.pipeline_mode<synchronous>, transform_indices = @transform_1, window_bounds = array<i64: 128, 640>}, {pipeline_mode = #tpu.pipeline_mode<synchronous>, transform_indices = @transform_2, window_bounds = array<i64: 1, 640>}, {transform_indices = @transform_3, window_bounds = array<i64: 128, 640>}]} {
    %c0 = arith.constant 0 : index
    %c0_0 = arith.constant 0 : index
    %0 = vector.load %arg1[%c0, %c0_0] : memref<128x128xf32, #tpu.memory_space<vmem>>, vector<128x128xf32>
    %1 = arith.truncf %0 : vector<128x128xf32> to vector<128x128xbf16>
    %c0_1 = arith.constant 0 : index
    %c0_2 = arith.constant 0 : index
    %2 = vector.load %arg2[%c0_1, %c0_2] : memref<128x640xbf16, #tpu.memory_space<vmem>>, vector<128x640xbf16>
    %cst = arith.constant dense<0.000000e+00> : vector<128x640xf32>
    %3 = tpu.matmul %1, %2, %cst {dimension_numbers = #tpu.dot_dimension_numbers<[1], [0], [0], [1], [0, 0, 1, 1], [], []>} : vector<128x128xbf16>, vector<128x640xbf16>, vector<128x640xf32> -> vector<128x640xf32>
    %c0_3 = arith.constant 0 : index
    %c0_4 = arith.constant 0 : index
    %4 = vector.load %arg3[%c0_3, %c0_4] : memref<1x640xf32, #tpu.memory_space<vmem>>, vector<1x640xf32>
    %5 = vector.broadcast %4 : vector<1x640xf32> to vector<128x640xf32>
    %6 = arith.addf %3, %5 : vector<128x640xf32>
    %7 = arith.truncf %6 : vector<128x640xf32> to vector<128x640xbf16>
    %c0_5 = arith.constant 0 : index
    %c0_6 = arith.constant 0 : index
    %8 = vector.load %arg4[%c0_5, %c0_6] : memref<128x640xbf16, #tpu.memory_space<vmem>>, vector<128x640xbf16>
    tpu.vector_store %arg4[%c0_5, %c0_6], %7 {strides = array<i32>} : memref<128x640xbf16, #tpu.memory_space<vmem>>, vector<128x640xbf16>,
    return
  }
  func.func @transform_0(%arg0: i32) -> (i32, i32) {
    %c0_i32 = arith.constant 0 : i32
    %c0_i32_0 = arith.constant 0 : i32
    return %arg0, %c0_i32 : i32, i32
  }
  func.func @transform_1(%arg0: i32) -> (i32, i32) {
    %c0_i32 = arith.constant 0 : i32
    %c0_i32_0 = arith.constant 0 : i32
    %c0_i32_1 = arith.constant 0 : i32
    return %c0_i32, %c0_i32_0 : i32, i32
  }
  func.func @transform_2(%arg0: i32) -> (i32, i32) {
    %c0_i32 = arith.constant 0 : i32
    %c0_i32_0 = arith.constant 0 : i32
    %c0_i32_1 = arith.constant 0 : i32
    return %c0_i32, %c0_i32_0 : i32, i32
  }
  func.func @transform_3(%arg0: i32) -> (i32, i32) {
    %c0_i32 = arith.constant 0 : i32
    %c0_i32_0 = arith.constant 0 : i32
    return %arg0, %c0_i32 : i32, i32
  }
}

module attributes {stable_mosaic.version = 11 : i64} {
  func.func @_finalize_kernel(%arg0: i32, %arg1: memref<2x128x128xf32, #tpu.memory_space<vmem>>, %arg2: memref<2x128x128xf32, #tpu.memory_space<vmem>>, %arg3: memref<2x128x128xf32, #tpu.memory_space<vmem>>, %arg4: memref<2x128x128xf32, #tpu.memory_space<vmem>>, %arg5: memref<128x128xbf16, #tpu.memory_space<vmem>>, %arg6: memref<128x128xf32, #tpu.memory_space<vmem>>, %arg7: memref<1x128xf32, #tpu.memory_space<vmem>>, %arg8: memref<1x128xf32, #tpu.memory_space<vmem>>, %arg9: memref<128x128xf32, #tpu.memory_space<vmem>>) attributes {dimension_semantics = [#tpu.dimension_semantics<parallel>], iteration_bounds = array<i64: 3>, scalar_prefetch = 0 : i64, scratch_operands = 0 : i64, tpu.core_type = #tpu.core_type<tc>, window_params = [{transform_indices = @transform_0, window_bounds = array<i64: 2, 128, 128>}, {transform_indices = @transform_1, window_bounds = array<i64: 2, 128, 128>}, {transform_indices = @transform_2, window_bounds = array<i64: 2, 128, 128>}, {transform_indices = @transform_3, window_bounds = array<i64: 2, 128, 128>}, {transform_indices = @transform_4, window_bounds = array<i64: 128, 128>}, {transform_indices = @transform_5, window_bounds = array<i64: 128, 128>}, {pipeline_mode = #tpu.pipeline_mode<synchronous>, transform_indices = @transform_6, window_bounds = array<i64: 1, 128>}, {pipeline_mode = #tpu.pipeline_mode<synchronous>, transform_indices = @transform_7, window_bounds = array<i64: 1, 128>}, {transform_indices = @transform_8, window_bounds = array<i64: 128, 128>}]} {
    %c0 = arith.constant 0 : index
    %c0_0 = arith.constant 0 : index
    %c0_1 = arith.constant 0 : index
    %0 = vector.load %arg1[%c0, %c0_0, %c0_1] : memref<2x128x128xf32, #tpu.memory_space<vmem>>, vector<2x128x128xf32>
    %cst = arith.constant dense<0.000000e+00> : vector<128x128xf32>
    %1 = vector.multi_reduction <add>, %0, %cst [0] : vector<2x128x128xf32> to vector<128x128xf32>
    %c0_2 = arith.constant 0 : index
    %c0_3 = arith.constant 0 : index
    %c0_4 = arith.constant 0 : index
    %2 = vector.load %arg2[%c0_2, %c0_3, %c0_4] : memref<2x128x128xf32, #tpu.memory_space<vmem>>, vector<2x128x128xf32>
    %cst_5 = arith.constant dense<0.000000e+00> : vector<128x128xf32>
    %3 = vector.multi_reduction <add>, %2, %cst_5 [0] : vector<2x128x128xf32> to vector<128x128xf32>
    %c0_6 = arith.constant 0 : index
    %c0_7 = arith.constant 0 : index
    %c0_8 = arith.constant 0 : index
    %4 = vector.load %arg3[%c0_6, %c0_7, %c0_8] : memref<2x128x128xf32, #tpu.memory_space<vmem>>, vector<2x128x128xf32>
    %cst_9 = arith.constant dense<0.000000e+00> : vector<128x128xf32>
    %5 = vector.multi_reduction <add>, %4, %cst_9 [0] : vector<2x128x128xf32> to vector<128x128xf32>
    %c0_10 = arith.constant 0 : index
    %c0_11 = arith.constant 0 : index
    %c0_12 = arith.constant 0 : index
    %6 = vector.load %arg4[%c0_10, %c0_11, %c0_12] : memref<2x128x128xf32, #tpu.memory_space<vmem>>, vector<2x128x128xf32>
    %cst_13 = arith.constant dense<0.000000e+00> : vector<128x128xf32>
    %7 = vector.multi_reduction <add>, %6, %cst_13 [0] : vector<2x128x128xf32> to vector<128x128xf32>
    %cst_14 = arith.constant 9.99999997E-7 : f32
    %8 = vector.broadcast %cst_14 : f32 to vector<128x128xf32>
    %9 = arith.addf %3, %8 : vector<128x128xf32>
    %10 = tpu.reciprocal %9 {approx = true} : vector<128x128xf32> -> vector<128x128xf32>
    %11 = arith.mulf %9, %10 : vector<128x128xf32>
    %cst_15 = arith.constant 2.000000e+00 : f32
    %12 = vector.broadcast %cst_15 : f32 to vector<128x128xf32>
    %13 = arith.subf %12, %11 : vector<128x128xf32>
    %14 = arith.mulf %10, %13 : vector<128x128xf32>
    %15 = arith.mulf %1, %14 : vector<128x128xf32>
    %cst_16 = arith.constant 9.99999997E-7 : f32
    %16 = vector.broadcast %cst_16 : f32 to vector<128x128xf32>
    %17 = arith.addf %7, %16 : vector<128x128xf32>
    %18 = tpu.reciprocal %17 {approx = true} : vector<128x128xf32> -> vector<128x128xf32>
    %19 = arith.mulf %17, %18 : vector<128x128xf32>
    %cst_17 = arith.constant 2.000000e+00 : f32
    %20 = vector.broadcast %cst_17 : f32 to vector<128x128xf32>
    %21 = arith.subf %20, %19 : vector<128x128xf32>
    %22 = arith.mulf %18, %21 : vector<128x128xf32>
    %23 = arith.mulf %5, %22 : vector<128x128xf32>
    %c0_18 = arith.constant 0 : index
    %c0_19 = arith.constant 0 : index
    %24 = vector.load %arg5[%c0_18, %c0_19] : memref<128x128xbf16, #tpu.memory_space<vmem>>, vector<128x128xbf16>
    %25 = arith.extf %24 : vector<128x128xbf16> to vector<128x128xf32>
    %26 = arith.addf %25, %15 : vector<128x128xf32>
    %27 = arith.addf %26, %23 : vector<128x128xf32>
    %28 = tpu.iota {dimensions = array<i32: 1>} : vector<128x128xi32>
    %c64_i32 = arith.constant 64 : i32
    %29 = vector.broadcast %c64_i32 : i32 to vector<128x128xi32>
    %30 = arith.cmpi slt, %28, %29 : vector<128x128xi32>
    %cst_20 = arith.constant 0.000000e+00 : f32
    %31 = vector.broadcast %cst_20 : f32 to vector<128x128xf32>
    %32 = arith.select %30, %27, %31 : vector<128x128xi1>, vector<128x128xf32>
    %cst_21 = arith.constant dense<0.000000e+00> : vector<128xf32>
    %33 = vector.multi_reduction <add>, %32, %cst_21 [1] : vector<128x128xf32> to vector<128xf32>
    %34 = vector.shape_cast %33 : vector<128xf32> to vector<128x1xf32>
    %cst_22 = arith.constant 1.562500e-02 : f32
    %35 = vector.broadcast %cst_22 : f32 to vector<128x1xf32>
    %36 = arith.mulf %34, %35 : vector<128x1xf32>
    %37 = vector.broadcast %36 : vector<128x1xf32> to vector<128x128xf32>
    %38 = arith.subf %32, %37 : vector<128x128xf32>
    %cst_23 = arith.constant 0.000000e+00 : f32
    %39 = vector.broadcast %cst_23 : f32 to vector<128x128xf32>
    %40 = arith.select %30, %38, %39 : vector<128x128xi1>, vector<128x128xf32>
    %41 = arith.mulf %40, %40 : vector<128x128xf32>
    %cst_24 = arith.constant dense<0.000000e+00> : vector<128xf32>
    %42 = vector.multi_reduction <add>, %41, %cst_24 [1] : vector<128x128xf32> to vector<128xf32>
    %43 = vector.shape_cast %42 : vector<128xf32> to vector<128x1xf32>
    %cst_25 = arith.constant 1.562500e-02 : f32
    %44 = vector.broadcast %cst_25 : f32 to vector<128x1xf32>
    %45 = arith.mulf %43, %44 : vector<128x1xf32>
    %cst_26 = arith.constant 9.99999974E-6 : f32
    %46 = vector.broadcast %cst_26 : f32 to vector<128x1xf32>
    %47 = arith.addf %45, %46 : vector<128x1xf32>
    %48 = math.rsqrt %47 : vector<128x1xf32>
    %49 = vector.broadcast %48 : vector<128x1xf32> to vector<128x128xf32>
    %50 = arith.mulf %40, %49 : vector<128x128xf32>
    %c0_27 = arith.constant 0 : index
    %c0_28 = arith.constant 0 : index
    %51 = vector.load %arg7[%c0_27, %c0_28] : memref<1x128xf32, #tpu.memory_space<vmem>>, vector<1x128xf32>
    %52 = vector.broadcast %51 : vector<1x128xf32> to vector<128x128xf32>
    %53 = arith.mulf %50, %52 : vector<128x128xf32>
    %c0_29 = arith.constant 0 : index
    %c0_30 = arith.constant 0 : index
    %54 = vector.load %arg8[%c0_29, %c0_30] : memref<1x128xf32, #tpu.memory_space<vmem>>, vector<1x128xf32>
    %55 = vector.broadcast %54 : vector<1x128xf32> to vector<128x128xf32>
    %56 = arith.addf %53, %55 : vector<128x128xf32>
    %cst_31 = arith.constant 0.000000e+00 : f32
    %57 = vector.broadcast %cst_31 : f32 to vector<128x128xf32>
    %58 = arith.maximumf %56, %57 : vector<128x128xf32>
    %c0_32 = arith.constant 0 : index
    %c0_33 = arith.constant 0 : index
    %59 = vector.load %arg6[%c0_32, %c0_33] : memref<128x128xf32, #tpu.memory_space<vmem>>, vector<128x128xf32>
    %60 = arith.addf %58, %59 : vector<128x128xf32>
    %c0_34 = arith.constant 0 : index
    %c0_35 = arith.constant 0 : index
    %61 = vector.load %arg9[%c0_34, %c0_35] : memref<128x128xf32, #tpu.memory_space<vmem>>, vector<128x128xf32>
    tpu.vector_store %arg9[%c0_34, %c0_35], %60 {strides = array<i32>} : memref<128x128xf32, #tpu.memory_space<vmem>>, vector<128x128xf32>,
    return
  }
  func.func @transform_0(%arg0: i32) -> (i32, i32, i32) {
    %c0_i32 = arith.constant 0 : i32
    %c0_i32_0 = arith.constant 0 : i32
    %c0_i32_1 = arith.constant 0 : i32
    return %c0_i32, %arg0, %c0_i32_0 : i32, i32, i32
  }
  func.func @transform_1(%arg0: i32) -> (i32, i32, i32) {
    %c0_i32 = arith.constant 0 : i32
    %c0_i32_0 = arith.constant 0 : i32
    %c0_i32_1 = arith.constant 0 : i32
    return %c0_i32, %arg0, %c0_i32_0 : i32, i32, i32
  }
  func.func @transform_2(%arg0: i32) -> (i32, i32, i32) {
    %c0_i32 = arith.constant 0 : i32
    %c0_i32_0 = arith.constant 0 : i32
    %c0_i32_1 = arith.constant 0 : i32
    return %c0_i32, %arg0, %c0_i32_0 : i32, i32, i32
  }
  func.func @transform_3(%arg0: i32) -> (i32, i32, i32) {
    %c0_i32 = arith.constant 0 : i32
    %c0_i32_0 = arith.constant 0 : i32
    %c0_i32_1 = arith.constant 0 : i32
    return %c0_i32, %arg0, %c0_i32_0 : i32, i32, i32
  }
  func.func @transform_4(%arg0: i32) -> (i32, i32) {
    %c4_i32 = arith.constant 4 : i32
    %c0_i32 = arith.constant 0 : i32
    return %arg0, %c4_i32 : i32, i32
  }
  func.func @transform_5(%arg0: i32) -> (i32, i32) {
    %c0_i32 = arith.constant 0 : i32
    %c0_i32_0 = arith.constant 0 : i32
    return %arg0, %c0_i32 : i32, i32
  }
  func.func @transform_6(%arg0: i32) -> (i32, i32) {
    %c0_i32 = arith.constant 0 : i32
    %c0_i32_0 = arith.constant 0 : i32
    %c0_i32_1 = arith.constant 0 : i32
    return %c0_i32, %c0_i32_0 : i32, i32
  }
  func.func @transform_7(%arg0: i32) -> (i32, i32) {
    %c0_i32 = arith.constant 0 : i32
    %c0_i32_0 = arith.constant 0 : i32
    %c0_i32_1 = arith.constant 0 : i32
    return %c0_i32, %c0_i32_0 : i32, i32
  }
  func.func @transform_8(%arg0: i32) -> (i32, i32) {
    %c0_i32 = arith.constant 0 : i32
    %c0_i32_0 = arith.constant 0 : i32
    return %arg0, %c0_i32 : i32, i32
  }
}

module attributes {stable_mosaic.version = 11 : i64} {
  func.func @_edge_agg_kernel(%arg0: i32, %arg1: i32, %arg2: memref<256x1xi32, #tpu.memory_space<vmem>>, %arg3: memref<256x1xi32, #tpu.memory_space<vmem>>, %arg4: memref<256x128xf32, #tpu.memory_space<vmem>>, %arg5: memref<384x640xbf16, #tpu.memory_space<vmem>>, %arg6: memref<128x128xbf16, #tpu.memory_space<vmem>>, %arg7: memref<1x128xf32, #tpu.memory_space<vmem>>, %arg8: memref<256x128xf32, #tpu.memory_space<vmem>>, %arg9: memref<1x384x128xf32, #tpu.memory_space<vmem>>, %arg10: memref<1x384x128xf32, #tpu.memory_space<vmem>>, %arg11: memref<1x384x128xf32, #tpu.memory_space<vmem>>, %arg12: memref<1x384x128xf32, #tpu.memory_space<vmem>>) attributes {dimension_semantics = [#tpu.dimension_semantics<parallel>, #tpu.dimension_semantics<arbitrary>], iteration_bounds = array<i64: 2, 2>, scalar_prefetch = 0 : i64, scratch_operands = 0 : i64, tpu.core_type = #tpu.core_type<tc>, window_params = [{transform_indices = @transform_0, window_bounds = array<i64: 256, 1>}, {transform_indices = @transform_1, window_bounds = array<i64: 256, 1>}, {transform_indices = @transform_2, window_bounds = array<i64: 256, 128>}, {pipeline_mode = #tpu.pipeline_mode<synchronous>, transform_indices = @transform_3, window_bounds = array<i64: 384, 640>}, {pipeline_mode = #tpu.pipeline_mode<synchronous>, transform_indices = @transform_4, window_bounds = array<i64: 128, 128>}, {pipeline_mode = #tpu.pipeline_mode<synchronous>, transform_indices = @transform_5, window_bounds = array<i64: 1, 128>}, {transform_indices = @transform_6, window_bounds = array<i64: 256, 128>}, {transform_indices = @transform_7, window_bounds = array<i64: 1, 384, 128>}, {transform_indices = @transform_8, window_bounds = array<i64: 1, 384, 128>}, {transform_indices = @transform_9, window_bounds = array<i64: 1, 384, 128>}, {transform_indices = @transform_10, window_bounds = array<i64: 1, 384, 128>}]} {
    %c0_i32 = arith.constant 0 : i32
    %0 = arith.cmpi eq, %arg1, %c0_i32 : i32
    %1 = arith.extui %0 : i1 to i32
    %c0_i32_0 = arith.constant 0 : i32
    %2 = arith.cmpi ne, %1, %c0_i32_0 : i32
    scf.if %2 {
      %cst_49 = arith.constant 0.000000e+00 : f32
      %77 = vector.broadcast %cst_49 : f32 to vector<1x384x128xf32>
      %c0_50 = arith.constant 0 : index
      %c0_51 = arith.constant 0 : index
      %c0_52 = arith.constant 0 : index
      %78 = vector.load %arg9[%c0_50, %c0_51, %c0_52] : memref<1x384x128xf32, #tpu.memory_space<vmem>>, vector<1x384x128xf32>
      tpu.vector_store %arg9[%c0_50, %c0_51, %c0_52], %77 {strides = array<i32>} : memref<1x384x128xf32, #tpu.memory_space<vmem>>, vector<1x384x128xf32>,
      %cst_53 = arith.constant 0.000000e+00 : f32
      %79 = vector.broadcast %cst_53 : f32 to vector<1x384x128xf32>
      %c0_54 = arith.constant 0 : index
      %c0_55 = arith.constant 0 : index
      %c0_56 = arith.constant 0 : index
      %80 = vector.load %arg10[%c0_54, %c0_55, %c0_56] : memref<1x384x128xf32, #tpu.memory_space<vmem>>, vector<1x384x128xf32>
      tpu.vector_store %arg10[%c0_54, %c0_55, %c0_56], %79 {strides = array<i32>} : memref<1x384x128xf32, #tpu.memory_space<vmem>>, vector<1x384x128xf32>,
      %cst_57 = arith.constant 0.000000e+00 : f32
      %81 = vector.broadcast %cst_57 : f32 to vector<1x384x128xf32>
      %c0_58 = arith.constant 0 : index
      %c0_59 = arith.constant 0 : index
      %c0_60 = arith.constant 0 : index
      %82 = vector.load %arg11[%c0_58, %c0_59, %c0_60] : memref<1x384x128xf32, #tpu.memory_space<vmem>>, vector<1x384x128xf32>
      tpu.vector_store %arg11[%c0_58, %c0_59, %c0_60], %81 {strides = array<i32>} : memref<1x384x128xf32, #tpu.memory_space<vmem>>, vector<1x384x128xf32>,
      %cst_61 = arith.constant 0.000000e+00 : f32
      %83 = vector.broadcast %cst_61 : f32 to vector<1x384x128xf32>
      %c0_62 = arith.constant 0 : index
      %c0_63 = arith.constant 0 : index
      %c0_64 = arith.constant 0 : index
      %84 = vector.load %arg12[%c0_62, %c0_63, %c0_64] : memref<1x384x128xf32, #tpu.memory_space<vmem>>, vector<1x384x128xf32>
      tpu.vector_store %arg12[%c0_62, %c0_63, %c0_64], %83 {strides = array<i32>} : memref<1x384x128xf32, #tpu.memory_space<vmem>>, vector<1x384x128xf32>,
    } else {
    }
    %c0 = arith.constant 0 : index
    %c0_1 = arith.constant 0 : index
    %3 = vector.load %arg2[%c0, %c0_1] : memref<256x1xi32, #tpu.memory_space<vmem>>, vector<256x1xi32>
    %c0_2 = arith.constant 0 : index
    %c0_3 = arith.constant 0 : index
    %4 = vector.load %arg3[%c0_2, %c0_3] : memref<256x1xi32, #tpu.memory_space<vmem>>, vector<256x1xi32>
    %5 = tpu.iota {dimensions = array<i32: 1>} : vector<256x384xi32>
    %6 = vector.broadcast %3 : vector<256x1xi32> to vector<256x384xi32>
    %7 = arith.cmpi eq, %5, %6 : vector<256x384xi32>
    %8 = arith.extui %7 : vector<256x384xi1> to vector<256x384xi32>
    %9 = arith.sitofp %8 : vector<256x384xi32> to vector<256x384xf32>
    %10 = arith.truncf %9 : vector<256x384xf32> to vector<256x384xbf16>
    %11 = vector.broadcast %4 : vector<256x1xi32> to vector<256x384xi32>
    %12 = arith.cmpi eq, %5, %11 : vector<256x384xi32>
    %13 = arith.extui %12 : vector<256x384xi1> to vector<256x384xi32>
    %14 = arith.sitofp %13 : vector<256x384xi32> to vector<256x384xf32>
    %15 = arith.truncf %14 : vector<256x384xf32> to vector<256x384xbf16>
    %c0_4 = arith.constant 0 : index
    %c0_5 = arith.constant 0 : index
    %16 = vector.load %arg5[%c0_4, %c0_5] : memref<384x640xbf16, #tpu.memory_space<vmem>>, vector<384x256xbf16>
    %cst = arith.constant dense<0.000000e+00> : vector<256x256xf32>
    %17 = tpu.matmul %10, %16, %cst {dimension_numbers = #tpu.dot_dimension_numbers<[1], [0], [0], [1], [0, 0, 1, 1], [], []>} : vector<256x384xbf16>, vector<384x256xbf16>, vector<256x256xf32> -> vector<256x256xf32>
    %c0_6 = arith.constant 0 : index
    %c256 = arith.constant 256 : index
    %18 = vector.load %arg5[%c0_6, %c256] : memref<384x640xbf16, #tpu.memory_space<vmem>>, vector<384x256xbf16>
    %cst_7 = arith.constant dense<0.000000e+00> : vector<256x256xf32>
    %19 = tpu.matmul %15, %18, %cst_7 {dimension_numbers = #tpu.dot_dimension_numbers<[1], [0], [0], [1], [0, 0, 1, 1], [], []>} : vector<256x384xbf16>, vector<384x256xbf16>, vector<256x256xf32> -> vector<256x256xf32>
    %20 = vector.extract_strided_slice %17 {offsets = [0, 0], sizes = [256, 128], strides = [1, 1]} : vector<256x256xf32> to vector<256x128xf32>
    %21 = vector.extract_strided_slice %17 {offsets = [0, 128], sizes = [256, 128], strides = [1, 1]} : vector<256x256xf32> to vector<256x128xf32>
    %22 = vector.extract_strided_slice %19 {offsets = [0, 0], sizes = [256, 128], strides = [1, 1]} : vector<256x256xf32> to vector<256x128xf32>
    %23 = vector.extract_strided_slice %19 {offsets = [0, 128], sizes = [256, 128], strides = [1, 1]} : vector<256x256xf32> to vector<256x128xf32>
    %c0_8 = arith.constant 0 : index
    %c0_9 = arith.constant 0 : index
    %24 = vector.load %arg4[%c0_8, %c0_9] : memref<256x128xf32, #tpu.memory_space<vmem>>, vector<256x128xf32>
    %25 = arith.truncf %24 : vector<256x128xf32> to vector<256x128xbf16>
    %c0_10 = arith.constant 0 : index
    %c0_11 = arith.constant 0 : index
    %26 = vector.load %arg6[%c0_10, %c0_11] : memref<128x128xbf16, #tpu.memory_space<vmem>>, vector<128x128xbf16>
    %cst_12 = arith.constant dense<0.000000e+00> : vector<256x128xf32>
    %27 = tpu.matmul %25, %26, %cst_12 {dimension_numbers = #tpu.dot_dimension_numbers<[1], [0], [0], [1], [0, 0, 1, 1], [], []>} : vector<256x128xbf16>, vector<128x128xbf16>, vector<256x128xf32> -> vector<256x128xf32>
    %c0_13 = arith.constant 0 : index
    %c0_14 = arith.constant 0 : index
    %28 = vector.load %arg7[%c0_13, %c0_14] : memref<1x128xf32, #tpu.memory_space<vmem>>, vector<1x128xf32>
    %29 = vector.broadcast %28 : vector<1x128xf32> to vector<256x128xf32>
    %30 = arith.addf %27, %29 : vector<256x128xf32>
    %31 = arith.addf %20, %22 : vector<256x128xf32>
    %32 = arith.addf %31, %30 : vector<256x128xf32>
    %cst_15 = arith.constant 0.000000e+00 : f32
    %33 = vector.broadcast %cst_15 : f32 to vector<256x128xf32>
    %34 = arith.maximumf %32, %33 : vector<256x128xf32>
    %35 = arith.addf %34, %24 : vector<256x128xf32>
    %c0_16 = arith.constant 0 : index
    %c0_17 = arith.constant 0 : index
    %36 = vector.load %arg8[%c0_16, %c0_17] : memref<256x128xf32, #tpu.memory_space<vmem>>, vector<256x128xf32>
    tpu.vector_store %arg8[%c0_16, %c0_17], %35 {strides = array<i32>} : memref<256x128xf32, #tpu.memory_space<vmem>>, vector<256x128xf32>,
    %cst_18 = arith.constant 5.000000e-01 : f32
    %37 = vector.broadcast %cst_18 : f32 to vector<256x128xf32>
    %38 = arith.mulf %37, %35 : vector<256x128xf32>
    %39 = math.tanh %38 : vector<256x128xf32>
    %cst_19 = arith.constant 5.000000e-01 : f32
    %40 = vector.broadcast %cst_19 : f32 to vector<256x128xf32>
    %41 = arith.mulf %40, %39 : vector<256x128xf32>
    %cst_20 = arith.constant 5.000000e-01 : f32
    %42 = vector.broadcast %cst_20 : f32 to vector<256x128xf32>
    %43 = arith.addf %41, %42 : vector<256x128xf32>
    %44 = arith.truncf %43 : vector<256x128xf32> to vector<256x128xbf16>
    %45 = arith.mulf %43, %21 : vector<256x128xf32>
    %46 = arith.truncf %45 : vector<256x128xf32> to vector<256x128xbf16>
    %47 = arith.mulf %43, %23 : vector<256x128xf32>
    %48 = arith.truncf %47 : vector<256x128xf32> to vector<256x128xbf16>
    %c0_21 = arith.constant 0 : index
    %c0_22 = arith.constant 0 : index
    %c0_23 = arith.constant 0 : index
    %49 = vector.load %arg9[%c0_21, %c0_22, %c0_23] : memref<1x384x128xf32, #tpu.memory_space<vmem>>, vector<1x384x128xf32>
    %50 = vector.shape_cast %49 : vector<1x384x128xf32> to vector<384x128xf32>
    %cst_24 = arith.constant dense<0.000000e+00> : vector<384x128xf32>
    %51 = tpu.matmul %15, %46, %cst_24 {dimension_numbers = #tpu.dot_dimension_numbers<[0], [0], [1], [1], [0, 1, 1, 1], [], []>} : vector<256x384xbf16>, vector<256x128xbf16>, vector<384x128xf32> -> vector<384x128xf32>
    %52 = arith.addf %50, %51 : vector<384x128xf32>
    %c0_25 = arith.constant 0 : index
    %c0_26 = arith.constant 0 : index
    %c0_27 = arith.constant 0 : index
    %53 = vector.load %arg9[%c0_25, %c0_26, %c0_27] : memref<1x384x128xf32, #tpu.memory_space<vmem>>, vector<1x384x128xf32>
    %54 = vector.shape_cast %53 : vector<1x384x128xf32> to vector<384x128xf32>
    %55 = vector.shape_cast %52 : vector<384x128xf32> to vector<1x384x128xf32>
    tpu.vector_store %arg9[%c0_25, %c0_26, %c0_27], %55 {strides = array<i32>} : memref<1x384x128xf32, #tpu.memory_space<vmem>>, vector<1x384x128xf32>,
    %c0_28 = arith.constant 0 : index
    %c0_29 = arith.constant 0 : index
    %c0_30 = arith.constant 0 : index
    %56 = vector.load %arg10[%c0_28, %c0_29, %c0_30] : memref<1x384x128xf32, #tpu.memory_space<vmem>>, vector<1x384x128xf32>
    %57 = vector.shape_cast %56 : vector<1x384x128xf32> to vector<384x128xf32>
    %cst_31 = arith.constant dense<0.000000e+00> : vector<384x128xf32>
    %58 = tpu.matmul %15, %44, %cst_31 {dimension_numbers = #tpu.dot_dimension_numbers<[0], [0], [1], [1], [0, 1, 1, 1], [], []>} : vector<256x384xbf16>, vector<256x128xbf16>, vector<384x128xf32> -> vector<384x128xf32>
    %59 = arith.addf %57, %58 : vector<384x128xf32>
    %c0_32 = arith.constant 0 : index
    %c0_33 = arith.constant 0 : index
    %c0_34 = arith.constant 0 : index
    %60 = vector.load %arg10[%c0_32, %c0_33, %c0_34] : memref<1x384x128xf32, #tpu.memory_space<vmem>>, vector<1x384x128xf32>
    %61 = vector.shape_cast %60 : vector<1x384x128xf32> to vector<384x128xf32>
    %62 = vector.shape_cast %59 : vector<384x128xf32> to vector<1x384x128xf32>
    tpu.vector_store %arg10[%c0_32, %c0_33, %c0_34], %62 {strides = array<i32>} : memref<1x384x128xf32, #tpu.memory_space<vmem>>, vector<1x384x128xf32>,
    %c0_35 = arith.constant 0 : index
    %c0_36 = arith.constant 0 : index
    %c0_37 = arith.constant 0 : index
    %63 = vector.load %arg11[%c0_35, %c0_36, %c0_37] : memref<1x384x128xf32, #tpu.memory_space<vmem>>, vector<1x384x128xf32>
    %64 = vector.shape_cast %63 : vector<1x384x128xf32> to vector<384x128xf32>
    %cst_38 = arith.constant dense<0.000000e+00> : vector<384x128xf32>
    %65 = tpu.matmul %10, %48, %cst_38 {dimension_numbers = #tpu.dot_dimension_numbers<[0], [0], [1], [1], [0, 1, 1, 1], [], []>} : vector<256x384xbf16>, vector<256x128xbf16>, vector<384x128xf32> -> vector<384x128xf32>
    %66 = arith.addf %64, %65 : vector<384x128xf32>
    %c0_39 = arith.constant 0 : index
    %c0_40 = arith.constant 0 : index
    %c0_41 = arith.constant 0 : index
    %67 = vector.load %arg11[%c0_39, %c0_40, %c0_41] : memref<1x384x128xf32, #tpu.memory_space<vmem>>, vector<1x384x128xf32>
    %68 = vector.shape_cast %67 : vector<1x384x128xf32> to vector<384x128xf32>
    %69 = vector.shape_cast %66 : vector<384x128xf32> to vector<1x384x128xf32>
    tpu.vector_store %arg11[%c0_39, %c0_40, %c0_41], %69 {strides = array<i32>} : memref<1x384x128xf32, #tpu.memory_space<vmem>>, vector<1x384x128xf32>,
    %c0_42 = arith.constant 0 : index
    %c0_43 = arith.constant 0 : index
    %c0_44 = arith.constant 0 : index
    %70 = vector.load %arg12[%c0_42, %c0_43, %c0_44] : memref<1x384x128xf32, #tpu.memory_space<vmem>>, vector<1x384x128xf32>
    %71 = vector.shape_cast %70 : vector<1x384x128xf32> to vector<384x128xf32>
    %cst_45 = arith.constant dense<0.000000e+00> : vector<384x128xf32>
    %72 = tpu.matmul %10, %44, %cst_45 {dimension_numbers = #tpu.dot_dimension_numbers<[0], [0], [1], [1], [0, 1, 1, 1], [], []>} : vector<256x384xbf16>, vector<256x128xbf16>, vector<384x128xf32> -> vector<384x128xf32>
    %73 = arith.addf %71, %72 : vector<384x128xf32>
    %c0_46 = arith.constant 0 : index
    %c0_47 = arith.constant 0 : index
    %c0_48 = arith.constant 0 : index
    %74 = vector.load %arg12[%c0_46, %c0_47, %c0_48] : memref<1x384x128xf32, #tpu.memory_space<vmem>>, vector<1x384x128xf32>
    %75 = vector.shape_cast %74 : vector<1x384x128xf32> to vector<384x128xf32>
    %76 = vector.shape_cast %73 : vector<384x128xf32> to vector<1x384x128xf32>
    tpu.vector_store %arg12[%c0_46, %c0_47, %c0_48], %76 {strides = array<i32>} : memref<1x384x128xf32, #tpu.memory_space<vmem>>, vector<1x384x128xf32>,
    return
  }
  func.func @transform_0(%arg0: i32, %arg1: i32) -> (i32, i32) {
    %c2_i32 = arith.constant 2 : i32
    %0 = arith.muli %arg0, %c2_i32 : i32
    %1 = arith.addi %0, %arg1 : i32
    %c0_i32 = arith.constant 0 : i32
    %c0_i32_0 = arith.constant 0 : i32
    return %1, %c0_i32 : i32, i32
  }
  func.func @transform_1(%arg0: i32, %arg1: i32) -> (i32, i32) {
    %c2_i32 = arith.constant 2 : i32
    %0 = arith.muli %arg0, %c2_i32 : i32
    %1 = arith.addi %0, %arg1 : i32
    %c0_i32 = arith.constant 0 : i32
    %c0_i32_0 = arith.constant 0 : i32
    return %1, %c0_i32 : i32, i32
  }
  func.func @transform_2(%arg0: i32, %arg1: i32) -> (i32, i32) {
    %c2_i32 = arith.constant 2 : i32
    %0 = arith.muli %arg0, %c2_i32 : i32
    %1 = arith.addi %0, %arg1 : i32
    %c0_i32 = arith.constant 0 : i32
    %c0_i32_0 = arith.constant 0 : i32
    return %1, %c0_i32 : i32, i32
  }
  func.func @transform_3(%arg0: i32, %arg1: i32) -> (i32, i32) {
    %c0_i32 = arith.constant 0 : i32
    %c0_i32_0 = arith.constant 0 : i32
    %c0_i32_1 = arith.constant 0 : i32
    return %c0_i32, %c0_i32_0 : i32, i32
  }
  func.func @transform_4(%arg0: i32, %arg1: i32) -> (i32, i32) {
    %c0_i32 = arith.constant 0 : i32
    %c0_i32_0 = arith.constant 0 : i32
    %c0_i32_1 = arith.constant 0 : i32
    return %c0_i32, %c0_i32_0 : i32, i32
  }
  func.func @transform_5(%arg0: i32, %arg1: i32) -> (i32, i32) {
    %c0_i32 = arith.constant 0 : i32
    %c0_i32_0 = arith.constant 0 : i32
    %c0_i32_1 = arith.constant 0 : i32
    return %c0_i32, %c0_i32_0 : i32, i32
  }
  func.func @transform_6(%arg0: i32, %arg1: i32) -> (i32, i32) {
    %c2_i32 = arith.constant 2 : i32
    %0 = arith.muli %arg0, %c2_i32 : i32
    %1 = arith.addi %0, %arg1 : i32
    %c0_i32 = arith.constant 0 : i32
    %c0_i32_0 = arith.constant 0 : i32
    return %1, %c0_i32 : i32, i32
  }
  func.func @transform_7(%arg0: i32, %arg1: i32) -> (i32, i32, i32) {
    %c0_i32 = arith.constant 0 : i32
    %c0_i32_0 = arith.constant 0 : i32
    %c0_i32_1 = arith.constant 0 : i32
    return %arg0, %c0_i32, %c0_i32_0 : i32, i32, i32
  }
  func.func @transform_8(%arg0: i32, %arg1: i32) -> (i32, i32, i32) {
    %c0_i32 = arith.constant 0 : i32
    %c0_i32_0 = arith.constant 0 : i32
    %c0_i32_1 = arith.constant 0 : i32
    return %arg0, %c0_i32, %c0_i32_0 : i32, i32, i32
  }
  func.func @transform_9(%arg0: i32, %arg1: i32) -> (i32, i32, i32) {
    %c0_i32 = arith.constant 0 : i32
    %c0_i32_0 = arith.constant 0 : i32
    %c0_i32_1 = arith.constant 0 : i32
    return %arg0, %c0_i32, %c0_i32_0 : i32, i32, i32
  }
  func.func @transform_10(%arg0: i32, %arg1: i32) -> (i32, i32, i32) {
    %c0_i32 = arith.constant 0 : i32
    %c0_i32_0 = arith.constant 0 : i32
    %c0_i32_1 = arith.constant 0 : i32
    return %arg0, %c0_i32, %c0_i32_0 : i32, i32, i32
  }
}

</mosaic_0001>

<bundles_post_ra>
// kernel: sym_gated_gcn.5
= control target key start
LH: loop header
LB: loop body
LE: loop exit
PB: predicated region body
PF: predicated region fallthrough
CT: control target
= control target key end

     0   :  { %s2495_s27 = smov 0   ;;  %s2497_s28 = smov 0   ;;  %s3558_s0 = inlined_call_operand.vmem [shape: f32[2,384,128], index: 0, kind: input, shape index: {}]   ;;  %s3559_s1 = inlined_call_operand.vmem [shape: f32[2,384,128], index: 1, kind: input, shape index: {}]   ;;  %s3560_s2 = inlined_call_operand.vmem [shape: f32[2,384,128], index: 2, kind: input, shape index: {}]   ;;  %s3561_s3 = inlined_call_operand.vmem [shape: f32[2,384,128], index: 3, kind: input, shape index: {}]   ;;  %s3562_s4 = inlined_call_operand.vmem [shape: bf16[384,640], index: 4, kind: input, shape index: {}]   ;;  %s3563_s5 = inlined_call_operand.vmem [shape: f32[384,128], index: 5, kind: input, shape index: {}, may-alias: {5,8}]   ;;  %s3564_s6 = inlined_call_operand.vmem [shape: f32[1,128], index: 6, kind: input, shape index: {}]   ;;  %s3565_s7 = inlined_call_operand.vmem [shape: f32[1,128], index: 7, kind: input, shape index: {}]   ;;  %s3566_s8 = inlined_call_operand.vmem [shape: f32[384,128], index: 8, kind: output, shape index: {}, may-alias: {5,8}]  }
   0x1   :  { %s2499_s29 = smov 0  }
   0x2 LB: > { %s2215_s30 = sadd.s32 4294967295, %s2448_s29   ;;  %s2512_s9 = sadd.s32 1, %s2448_s29   ;;  %s2448_s29 = sphi %s2499_s29, %s3572_s29   ;;  %s2444_s28 = sphi %s2497_s28, %s3571_s28   ;;  %s2440_s27 = sphi %s2495_s27, %s3570_s27  }
   0x3   : > { %s22_s10 = ssub.s32 %s2448_s29, %s2512_s9  ;;  %s25_s11 = sadd.s32 1, %s2444_s28 }
   0x4   : > { %p23_p0 = scmp.eq.s32.totalorder %s22_s10, 0  ;;  %p32_p1 = scmp.ne.s32.totalorder %s2444_s28, %s2440_s27 }
   0x5   : > { %p33_p2 = scmp.eq.s32.totalorder %s2448_s29, 0  ;;  %p2218_p4 = scmp.ge.s32.totalorder %s2448_s29, 3 }
   0x6   : > { %s2521_s12 = scalar_select %p23_p0, %s2444_s28, %s25_s11  }
   0x7   : > { %p2523_p3 = por %p33_p2, %p32_p1  ;;  %262 = sbr.rel (%p2218_p4) target bundleno = 177 (0xb1), region = 24 }
   0xc   : > { %265 = sbr.rel (!%p2523_p3) target bundleno = 48 (0x30), region = 28  ;;  %s267_s14 = sand.u32 (%p2523_p3), 1, %s2444_s28  }
   0xd   : > { %s2261_s15 = sshll.u32 (%p2523_p3), %s2448_s29, 7  ;;  %s2219_s16 = sshll.u32 (%p2523_p3), %s267_s14, 8 }
   0xe   : > { %s2535_s19 = scalar_lea.vmem (%p2523_p3), %s3558_s0, %s2261_s15  ;;  %s2540_s20 = scalar_lea.vmem (%p2523_p3), [#allocation2], %s2219_s16 }
   0xf   : > { %v363_v0 = vld [vmem:[%s2535_s19] sm:$0xff] (%p2523_p3)  ;;  %v365_v1 = vld [vmem:[%s2535_s19 + $0x8] sm:$0xff] (%p2523_p3)  ;;  %v367_v2 = vld [vmem:[%s2535_s19 + $0x10] sm:$0xff] (%p2523_p3) }
  0x10   : > { %364 = vst [vmem:[%s2540_s20] sm:$0xff] (%p2523_p3), %v363_v0  ;;  %v369_v3 = vld [vmem:[%s2535_s19 + $0x18] sm:$0xff] (%p2523_p3)  ;;  %v371_v4 = vld [vmem:[%s2535_s19 + $0x20] sm:$0xff] (%p2523_p3)  ;;  %v373_v5 = vld [vmem:[%s2535_s19 + $0x28] sm:$0xff] (%p2523_p3) }
  0x11   : > { %366 = vst [vmem:[%s2540_s20 + $0x8] sm:$0xff] %v365_v1  ;;  %v375_v6 = vld [vmem:[%s2535_s19 + $0x30] sm:$0xff]  ;;  %v377_v7 = vld [vmem:[%s2535_s19 + $0x38] sm:$0xff]  ;;  %v379_v8 = vld [vmem:[%s2535_s19 + $0x40] sm:$0xff] }
  0x12   : > { %368 = vst [vmem:[%s2540_s20 + $0x10] sm:$0xff] %v367_v2  ;;  %v381_v9 = vld [vmem:[%s2535_s19 + $0x48] sm:$0xff]  ;;  %v383_v10 = vld [vmem:[%s2535_s19 + $0x50] sm:$0xff]  ;;  %v385_v11 = vld [vmem:[%s2535_s19 + $0x58] sm:$0xff] }
  0x13   : > { %370 = vst [vmem:[%s2540_s20 + $0x18] sm:$0xff] %v369_v3  ;;  %v387_v12 = vld [vmem:[%s2535_s19 + $0x60] sm:$0xff]  ;;  %v389_v13 = vld [vmem:[%s2535_s19 + $0x68] sm:$0xff]  ;;  %v391_v14 = vld [vmem:[%s2535_s19 + $0x70] sm:$0xff] }
  0x14   : > { %372 = vst [vmem:[%s2540_s20 + $0x20] sm:$0xff] %v371_v4  ;;  %v393_v15 = vld [vmem:[%s2535_s19 + $0x78] sm:$0xff]  ;;  %v395_v16 = vld [vmem:[%s2535_s19 + $0x180] sm:$0xff]  ;;  %v397_v17 = vld [vmem:[%s2535_s19 + $0x188] sm:$0xff] }
  0x15   : > { %374 = vst [vmem:[%s2540_s20 + $0x28] sm:$0xff] %v373_v5  ;;  %v399_v18 = vld [vmem:[%s2535_s19 + $0x190] sm:$0xff]  ;;  %v401_v19 = vld [vmem:[%s2535_s19 + $0x198] sm:$0xff]  ;;  %v403_v20 = vld [vmem:[%s2535_s19 + $0x1a0] sm:$0xff] }
  0x16   : > { %376 = vst [vmem:[%s2540_s20 + $0x30] sm:$0xff] %v375_v6  ;;  %v405_v21 = vld [vmem:[%s2535_s19 + $0x1a8] sm:$0xff]  ;;  %v407_v22 = vld [vmem:[%s2535_s19 + $0x1b0] sm:$0xff]  ;;  %v409_v23 = vld [vmem:[%s2535_s19 + $0x1b8] sm:$0xff] }
  0x17   : > { %378 = vst [vmem:[%s2540_s20 + $0x38] sm:$0xff] %v377_v7  ;;  %v411_v24 = vld [vmem:[%s2535_s19 + $0x1c0] sm:$0xff]  ;;  %v413_v25 = vld [vmem:[%s2535_s19 + $0x1c8] sm:$0xff]  ;;  %v415_v26 = vld [vmem:[%s2535_s19 + $0x1d0] sm:$0xff] }
  0x18   : > { %380 = vst [vmem:[%s2540_s20 + $0x40] sm:$0xff] %v379_v8  ;;  %v417_v27 = vld [vmem:[%s2535_s19 + $0x1d8] sm:$0xff]  ;;  %v419_v28 = vld [vmem:[%s2535_s19 + $0x1e0] sm:$0xff]  ;;  %v421_v29 = vld [vmem:[%s2535_s19 + $0x1e8] sm:$0xff] }
  0x19   : > { %382 = vst [vmem:[%s2540_s20 + $0x48] sm:$0xff] %v381_v9  ;;  %v423_v30 = vld [vmem:[%s2535_s19 + $0x1f0] sm:$0xff]  ;;  %v425_v31 = vld [vmem:[%s2535_s19 + $0x1f8] sm:$0xff] }
  0x1a   : > { %384 = vst [vmem:[%s2540_s20 + $0x50] sm:$0xff] %v383_v10 }
  0x1b   : > { %386 = vst [vmem:[%s2540_s20 + $0x58] sm:$0xff] %v385_v11 }
  0x1c   : > { %388 = vst [vmem:[%s2540_s20 + $0x60] sm:$0xff] %v387_v12 }
  0x1d   : > { %390 = vst [vmem:[%s2540_s20 + $0x68] sm:$0xff] %v389_v13 }
  0x1e   : > { %392 = vst [vmem:[%s2540_s20 + $0x70] sm:$0xff] %v391_v14 }
  0x1f   : > { %394 = vst [vmem:[%s2540_s20 + $0x78] sm:$0xff] %v393_v15 }
  0x20   : > { %396 = vst [vmem:[%s2540_s20 + $0x80] sm:$0xff] %v395_v16 }
  0x21   : > { %398 = vst [vmem:[%s2540_s20 + $0x88] sm:$0xff] %v397_v17 }
  0x22   : > { %400 = vst [vmem:[%s2540_s20 + $0x90] sm:$0xff] %v399_v18 }
  0x23   : > { %402 = vst [vmem:[%s2540_s20 + $0x98] sm:$0xff] %v401_v19 }
  0x24   : > { %404 = vst [vmem:[%s2540_s20 + $0xa0] sm:$0xff] %v403_v20 }
  0x25   : > { %406 = vst [vmem:[%s2540_s20 + $0xa8] sm:$0xff] %v405_v21 }
  0x26   : > { %408 = vst [vmem:[%s2540_s20 + $0xb0] sm:$0xff] %v407_v22 }
  0x27   : > { %410 = vst [vmem:[%s2540_s20 + $0xb8] sm:$0xff] %v409_v23 }
  0x28   : > { %412 = vst [vmem:[%s2540_s20 + $0xc0] sm:$0xff] %v411_v24 }
  0x29   : > { %414 = vst [vmem:[%s2540_s20 + $0xc8] sm:$0xff] %v413_v25 }
  0x2a   : > { %416 = vst [vmem:[%s2540_s20 + $0xd0] sm:$0xff] %v415_v26 }
  0x2b   : > { %418 = vst [vmem:[%s2540_s20 + $0xd8] sm:$0xff] %v417_v27 }
  0x2c   : > { %420 = vst [vmem:[%s2540_s20 + $0xe0] sm:$0xff] %v419_v28 }
  0x2d   : > { %422 = vst [vmem:[%s2540_s20 + $0xe8] sm:$0xff] %v421_v29 }
  0x2e   : > { %424 = vst [vmem:[%s2540_s20 + $0xf0] sm:$0xff] %v423_v30 }
  0x2f   : > { %426 = vst [vmem:[%s2540_s20 + $0xf8] sm:$0xff] %v425_v31 }
  0x30 PF: > { %432 = sbr.rel (!%p2523_p3) target bundleno = 84 (0x54), region = 66  ;;  %s434_s21 = sand.u32 (%p2523_p3), 1, %s2444_s28  }
  0x31   : > { %s2262_s22 = sshll.u32 (%p2523_p3), %s2448_s29, 7  ;;  %s2222_s23 = sshll.u32 (%p2523_p3), %s434_s21, 8 }
  0x32   : > { %s2610_s26 = scalar_lea.vmem (%p2523_p3), %s3559_s1, %s2262_s22  ;;  %s2615_s10 = scalar_lea.vmem (%p2523_p3), [#allocation3], %s2222_s23 }
  0x33   : > { %v530_v32 = vld [vmem:[%s2610_s26] sm:$0xff] (%p2523_p3)  ;;  %v532_v33 = vld [vmem:[%s2610_s26 + $0x8] sm:$0xff] (%p2523_p3)  ;;  %v534_v34 = vld [vmem:[%s2610_s26 + $0x10] sm:$0xff] (%p2523_p3) }
  0x34   : > { %531 = vst [vmem:[%s2615_s10] sm:$0xff] (%p2523_p3), %v530_v32  ;;  %v536_v35 = vld [vmem:[%s2610_s26 + $0x18] sm:$0xff] (%p2523_p3)  ;;  %v538_v36 = vld [vmem:[%s2610_s26 + $0x20] sm:$0xff] (%p2523_p3)  ;;  %v540_v37 = vld [vmem:[%s2610_s26 + $0x28] sm:$0xff] (%p2523_p3) }
  0x35   : > { %533 = vst [vmem:[%s2615_s10 + $0x8] sm:$0xff] %v532_v33  ;;  %v542_v38 = vld [vmem:[%s2610_s26 + $0x30] sm:$0xff]  ;;  %v544_v39 = vld [vmem:[%s2610_s26 + $0x38] sm:$0xff]  ;;  %v546_v40 = vld [vmem:[%s2610_s26 + $0x40] sm:$0xff] }
  0x36   : > { %535 = vst [vmem:[%s2615_s10 + $0x10] sm:$0xff] %v534_v34  ;;  %v548_v41 = vld [vmem:[%s2610_s26 + $0x48] sm:$0xff]  ;;  %v550_v42 = vld [vmem:[%s2610_s26 + $0x50] sm:$0xff]  ;;  %v552_v43 = vld [vmem:[%s2610_s26 + $0x58] sm:$0xff] }
  0x37   : > { %537 = vst [vmem:[%s2615_s10 + $0x18] sm:$0xff] %v536_v35  ;;  %v554_v44 = vld [vmem:[%s2610_s26 + $0x60] sm:$0xff]  ;;  %v556_v45 = vld [vmem:[%s2610_s26 + $0x68] sm:$0xff]  ;;  %v558_v46 = vld [vmem:[%s2610_s26 + $0x70] sm:$0xff] }
  0x38   : > { %539 = vst [vmem:[%s2615_s10 + $0x20] sm:$0xff] %v538_v36  ;;  %v560_v47 = vld [vmem:[%s2610_s26 + $0x78] sm:$0xff]  ;;  %v562_v48 = vld [vmem:[%s2610_s26 + $0x180] sm:$0xff]  ;;  %v564_v49 = vld [vmem:[%s2610_s26 + $0x188] sm:$0xff] }
  0x39   : > { %541 = vst [vmem:[%s2615_s10 + $0x28] sm:$0xff] %v540_v37  ;;  %v566_v50 = vld [vmem:[%s2610_s26 + $0x190] sm:$0xff]  ;;  %v568_v51 = vld [vmem:[%s2610_s26 + $0x198] sm:$0xff]  ;;  %v570_v52 = vld [vmem:[%s2610_s26 + $0x1a0] sm:$0xff] }
  0x3a   : > { %543 = vst [vmem:[%s2615_s10 + $0x30] sm:$0xff] %v542_v38  ;;  %v572_v53 = vld [vmem:[%s2610_s26 + $0x1a8] sm:$0xff]  ;;  %v574_v54 = vld [vmem:[%s2610_s26 + $0x1b0] sm:$0xff]  ;;  %v576_v55 = vld [vmem:[%s2610_s26 + $0x1b8] sm:$0xff] }
  0x3b   : > { %545 = vst [vmem:[%s2615_s10 + $0x38] sm:$0xff] %v544_v39  ;;  %v578_v56 = vld [vmem:[%s2610_s26 + $0x1c0] sm:$0xff]  ;;  %v580_v57 = vld [vmem:[%s2610_s26 + $0x1c8] sm:$0xff]  ;;  %v582_v58 = vld [vmem:[%s2610_s26 + $0x1d0] sm:$0xff] }
  0x3c   : > { %547 = vst [vmem:[%s2615_s10 + $0x40] sm:$0xff] %v546_v40  ;;  %v584_v59 = vld [vmem:[%s2610_s26 + $0x1d8] sm:$0xff]  ;;  %v586_v60 = vld [vmem:[%s2610_s26 + $0x1e0] sm:$0xff]  ;;  %v588_v61 = vld [vmem:[%s2610_s26 + $0x1e8] sm:$0xff] }
  0x3d   : > { %549 = vst [vmem:[%s2615_s10 + $0x48] sm:$0xff] %v548_v41  ;;  %v590_v62 = vld [vmem:[%s2610_s26 + $0x1f0] sm:$0xff]  ;;  %v592_v63 = vld [vmem:[%s2610_s26 + $0x1f8] sm:$0xff] }
  0x3e   : > { %551 = vst [vmem:[%s2615_s10 + $0x50] sm:$0xff] %v550_v42 }
  0x3f   : > { %553 = vst [vmem:[%s2615_s10 + $0x58] sm:$0xff] %v552_v43 }
  0x40   : > { %555 = vst [vmem:[%s2615_s10 + $0x60] sm:$0xff] %v554_v44 }
  0x41   : > { %557 = vst [vmem:[%s2615_s10 + $0x68] sm:$0xff] %v556_v45 }
  0x42   : > { %559 = vst [vmem:[%s2615_s10 + $0x70] sm:$0xff] %v558_v46 }
  0x43   : > { %561 = vst [vmem:[%s2615_s10 + $0x78] sm:$0xff] %v560_v47 }
  0x44   : > { %563 = vst [vmem:[%s2615_s10 + $0x80] sm:$0xff] %v562_v48 }
  0x45   : > { %565 = vst [vmem:[%s2615_s10 + $0x88] sm:$0xff] %v564_v49 }
  0x46   : > { %567 = vst [vmem:[%s2615_s10 + $0x90] sm:$0xff] %v566_v50 }
  0x47   : > { %569 = vst [vmem:[%s2615_s10 + $0x98] sm:$0xff] %v568_v51 }
  0x48   : > { %571 = vst [vmem:[%s2615_s10 + $0xa0] sm:$0xff] %v570_v52 }
  0x49   : > { %573 = vst [vmem:[%s2615_s10 + $0xa8] sm:$0xff] %v572_v53 }
  0x4a   : > { %575 = vst [vmem:[%s2615_s10 + $0xb0] sm:$0xff] %v574_v54 }
  0x4b   : > { %577 = vst [vmem:[%s2615_s10 + $0xb8] sm:$0xff] %v576_v55 }
  0x4c   : > { %579 = vst [vmem:[%s2615_s10 + $0xc0] sm:$0xff] %v578_v56 }
  0x4d   : > { %581 = vst [vmem:[%s2615_s10 + $0xc8] sm:$0xff] %v580_v57 }
  0x4e   : > { %583 = vst [vmem:[%s2615_s10 + $0xd0] sm:$0xff] %v582_v58 }
  0x4f   : > { %585 = vst [vmem:[%s2615_s10 + $0xd8] sm:$0xff] %v584_v59 }
  0x50   : > { %587 = vst [vmem:[%s2615_s10 + $0xe0] sm:$0xff] %v586_v60 }
  0x51   : > { %589 = vst [vmem:[%s2615_s10 + $0xe8] sm:$0xff] %v588_v61 }
  0x52   : > { %591 = vst [vmem:[%s2615_s10 + $0xf0] sm:$0xff] %v590_v62 }
  0x53   : > { %593 = vst [vmem:[%s2615_s10 + $0xf8] sm:$0xff] %v592_v63 }
  0x54 PF: > { %599 = sbr.rel (!%p2523_p3) target bundleno = 120 (0x78), region = 104  ;;  %s601_s11 = sand.u32 (%p2523_p3), 1, %s2444_s28  }
  0x55   : > { %s2263_s14 = sshll.u32 (%p2523_p3), %s2448_s29, 7  ;;  %s2225_s15 = sshll.u32 (%p2523_p3), %s601_s11, 8 }
  0x56   : > { %s2685_s18 = scalar_lea.vmem (%p2523_p3), %s3560_s2, %s2263_s14  ;;  %s2690_s19 = scalar_lea.vmem (%p2523_p3), [#allocation4], %s2225_s15 }
  0x57   : > { %v697_v0 = vld [vmem:[%s2685_s18] sm:$0xff] (%p2523_p3)  ;;  %v699_v1 = vld [vmem:[%s2685_s18 + $0x8] sm:$0xff] (%p2523_p3)  ;;  %v701_v2 = vld [vmem:[%s2685_s18 + $0x10] sm:$0xff] (%p2523_p3) }
  0x58   : > { %698 = vst [vmem:[%s2690_s19] sm:$0xff] (%p2523_p3), %v697_v0  ;;  %v703_v3 = vld [vmem:[%s2685_s18 + $0x18] sm:$0xff] (%p2523_p3)  ;;  %v705_v4 = vld [vmem:[%s2685_s18 + $0x20] sm:$0xff] (%p2523_p3)  ;;  %v707_v5 = vld [vmem:[%s2685_s18 + $0x28] sm:$0xff] (%p2523_p3) }
  0x59   : > { %700 = vst [vmem:[%s2690_s19 + $0x8] sm:$0xff] %v699_v1  ;;  %v709_v6 = vld [vmem:[%s2685_s18 + $0x30] sm:$0xff]  ;;  %v711_v7 = vld [vmem:[%s2685_s18 + $0x38] sm:$0xff]  ;;  %v713_v8 = vld [vmem:[%s2685_s18 + $0x40] sm:$0xff] }
  0x5a   : > { %702 = vst [vmem:[%s2690_s19 + $0x10] sm:$0xff] %v701_v2  ;;  %v715_v9 = vld [vmem:[%s2685_s18 + $0x48] sm:$0xff]  ;;  %v717_v10 = vld [vmem:[%s2685_s18 + $0x50] sm:$0xff]  ;;  %v719_v11 = vld [vmem:[%s2685_s18 + $0x58] sm:$0xff] }
  0x5b   : > { %704 = vst [vmem:[%s2690_s19 + $0x18] sm:$0xff] %v703_v3  ;;  %v721_v12 = vld [vmem:[%s2685_s18 + $0x60] sm:$0xff]  ;;  %v723_v13 = vld [vmem:[%s2685_s18 + $0x68] sm:$0xff]  ;;  %v725_v14 = vld [vmem:[%s2685_s18 + $0x70] sm:$0xff] }
  0x5c   : > { %706 = vst [vmem:[%s2690_s19 + $0x20] sm:$0xff] %v705_v4  ;;  %v727_v15 = vld [vmem:[%s2685_s18 + $0x78] sm:$0xff]  ;;  %v729_v16 = vld [vmem:[%s2685_s18 + $0x180] sm:$0xff]  ;;  %v731_v17 = vld [vmem:[%s2685_s18 + $0x188] sm:$0xff] }
  0x5d   : > { %708 = vst [vmem:[%s2690_s19 + $0x28] sm:$0xff] %v707_v5  ;;  %v733_v18 = vld [vmem:[%s2685_s18 + $0x190] sm:$0xff]  ;;  %v735_v19 = vld [vmem:[%s2685_s18 + $0x198] sm:$0xff]  ;;  %v737_v20 = vld [vmem:[%s2685_s18 + $0x1a0] sm:$0xff] }
  0x5e   : > { %710 = vst [vmem:[%s2690_s19 + $0x30] sm:$0xff] %v709_v6  ;;  %v739_v21 = vld [vmem:[%s2685_s18 + $0x1a8] sm:$0xff]  ;;  %v741_v22 = vld [vmem:[%s2685_s18 + $0x1b0] sm:$0xff]  ;;  %v743_v23 = vld [vmem:[%s2685_s18 + $0x1b8] sm:$0xff] }
  0x5f   : > { %712 = vst [vmem:[%s2690_s19 + $0x38] sm:$0xff] %v711_v7  ;;  %v745_v24 = vld [vmem:[%s2685_s18 + $0x1c0] sm:$0xff]  ;;  %v747_v25 = vld [vmem:[%s2685_s18 + $0x1c8] sm:$0xff]  ;;  %v749_v26 = vld [vmem:[%s2685_s18 + $0x1d0] sm:$0xff] }
  0x60   : > { %714 = vst [vmem:[%s2690_s19 + $0x40] sm:$0xff] %v713_v8  ;;  %v751_v27 = vld [vmem:[%s2685_s18 + $0x1d8] sm:$0xff]  ;;  %v753_v28 = vld [vmem:[%s2685_s18 + $0x1e0] sm:$0xff]  ;;  %v755_v29 = vld [vmem:[%s2685_s18 + $0x1e8] sm:$0xff] }
  0x61   : > { %716 = vst [vmem:[%s2690_s19 + $0x48] sm:$0xff] %v715_v9  ;;  %v757_v30 = vld [vmem:[%s2685_s18 + $0x1f0] sm:$0xff]  ;;  %v759_v31 = vld [vmem:[%s2685_s18 + $0x1f8] sm:$0xff] }
  0x62   : > { %718 = vst [vmem:[%s2690_s19 + $0x50] sm:$0xff] %v717_v10 }
  0x63   : > { %720 = vst [vmem:[%s2690_s19 + $0x58] sm:$0xff] %v719_v11 }
  0x64   : > { %722 = vst [vmem:[%s2690_s19 + $0x60] sm:$0xff] %v721_v12 }
  0x65   : > { %724 = vst [vmem:[%s2690_s19 + $0x68] sm:$0xff] %v723_v13 }
  0x66   : > { %726 = vst [vmem:[%s2690_s19 + $0x70] sm:$0xff] %v725_v14 }
  0x67   : > { %728 = vst [vmem:[%s2690_s19 + $0x78] sm:$0xff] %v727_v15 }
  0x68   : > { %730 = vst [vmem:[%s2690_s19 + $0x80] sm:$0xff] %v729_v16 }
  0x69   : > { %732 = vst [vmem:[%s2690_s19 + $0x88] sm:$0xff] %v731_v17 }
  0x6a   : > { %734 = vst [vmem:[%s2690_s19 + $0x90] sm:$0xff] %v733_v18 }
  0x6b   : > { %736 = vst [vmem:[%s2690_s19 + $0x98] sm:$0xff] %v735_v19 }
  0x6c   : > { %738 = vst [vmem:[%s2690_s19 + $0xa0] sm:$0xff] %v737_v20 }
  0x6d   : > { %740 = vst [vmem:[%s2690_s19 + $0xa8] sm:$0xff] %v739_v21 }
  0x6e   : > { %742 = vst [vmem:[%s2690_s19 + $0xb0] sm:$0xff] %v741_v22 }
  0x6f   : > { %744 = vst [vmem:[%s2690_s19 + $0xb8] sm:$0xff] %v743_v23 }
  0x70   : > { %746 = vst [vmem:[%s2690_s19 + $0xc0] sm:$0xff] %v745_v24 }
  0x71   : > { %748 = vst [vmem:[%s2690_s19 + $0xc8] sm:$0xff] %v747_v25 }
  0x72   : > { %750 = vst [vmem:[%s2690_s19 + $0xd0] sm:$0xff] %v749_v26 }
  0x73   : > { %752 = vst [vmem:[%s2690_s19 + $0xd8] sm:$0xff] %v751_v27 }
  0x74   : > { %754 = vst [vmem:[%s2690_s19 + $0xe0] sm:$0xff] %v753_v28 }
  0x75   : > { %756 = vst [vmem:[%s2690_s19 + $0xe8] sm:$0xff] %v755_v29 }
  0x76   : > { %758 = vst [vmem:[%s2690_s19 + $0xf0] sm:$0xff] %v757_v30 }
  0x77   : > { %760 = vst [vmem:[%s2690_s19 + $0xf8] sm:$0xff] %v759_v31 }
  0x78 PF: > { %766 = sbr.rel (!%p2523_p3) target bundleno = 156 (0x9c), region = 142  ;;  %s768_s20 = sand.u32 (%p2523_p3), 1, %s2444_s28  }
  0x79   : > { %s2264_s21 = sshll.u32 (%p2523_p3), %s2448_s29, 7  ;;  %s2228_s22 = sshll.u32 (%p2523_p3), %s768_s20, 8 }
  0x7a   : > { %s2760_s25 = scalar_lea.vmem (%p2523_p3), %s3561_s3, %s2264_s21  ;;  %s2765_s26 = scalar_lea.vmem (%p2523_p3), [#allocation5], %s2228_s22 }
  0x7b   : > { %v864_v32 = vld [vmem:[%s2760_s25] sm:$0xff] (%p2523_p3)  ;;  %v866_v33 = vld [vmem:[%s2760_s25 + $0x8] sm:$0xff] (%p2523_p3)  ;;  %v868_v34 = vld [vmem:[%s2760_s25 + $0x10] sm:$0xff] (%p2523_p3) }
  0x7c   : > { %865 = vst [vmem:[%s2765_s26] sm:$0xff] (%p2523_p3), %v864_v32  ;;  %v870_v35 = vld [vmem:[%s2760_s25 + $0x18] sm:$0xff] (%p2523_p3)  ;;  %v872_v36 = vld [vmem:[%s2760_s25 + $0x20] sm:$0xff] (%p2523_p3)  ;;  %v874_v37 = vld [vmem:[%s2760_s25 + $0x28] sm:$0xff] (%p2523_p3) }
  0x7d   : > { %867 = vst [vmem:[%s2765_s26 + $0x8] sm:$0xff] %v866_v33  ;;  %v876_v38 = vld [vmem:[%s2760_s25 + $0x30] sm:$0xff]  ;;  %v878_v39 = vld [vmem:[%s2760_s25 + $0x38] sm:$0xff]  ;;  %v880_v40 = vld [vmem:[%s2760_s25 + $0x40] sm:$0xff] }
  0x7e   : > { %869 = vst [vmem:[%s2765_s26 + $0x10] sm:$0xff] %v868_v34  ;;  %v882_v41 = vld [vmem:[%s2760_s25 + $0x48] sm:$0xff]  ;;  %v884_v42 = vld [vmem:[%s2760_s25 + $0x50] sm:$0xff]  ;;  %v886_v43 = vld [vmem:[%s2760_s25 + $0x58] sm:$0xff] }
  0x7f   : > { %871 = vst [vmem:[%s2765_s26 + $0x18] sm:$0xff] %v870_v35  ;;  %v888_v44 = vld [vmem:[%s2760_s25 + $0x60] sm:$0xff]  ;;  %v890_v45 = vld [vmem:[%s2760_s25 + $0x68] sm:$0xff]  ;;  %v892_v46 = vld [vmem:[%s2760_s25 + $0x70] sm:$0xff] }
  0x80   : > { %873 = vst [vmem:[%s2765_s26 + $0x20] sm:$0xff] %v872_v36  ;;  %v894_v47 = vld [vmem:[%s2760_s25 + $0x78] sm:$0xff]  ;;  %v896_v48 = vld [vmem:[%s2760_s25 + $0x180] sm:$0xff]  ;;  %v898_v49 = vld [vmem:[%s2760_s25 + $0x188] sm:$0xff] }
  0x81   : > { %875 = vst [vmem:[%s2765_s26 + $0x28] sm:$0xff] %v874_v37  ;;  %v900_v50 = vld [vmem:[%s2760_s25 + $0x190] sm:$0xff]  ;;  %v902_v51 = vld [vmem:[%s2760_s25 + $0x198] sm:$0xff]  ;;  %v904_v52 = vld [vmem:[%s2760_s25 + $0x1a0] sm:$0xff] }
  0x82   : > { %877 = vst [vmem:[%s2765_s26 + $0x30] sm:$0xff] %v876_v38  ;;  %v906_v53 = vld [vmem:[%s2760_s25 + $0x1a8] sm:$0xff]  ;;  %v908_v54 = vld [vmem:[%s2760_s25 + $0x1b0] sm:$0xff]  ;;  %v910_v55 = vld [vmem:[%s2760_s25 + $0x1b8] sm:$0xff] }
  0x83   : > { %879 = vst [vmem:[%s2765_s26 + $0x38] sm:$0xff] %v878_v39  ;;  %v912_v56 = vld [vmem:[%s2760_s25 + $0x1c0] sm:$0xff]  ;;  %v914_v57 = vld [vmem:[%s2760_s25 + $0x1c8] sm:$0xff]  ;;  %v916_v58 = vld [vmem:[%s2760_s25 + $0x1d0] sm:$0xff] }
  0x84   : > { %881 = vst [vmem:[%s2765_s26 + $0x40] sm:$0xff] %v880_v40  ;;  %v918_v59 = vld [vmem:[%s2760_s25 + $0x1d8] sm:$0xff]  ;;  %v920_v60 = vld [vmem:[%s2760_s25 + $0x1e0] sm:$0xff]  ;;  %v922_v61 = vld [vmem:[%s2760_s25 + $0x1e8] sm:$0xff] }
  0x85   : > { %883 = vst [vmem:[%s2765_s26 + $0x48] sm:$0xff] %v882_v41  ;;  %v924_v62 = vld [vmem:[%s2760_s25 + $0x1f0] sm:$0xff]  ;;  %v926_v63 = vld [vmem:[%s2760_s25 + $0x1f8] sm:$0xff] }
  0x86   : > { %885 = vst [vmem:[%s2765_s26 + $0x50] sm:$0xff] %v884_v42 }
  0x87   : > { %887 = vst [vmem:[%s2765_s26 + $0x58] sm:$0xff] %v886_v43 }
  0x88   : > { %889 = vst [vmem:[%s2765_s26 + $0x60] sm:$0xff] %v888_v44 }
  0x89   : > { %891 = vst [vmem:[%s2765_s26 + $0x68] sm:$0xff] %v890_v45 }
  0x8a   : > { %893 = vst [vmem:[%s2765_s26 + $0x70] sm:$0xff] %v892_v46 }
  0x8b   : > { %895 = vst [vmem:[%s2765_s26 + $0x78] sm:$0xff] %v894_v47 }
  0x8c   : > { %897 = vst [vmem:[%s2765_s26 + $0x80] sm:$0xff] %v896_v48 }
  0x8d   : > { %899 = vst [vmem:[%s2765_s26 + $0x88] sm:$0xff] %v898_v49 }
  0x8e   : > { %901 = vst [vmem:[%s2765_s26 + $0x90] sm:$0xff] %v900_v50 }
  0x8f   : > { %903 = vst [vmem:[%s2765_s26 + $0x98] sm:$0xff] %v902_v51 }
  0x90   : > { %905 = vst [vmem:[%s2765_s26 + $0xa0] sm:$0xff] %v904_v52 }
  0x91   : > { %907 = vst [vmem:[%s2765_s26 + $0xa8] sm:$0xff] %v906_v53 }
  0x92   : > { %909 = vst [vmem:[%s2765_s26 + $0xb0] sm:$0xff] %v908_v54 }
  0x93   : > { %911 = vst [vmem:[%s2765_s26 + $0xb8] sm:$0xff] %v910_v55 }
  0x94   : > { %913 = vst [vmem:[%s2765_s26 + $0xc0] sm:$0xff] %v912_v56 }
  0x95   : > { %915 = vst [vmem:[%s2765_s26 + $0xc8] sm:$0xff] %v914_v57 }
  0x96   : > { %917 = vst [vmem:[%s2765_s26 + $0xd0] sm:$0xff] %v916_v58 }
  0x97   : > { %919 = vst [vmem:[%s2765_s26 + $0xd8] sm:$0xff] %v918_v59 }
  0x98   : > { %921 = vst [vmem:[%s2765_s26 + $0xe0] sm:$0xff] %v920_v60 }
  0x99   : > { %923 = vst [vmem:[%s2765_s26 + $0xe8] sm:$0xff] %v922_v61 }
  0x9a   : > { %925 = vst [vmem:[%s2765_s26 + $0xf0] sm:$0xff] %v924_v62 }
  0x9b   : > { %927 = vst [vmem:[%s2765_s26 + $0xf8] sm:$0xff] %v926_v63 }
  0x9c PF: > { %933 = sbr.rel (!%p2523_p3) target bundleno = 177 (0xb1), region = 180  ;;  %s935_s10 = sand.u32 (%p2523_p3), 1, %s2444_s28  }
  0x9d   : > { %s2232_s11 = smul.u32 (%p2523_p3), 320, %s2448_s29  ;;  %s2231_s14 = sshll.u32 (%p2523_p3), %s935_s10, 6 }
  0x9e   : > { %s937_s13 = scalar_lea.vmem (%p2523_p3), [#allocation6], %s2231_s14 }
  0x9f   : > { %s2835_s17 = scalar_lea.vmem (%p2523_p3), %s3562_s4, %s2232_s11 }
  0xa0   : > { %v2233_v0 = vld [vmem:[%s2835_s17 + $0x10] sm:$0xf] (%p2523_p3)  ;;  %v2234_v1 = vld [vmem:[%s2835_s17 + $0x24] sm:$0xf] (%p2523_p3)  ;;  %v2235_v2 = vld [vmem:[%s2835_s17 + $0x38] sm:$0xf] (%p2523_p3) }
  0xa1   : > { %960 = vst [vmem:[%s937_s13] sm:$0xf] %v2233_v0  ;;  %v2236_v3 = vld [vmem:[%s2835_s17 + $0x4c] sm:$0xf]  ;;  %v2237_v4 = vld [vmem:[%s2835_s17 + $0x60] sm:$0xf] }
  0xa2   : > { %962 = vst [vmem:[%s937_s13 + $0x4] sm:$0xf] %v2234_v1  ;;  %v2238_v5 = vld [vmem:[%s2835_s17 + $0x74] sm:$0xf]  ;;  %v2239_v6 = vld [vmem:[%s2835_s17 + $0x88] sm:$0xf] }
  0xa3   : > { %964 = vst [vmem:[%s937_s13 + $0x8] sm:$0xf] %v2235_v2  ;;  %v2240_v7 = vld [vmem:[%s2835_s17 + $0x9c] sm:$0xf]  ;;  %v2241_v8 = vld [vmem:[%s2835_s17 + $0xb0] sm:$0xf] }
  0xa4   : > { %966 = vst [vmem:[%s937_s13 + $0xc] sm:$0xf] %v2236_v3  ;;  %v2242_v9 = vld [vmem:[%s2835_s17 + $0xc4] sm:$0xf]  ;;  %v2243_v10 = vld [vmem:[%s2835_s17 + $0xd8] sm:$0xf] }
  0xa5   : > { %968 = vst [vmem:[%s937_s13 + $0x10] sm:$0xf] %v2237_v4  ;;  %v2244_v11 = vld [vmem:[%s2835_s17 + $0xec] sm:$0xf]  ;;  %v2245_v12 = vld [vmem:[%s2835_s17 + $0x100] sm:$0xf] }
  0xa6   : > { %970 = vst [vmem:[%s937_s13 + $0x14] sm:$0xf] %v2238_v5  ;;  %v2246_v13 = vld [vmem:[%s2835_s17 + $0x114] sm:$0xf]  ;;  %v2247_v14 = vld [vmem:[%s2835_s17 + $0x128] sm:$0xf] }
  0xa7   : > { %972 = vst [vmem:[%s937_s13 + $0x18] sm:$0xf] %v2239_v6  ;;  %v2248_v15 = vld [vmem:[%s2835_s17 + $0x13c] sm:$0xf] }
  0xa8   : > { %974 = vst [vmem:[%s937_s13 + $0x1c] sm:$0xf] %v2240_v7 }
  0xa9   : > { %976 = vst [vmem:[%s937_s13 + $0x20] sm:$0xf] %v2241_v8 }
  0xaa   : > { %978 = vst [vmem:[%s937_s13 + $0x24] sm:$0xf] %v2242_v9 }
  0xab   : > { %980 = vst [vmem:[%s937_s13 + $0x28] sm:$0xf] %v2243_v10 }
  0xac   : > { %982 = vst [vmem:[%s937_s13 + $0x2c] sm:$0xf] %v2244_v11 }
  0xad   : > { %984 = vst [vmem:[%s937_s13 + $0x30] sm:$0xf] %v2245_v12 }
  0xae   : > { %986 = vst [vmem:[%s937_s13 + $0x34] sm:$0xf] %v2246_v13 }
  0xaf   : > { %988 = vst [vmem:[%s937_s13 + $0x38] sm:$0xf] %v2247_v14 }
  0xb0   : > { %990 = vst [vmem:[%s937_s13 + $0x3c] sm:$0xf] %v2248_v15 }
  0xb1 PF: > { %p2249_p5 = scmp.ge.s32.totalorder %s2448_s29, 1  ;;  %p1054_p6 = scmp.lt.s32.totalorder %s2448_s29, 4 }
  0xb3   : > { %p1055_p7 = pnand %p2249_p5, %p1054_p6 }
  0xb4   : > { %s1061_s18 = sand.u32 (!%p1055_p7), 1, %s2440_s27   ;;  %s2255_s25 = sshll.u32 (!%p1055_p7), %s2215_s30, 4 }
  0xb5   : > { %1058 = sbr.rel (%p1055_p7) target bundleno = 555 (0x22b), region = 225  ;;  %s2250_s19 = sshll.u32 (!%p1055_p7), %s1061_s18, 8 }
  0xb6   : > { %s2254_s20 = sshll.u32 (!%p1055_p7), %s1061_s18, 6  ;;  %s2856_s21 = scalar_lea.vmem (!%p1055_p7), [#allocation3], %s2250_s19 }
  0xb7   : > { %s2860_s22 = scalar_lea.vmem (!%p1055_p7), [#allocation5], %s2250_s19  ;;  %s2864_s23 = scalar_lea.vmem (!%p1055_p7), [#allocation2], %s2250_s19 }
  0xb8   : > { %s2868_s27 = scalar_lea.vmem (!%p1055_p7), [#allocation4], %s2250_s19  ;;  %s2873_s24 = scalar_lea.vmem (!%p1055_p7), [#allocation6], %s2254_s20 }
  0xb9   : > { %p1149_p8 = scmp.lt.s32.totalorder (!%p1055_p7), %s2255_s25, 47 }
  0xba   : > { %v1212_v16 = vld [vmem:[%s2856_s21 + $0x20] sm:$0xff]  ;;  %v1608_v25 = vlaneseq  ;;  %v1210_v26 = vld [vmem:[%s2856_s21 + $0x10] sm:$0xff]  ;;  %v2886_v40 = vld [vmem:[%s2873_s24 + $0x8] sm:$0xff]  }
  0xbb   : > { %v1228_v17 = vld [vmem:[%s2856_s21 + $0xa0] sm:$0xff]  ;;  %v2876_v29 = vld [vmem:[%s2873_s24 + $0x10] sm:$0xff]   ;;  %v1213_v58 = vld [vmem:[%s2856_s21 + $0x28] sm:$0xff]  ;;  %v2271_v2 = vunpack.c.l.bf16 %v2886_v40  ;;  %v2272_v8 = vunpack.c.h.bf16 %v2886_v40  ;;  %s3574_s25 = smov (!%p1149_p8, %s2255_s25), 47 }
  0xbc   : > { %v1244_v18 = vadd.f32 %v1228_v17, %v1212_v16  ;;  %v1308_v19 = vld [vmem:[%s2860_s22 + $0x20] sm:$0xff]  ;;  %v1226_v30 = vld [vmem:[%s2856_s21 + $0x90] sm:$0xff]  ;;  %v2889_v42 = vand.u32 127, %v1608_v25  ;;  %v2275_v54 = vunpack.c.l.bf16 %v2876_v29  ;;  %v2276_v59 = vunpack.c.h.bf16 %v2876_v29  ;;  %v1165_v63 = vld [vmem:[%s2864_s23 + $0x28] sm:$0xff]  ;;  %s2256_s29 = sshll.u32 %s3574_s25, 3 }
  0xbd   : > { %v1324_v20 = vld [vmem:[%s2860_s22 + $0xa0] sm:$0xff]  ;;  %v1162_v32 = vld [vmem:[%s2864_s23 + $0x10] sm:$0xff]  ;;  %v1242_v34 = vadd.f32 %v1226_v30, %v1210_v26  ;;  %v1181_v0 = vld [vmem:[%s2864_s23 + $0xa8] sm:$0xff]  ;;  %s3331_s16 = scalar_lea.vmem %s3563_s5, %s2256_s29  ;;  %s3390_s18 = scalar_lea.vmem %s3566_s8, %s2256_s29 }
  0xbe   : > { %v1164_v21 = vld [vmem:[%s2864_s23 + $0x20] sm:$0xff]  ;;  %v1340_v24 = vadd.f32 %v1324_v20, %v1308_v19  ;;  %v1356_v28 = vadd.f32 1e-06, %v1244_v18  ;;  %v1178_v33 = vld [vmem:[%s2864_s23 + $0x90] sm:$0xff]  ;;  %v1229_v1 = vld [vmem:[%s2856_s21 + $0xa8] sm:$0xff]  ;;  %vm1610_vm0 = vcmp.lt.s32.totalorder %v2889_v42, 64 }
  0xbf   : > { %v1180_v22 = vld [vmem:[%s2864_s23 + $0xa0] sm:$0xff]  ;;  %v1258_v35 = vld [vmem:[%s2868_s27 + $0x10] sm:$0xff]  ;;  %v2891_v43 = vadd.f32 1e-06, %v1242_v34  ;;  %v2911_v60 = vadd.f32 %v1178_v33, %v1162_v32  ;;  %v1245_v4 = vadd.f32 %v1229_v1, %v1213_v58  ;;  %v1261_v5 = vld [vmem:[%s2868_s27 + $0x28] sm:$0xff] }
  0xc0   : > { %v1260_v23 = vld [vmem:[%s2868_s27 + $0x20] sm:$0xff]  ;;  %v1452_v31 = vadd.f32 1e-06, %v1340_v24  ;;  %v1306_v36 = vld [vmem:[%s2860_s22 + $0x10] sm:$0xff]  ;;  %2330 = vrcp.f32 %v1356_v28  ;;  %v2896_v47 = vadd.f32 %v1180_v22, %v1164_v21  ;;  %v1309_v6 = vld [vmem:[%s2860_s22 + $0x28] sm:$0xff]  ;;  %v2933_v22 = vadd.f32 %v1181_v0, %v1165_v63 }
  0xc1   : > { %v1276_v27 = vld [vmem:[%s2868_s27 + $0xa0] sm:$0xff]  ;;  %v1322_v37 = vld [vmem:[%s2860_s22 + $0x90] sm:$0xff]  ;;  %v1325_v7 = vld [vmem:[%s2860_s22 + $0xa8] sm:$0xff]  ;;  %v1357_v19 = vadd.f32 1e-06, %v1245_v4 }
  0xc2   : > { %v1274_v38 = vld [vmem:[%s2868_s27 + $0x90] sm:$0xff]  ;;  %v1338_v39 = vadd.f32 %v1322_v37, %v1306_v36  ;;  %v1208_v41 = vld [vmem:[%s2856_s21] sm:$0xff]  ;;  %2332 = vrcp.f32 %v1452_v31  ;;  %v2898_v48 = vadd.f32 %v1276_v27, %v1260_v23  ;;  %v1277_v12 = vld [vmem:[%s2868_s27 + $0xa8] sm:$0xff]  ;;  %v1341_v13 = vadd.f32 %v1325_v7, %v1309_v6 }
  0xc3   : > { %v1160_v44 = vld [vmem:[%s2864_s23] sm:$0xff]  ;;  %2334 = vrcp.f32 %v2891_v43  ;;  %v2913_v61 = vadd.f32 %v1274_v38, %v1258_v35  ;;  %v1211_v14 = vld [vmem:[%s2856_s21 + $0x18] sm:$0xff]  ;;  %v1209_v34 = vld [vmem:[%s2856_s21 + $0x8] sm:$0xff] }
  0xc4   : > { %v1176_v45 = vld [vmem:[%s2864_s23 + $0x80] sm:$0xff]  ;;  %v1450_v49 = vadd.f32 1e-06, %v1338_v39  ;;  %v1227_v15 = vld [vmem:[%s2856_s21 + $0x98] sm:$0xff]  ;;  %v1453_v23 = vadd.f32 1e-06, %v1341_v13 }
  0xc5   : > { %v1224_v46 = vld [vmem:[%s2856_s21 + $0x80] sm:$0xff]  ;;  %v2923_v10 = vadd.f32 %v1176_v45, %v1160_v44  ;;  %v1307_v20 = vld [vmem:[%s2860_s22 + $0x18] sm:$0xff]  ;;  %v1243_v25 = vadd.f32 %v1227_v15, %v1211_v14  ;;  %v1225_v35 = vld [vmem:[%s2856_s21 + $0x88] sm:$0xff] }
  0xc6   : > { %v1240_v50 = vadd.f32 %v1224_v46, %v1208_v41  ;;  %v1256_v51 = vld [vmem:[%s2868_s27] sm:$0xff]  ;;  %2336 = vrcp.f32 %v1450_v49  ;;  %v2331_v9 = vpop.eup %2330  ;;  %v1163_v24 = vld [vmem:[%s2864_s23 + $0x18] sm:$0xff]  ;;  %v1241_v45 = vadd.f32 %v1225_v35, %v1209_v34  ;;  %v1305_v46 = vld [vmem:[%s2860_s22 + $0x8] sm:$0xff] }
  0xc7   : > { %v1304_v52 = vld [vmem:[%s2860_s22] sm:$0xff]  ;;  %v1388_v17 = vmul.f32 %v2331_v9, %v1356_v28  ;;  %v1323_v26 = vld [vmem:[%s2860_s22 + $0x98] sm:$0xff]  ;;  %v2937_v28 = vadd.f32 %v1277_v12, %v1261_v5  ;;  %v1355_v38 = vadd.f32 1e-06, %v1243_v25  ;;  %v1214_v29 = vld [vmem:[%s2856_s21 + $0x30] sm:$0xff] }
  0xc8   : > { %v1320_v53 = vld [vmem:[%s2860_s22 + $0x80] sm:$0xff]  ;;  %v1352_v62 = vadd.f32 1e-06, %v1240_v50  ;;  %v2333_v16 = vpop.eup %2332  ;;  %v1179_v32 = vld [vmem:[%s2864_s23 + $0x98] sm:$0xff]  ;;  %v1339_v33 = vadd.f32 %v1323_v26, %v1307_v20  ;;  %v1321_v50 = vld [vmem:[%s2860_s22 + $0x88] sm:$0xff] }
  0xc9   : > { %v1272_v55 = vld [vmem:[%s2868_s27 + $0x80] sm:$0xff]  ;;  %v1336_v56 = vadd.f32 %v1320_v53, %v1304_v52  ;;  %v1484_v21 = vmul.f32 %v2333_v16, %v1452_v31  ;;  %v2335_v27 = vpop.eup %2334  ;;  %v1404_v30 = vsub.f32 2.0, %v1388_v17  ;;  %v1337_v4 = vadd.f32 %v1321_v50, %v1305_v46  ;;  %v1275_v26 = vld [vmem:[%s2868_s27 + $0x98] sm:$0xff] }
  0xca   : > { %v2907_v57 = vld [vmem:[%s2873_s24] sm:$0xff]   ;;  %v2925_v11 = vadd.f32 %v1272_v55, %v1256_v51  ;;  %2338 = vrcp.f32 %v1352_v62  ;;  %v1386_v37 = vmul.f32 %v2335_v27, %v2891_v43  ;;  %v1451_v44 = vadd.f32 1e-06, %v1339_v33 }
  0xcb   : > { %v1448_v3 = vadd.f32 1e-06, %v1336_v56  ;;  %v2267_v18 = vunpack.c.l.bf16 %v2907_v57  ;;  %v1500_v36 = vsub.f32 2.0, %v1484_v21  ;;  %v1420_v39 = vmul.f32 %v2331_v9, %v1404_v30  ;;  %v1216_v34 = vld [vmem:[%s2856_s21 + $0x40] sm:$0xff] }
  0xcc   : > { %v2337_v31 = vpop.eup %2336  ;;  %v1402_v53 = vsub.f32 2.0, %v1386_v37  ;;  %v2945_v55 = vadd.f32 %v1179_v32, %v1163_v24  ;;  %v1353_v12 = vadd.f32 1e-06, %v1241_v45  ;;  %v1232_v35 = vld [vmem:[%s2856_s21 + $0xc0] sm:$0xff] }
  0xcd   : > { %2340 = vrcp.f32 %v1448_v3  ;;  %v1482_v41 = vmul.f32 %v2337_v31, %v1450_v49  ;;  %v1516_v52 = vmul.f32 %v2333_v16, %v1500_v36  ;;  %v1436_v58 = vmul.f32 %v1420_v39, %v2896_v47  ;;  %v1312_v37 = vld [vmem:[%s2860_s22 + $0x40] sm:$0xff] }
  0xce   : > { %2342 = vrcp.f32 %v1357_v19  ;;  %v1418_v1 = vmul.f32 %v2335_v27, %v1402_v53  ;;  %v1248_v50 = vadd.f32 %v1232_v35, %v1216_v34  ;;  %v1262_v35 = vld [vmem:[%s2868_s27 + $0x30] sm:$0xff] }
  0xcf   : > { %2344 = vrcp.f32 %v1453_v23  ;;  %v1498_v63 = vsub.f32 2.0, %v1482_v41  ;;  %v1532_v43 = vmul.f32 %v1516_v52, %v2898_v48  ;;  %v1580_v6 = vadd.f32 %v2275_v54, %v1436_v58  ;;  %v1257_v58 = vld [vmem:[%s2868_s27 + $0x8] sm:$0xff] }
  0xd0   : > { %v2339_v51 = vpop.eup %2338  ;;  %2346 = vrcp.f32 %v1355_v38  ;;  %v1434_v14 = vmul.f32 %v1418_v1, %v2911_v60 }
  0xd1   : > { %v1384_v0 = vmul.f32 %v2339_v51, %v1352_v62  ;;  %2348 = vrcp.f32 %v1451_v44  ;;  %v1514_v7 = vmul.f32 %v2337_v31, %v1498_v63  ;;  %v2952_v62 = vadd.f32 1e-06, %v1337_v4 }
  0xd2   : > { %v1596_v48 = vadd.f32 %v1580_v6, %v1532_v43  ;;  %v1578_v54 = vadd.f32 %v2271_v2, %v1434_v14  ;;  %2350 = vrcp.f32 %v1353_v12  ;;  %v1273_v43 = vld [vmem:[%s2868_s27 + $0x88] sm:$0xff]  ;;  %v2268_v6 = vunpack.c.h.bf16 %v2907_v57 }
  0xd3   : > { %v2341_v56 = vpop.eup %2340  ;;  %v1400_v9 = vsub.f32 2.0, %v1384_v0  ;;  %2352 = vrcp.f32 %v2952_v62 }
  0xd4   : > { %v1480_v49 = vmul.f32 %v2341_v56, %v1448_v3  ;;  %v2343_v5 = vpop.eup %2342  ;;  %v1530_v3 = vmul.f32 %v1514_v7, %v2913_v61  ;;  %v1168_v7 = vld [vmem:[%s2864_s23 + $0x40] sm:$0xff] }
  0xd5   : > { %v2345_v13 = vpop.eup %2344  ;;  %v1389_v47 = vmul.f32 %v2343_v5, %v1357_v19  ;;  %v1416_v16 = vmul.f32 %v2339_v51, %v1400_v9  ;;  %v2959_v19 = vsel %vm1610_vm0, %v1596_v48, 0.0  ;;  %v1184_v48 = vld [vmem:[%s2864_s23 + $0xc0] sm:$0xff] }
  0xd6   : > { %v1496_v15 = vsub.f32 2.0, %v1480_v49  ;;  %v1485_v17 = vmul.f32 %v2345_v13, %v1453_v23  ;;  %v2347_v20 = vpop.eup %2346  ;;  %v1259_v23 = vld [vmem:[%s2868_s27 + $0x18] sm:$0xff]  ;;  %1635 = vadd.xlane.f32.xlu2 %v2959_v19  ;;  %v1594_v2 = vadd.f32 %v1578_v54, %v1530_v3  ;;  %v2991_v49 = vadd.f32 1e-06, %v1248_v50  ;;  %v1264_v3 = vld [vmem:[%s2868_s27 + $0x40] sm:$0xff] }
  0xd7   : > { %v1405_v24 = vsub.f32 2.0, %v1389_v47  ;;  %v2349_v60 = vpop.eup %2348  ;;  %v1432_v25 = vmul.f32 %v1416_v16, %v2923_v10  ;;  %v1387_v27 = vmul.f32 %v2347_v20, %v1355_v38  ;;  %v1328_v38 = vld [vmem:[%s2860_s22 + $0xc0] sm:$0xff]  ;;  %v1291_v41 = vadd.f32 %v1275_v26, %v1259_v23  ;;  %v1331_v23 = vld [vmem:[%s2860_s22 + $0xd8] sm:$0xff] }
  0xd8   : > { %v1512_v21 = vmul.f32 %v2341_v56, %v1496_v15  ;;  %v1501_v61 = vsub.f32 2.0, %v1485_v17  ;;  %v1483_v33 = vmul.f32 %v2349_v60, %v1451_v44  ;;  %v2975_v39 = vsel %vm1610_vm0, %v1594_v2, 0.0  ;;  %v2351_v51 = vpop.eup %2350  ;;  %v1161_v56 = vld [vmem:[%s2864_s23 + $0x8] sm:$0xff]  ;;  %v1280_v16 = vld [vmem:[%s2868_s27 + $0xc0] sm:$0xff]  ;;  %v1166_v2 = vld [vmem:[%s2864_s23 + $0x30] sm:$0xff] }
  0xd9   : > { %v1421_v32 = vmul.f32 %v2343_v5, %v1405_v24  ;;  %v1576_v31 = vadd.f32 %v2267_v18, %v1432_v25  ;;  %v1403_v10 = vsub.f32 2.0, %v1387_v27  ;;  %1631 = vadd.xlane.f32.xlu1 %v2975_v39  ;;  %v1344_v63 = vadd.f32 %v1328_v38, %v1312_v37 }
  0xda   : > { %v1528_v30 = vmul.f32 %v1512_v21, %v2925_v11  ;;  %v1517_v36 = vmul.f32 %v2345_v13, %v1501_v61  ;;  %v1499_v44 = vsub.f32 2.0, %v1483_v33  ;;  %v1385_v1 = vmul.f32 %v2351_v51, %v1353_v12  ;;  %v1326_v13 = vld [vmem:[%s2860_s22 + $0xb0] sm:$0xff]  ;;  %v2353_v12 = vpop.eup %2352  ;;  %v1315_v61 = vld [vmem:[%s2860_s22 + $0x58] sm:$0xff] }
  0xdb   : > { %v1437_v11 = vmul.f32 %v1421_v32, %v2933_v22  ;;  %v1419_v46 = vmul.f32 %v2347_v20, %v1403_v10  ;;  %v1177_v22 = vld [vmem:[%s2864_s23 + $0x88] sm:$0xff]  ;;  %v1456_v9 = vadd.f32 1e-06, %v1344_v63  ;;  %2354 = vrcp.f32 %v2991_v49  ;;  %v1235_v20 = vld [vmem:[%s2856_s21 + $0xd8] sm:$0xff] }
  0xdc   : > { %v1592_v18 = vadd.f32 %v1576_v31, %v1528_v30  ;;  %v1533_v45 = vmul.f32 %v1517_v36, %v2937_v28  ;;  %v1515_v53 = vmul.f32 %v2349_v60, %v1499_v44  ;;  %v1193_v15 = vadd.f32 %v1177_v22, %v1161_v56  ;;  %v3015_v60 = vld [vmem:[%s2873_s24 + $0x20] sm:$0xff]   ;;  %v1182_v30 = vld [vmem:[%s2864_s23 + $0xb0] sm:$0xff]  ;;  %v1215_v44 = vld [vmem:[%s2856_s21 + $0x38] sm:$0xff] }
  0xdd   : > { %v1581_v52 = vadd.f32 %v2276_v59, %v1437_v11  ;;  %v1435_v28 = vmul.f32 %v1419_v46, %v2945_v55  ;;  %v1230_v59 = vld [vmem:[%s2856_s21 + $0xb0] sm:$0xff]  ;;  %v1401_v47 = vsub.f32 2.0, %v1385_v1  ;;  %v1481_v17 = vmul.f32 %v2353_v12, %v2952_v62  ;;  %v3034_v11 = vld [vmem:[%s2873_s24 + $0x18] sm:$0xff]  }
  0xde   : > { %v2987_v0 = vsel %vm1610_vm0, %v1592_v18, 0.0  ;;  %v1531_v5 = vmul.f32 %v1515_v53, %v1291_v41  ;;  %v1310_v55 = vld [vmem:[%s2860_s22 + $0x30] sm:$0xff]  ;;  %2356 = vrcp.f32 %v1456_v9  ;;  %v1246_v40 = vadd.f32 %v1230_v59, %v1214_v29  ;;  %v1231_v18 = vld [vmem:[%s2856_s21 + $0xb8] sm:$0xff] }
  0xdf   : > { %1627 = vadd.xlane.f32.xlu0 %v2987_v0  ;;  %v1597_v4 = vadd.f32 %v1581_v52, %v1533_v45  ;;  %v1579_v14 = vadd.f32 %v2272_v8, %v1435_v28  ;;  %v1219_v8 = vld [vmem:[%s2856_s21 + $0x58] sm:$0xff]  ;;  %v1289_v21 = vadd.f32 %v1273_v43, %v1257_v58  ;;  %v1417_v24 = vmul.f32 %v2351_v51, %v1401_v47  ;;  %v1278_v31 = vld [vmem:[%s2868_s27 + $0xb0] sm:$0xff] }
  0xe0   : > { %v1342_v25 = vadd.f32 %v1326_v13, %v1310_v55  ;;  %v1497_v26 = vsub.f32 2.0, %v1481_v17  ;;  %v3019_v62 = vadd.f32 %v1184_v48, %v1168_v7  ;;  %v3021_v27 = vadd.f32 %v1280_v16, %v1264_v3  ;;  %v1171_v51 = vld [vmem:[%s2864_s23 + $0x58] sm:$0xff]  ;;  %v1217_v7 = vld [vmem:[%s2856_s21 + $0x48] sm:$0xff] }
  0xe1   : > { %v3008_v57 = vsel %vm1610_vm0, %v1597_v4, 0.0  ;;  %v1595_v54 = vadd.f32 %v1579_v14, %v1531_v5  ;;  %v1358_v32 = vadd.f32 1e-06, %v1246_v40  ;;  %v1433_v34 = vmul.f32 %v1417_v24, %v1193_v15  ;;  %v2355_v45 = vpop.eup %2354  ;;  %v1311_v53 = vld [vmem:[%s2860_s22 + $0x38] sm:$0xff]  ;;  %v1233_v55 = vld [vmem:[%s2856_s21 + $0xc8] sm:$0xff] }
  0xe2   : > { %1637 = vadd.xlane.f32.xlu2 %v3008_v57  ;;  %v1454_v36 = vadd.f32 1e-06, %v1342_v25  ;;  %v1251_v10 = vadd.f32 %v1235_v20, %v1219_v8  ;;  %v1513_v37 = vmul.f32 %v2353_v12, %v1497_v26  ;;  %v2283_v38 = vunpack.c.l.bf16 %v3015_v60  ;;  %v1327_v56 = vld [vmem:[%s2860_s22 + $0xb8] sm:$0xff]  ;;  %v1313_v3 = vld [vmem:[%s2860_s22 + $0x48] sm:$0xff] }
  0xe3   : > { %v3027_v33 = vsel %vm1610_vm0, %v1595_v54, 0.0  ;;  %2358 = vrcp.f32 %v1358_v32  ;;  %v1347_v41 = vadd.f32 %v1331_v23, %v1315_v61  ;;  %v1577_v46 = vadd.f32 %v2268_v6, %v1433_v34  ;;  %v1187_v43 = vld [vmem:[%s2864_s23 + $0xd8] sm:$0xff]  ;;  %v1329_v16 = vld [vmem:[%s2860_s22 + $0xc8] sm:$0xff] }
  0xe4   : > { %1633 = vadd.xlane.f32.xlu1 %v3027_v33  ;;  %v3038_v50 = vadd.f32 %v1182_v30, %v1166_v2  ;;  %2360 = vrcp.f32 %v1454_v36  ;;  %v1363_v52 = vadd.f32 1e-06, %v1251_v10  ;;  %v2357_v22 = vpop.eup %2356  ;;  %v1529_v58 = vmul.f32 %v1513_v37, %v1289_v21  ;;  %v1267_v1 = vld [vmem:[%s2868_s27 + $0x58] sm:$0xff] }
  0xe5   : > { %v1392_v63 = vmul.f32 %v2355_v45, %v2991_v49  ;;  %v3044_v28 = vadd.f32 %v1278_v31, %v1262_v35  ;;  %v1283_v29 = vld [vmem:[%s2868_s27 + $0xd8] sm:$0xff]  ;;  %v1459_v59 = vadd.f32 1e-06, %v1347_v41  ;;  %v1488_v4 = vmul.f32 %v2357_v22, %v1456_v9  ;;  %v3053_v49 = vld [vmem:[%s2873_s24 + $0x28] sm:$0xff]  }
  0xe6   : > { %v2279_v5 = vunpack.c.l.bf16 %v3034_v11  ;;  %2362 = vrcp.f32 %v1363_v52  ;;  %v1247_v6 = vadd.f32 %v1231_v18, %v1215_v44  ;;  %v1593_v13 = vadd.f32 %v1577_v46, %v1529_v58  ;;  %v1167_v20 = vld [vmem:[%s2864_s23 + $0x38] sm:$0xff] }
  0xe7   : > { %v1408_v12 = vsub.f32 2.0, %v1392_v63  ;;  %2364 = vrcp.f32 %v1459_v59  ;;  %v1343_v14 = vadd.f32 %v1327_v56, %v1311_v53  ;;  %v1504_v15 = vsub.f32 2.0, %v1488_v4  ;;  %v1183_v54 = vld [vmem:[%s2864_s23 + $0xb8] sm:$0xff]  ;;  %v1238_v53 = vld [vmem:[%s2856_s21 + $0xf0] sm:$0xff] }
  0xe8   : > { %v3055_v47 = vadd.f32 %v1187_v43, %v1171_v51  ;;  %v3057_v48 = vadd.f32 %v1283_v29, %v1267_v1  ;;  %v1359_v9 = vadd.f32 1e-06, %v1247_v6  ;;  %v3063_v40 = vsel %vm1610_vm0, %v1593_v13, 0.0  ;;  %v1263_v34 = vld [vmem:[%s2868_s27 + $0x38] sm:$0xff]  ;;  %v1222_v51 = vld [vmem:[%s2856_s21 + $0x70] sm:$0xff] }
  0xe9   : > { %v2359_v17 = vpop.eup %2358  ;;  %v1424_v8 = vmul.f32 %v2355_v45, %v1408_v12  ;;  %v1455_v21 = vadd.f32 1e-06, %v1343_v14  ;;  %v1249_v24 = vadd.f32 %v1233_v55, %v1217_v7  ;;  %1629 = vadd.xlane.f32.xlu0 %v3063_v40  ;;  %v1520_v61 = vmul.f32 %v2357_v22, %v1504_v15  ;;  %v1279_v35 = vld [vmem:[%s2868_s27 + $0xb8] sm:$0xff]  ;;  %v1318_v1 = vld [vmem:[%s2860_s22 + $0x70] sm:$0xff]  ;;  %v1169_v7 = vld [vmem:[%s2864_s23 + $0x48] sm:$0xff] }
  0xea   : > { %v2361_v25 = vpop.eup %2360  ;;  %v1390_v23 = vmul.f32 %v2359_v17, %v1358_v32  ;;  %v2288_v26 = vunpack.c.h.bf16 %v3053_v49  ;;  %2366 = vrcp.f32 %v1359_v9  ;;  %v1345_v31 = vadd.f32 %v1329_v16, %v1313_v3  ;;  %v1334_v29 = vld [vmem:[%s2860_s22 + $0xf0] sm:$0xff]  ;;  %v1185_v55 = vld [vmem:[%s2864_s23 + $0xc8] sm:$0xff] }
  0xeb   : > { %v1440_v2 = vmul.f32 %v1424_v8, %v3019_v62  ;;  %v1486_v30 = vmul.f32 %v2361_v25, %v1454_v36  ;;  %2368 = vrcp.f32 %v1455_v21  ;;  %v1536_v37 = vmul.f32 %v1520_v61, %v3021_v27 }
  0xec   : > { %v2363_v10 = vpop.eup %2362  ;;  %v1406_v41 = vsub.f32 2.0, %v1390_v23  ;;  %v1199_v44 = vadd.f32 %v1183_v54, %v1167_v20  ;;  %v1361_v18 = vadd.f32 1e-06, %v1249_v24  ;;  %v1457_v36 = vadd.f32 1e-06, %v1345_v31  ;;  %v1234_v31 = vld [vmem:[%s2856_s21 + $0xd0] sm:$0xff] }
  0xed   : > { %v2365_v32 = vpop.eup %2364  ;;  %v1584_v45 = vadd.f32 %v2283_v38, %v1440_v2  ;;  %v1502_v62 = vsub.f32 2.0, %v1486_v30  ;;  %v1395_v46 = vmul.f32 %v2363_v10, %v1363_v52  ;;  %v1295_v58 = vadd.f32 %v1279_v35, %v1263_v34  ;;  %v1265_v2 = vld [vmem:[%s2868_s27 + $0x48] sm:$0xff] }
  0xee   : > { %v1422_v56 = vmul.f32 %v2359_v17, %v1406_v41  ;;  %v1491_v22 = vmul.f32 %v2365_v32, %v1459_v59  ;;  %2370 = vrcp.f32 %v1361_v18  ;;  %v2280_v52 = vunpack.c.h.bf16 %v3034_v11  ;;  %v1281_v11 = vld [vmem:[%s2868_s27 + $0xc8] sm:$0xff]  ;;  %v1314_v41 = vld [vmem:[%s2860_s22 + $0x50] sm:$0xff] }
  0xef   : > { %v1600_v27 = vadd.f32 %v1584_v45, %v1536_v37  ;;  %v1518_v63 = vmul.f32 %v2361_v25, %v1502_v62  ;;  %v1411_v43 = vsub.f32 2.0, %v1395_v46  ;;  %2372 = vrcp.f32 %v1457_v36 }
  0xf0   : > { %v2367_v4 = vpop.eup %2366  ;;  %v1438_v38 = vmul.f32 %v1422_v56, %v3038_v50  ;;  %v1507_v6 = vsub.f32 2.0, %v1491_v22  ;;  %v1254_v13 = vadd.f32 %v1238_v53, %v1222_v51  ;;  %v1350_v8 = vadd.f32 %v1334_v29, %v1318_v1  ;;  %v1220_v22 = vld [vmem:[%s2856_s21 + $0x60] sm:$0xff]  ;;  %v1174_v1 = vld [vmem:[%s2864_s23 + $0x70] sm:$0xff] }
  0xf1   : > { %v2369_v12 = vpop.eup %2368  ;;  %v3085_v59 = vsel %vm1610_vm0, %v1600_v27, 0.0  ;;  %v1534_v14 = vmul.f32 %v1518_v63, %v3044_v28  ;;  %v1427_v15 = vmul.f32 %v2363_v10, %v1411_v43  ;;  %v1391_v3 = vmul.f32 %v2367_v4, %v1359_v9  ;;  %v1316_v29 = vld [vmem:[%s2860_s22 + $0x60] sm:$0xff] }
  0xf2   : > { %1643 = vadd.xlane.f32.xlu2 %v3085_v59  ;;  %v1582_v50 = vadd.f32 %v2279_v5, %v1438_v38  ;;  %v1523_v16 = vmul.f32 %v2365_v32, %v1507_v6  ;;  %v1487_v17 = vmul.f32 %v2369_v12, %v1455_v21  ;;  %v1201_v24 = vadd.f32 %v1185_v55, %v1169_v7  ;;  %v1330_v32 = vld [vmem:[%s2860_s22 + $0xd0] sm:$0xff] }
  0xf3   : > { %v1443_v20 = vmul.f32 %v1427_v15, %v3055_v47  ;;  %v1407_v54 = vsub.f32 2.0, %v1391_v3  ;;  %v1366_v25 = vadd.f32 1e-06, %v1254_v13  ;;  %v1462_v5 = vadd.f32 1e-06, %v1350_v8  ;;  %v1218_v47 = vld [vmem:[%s2856_s21 + $0x50] sm:$0xff] }
  0xf4   : > { %v2371_v28 = vpop.eup %2370  ;;  %v1598_v61 = vadd.f32 %v1582_v50, %v1534_v14  ;;  %v1539_v23 = vmul.f32 %v1523_v16, %v3057_v48  ;;  %v1503_v9 = vsub.f32 2.0, %v1487_v17  ;;  %v2284_v53 = vunpack.c.h.bf16 %v3015_v60  ;;  %v1190_v7 = vld [vmem:[%s2864_s23 + $0xf0] sm:$0xff]  ;;  %v1221_v16 = vld [vmem:[%s2856_s21 + $0x68] sm:$0xff] }
  0xf5   : > { %v2373_v30 = vpop.eup %2372  ;;  %v1587_v21 = vadd.f32 %v2288_v26, %v1443_v20  ;;  %v1423_v34 = vmul.f32 %v2367_v4, %v1407_v54  ;;  %v1393_v35 = vmul.f32 %v2371_v28, %v1361_v18  ;;  %2374 = vrcp.f32 %v1366_v25  ;;  %v1270_v55 = vld [vmem:[%s2868_s27 + $0x70] sm:$0xff]  ;;  %v1237_v17 = vld [vmem:[%s2856_s21 + $0xe8] sm:$0xff] }
  0xf6   : > { %v3099_v10 = vsel %vm1610_vm0, %v1598_v61, 0.0  ;;  %v1519_v48 = vmul.f32 %v2369_v12, %v1503_v9  ;;  %v1489_v37 = vmul.f32 %v2373_v30, %v1457_v36  ;;  %2376 = vrcp.f32 %v1462_v5  ;;  %v1236_v36 = vld [vmem:[%s2856_s21 + $0xe0] sm:$0xff]  ;;  %v1286_v3 = vld [vmem:[%s2868_s27 + $0xf0] sm:$0xff] }
  0xf7   : > { %1639 = vadd.xlane.f32.xlu0 %v3099_v10  ;;  %v1603_v45 = vadd.f32 %v1587_v21, %v1539_v23  ;;  %v1439_v26 = vmul.f32 %v1423_v34, %v1199_v44  ;;  %v1297_v18 = vadd.f32 %v1281_v11, %v1265_v2  ;;  %v1409_v62 = vsub.f32 2.0, %v1393_v35  ;;  %v1333_v2 = vld [vmem:[%s2860_s22 + $0xe8] sm:$0xff] }
  0xf8   : > { %v1535_v46 = vmul.f32 %v1519_v48, %v1295_v58  ;;  %v1505_v51 = vsub.f32 2.0, %v1489_v37  ;;  %v1250_v56 = vadd.f32 %v1234_v31, %v1218_v47  ;;  %v1346_v44 = vadd.f32 %v1330_v32, %v1314_v41  ;;  %v1170_v37 = vld [vmem:[%s2864_s23 + $0x50] sm:$0xff] }
  0xf9   : > { %v3109_v27 = vsel %vm1610_vm0, %v1603_v45, 0.0  ;;  %v1583_v63 = vadd.f32 %v2280_v52, %v1439_v26  ;;  %v1425_v43 = vmul.f32 %v2371_v28, %v1409_v62  ;;  %v1252_v12 = vadd.f32 %v1236_v36, %v1220_v22  ;;  %v1332_v52 = vld [vmem:[%s2860_s22 + $0xe0] sm:$0xff]  ;;  %v1223_v45 = vld [vmem:[%s2856_s21 + $0x78] sm:$0xff]  ;;  %v1266_v36 = vld [vmem:[%s2868_s27 + $0x50] sm:$0xff] }
  0xfa   : > { %1649 = vadd.xlane.f32.xlu2 %v3109_v27  ;;  %v1521_v58 = vmul.f32 %v2373_v30, %v1505_v51  ;;  %v1362_v60 = vadd.f32 1e-06, %v1250_v56  ;;  %v1458_v13 = vadd.f32 1e-06, %v1346_v44  ;;  %v1206_v28 = vadd.f32 %v1190_v7, %v1174_v1  ;;  %v1239_v26 = vld [vmem:[%s2856_s21 + $0xf8] sm:$0xff]  ;;  %v1188_v7 = vld [vmem:[%s2864_s23 + $0xe0] sm:$0xff] }
  0xfb   : > { %v2375_v4 = vpop.eup %2374  ;;  %v1599_v38 = vadd.f32 %v1583_v63, %v1535_v46  ;;  %v1441_v6 = vmul.f32 %v1425_v43, %v1201_v24  ;;  %v3125_v24 = vld [vmem:[%s2873_s24 + $0x38] sm:$0xff]   ;;  %v1348_v23 = vadd.f32 %v1332_v52, %v1316_v29  ;;  %v1364_v9 = vadd.f32 1e-06, %v1252_v12  ;;  %v1186_v46 = vld [vmem:[%s2864_s23 + $0xd0] sm:$0xff] }
  0xfc   : > { %v2377_v14 = vpop.eup %2376  ;;  %v1537_v15 = vmul.f32 %v1521_v58, %v1297_v18  ;;  %v1398_v50 = vmul.f32 %v2375_v4, %v1366_v25  ;;  %2378 = vrcp.f32 %v1362_v60  ;;  %v1317_v25 = vld [vmem:[%s2860_s22 + $0x68] sm:$0xff]  ;;  %v1302_v30 = vadd.f32 %v1286_v3, %v1270_v55  ;;  %v1319_v51 = vld [vmem:[%s2860_s22 + $0x78] sm:$0xff]  ;;  %v1282_v63 = vld [vmem:[%s2868_s27 + $0xd0] sm:$0xff] }
  0xfd   : > { %v3122_v8 = vsel %vm1610_vm0, %v1599_v38, 0.0  ;;  %v1585_v20 = vadd.f32 %v2284_v53, %v1441_v6  ;;  %v1494_v54 = vmul.f32 %v2377_v14, %v1462_v5  ;;  %2380 = vrcp.f32 %v1458_v13  ;;  %v1335_v53 = vld [vmem:[%s2860_s22 + $0xf8] sm:$0xff]  ;;  %v1172_v6 = vld [vmem:[%s2864_s23 + $0x60] sm:$0xff] }
  0xfe   : > { %1641 = vadd.xlane.f32.xlu1 %v3122_v8  ;;  %v1414_v61 = vsub.f32 2.0, %v1398_v50  ;;  %v1253_v34 = vadd.f32 %v1237_v17, %v1221_v16  ;;  %v2295_v35 = vunpack.c.l.bf16 %v3125_v24  ;;  %2382 = vrcp.f32 %v1364_v9  ;;  %v1268_v16 = vld [vmem:[%s2868_s27 + $0x60] sm:$0xff] }
  0xff   : > { %v1601_v11 = vadd.f32 %v1585_v20, %v1537_v15  ;;  %v1510_v21 = vsub.f32 2.0, %v1494_v54  ;;  %v1460_v47 = vadd.f32 1e-06, %v1348_v23  ;;  %v1349_v41 = vadd.f32 %v1333_v2, %v1317_v25  ;;  %v2302_v25 = vld [vmem:[%s2873_s24 + $0x30] sm:$0xff]  }
 0x100   : > { %v1430_v5 = vmul.f32 %v2375_v4, %v1414_v61  ;;  %v1365_v32 = vadd.f32 1e-06, %v1253_v34  ;;  %v1255_v29 = vadd.f32 %v1239_v26, %v1223_v45  ;;  %v1202_v4 = vadd.f32 %v1186_v46, %v1170_v37 }
 0x101   : > { %v3133_v31 = vsel %vm1610_vm0, %v1601_v11, 0.0  ;;  %v1526_v48 = vmul.f32 %v2377_v14, %v1510_v21  ;;  %2384 = vrcp.f32 %v1460_v47  ;;  %v1461_v44 = vadd.f32 1e-06, %v1349_v41  ;;  %v1173_v21 = vld [vmem:[%s2864_s23 + $0x68] sm:$0xff] }
 0x102   : > { %v2379_v18 = vpop.eup %2378  ;;  %1645 = vadd.xlane.f32.xlu0 %v3133_v31  ;;  %v1446_v62 = vmul.f32 %v1430_v5, %v1206_v28  ;;  %2386 = vrcp.f32 %v1365_v32  ;;  %v1351_v55 = vadd.f32 %v1335_v53, %v1319_v51  ;;  %v1298_v14 = vadd.f32 %v1282_v63, %v1266_v36 }
 0x103   : > { %v2381_v56 = vpop.eup %2380  ;;  %v1542_v22 = vmul.f32 %v1526_v48, %v1302_v30  ;;  %v1394_v43 = vmul.f32 %v2379_v18, %v1362_v60  ;;  %2388 = vrcp.f32 %v1461_v44  ;;  %v1367_v3 = vadd.f32 1e-06, %v1255_v29  ;;  %v1191_v29 = vld [vmem:[%s2864_s23 + $0xf8] sm:$0xff] }
 0x104   : > { %v1590_v58 = vadd.f32 %v2295_v35, %v1446_v62  ;;  %v1490_v1 = vmul.f32 %v2381_v56, %v1458_v13  ;;  %v2383_v12 = vpop.eup %2382  ;;  %v2287_v50 = vunpack.c.l.bf16 %v3053_v49  ;;  %v1284_v13 = vld [vmem:[%s2868_s27 + $0xe0] sm:$0xff]  ;;  %v1463_v20 = vadd.f32 1e-06, %v1351_v55  ;;  %v1285_v62 = vld [vmem:[%s2868_s27 + $0xe8] sm:$0xff]  ;;  %v1271_v55 = vld [vmem:[%s2868_s27 + $0x78] sm:$0xff] }
 0x105   : > { %v1410_v38 = vsub.f32 2.0, %v1394_v43  ;;  %v1396_v17 = vmul.f32 %v2383_v12, %v1364_v9  ;;  %v1204_v23 = vadd.f32 %v1188_v7, %v1172_v6  ;;  %2390 = vrcp.f32 %v1367_v3  ;;  %v1189_v9 = vld [vmem:[%s2864_s23 + $0xe8] sm:$0xff] }
 0x106   : > { %v1606_v52 = vadd.f32 %v1590_v58, %v1542_v22  ;;  %v1506_v15 = vsub.f32 2.0, %v1490_v1  ;;  %2392 = vrcp.f32 %v1463_v20  ;;  %v1300_v5 = vadd.f32 %v1284_v13, %v1268_v16  ;;  %v1175_v1 = vld [vmem:[%s2864_s23 + $0x78] sm:$0xff] }
 0x107   : > { %v1426_v60 = vmul.f32 %v2379_v18, %v1410_v38  ;;  %v2385_v54 = vpop.eup %2384  ;;  %v1412_v11 = vsub.f32 2.0, %v1396_v17  ;;  %v2291_v26 = vunpack.c.l.bf16 %v2302_v25  ;;  %v1269_v18 = vld [vmem:[%s2868_s27 + $0x68] sm:$0xff]  ;;  %v1205_v46 = vadd.f32 %v1189_v9, %v1173_v21 }
 0x108   : > { %v3151_v28 = vsel %vm1610_vm0, %v1606_v52, 0.0  ;;  %v1522_v61 = vmul.f32 %v2381_v56, %v1506_v15  ;;  %v2387_v2 = vpop.eup %2386  ;;  %v1492_v30 = vmul.f32 %v2385_v54, %v1460_v47  ;;  %v1301_v63 = vadd.f32 %v1285_v62, %v1269_v18 }
 0x109   : > { %1655 = vadd.xlane.f32.xlu2 %v3151_v28  ;;  %v1442_v49 = vmul.f32 %v1426_v60, %v1202_v4  ;;  %v1397_v35 = vmul.f32 %v2387_v2, %v1365_v32  ;;  %v2389_v48 = vpop.eup %2388  ;;  %v1428_v41 = vmul.f32 %v2383_v12, %v1412_v11  ;;  %v2292_v58 = vunpack.c.h.bf16 %v2302_v25 }
 0x10a   : > { %v1538_v34 = vmul.f32 %v1522_v61, %v1298_v14  ;;  %v1508_v45 = vsub.f32 2.0, %v1492_v30  ;;  %v1493_v53 = vmul.f32 %v2389_v48, %v1461_v44  ;;  %v1287_v44 = vld [vmem:[%s2868_s27 + $0xf8] sm:$0xff] }
 0x10b   : > { %v1586_v37 = vadd.f32 %v2287_v50, %v1442_v49  ;;  %v1413_v51 = vsub.f32 2.0, %v1397_v35  ;;  %v1444_v56 = vmul.f32 %v1428_v41, %v1204_v23  ;;  %v2391_v36 = vpop.eup %2390  ;;  %v1207_v50 = vadd.f32 %v1191_v29, %v1175_v1 }
 0x10c   : > { %v1524_v22 = vmul.f32 %v2385_v54, %v1508_v45  ;;  %v1509_v43 = vsub.f32 2.0, %v1493_v53  ;;  %v2393_v4 = vpop.eup %2392  ;;  %v1399_v12 = vmul.f32 %v2391_v36, %v1367_v3  ;;  %v1303_v54 = vadd.f32 %v1287_v44, %v1271_v55 }
 0x10d   : > { %v1602_v47 = vadd.f32 %v1586_v37, %v1538_v34  ;;  %v1429_v32 = vmul.f32 %v2387_v2, %v1413_v51  ;;  %v1588_v7 = vadd.f32 %v2291_v26, %v1444_v56  ;;  %v1495_v15 = vmul.f32 %v2393_v4, %v1463_v20 }
 0x10e   : > { %v1540_v6 = vmul.f32 %v1524_v22, %v1300_v5  ;;  %v1525_v14 = vmul.f32 %v2389_v48, %v1509_v43  ;;  %v1415_v16 = vsub.f32 2.0, %v1399_v12  ;;  %v2296_v2 = vunpack.c.h.bf16 %v3125_v24 }
 0x10f   : > { %v3163_v38 = vsel %vm1610_vm0, %v1602_v47, 0.0  ;;  %v1445_v52 = vmul.f32 %v1429_v32, %v1205_v46  ;;  %v1511_v61 = vsub.f32 2.0, %v1495_v15 }
 0x110   : > { %1647 = vadd.xlane.f32.xlu1 %v3163_v38  ;;  %v1604_v60 = vadd.f32 %v1588_v7, %v1540_v6  ;;  %v1541_v13 = vmul.f32 %v1525_v14, %v1301_v63  ;;  %v1431_v25 = vmul.f32 %v2391_v36, %v1415_v16 }
 0x111   : > { %v1589_v17 = vadd.f32 %v2292_v58, %v1445_v52  ;;  %v1527_v49 = vmul.f32 %v2393_v4, %v1511_v61 }
 0x112   : > { %v3170_v23 = vsel %vm1610_vm0, %v1604_v60, 0.0  ;;  %v1447_v11 = vmul.f32 %v1431_v25, %v1207_v50 }
 0x113   : > { %1651 = vadd.xlane.f32.xlu0 %v3170_v23  ;;  %v1605_v3 = vadd.f32 %v1589_v17, %v1541_v13  ;;  %v1543_v30 = vmul.f32 %v1527_v49, %v1303_v54 }
 0x114   : > { %v1591_v21 = vadd.f32 %v2296_v2, %v1447_v11 }
 0x115   : > { %v3176_v20 = vsel %vm1610_vm0, %v1605_v3, 0.0 }
 0x116   : > { %v1607_v9 = vadd.f32 %v1591_v21, %v1543_v30 }
 0x118   : > { %1653 = vadd.xlane.f32.xlu1 %v3176_v20  ;;  %v3181_v34 = vsel %vm1610_vm0, %v1607_v9, 0.0 }
 0x11b   : > { %1657 = vadd.xlane.f32.xlu0 %v3181_v34 }
 0x149   : > { %v1636_v24 = vpop.xlane.xlu2 %1635 }
 0x14a   : > { %v1663_v58 = vmul.f32 0.015625, %v1636_v24 }
 0x14c   : > { %v1632_v5 = vpop.xlane.xlu1 %1631  ;;  %v1679_v4 = vsub.f32 %v2959_v19, %v1663_v58 }
 0x14d   : > { %v1661_v35 = vmul.f32 0.015625, %v1632_v5 }
 0x14e   : > { %v3223_v44 = vsel %vm1610_vm0, %v1679_v4, 0.0 }
 0x14f   : > { %v1677_v48 = vsub.f32 %v2975_v39, %v1661_v35  ;;  %v1711_v19 = vmul.f32 %v3223_v44, %v3223_v44 }
 0x151   : > { %v3187_v45 = vsel %vm1610_vm0, %v1677_v48, 0.0 }
 0x152   : > { %v1628_v37 = vpop.xlane.xlu0 %1627  ;;  %v1709_v62 = vmul.f32 %v3187_v45, %v3187_v45 }
 0x153   : > { %v1659_v41 = vmul.f32 0.015625, %v1628_v37 }
 0x154   : > { %1727 = vadd.xlane.f32.xlu0 %v1709_v62 }
 0x155   : > { %v1675_v26 = vsub.f32 %v2987_v0, %v1659_v41  ;;  %v1638_v18 = vpop.xlane.xlu2 %1637 }
 0x156   : > { %v1664_v46 = vmul.f32 0.015625, %v1638_v18 }
 0x157   : > { %v3194_v51 = vsel %vm1610_vm0, %v1675_v26, 0.0  ;;  %v1634_v53 = vpop.xlane.xlu1 %1633 }
 0x158   : > { %v1680_v39 = vsub.f32 %v3008_v57, %v1664_v46  ;;  %v1707_v47 = vmul.f32 %v3194_v51, %v3194_v51  ;;  %v1662_v56 = vmul.f32 0.015625, %v1634_v53 }
 0x15a   : > { %1723 = vadd.xlane.f32.xlu1 %v1707_v47  ;;  %v3201_v0 = vsel %vm1610_vm0, %v1680_v39, 0.0  ;;  %v1678_v22 = vsub.f32 %v3027_v33, %v1662_v56 }
 0x15b   : > { %v1712_v36 = vmul.f32 %v3201_v0, %v3201_v0 }
 0x15c   : > { %v3208_v63 = vsel %vm1610_vm0, %v1678_v22, 0.0  ;;  %v1630_v32 = vpop.xlane.xlu0 %1629 }
 0x15d   : > { %v1710_v57 = vmul.f32 %v3208_v63, %v3208_v63  ;;  %1733 = vadd.xlane.f32.xlu0 %v1712_v36  ;;  %v1660_v43 = vmul.f32 0.015625, %v1630_v32 }
 0x15f   : > { %v1676_v1 = vsub.f32 %v3063_v40, %v1660_v43 }
 0x161   : > { %v3215_v33 = vsel %vm1610_vm0, %v1676_v1, 0.0 }
 0x162   : > { %1729 = vadd.xlane.f32.xlu1 %v1710_v57  ;;  %v1708_v29 = vmul.f32 %v3215_v33, %v3215_v33 }
 0x164   : > { %1725 = vadd.xlane.f32.xlu2 %v1708_v29 }
 0x165   : > { %v1644_v6 = vpop.xlane.xlu2 %1643 }
 0x166   : > { %v1667_v7 = vmul.f32 0.015625, %v1644_v6 }
 0x168   : > { %v1683_v55 = vsub.f32 %v3085_v59, %v1667_v7 }
 0x16a   : > { %v1640_v40 = vpop.xlane.xlu0 %1639  ;;  %v3227_v12 = vsel %vm1610_vm0, %v1683_v55, 0.0 }
 0x16b   : > { %v1665_v52 = vmul.f32 0.015625, %v1640_v40  ;;  %v1715_v14 = vmul.f32 %v3227_v12, %v3227_v12 }
 0x16c   : > { %1731 = vadd.xlane.f32.xlu2 %v1711_v19 }
 0x16d   : > { %v1681_v15 = vsub.f32 %v3099_v10, %v1665_v52  ;;  %v1650_v60 = vpop.xlane.xlu2 %1649  ;;  %1739 = vadd.xlane.f32.xlu0 %v1715_v14 }
 0x16e   : > { %v1670_v59 = vmul.f32 0.015625, %v1650_v60 }
 0x16f   : > { %v3236_v50 = vsel %vm1610_vm0, %v1681_v15, 0.0 }
 0x170   : > { %v1686_v16 = vsub.f32 %v3109_v27, %v1670_v59  ;;  %v1713_v13 = vmul.f32 %v3236_v50, %v3236_v50 }
 0x171   : > { %v1642_v17 = vpop.xlane.xlu1 %1641 }
 0x172   : > { %v1666_v54 = vmul.f32 0.015625, %v1642_v17  ;;  %1735 = vadd.xlane.f32.xlu1 %v1713_v13  ;;  %v3243_v61 = vsel %vm1610_vm0, %v1686_v16, 0.0 }
 0x173   : > { %v1718_v10 = vmul.f32 %v3243_v61, %v3243_v61 }
 0x174   : > { %v1682_v25 = vsub.f32 %v3122_v8, %v1666_v54 }
 0x175   : > { %v1646_v2 = vpop.xlane.xlu0 %1645  ;;  %1745 = vadd.xlane.f32.xlu0 %v1718_v10 }
 0x176   : > { %v1668_v3 = vmul.f32 0.015625, %v1646_v2  ;;  %v3250_v27 = vsel %vm1610_vm0, %v1682_v25, 0.0 }
 0x177   : > { %v1714_v49 = vmul.f32 %v3250_v27, %v3250_v27 }
 0x178   : > { %v1684_v11 = vsub.f32 %v3133_v31, %v1668_v3 }
 0x179   : > { %1737 = vadd.xlane.f32.xlu2 %v1714_v49 }
 0x17a   : > { %v3257_v30 = vsel %vm1610_vm0, %v1684_v11, 0.0 }
 0x17b   : > { %v1716_v8 = vmul.f32 %v3257_v30, %v3257_v30 }
 0x17c   : > { %v1656_v21 = vpop.xlane.xlu2 %1655 }
 0x17d   : > { %v1673_v9 = vmul.f32 0.015625, %v1656_v21  ;;  %1741 = vadd.xlane.f32.xlu1 %v1716_v8  ;;  %v3312_v8 = vld [vmem:[%s3564_s6] ss:$0 sm:$0xff] }
 0x17f   : > { %v1689_v24 = vsub.f32 %v3151_v28, %v1673_v9 }
 0x181   : > { %v3264_v5 = vsel %vm1610_vm0, %v1689_v24, 0.0 }
 0x182   : > { %v1721_v31 = vmul.f32 %v3264_v5, %v3264_v5 }
 0x183   : > { %v1648_v35 = vpop.xlane.xlu1 %1647 }
 0x184   : > { %v1669_v48 = vmul.f32 0.015625, %v1648_v35  ;;  %1751 = vadd.xlane.f32.xlu0 %v1721_v31  ;;  %v3321_v35 = vld [vmem:[%s3565_s7] ss:$0 sm:$0xff] }
 0x186   : > { %v1685_v37 = vsub.f32 %v3163_v38, %v1669_v48  ;;  %v1652_v41 = vpop.xlane.xlu0 %1651 }
 0x187   : > { %v1671_v26 = vmul.f32 0.015625, %v1652_v41 }
 0x188   : > { %v3271_v18 = vsel %vm1610_vm0, %v1685_v37, 0.0 }
 0x189   : > { %v1717_v28 = vmul.f32 %v3271_v18, %v3271_v18  ;;  %v1687_v62 = vsub.f32 %v3170_v23, %v1671_v26 }
 0x18b   : > { %v1654_v46 = vpop.xlane.xlu1 %1653  ;;  %1743 = vadd.xlane.f32.xlu2 %v1717_v28  ;;  %v3278_v53 = vsel %vm1610_vm0, %v1687_v62, 0.0 }
 0x18c   : > { %v1672_v39 = vmul.f32 0.015625, %v1654_v46  ;;  %v1719_v38 = vmul.f32 %v3278_v53, %v3278_v53 }
 0x18e   : > { %v1688_v47 = vsub.f32 %v3176_v20, %v1672_v39  ;;  %1747 = vadd.xlane.f32.xlu1 %v1719_v38  ;;  %v1658_v56 = vpop.xlane.xlu0 %1657 }
 0x18f   : > { %v1674_v22 = vmul.f32 0.015625, %v1658_v56 }
 0x190   : > { %v3285_v36 = vsel %vm1610_vm0, %v1688_v47, 0.0 }
 0x191   : > { %v1720_v23 = vmul.f32 %v3285_v36, %v3285_v36  ;;  %v1690_v57 = vsub.f32 %v3181_v34, %v1674_v22 }
 0x193   : > { %1749 = vadd.xlane.f32.xlu2 %v1720_v23  ;;  %v3292_v32 = vsel %vm1610_vm0, %v1690_v57, 0.0  ;;  %v2021_v23 = vld [vmem:[%s3331_s16 + $0x10] sm:$0xff] }
 0x194   : > { %v1722_v20 = vmul.f32 %v3292_v32, %v3292_v32 }
 0x196   : > { %1753 = vadd.xlane.f32.xlu1 %v1722_v20 }
 0x1c7   : > { %v1728_v43 = vpop.xlane.xlu0 %1727 }
 0x1c8   : > { %v1757_v58 = vmul.f32 0.015625, %v1728_v43 }
 0x1ca   : > { %v1773_v29 = vadd.f32 1e-05, %v1757_v58 }
 0x1cc   : > { %2394 = vrsqrt.f32 %v1773_v29  ;;  %vm1813_vm2 = vweird.f32 %v1773_v29 }
 0x1cd   : > { %v1724_v1 = vpop.xlane.xlu1 %1723 }
 0x1ce   : > { %v1755_v4 = vmul.f32 0.015625, %v1724_v1 }
 0x1d0   : > { %v1771_v6 = vadd.f32 1e-05, %v1755_v4  ;;  %v1734_v7 = vpop.xlane.xlu0 %1733  ;;  %v3353_v4 = vld [vmem:[%s3331_s16 + $0x8] sm:$0xff] }
 0x1d1   : > { %v1760_v55 = vmul.f32 0.015625, %v1734_v7  ;;  %v2024_v7 = vld [vmem:[%s3331_s16 + $0x28] sm:$0xff] }
 0x1d2   : > { %2396 = vrsqrt.f32 %v1771_v6  ;;  %v2395_v34 = vpop.eup %2394  ;;  %vm1793_vm5 = vweird.f32 %v1771_v6 }
 0x1d3   : > { %v1776_v40 = vadd.f32 1e-05, %v1760_v55  ;;  %v1808_v52 = vmul.f32 %v2395_v34, %v1773_v29  ;;  %vm1814_vm1 = vweird.f32 %v2395_v34  ;;  %v3349_v29 = vld [vmem:[%s3331_s16 + $0x18] sm:$0xff] }
 0x1d4   : > { %vm1815_vm4 = vmor %vm1813_vm2, %vm1814_vm1 }
 0x1d5   : > { %v1730_v42 = vpop.xlane.xlu1 %1729  ;;  %2398 = vrsqrt.f32 %v1776_v40  ;;  %v1809_v15 = vmul.f32 %v2395_v34, %v1808_v52  ;;  %vm1843_vm7 = vweird.f32 %v1776_v40  ;;  %v3369_v52 = vld [vmem:[%s3331_s16 + $0x38] sm:$0xff] }
 0x1d6   : > { %v1758_v14 = vmul.f32 0.015625, %v1730_v42  ;;  %v3363_v42 = vld [vmem:[%s3331_s16 + $0x30] sm:$0xff] }
 0x1d7   : > { %v1810_v16 = vmul.f32 0.5, %v1809_v15  ;;  %v1726_v13 = vpop.xlane.xlu2 %1725 }
 0x1d8   : > { %v2397_v19 = vpop.eup %2396  ;;  %v3298_v60 = vadd.f32 1e-05, %v1758_v14  ;;  %v1756_v54 = vmul.f32 0.015625, %v1726_v13  ;;  %v3372_v14 = vld [vmem:[%s3331_s16 + $0x48] sm:$0xff]  ;;  %v3380_v13 = vld [vmem:[%s3331_s16 + $0x50] sm:$0xff] }
 0x1d9   : > { %v1788_v59 = vmul.f32 %v2397_v19, %v1771_v6  ;;  %v1811_v10 = vsub.f32 1.5, %v1810_v16  ;;  %vm1794_vm3 = vweird.f32 %v2397_v19  ;;  %v3377_v16 = vld [vmem:[%s3331_s16 + $0x58] sm:$0xff] }
 0x1da   : > { %2400 = vrsqrt.f32 %v3298_v60  ;;  %v3305_v3 = vadd.f32 1e-05, %v1756_v54  ;;  %vm1795_vm6 = vmor %vm1793_vm5, %vm1794_vm3  ;;  %vm1823_vm10 = vweird.f32 %v3298_v60 }
 0x1db   : > { %v1789_v17 = vmul.f32 %v2397_v19, %v1788_v59  ;;  %v3303_v25 = vpop.eup %2398  ;;  %v1812_v49 = vmul.f32 %v2395_v34, %v1811_v10 }
 0x1dc   : > { %v1838_v11 = vmul.f32 %v3303_v25, %v1776_v40  ;;  %2402 = vrsqrt.f32 %v3305_v3  ;;  %vm1844_vm8 = vweird.f32 %v3303_v25  ;;  %v3366_v40 = vld [vmem:[%s3331_s16 + $0x40] sm:$0xff]  ;;  %vm1803_vm14 = vweird.f32 %v3305_v3 }
 0x1dd   : > { %v1790_v2 = vmul.f32 0.5, %v1789_v17  ;;  %v1816_v24 = vsel %vm1815_vm4, %v2395_v34, %v1812_v49  ;;  %vm3341_vm9 = vmor %vm1843_vm7, %vm1844_vm8  ;;  %v3360_v34 = vld [vmem:[%s3331_s16 + $0x20] sm:$0xff] }
 0x1de   : > { %v1839_v31 = vmul.f32 %v3303_v25, %v1838_v11  ;;  %v1949_v37 = vmul.f32 %v1816_v24, %v3187_v45  ;;  %v3383_v17 = vld [vmem:[%s3331_s16 + $0x60] sm:$0xff]  ;;  %v3398_v11 = vld [vmem:[%s3331_s16 + $0x70] sm:$0xff]  ;;  %v3404_v24 = vld [vmem:[%s3331_s16 + $0x78] sm:$0xff] }
 0x1df   : > { %v1791_v21 = vsub.f32 1.5, %v1790_v2  ;;  %v1732_v28 = vpop.xlane.xlu2 %1731 }
 0x1e0   : > { %v3315_v9 = vpop.eup %2400  ;;  %v1840_v26 = vmul.f32 0.5, %v1839_v31  ;;  %v1740_v62 = vpop.xlane.xlu0 %1739  ;;  %v1969_v45 = vmul.f32 %v3312_v8, %v1949_v37  ;;  %v1759_v38 = vmul.f32 0.015625, %v1732_v28  ;;  %v2019_v31 = vld [vmem:[%s3331_s16] sm:$0xff] }
 0x1e1   : > { %v1792_v48 = vmul.f32 %v2397_v19, %v1791_v21  ;;  %v1818_v41 = vmul.f32 %v3315_v9, %v3298_v60  ;;  %v1763_v1 = vmul.f32 0.015625, %v1740_v62  ;;  %vm1824_vm11 = vweird.f32 %v3315_v9  ;;  %v3401_v21 = vld [vmem:[%s3331_s16 + $0x68] sm:$0xff] }
 0x1e2   : > { %v1841_v56 = vsub.f32 1.5, %v1840_v26  ;;  %v3337_v22 = vpop.eup %2402  ;;  %v1989_v57 = vadd.f32 %v3321_v35, %v1969_v45  ;;  %v3345_v58 = vadd.f32 1e-05, %v1759_v38  ;;  %vm1825_vm12 = vmor %vm1823_vm10, %vm1824_vm11 }
 0x1e3   : > { %v1796_v46 = vsel %vm1795_vm6, %v2397_v19, %v1792_v48  ;;  %v1819_v39 = vmul.f32 %v3315_v9, %v1818_v41  ;;  %v1798_v6 = vmul.f32 %v3337_v22, %v3305_v3  ;;  %v3409_v26 = vadd.f32 1e-05, %v1763_v1 }
 0x1e4   : > { %v1947_v47 = vmul.f32 %v1796_v46, %v3194_v51  ;;  %v1842_v55 = vmul.f32 %v3303_v25, %v1841_v56  ;;  %v2005_v19 = vmax.f32 %v1989_v57, 0.0  ;;  %2404 = vrsqrt.f32 %v3345_v58 }
 0x1e5   : > { %v1820_v20 = vmul.f32 0.5, %v1819_v39  ;;  %v1736_v59 = vpop.xlane.xlu1 %1735  ;;  %v1799_v10 = vmul.f32 %v3337_v22, %v1798_v6  ;;  %vm1804_vm13 = vweird.f32 %v3337_v22  ;;  %2406 = vrsqrt.f32 %v3409_v26 }
 0x1e6   : > { %v1967_v51 = vmul.f32 %v3312_v8, %v1947_v47  ;;  %v1846_v2 = vsel %vm3341_vm9, %v3303_v25, %v1842_v55  ;;  %v1761_v49 = vmul.f32 0.015625, %v1736_v59  ;;  %v2037_v48 = vadd.f32 %v2021_v23, %v2005_v19  ;;  %vm1805_vm15 = vmor %vm1803_vm14, %vm1804_vm13 }
 0x1e7   : > { %v1821_v15 = vsub.f32 1.5, %v1820_v20  ;;  %v1952_v41 = vmul.f32 %v1846_v2, %v3201_v0  ;;  %v1800_v25 = vmul.f32 0.5, %v1799_v10  ;;  %vm1833_vm1 = vweird.f32 %v3345_v58 }
 0x1e8   : > { %v1987_v54 = vadd.f32 %v3321_v35, %v1967_v51  ;;  %v3415_v62 = vadd.f32 1e-05, %v1761_v49  ;;  %v1746_v46 = vpop.xlane.xlu0 %1745  ;;  %2053 = vst [vmem:[%s3390_s18 + $0x10] sm:$0xff] %v2037_v48  ;;  %vm1873_vm2 = vweird.f32 %v3409_v26 }
 0x1e9   : > { %v1822_v37 = vmul.f32 %v3315_v9, %v1821_v15  ;;  %v1972_v39 = vmul.f32 %v3312_v8, %v1952_v41  ;;  %v1801_v47 = vsub.f32 1.5, %v1800_v25  ;;  %v1766_v23 = vmul.f32 0.015625, %v1746_v46 }
 0x1ea   : > { %v2003_v28 = vmax.f32 %v1987_v54, 0.0  ;;  %2408 = vrsqrt.f32 %v3415_v62  ;;  %v2405_v60 = vpop.eup %2404  ;;  %vm1853_vm6 = vweird.f32 %v3415_v62 }
 0x1eb   : > { %v1826_v45 = vsel %vm1825_vm12, %v3315_v9, %v1822_v37  ;;  %v1992_v56 = vadd.f32 %v3321_v35, %v1972_v39  ;;  %v1802_v57 = vmul.f32 %v3337_v22, %v1801_v47  ;;  %v1828_v20 = vmul.f32 %v2405_v60, %v3345_v58  ;;  %v2407_v15 = vpop.eup %2406 }
 0x1ec   : > { %v2035_v0 = vadd.f32 %v2019_v31, %v2003_v28  ;;  %v1950_v38 = vmul.f32 %v1826_v45, %v3208_v63  ;;  %v1738_v43 = vpop.xlane.xlu2 %1737  ;;  %v3432_v51 = vadd.f32 1e-05, %v1766_v23  ;;  %v1868_v31 = vmul.f32 %v2407_v15, %v3409_v26 }
 0x1ed   : > { %v2008_v63 = vmax.f32 %v1992_v56, 0.0  ;;  %v1762_v1 = vmul.f32 0.015625, %v1738_v43  ;;  %v1806_v55 = vsel %vm1805_vm15, %v3337_v22, %v1802_v57  ;;  %v1829_v19 = vmul.f32 %v2405_v60, %v1828_v20 }
 0x1ee   : > { %v1970_v9 = vmul.f32 %v3312_v8, %v1950_v38  ;;  %2051 = vst [vmem:[%s3390_s18] sm:$0xff] %v2035_v0  ;;  %v1948_v3 = vmul.f32 %v1806_v55, %v3215_v33  ;;  %2410 = vrsqrt.f32 %v3432_v51  ;;  %vm1834_vm0 = vweird.f32 %v2405_v60 }
 0x1ef   : > { %v2040_v59 = vadd.f32 %v2024_v7, %v2008_v63  ;;  %v3437_v54 = vadd.f32 1e-05, %v1762_v1  ;;  %v1830_v49 = vmul.f32 0.5, %v1829_v19  ;;  %v1869_v41 = vmul.f32 %v2407_v15, %v1868_v31  ;;  %vm1835_vm3 = vmor %vm1833_vm1, %vm1834_vm0 }
 0x1f0   : > { %v1990_v6 = vadd.f32 %v3321_v35, %v1970_v9  ;;  %v2409_v10 = vpop.eup %2408  ;;  %v1742_v48 = vpop.xlane.xlu1 %1741  ;;  %v1968_v37 = vmul.f32 %v3312_v8, %v1948_v3  ;;  %vm1874_vm4 = vweird.f32 %v2407_v15  ;;  %vm1903_vm10 = vweird.f32 %v3432_v51 }
 0x1f1   : > { %v1848_v22 = vmul.f32 %v2409_v10, %v3415_v62  ;;  %2412 = vrsqrt.f32 %v3437_v54  ;;  %2056 = vst [vmem:[%s3390_s18 + $0x28] sm:$0xff] %v2040_v59  ;;  %v1831_v7 = vsub.f32 1.5, %v1830_v49  ;;  %v1764_v46 = vmul.f32 0.015625, %v1742_v48  ;;  %vm1875_vm7 = vmor %vm1873_vm2, %vm1874_vm4 }
 0x1f2   : > { %v2006_v2 = vmax.f32 %v1990_v6, 0.0  ;;  %v1988_v28 = vadd.f32 %v3321_v35, %v1968_v37  ;;  %v1870_v39 = vmul.f32 0.5, %v1869_v41  ;;  %vm1854_vm5 = vweird.f32 %v2409_v10 }
 0x1f3   : > { %v1849_v25 = vmul.f32 %v2409_v10, %v1848_v22  ;;  %v1832_v45 = vmul.f32 %v2405_v60, %v1831_v7  ;;  %vm1855_vm8 = vmor %vm1853_vm6, %vm1854_vm5  ;;  %vm1863_vm9 = vweird.f32 %v3437_v54 }
 0x1f4   : > { %v2038_v33 = vadd.f32 %v3349_v29, %v2006_v2  ;;  %v3450_v0 = vpop.eup %2410  ;;  %v2004_v38 = vmax.f32 %v1988_v28, 0.0  ;;  %v3452_v29 = vadd.f32 1e-05, %v1764_v46  ;;  %v1871_v23 = vsub.f32 1.5, %v1870_v39 }
 0x1f5   : > { %v1850_v47 = vmul.f32 0.5, %v1849_v25  ;;  %v1836_v56 = vsel %vm1835_vm3, %v2405_v60, %v1832_v45  ;;  %v1898_v9 = vmul.f32 %v3450_v0, %v3432_v51  ;;  %vm1904_vm11 = vweird.f32 %v3450_v0 }
 0x1f6   : > { %2054 = vst [vmem:[%s3390_s18 + $0x18] sm:$0xff] %v2038_v33  ;;  %v2036_v57 = vadd.f32 %v3353_v4, %v2004_v38  ;;  %v1951_v20 = vmul.f32 %v1836_v56, %v3223_v44  ;;  %2414 = vrsqrt.f32 %v3452_v29  ;;  %v1872_v1 = vmul.f32 %v2407_v15, %v1871_v23  ;;  %vm1905_vm13 = vmor %vm1903_vm10, %vm1904_vm11 }
 0x1f7   : > { %v2413_v58 = vpop.eup %2412  ;;  %v1851_v43 = vsub.f32 1.5, %v1850_v47  ;;  %v1752_v63 = vpop.xlane.xlu0 %1751  ;;  %v1899_v4 = vmul.f32 %v3450_v0, %v1898_v9  ;;  %vm1883_vm0 = vweird.f32 %v3452_v29 }
 0x1f8   : > { %v1858_v60 = vmul.f32 %v2413_v58, %v3437_v54  ;;  %v1971_v6 = vmul.f32 %v3312_v8, %v1951_v20  ;;  %v1769_v19 = vmul.f32 0.015625, %v1752_v63  ;;  %2052 = vst [vmem:[%s3390_s18 + $0x8] sm:$0xff] %v2036_v57  ;;  %v1876_v44 = vsel %vm1875_vm7, %v2407_v15, %v1872_v1 }
 0x1f9   : > { %v1852_v55 = vmul.f32 %v2409_v10, %v1851_v43  ;;  %v1955_v2 = vmul.f32 %v1876_v44, %v3227_v12  ;;  %v1900_v49 = vmul.f32 0.5, %v1899_v4  ;;  %vm1864_vm12 = vweird.f32 %v2413_v58 }
 0x1fa   : > { %v1859_v3 = vmul.f32 %v2413_v58, %v1858_v60  ;;  %v1991_v62 = vadd.f32 %v3321_v35, %v1971_v6  ;;  %v3473_v48 = vadd.f32 1e-05, %v1769_v19  ;;  %vm1865_vm14 = vmor %vm1863_vm9, %vm1864_vm12 }
 0x1fb   : > { %v1856_v59 = vsel %vm1855_vm8, %v2409_v10, %v1852_v55  ;;  %v1975_v15 = vmul.f32 %v3312_v8, %v1955_v2  ;;  %v1901_v33 = vsub.f32 1.5, %v1900_v49 }
 0x1fc   : > { %v1953_v31 = vmul.f32 %v1856_v59, %v3236_v50  ;;  %v1860_v26 = vmul.f32 0.5, %v1859_v3  ;;  %v2415_v37 = vpop.eup %2414  ;;  %v2007_v22 = vmax.f32 %v1991_v62, 0.0  ;;  %2416 = vrsqrt.f32 %v3473_v48 }
 0x1fd   : > { %v1878_v12 = vmul.f32 %v2415_v37, %v3452_v29  ;;  %v1995_v28 = vadd.f32 %v3321_v35, %v1975_v15  ;;  %v1902_v25 = vmul.f32 %v3450_v0, %v1901_v33  ;;  %vm1884_vm15 = vweird.f32 %v2415_v37 }
 0x1fe   : > { %v1973_v7 = vmul.f32 %v3312_v8, %v1953_v31  ;;  %v1861_v10 = vsub.f32 1.5, %v1860_v26  ;;  %v1744_v50 = vpop.xlane.xlu2 %1743  ;;  %v2039_v41 = vadd.f32 %v3360_v34, %v2007_v22  ;;  %vm1885_vm1 = vmor %vm1883_vm0, %vm1884_vm15  ;;  %vm1933_vm2 = vweird.f32 %v3473_v48 }
 0x1ff   : > { %v1765_v46 = vmul.f32 0.015625, %v1744_v50  ;;  %v1879_v38 = vmul.f32 %v2415_v37, %v1878_v12  ;;  %v2011_v47 = vmax.f32 %v1995_v28, 0.0  ;;  %v1906_v34 = vsel %vm1905_vm13, %v3450_v0, %v1902_v25 }
 0x200   : > { %v1993_v45 = vadd.f32 %v3321_v35, %v1973_v7  ;;  %v1862_v39 = vmul.f32 %v2413_v58, %v1861_v10  ;;  %2055 = vst [vmem:[%s3390_s18 + $0x20] sm:$0xff] %v2039_v41  ;;  %v1958_v20 = vmul.f32 %v1906_v34, %v3243_v61 }
 0x201   : > { %v3489_v56 = vadd.f32 1e-05, %v1765_v46  ;;  %v1880_v57 = vmul.f32 0.5, %v1879_v38  ;;  %v1748_v43 = vpop.xlane.xlu1 %1747  ;;  %v2043_v51 = vadd.f32 %v3366_v40, %v2011_v47 }
 0x202   : > { %v2009_v23 = vmax.f32 %v1993_v45, 0.0  ;;  %v1866_v9 = vsel %vm1865_vm14, %v2413_v58, %v1862_v39  ;;  %v1978_v1 = vmul.f32 %v3312_v8, %v1958_v20  ;;  %v1767_v60 = vmul.f32 0.015625, %v1748_v43  ;;  %v2417_v6 = vpop.eup %2416 }
 0x203   : > { %v1954_v63 = vmul.f32 %v1866_v9, %v3250_v27  ;;  %2418 = vrsqrt.f32 %v3489_v56  ;;  %v1881_v0 = vsub.f32 1.5, %v1880_v57  ;;  %2059 = vst [vmem:[%s3390_s18 + $0x40] sm:$0xff] %v2043_v51  ;;  %vm1934_vm3 = vweird.f32 %v2417_v6 }
 0x204   : > { %v2041_v54 = vadd.f32 %v3363_v42, %v2009_v23  ;;  %v1998_v40 = vadd.f32 %v3321_v35, %v1978_v1  ;;  %v3502_v55 = vadd.f32 1e-05, %v1767_v60  ;;  %v1928_v42 = vmul.f32 %v2417_v6, %v3473_v48  ;;  %vm1935_vm5 = vmor %vm1933_vm2, %vm1934_vm3 }
 0x205   : > { %v1974_v58 = vmul.f32 %v3312_v8, %v1954_v63  ;;  %v1882_v61 = vmul.f32 %v2415_v37, %v1881_v0  ;;  %vm1893_vm6 = vweird.f32 %v3489_v56 }
 0x206   : > { %v1750_v27 = vpop.xlane.xlu2 %1749  ;;  %2057 = vst [vmem:[%s3390_s18 + $0x30] sm:$0xff] %v2041_v54  ;;  %v2014_v3 = vmax.f32 %v1998_v40, 0.0  ;;  %2420 = vrsqrt.f32 %v3502_v55  ;;  %v1929_v2 = vmul.f32 %v2417_v6, %v1928_v42  ;;  %vm1913_vm9 = vweird.f32 %v3502_v55 }
 0x207   : > { %v1994_v4 = vadd.f32 %v3321_v35, %v1974_v58  ;;  %v1768_v19 = vmul.f32 0.015625, %v1750_v27  ;;  %v1886_v44 = vsel %vm1885_vm1, %v2415_v37, %v1882_v61 }
 0x208   : > { %v1956_v59 = vmul.f32 %v1886_v44, %v3257_v30  ;;  %v2046_v31 = vadd.f32 %v3377_v16, %v2014_v3  ;;  %v1930_v33 = vmul.f32 0.5, %v1929_v2 }
 0x209   : > { %v2419_v62 = vpop.eup %2418  ;;  %v2010_v29 = vmax.f32 %v1994_v4, 0.0  ;;  %v1784_v49 = vadd.f32 1e-05, %v1768_v19  ;;  %v1754_v22 = vpop.xlane.xlu1 %1753 }
 0x20a   : > { %v1888_v26 = vmul.f32 %v2419_v62, %v3489_v56  ;;  %v1976_v37 = vmul.f32 %v3312_v8, %v1956_v59  ;;  %v1770_v10 = vmul.f32 0.015625, %v1754_v22  ;;  %2062 = vst [vmem:[%s3390_s18 + $0x58] sm:$0xff] %v2046_v31  ;;  %v1931_v30 = vsub.f32 1.5, %v1930_v33 }
 0x20b   : > { %v2042_v15 = vadd.f32 %v3369_v52, %v2010_v29  ;;  %2422 = vrsqrt.f32 %v1784_v49  ;;  %vm1894_vm4 = vweird.f32 %v2419_v62  ;;  %vm1923_vm12 = vweird.f32 %v1784_v49 }
 0x20c   : > { %v1889_v7 = vmul.f32 %v2419_v62, %v1888_v26  ;;  %v1996_v12 = vadd.f32 %v3321_v35, %v1976_v37  ;;  %v2421_v16 = vpop.eup %2420  ;;  %v1786_v41 = vadd.f32 1e-05, %v1770_v10  ;;  %v1932_v25 = vmul.f32 %v2417_v6, %v1931_v30  ;;  %vm1895_vm7 = vmor %vm1893_vm6, %vm1894_vm4 }
 0x20d   : > { %2058 = vst [vmem:[%s3390_s18 + $0x38] sm:$0xff] %v2042_v15  ;;  %v1908_v52 = vmul.f32 %v2421_v16, %v3502_v55  ;;  %vm1914_vm8 = vweird.f32 %v2421_v16 }
 0x20e   : > { %v1890_v50 = vmul.f32 0.5, %v1889_v7  ;;  %v2012_v28 = vmax.f32 %v1996_v12, 0.0  ;;  %2424 = vrsqrt.f32 %v1786_v41  ;;  %v1936_v47 = vsel %vm1935_vm5, %v2417_v6, %v1932_v25  ;;  %vm1915_vm10 = vmor %vm1913_vm9, %vm1914_vm8 }
 0x20f   : > { %v1909_v38 = vmul.f32 %v2421_v16, %v1908_v52  ;;  %v1961_v34 = vmul.f32 %v1936_v47, %v3264_v5  ;;  %vm1943_vm15 = vweird.f32 %v1786_v41 }
 0x210   : > { %v1891_v46 = vsub.f32 1.5, %v1890_v50  ;;  %v2044_v39 = vadd.f32 %v3372_v14, %v2012_v28 }
 0x211   : > { %v2423_v45 = vpop.eup %2422  ;;  %v1910_v9 = vmul.f32 0.5, %v1909_v38  ;;  %v1981_v20 = vmul.f32 %v3312_v8, %v1961_v34 }
 0x212   : > { %v1892_v48 = vmul.f32 %v2419_v62, %v1891_v46  ;;  %v1918_v23 = vmul.f32 %v2423_v45, %v1784_v49  ;;  %2060 = vst [vmem:[%s3390_s18 + $0x48] sm:$0xff] %v2044_v39  ;;  %vm1924_vm11 = vweird.f32 %v2423_v45 }
 0x213   : > { %v1911_v63 = vsub.f32 1.5, %v1910_v9  ;;  %v2001_v54 = vadd.f32 %v3321_v35, %v1981_v20  ;;  %vm1925_vm13 = vmor %vm1923_vm12, %vm1924_vm11 }
 0x214   : > { %v1896_v57 = vsel %vm1895_vm7, %v2419_v62, %v1892_v48  ;;  %v1919_v43 = vmul.f32 %v2423_v45, %v1918_v23  ;;  %v2425_v14 = vpop.eup %2424 }
 0x215   : > { %v1957_v51 = vmul.f32 %v1896_v57, %v3271_v18  ;;  %v1912_v1 = vmul.f32 %v2421_v16, %v1911_v63  ;;  %v1938_v5 = vmul.f32 %v2425_v14, %v1786_v41  ;;  %v2017_v60 = vmax.f32 %v2001_v54, 0.0 }
 0x216   : > { %v1920_v0 = vmul.f32 0.5, %v1919_v43  ;;  %vm1944_vm14 = vweird.f32 %v2425_v14 }
 0x217   : > { %v1977_v56 = vmul.f32 %v3312_v8, %v1957_v51  ;;  %v1916_v18 = vsel %vm1915_vm10, %v2421_v16, %v1912_v1  ;;  %v1939_v61 = vmul.f32 %v2425_v14, %v1938_v5  ;;  %v2049_v27 = vadd.f32 %v3398_v11, %v2017_v60  ;;  %vm1945_vm0 = vmor %vm1943_vm15, %vm1944_vm14 }
 0x218   : > { %v1921_v58 = vsub.f32 1.5, %v1920_v0  ;;  %v1959_v40 = vmul.f32 %v1916_v18, %v3278_v53 }
 0x219   : > { %v1997_v6 = vadd.f32 %v3321_v35, %v1977_v56  ;;  %v1940_v55 = vmul.f32 0.5, %v1939_v61  ;;  %2065 = vst [vmem:[%s3390_s18 + $0x70] sm:$0xff] %v2049_v27 }
 0x21a   : > { %v1922_v4 = vmul.f32 %v2423_v45, %v1921_v58  ;;  %v1979_v19 = vmul.f32 %v3312_v8, %v1959_v40 }
 0x21b   : > { %v2013_v42 = vmax.f32 %v1997_v6, 0.0  ;;  %v1941_v29 = vsub.f32 1.5, %v1940_v55 }
 0x21c   : > { %v1926_v44 = vsel %vm1925_vm13, %v2423_v45, %v1922_v4  ;;  %v1999_v53 = vadd.f32 %v3321_v35, %v1979_v19 }
 0x21d   : > { %v2045_v3 = vadd.f32 %v3380_v13, %v2013_v42  ;;  %v1960_v62 = vmul.f32 %v1926_v44, %v3285_v36  ;;  %v1942_v59 = vmul.f32 %v2425_v14, %v1941_v29 }
 0x21e   : > { %v2015_v2 = vmax.f32 %v1999_v53, 0.0 }
 0x21f   : > { %v1980_v11 = vmul.f32 %v3312_v8, %v1960_v62  ;;  %2061 = vst [vmem:[%s3390_s18 + $0x50] sm:$0xff] %v2045_v3  ;;  %v1946_v31 = vsel %vm1945_vm0, %v2425_v14, %v1942_v59 }
 0x220   : > { %v2047_v13 = vadd.f32 %v3383_v17, %v2015_v2  ;;  %v1962_v36 = vmul.f32 %v1946_v31, %v3292_v32 }
 0x221   : > { %v2000_v49 = vadd.f32 %v3321_v35, %v1980_v11 }
 0x222   : > { %2063 = vst [vmem:[%s3390_s18 + $0x60] sm:$0xff] %v2047_v13  ;;  %v1982_v22 = vmul.f32 %v3312_v8, %v1962_v36 }
 0x223   : > { %v2016_v26 = vmax.f32 %v2000_v49, 0.0 }
 0x224   : > { %v2002_v37 = vadd.f32 %v3321_v35, %v1982_v22 }
 0x225   : > { %v2048_v15 = vadd.f32 %v3401_v21, %v2016_v26 }
 0x226   : > { %v2018_v33 = vmax.f32 %v2002_v37, 0.0 }
 0x227   : > { %2064 = vst [vmem:[%s3390_s18 + $0x68] sm:$0xff] %v2048_v15 }
 0x228   : > { %v2050_v7 = vadd.f32 %v3404_v24, %v2018_v33 }
 0x22a   : > { %2066 = vst [vmem:[%s3390_s18 + $0x78] sm:$0xff] %v2050_v7 }
 0x22b PF: > { %p15_p9 = scmp.ge.s32.totalorder %s2512_s9, 5   ;;  %s3570_s27 = smov %s2444_s28 }
 0x22c   : > { %s3571_s28 = smov %s2521_s12  ;;  %s3572_s29 = smov %s2512_s9 }
 0x22d   :  { %17 = sbr.rel (!%p15_p9) target bundleno = 2 (0x2), region = 315 }

// kernel: sym_gated_gcn.3
= control target key start
LH: loop header
LB: loop body
LE: loop exit
PB: predicated region body
PF: predicated region fallthrough
CT: control target
= control target key end

     0   :  { %s1139_s12 = smov 0   ;;  %s1653_s0 = inlined_call_operand.vmem [shape: f32[384,128], index: 0, kind: input, shape index: {}]   ;;  %s1654_s1 = inlined_call_operand.vmem [shape: bf16[128,640], index: 1, kind: input, shape index: {}]   ;;  %s1655_s2 = inlined_call_operand.vmem [shape: f32[1,640], index: 2, kind: input, shape index: {}]   ;;  %s1656_s3 = inlined_call_operand.vmem [shape: bf16[384,640], index: 3, kind: output, shape index: {}]  }
   0x1 LB: > { %s867_s13 = sadd.s32 4294967295, %s1117_s12   ;;  %p871_p0 = scmp.ge.s32.totalorder %s1117_s12, 1  ;;  %s1117_s12 = sphi %s1139_s12, %s13_s12  }
   0x2   : > { %p138_p1 = scmp.lt.s32.totalorder %s1117_s12, 4 }
   0x4   : > { %p139_p2 = pnand %p871_p0, %p138_p1 }
   0x5   : > { %s872_s30 = sshll.u32 (!%p139_p2), %s867_s13, 4 }
   0x6   : > { %142 = sbr.rel (%p139_p2) target bundleno = 335 (0x14f), region = 32  ;;  %p164_p3 = scmp.lt.s32.totalorder (!%p139_p2), %s872_s30, 47 }
   0xb   : > { %v1018_v0 = vld [vmem:[%s1654_s1 + $0x118] sm:$0xf]  ;;  %v1075_v1 = vld [vmem:[%s1654_s1 + $0x128] sm:$0xf0]  ;;  %v998_v2 = vld [vmem:[%s1654_s1 + $0xf0] sm:$0xf] }
   0xc   : > { %v1019_v3 = vor.u32 %v1075_v1, %v1018_v0  ;;  %v1070_v4 = vld [vmem:[%s1654_s1 + $0x100] sm:$0xf0]  ;;  %v978_v6 = vld [vmem:[%s1654_s1 + $0xc8] sm:$0xf]  ;;  %v1065_v7 = vld [vmem:[%s1654_s1 + $0xd8] sm:$0xf0] }
   0xd   : > { %v999_v5 = vor.u32 %v1070_v4, %v998_v2  ;;  %v979_v8 = vor.u32 %v1065_v7, %v978_v6  ;;  %v958_v9 = vld [vmem:[%s1654_s1 + $0xa0] sm:$0xf]  ;;  %v1060_v10 = vld [vmem:[%s1654_s1 + $0xb0] sm:$0xf0]  ;;  %v938_v12 = vld [vmem:[%s1654_s1 + $0x78] sm:$0xf] }
   0xe   : > { %468 = vmatpush.bf16.msra.mxu0 %v1019_v3  ;;  %1078 = vmatpush.bf16.msra.mxu1 %v1019_v3  ;;  %v959_v11 = vor.u32 %v1060_v10, %v958_v9  ;;  %v1055_v13 = vld [vmem:[%s1654_s1 + $0x88] sm:$0xf0]  ;;  %v918_v15 = vld [vmem:[%s1654_s1 + $0x50] sm:$0xf]  ;;  %v1050_v16 = vld [vmem:[%s1654_s1 + $0x60] sm:$0xf0] }
   0xf   : > { %1079 = vmatpush.bf16.msra.mxu2 %v1019_v3  ;;  %1080 = vmatpush.bf16.msra.mxu3 %v1019_v3  ;;  %v939_v14 = vor.u32 %v1055_v13, %v938_v12  ;;  %s1658_s30 = smov (!%p164_p3, %s872_s30), 47  ;;  %v919_v17 = vor.u32 %v1050_v16, %v918_v15  ;;  %v898_v18 = vld [vmem:[%s1654_s1 + $0x28] sm:$0xf]  ;;  %v1045_v19 = vld [vmem:[%s1654_s1 + $0x38] sm:$0xf0] }
  0x10   : > { %s873_s17 = sshll.u32 %s1658_s30, 3  ;;  %v899_v20 = vor.u32 %v1045_v19, %v898_v18  ;;  %v878_v21 = vld [vmem:[%s1654_s1] sm:$0xf]  ;;  %v1040_v22 = vld [vmem:[%s1654_s1 + $0x10] sm:$0xf0] }
  0x11   : > { %s1195_s20 = scalar_lea.vmem %s1653_s0, %s873_s17  ;;  %v1026_v23 = vld [vmem:[%s1654_s1 + $0x120] sm:$0xf]  ;;  %v1076_v24 = vld [vmem:[%s1654_s1 + $0x130] sm:$0xf0]  ;;  %v1074_v25 = vld [vmem:[%s1654_s1 + $0x124] sm:$0xf]  ;;  %v879_v29 = vor.u32 %v1040_v22, %v878_v21 }
  0x12   : > { %469 = vmatpush.bf16.msra.mxu0 %v999_v5  ;;  %1081 = vmatpush.bf16.msra.mxu1 %v999_v5  ;;  %v176_v26 = vld [vmem:[%s1195_s20] sm:$0xff]  ;;  %v177_v27 = vld [vmem:[%s1195_s20 + $0x8] sm:$0xff]  ;;  %v1028_v28 = vld [vmem:[%s1654_s1 + $0x134] sm:$0xf0]  ;;  %v1027_v38 = vor.u32 %v1076_v24, %v1026_v23 }
  0x13   : > { %1082 = vmatpush.bf16.msra.mxu2 %v999_v5  ;;  %1083 = vmatpush.bf16.msra.mxu3 %v999_v5  ;;  %v180_v30 = vld [vmem:[%s1195_s20 + $0x20] sm:$0xff]  ;;  %v181_v31 = vld [vmem:[%s1195_s20 + $0x28] sm:$0xff]  ;;  %v1073_v33 = vld [vmem:[%s1654_s1 + $0x11c] sm:$0xf]  ;;  %v1031_v39 = vor.u32 %v1074_v25, %v1028_v28  ;;  %v1238_v43 = vpack.c.bf16 %v177_v27, %v176_v26 }
  0x14   : > { %v184_v32 = vld [vmem:[%s1195_s20 + $0x40] sm:$0xff]  ;;  %v1020_v34 = vld [vmem:[%s1654_s1 + $0x12c] sm:$0xf0]  ;;  %v185_v35 = vld [vmem:[%s1195_s20 + $0x48] sm:$0xff]  ;;  %v1240_v44 = vpack.c.bf16 %v181_v31, %v180_v30 }
  0x15   : > { %v188_v36 = vld [vmem:[%s1195_s20 + $0x60] sm:$0xff]  ;;  %v189_v37 = vld [vmem:[%s1195_s20 + $0x68] sm:$0xff]  ;;  %v1077_v41 = vld [vmem:[%s1654_s1 + $0x138] sm:$0xf0]  ;;  %v1251_v48 = vpack.c.bf16 %v185_v35, %v184_v32  ;;  %v1023_v50 = vor.u32 %v1073_v33, %v1020_v34 }
  0x16   : > { %470 = vmatpush.bf16.msra.mxu0 %v979_v8  ;;  %1084 = vmatpush.bf16.msra.mxu1 %v979_v8  ;;  %v1034_v40 = vld [vmem:[%s1654_s1 + $0x128] sm:$0xf]  ;;  %v1006_v42 = vld [vmem:[%s1654_s1 + $0xf8] sm:$0xf]  ;;  %v1071_v45 = vld [vmem:[%s1654_s1 + $0x108] sm:$0xf0]  ;;  %v1253_v49 = vpack.c.bf16 %v189_v37, %v188_v36 }
  0x17   : > { %1085 = vmatpush.bf16.msra.mxu2 %v979_v8  ;;  %1086 = vmatpush.bf16.msra.mxu3 %v979_v8  ;;  %v1069_v46 = vld [vmem:[%s1654_s1 + $0xfc] sm:$0xf]  ;;  %v1008_v47 = vld [vmem:[%s1654_s1 + $0x10c] sm:$0xf0]  ;;  %v1035_v51 = vor.u32 %v1077_v41, %v1034_v40  ;;  %v1068_v52 = vld [vmem:[%s1654_s1 + $0xf4] sm:$0xf]  ;;  %v1007_v54 = vor.u32 %v1071_v45, %v1006_v42 }
  0x18   : > { %v1000_v53 = vld [vmem:[%s1654_s1 + $0x104] sm:$0xf0]  ;;  %v1011_v55 = vor.u32 %v1069_v46, %v1008_v47  ;;  %v1014_v56 = vld [vmem:[%s1654_s1 + $0x100] sm:$0xf]  ;;  %v1072_v57 = vld [vmem:[%s1654_s1 + $0x110] sm:$0xf0] }
  0x19   : > { %v986_v58 = vld [vmem:[%s1654_s1 + $0xd0] sm:$0xf]  ;;  %v1066_v59 = vld [vmem:[%s1654_s1 + $0xe0] sm:$0xf0]  ;;  %v1064_v60 = vld [vmem:[%s1654_s1 + $0xd4] sm:$0xf]  ;;  %v1003_v62 = vor.u32 %v1068_v52, %v1000_v53  ;;  %v1015_v63 = vor.u32 %v1072_v57, %v1014_v56 }
  0x1a   : > { %471 = vmatpush.bf16.msra.mxu0 %v959_v11  ;;  %1087 = vmatpush.bf16.msra.mxu1 %v959_v11  ;;  %v988_v61 = vld [vmem:[%s1654_s1 + $0xe4] sm:$0xf0]  ;;  %v1063_v0 = vld [vmem:[%s1654_s1 + $0xcc] sm:$0xf]  ;;  %v980_v1 = vld [vmem:[%s1654_s1 + $0xdc] sm:$0xf0]  ;;  %v987_v2 = vor.u32 %v1066_v59, %v986_v58 }
  0x1b   : > { %1088 = vmatpush.bf16.msra.mxu2 %v959_v11  ;;  %1089 = vmatpush.bf16.msra.mxu3 %v959_v11  ;;  %v991_v3 = vor.u32 %v1064_v60, %v988_v61  ;;  %v994_v4 = vld [vmem:[%s1654_s1 + $0xd8] sm:$0xf]  ;;  %v1067_v5 = vld [vmem:[%s1654_s1 + $0xe8] sm:$0xf0]  ;;  %v966_v6 = vld [vmem:[%s1654_s1 + $0xa8] sm:$0xf]  ;;  %v983_v11 = vor.u32 %v1063_v0, %v980_v1 }
  0x1c   : > { %v1061_v7 = vld [vmem:[%s1654_s1 + $0xb8] sm:$0xf0]  ;;  %v1059_v8 = vld [vmem:[%s1654_s1 + $0xac] sm:$0xf]  ;;  %v968_v9 = vld [vmem:[%s1654_s1 + $0xbc] sm:$0xf0]  ;;  %v995_v12 = vor.u32 %v1067_v5, %v994_v4 }
  0x1d   : > { %v1058_v10 = vld [vmem:[%s1654_s1 + $0xa4] sm:$0xf]  ;;  %v960_v13 = vld [vmem:[%s1654_s1 + $0xb4] sm:$0xf0]  ;;  %v967_v16 = vor.u32 %v1061_v7, %v966_v6  ;;  %v178_v18 = vld [vmem:[%s1195_s20 + $0x10] sm:$0xff] }
  0x1e   : > { %472 = vmatpush.bf16.msra.mxu0 %v939_v14  ;;  %1090 = vmatpush.bf16.msra.mxu1 %v939_v14  ;;  %v1062_v15 = vld [vmem:[%s1654_s1 + $0xc0] sm:$0xf0]  ;;  %v179_v19 = vld [vmem:[%s1195_s20 + $0x18] sm:$0xff]  ;;  %v946_v22 = vld [vmem:[%s1654_s1 + $0x80] sm:$0xf] }
  0x1f   : > { %1091 = vmatpush.bf16.msra.mxu2 %v939_v14  ;;  %1092 = vmatpush.bf16.msra.mxu3 %v939_v14  ;;  %v974_v14 = vld [vmem:[%s1654_s1 + $0xb0] sm:$0xf]  ;;  %v183_v21 = vld [vmem:[%s1195_s20 + $0x38] sm:$0xff]  ;;  %v1056_v23 = vld [vmem:[%s1654_s1 + $0x90] sm:$0xf0] }
  0x20   : > { %v1054_v24 = vld [vmem:[%s1654_s1 + $0x84] sm:$0xf]  ;;  %v948_v25 = vld [vmem:[%s1654_s1 + $0x94] sm:$0xf0]  ;;  %v186_v26 = vld [vmem:[%s1195_s20 + $0x50] sm:$0xff]  ;;  %v975_v30 = vor.u32 %v1062_v15, %v974_v14  ;;  %v947_v34 = vor.u32 %v1056_v23, %v946_v22 }
  0x21   : > { %v187_v27 = vld [vmem:[%s1195_s20 + $0x58] sm:$0xff]  ;;  %v190_v28 = vld [vmem:[%s1195_s20 + $0x70] sm:$0xff]  ;;  %v951_v35 = vor.u32 %v1054_v24, %v948_v25  ;;  %v954_v36 = vld [vmem:[%s1654_s1 + $0x88] sm:$0xf] }
  0x22   : > { %473 = vmatpush.bf16.msra.mxu0 %v919_v17  ;;  %1093 = vmatpush.bf16.msra.mxu1 %v919_v17  ;;  %v191_v31 = vld [vmem:[%s1195_s20 + $0x78] sm:$0xff]  ;;  %v940_v33 = vld [vmem:[%s1654_s1 + $0x8c] sm:$0xf0]  ;;  %v1051_v41 = vld [vmem:[%s1654_s1 + $0x68] sm:$0xf0]  ;;  %v1367_v46 = vpack.c.bf16 %v187_v27, %v186_v26 }
  0x23   : > { %1094 = vmatpush.bf16.msra.mxu2 %v919_v17  ;;  %1095 = vmatpush.bf16.msra.mxu3 %v919_v17  ;;  %v971_v17 = vor.u32 %v1059_v8, %v968_v9  ;;  %v1053_v32 = vld [vmem:[%s1654_s1 + $0x7c] sm:$0xf]  ;;  %v928_v45 = vld [vmem:[%s1654_s1 + $0x6c] sm:$0xf0]  ;;  %v1369_v47 = vpack.c.bf16 %v191_v31, %v190_v28  ;;  %v1048_v52 = vld [vmem:[%s1654_s1 + $0x54] sm:$0xf] }
  0x24   : > { %v1057_v37 = vld [vmem:[%s1654_s1 + $0x98] sm:$0xf0]  ;;  %v920_v53 = vld [vmem:[%s1654_s1 + $0x64] sm:$0xf0]  ;;  %v934_v56 = vld [vmem:[%s1654_s1 + $0x60] sm:$0xf] }
  0x25   : > { %v1049_v42 = vld [vmem:[%s1654_s1 + $0x5c] sm:$0xf]  ;;  %v1052_v57 = vld [vmem:[%s1654_s1 + $0x70] sm:$0xf0]  ;;  %v906_v58 = vld [vmem:[%s1654_s1 + $0x30] sm:$0xf] }
  0x26   : > { %474 = vmatpush.bf16.msra.mxu0 %v899_v20  ;;  %1096 = vmatpush.bf16.msra.mxu1 %v899_v20  ;;  %v1046_v59 = vld [vmem:[%s1654_s1 + $0x40] sm:$0xf0]  ;;  %v1044_v60 = vld [vmem:[%s1654_s1 + $0x34] sm:$0xf]  ;;  %v908_v61 = vld [vmem:[%s1654_s1 + $0x44] sm:$0xf0] }
  0x27   : > { %1097 = vmatpush.bf16.msra.mxu2 %v899_v20  ;;  %1098 = vmatpush.bf16.msra.mxu3 %v899_v20  ;;  %v182_v20 = vld [vmem:[%s1195_s20 + $0x30] sm:$0xff]  ;;  %v1043_v0 = vld [vmem:[%s1654_s1 + $0x2c] sm:$0xf]  ;;  %v900_v1 = vld [vmem:[%s1654_s1 + $0x3c] sm:$0xf0]  ;;  %s1102_s20 = smul.u32 20, %s1658_s30 }
  0x28   : > { %v1356_v40 = vpack.c.bf16 %v183_v21, %v182_v20  ;;  %v914_v4 = vld [vmem:[%s1654_s1 + $0x38] sm:$0xf]  ;;  %v1047_v5 = vld [vmem:[%s1654_s1 + $0x48] sm:$0xf0]  ;;  %v886_v6 = vld [vmem:[%s1654_s1 + $0x8] sm:$0xf] }
  0x29   : > { %v1041_v7 = vld [vmem:[%s1654_s1 + $0x18] sm:$0xf0]  ;;  %v1039_v8 = vld [vmem:[%s1654_s1 + $0xc] sm:$0xf]  ;;  %v888_v9 = vld [vmem:[%s1654_s1 + $0x1c] sm:$0xf0]  ;;  %s1514_s30 = scalar_lea.vmem %s1656_s3, %s1102_s20 }
  0x2a   : > { %475 = vmatpush.bf16.msra.mxu0 %v879_v29  ;;  %1099 = vmatpush.bf16.msra.mxu1 %v879_v29  ;;  %v891_v14 = vor.u32 %v1039_v8, %v888_v9  ;;  %v880_v15 = vld [vmem:[%s1654_s1 + $0x14] sm:$0xf0]  ;;  %v248_v20 = vld [vmem:[%s1655_s2] sm:$0x1f] }
  0x2b   : > { %1100 = vmatpush.bf16.msra.mxu2 %v879_v29  ;;  %1101 = vmatpush.bf16.msra.mxu3 %v879_v29  ;;  %v963_v29 = vor.u32 %v1058_v10, %v960_v13  ;;  %v903_v10 = vor.u32 %v1043_v0, %v900_v1  ;;  %v887_v13 = vor.u32 %v1041_v7, %v886_v6  ;;  %v1464_v21 = vperm.slane %v248_v20, 0 }
  0x2d   : > { %476 = vmatmul.bf16.vlgmr.msra.gmra.mxu0 %v1238_v43  ;;  %486 = vmatmul.bf16.vlgmr.msra.gmra.mxu1 %v1240_v44 }
  0x2e   : > { %496 = vmatmul.bf16.vlgmr.msra.gmra.mxu2 %v1251_v48  ;;  %506 = vmatmul.bf16.vlgmr.msra.gmra.mxu3 %v1253_v49 }
  0x2f   : > { %566 = vmatpush.bf16.msrb.mxu2 %v1027_v38  ;;  %615 = vmatpush.bf16.msrb.mxu3 %v1031_v39  ;;  %v926_v38 = vld [vmem:[%s1654_s1 + $0x58] sm:$0xf]  ;;  %v1354_v39 = vpack.c.bf16 %v179_v19, %v178_v18 }
  0x30   : > { %517 = vmatpush.bf16.msrb.mxu1 %v1023_v50  ;;  %664 = vmatpush.bf16.msrb.mxu0 %v1035_v51  ;;  %v943_v50 = vor.u32 %v1053_v32, %v940_v33  ;;  %v955_v51 = vor.u32 %v1057_v37, %v954_v36 }
  0x33   : > { %567 = vmatpush.bf16.msrb.mxu2 %v1007_v54  ;;  %616 = vmatpush.bf16.msrb.mxu3 %v1011_v55  ;;  %v927_v54 = vor.u32 %v1051_v41, %v926_v38  ;;  %v931_v55 = vor.u32 %v1049_v42, %v928_v45  ;;  %v1498_v38 = vperm.slane %v248_v20, 1  ;;  %v1501_v41 = vperm.slane %v248_v20, 4 }
  0x34   : > { %518 = vmatpush.bf16.msrb.mxu1 %v1003_v62  ;;  %665 = vmatpush.bf16.msrb.mxu0 %v1015_v63  ;;  %v923_v62 = vor.u32 %v1048_v52, %v920_v53  ;;  %v935_v63 = vor.u32 %v1052_v57, %v934_v56  ;;  %v1519_v56 = vperm.slane %v248_v20, 3 }
  0x37   : > { %568 = vmatpush.bf16.msrb.mxu2 %v987_v2  ;;  %617 = vmatpush.bf16.msrb.mxu3 %v991_v3  ;;  %v907_v2 = vor.u32 %v1046_v59, %v906_v58  ;;  %v911_v3 = vor.u32 %v1044_v60, %v908_v61 }
  0x38   : > { %519 = vmatpush.bf16.msrb.mxu1 %v983_v11  ;;  %666 = vmatpush.bf16.msrb.mxu0 %v995_v12  ;;  %v915_v11 = vor.u32 %v1047_v5, %v914_v4  ;;  %v1038_v12 = vld [vmem:[%s1654_s1 + $0x4] sm:$0xf] }
  0x39   : > { %v883_v18 = vor.u32 %v1038_v12, %v880_v15 }
  0x3b   : > { %569 = vmatpush.bf16.msrb.mxu2 %v967_v16  ;;  %618 = vmatpush.bf16.msrb.mxu3 %v971_v17  ;;  %v894_v16 = vld [vmem:[%s1654_s1 + $0x10] sm:$0xf]  ;;  %v1042_v17 = vld [vmem:[%s1654_s1 + $0x20] sm:$0xf0] }
  0x3c   : > { %520 = vmatpush.bf16.msrb.mxu1 %v963_v29  ;;  %667 = vmatpush.bf16.msrb.mxu0 %v975_v30  ;;  %v895_v19 = vor.u32 %v1042_v17, %v894_v16 }
  0x3d   : > { %481 = vmatmul.bf16.gmra.mxu0 %v1354_v39  ;;  %491 = vmatmul.bf16.gmra.mxu1 %v1356_v40 }
  0x3e   : > { %501 = vmatmul.bf16.gmra.mxu2 %v1367_v46  ;;  %511 = vmatmul.bf16.gmra.mxu3 %v1369_v47 }
  0x3f   : > { %570 = vmatpush.bf16.msrb.mxu2 %v947_v34  ;;  %619 = vmatpush.bf16.msrb.mxu3 %v951_v35 }
  0x40   : > { %521 = vmatpush.bf16.msrb.mxu1 %v943_v50  ;;  %668 = vmatpush.bf16.msrb.mxu0 %v955_v51 }
  0x43   : > { %571 = vmatpush.bf16.msrb.mxu2 %v927_v54  ;;  %620 = vmatpush.bf16.msrb.mxu3 %v931_v55  ;;  %v1517_v54 = vperm.slane %v248_v20, 2 }
  0x44   : > { %522 = vmatpush.bf16.msrb.mxu1 %v923_v62  ;;  %669 = vmatpush.bf16.msrb.mxu0 %v935_v63 }
  0x47   : > { %572 = vmatpush.bf16.msrb.mxu2 %v907_v2  ;;  %621 = vmatpush.bf16.msrb.mxu3 %v911_v3 }
  0x48   : > { %523 = vmatpush.bf16.msrb.mxu1 %v903_v10  ;;  %670 = vmatpush.bf16.msrb.mxu0 %v915_v11 }
  0x4b   : > { %573 = vmatpush.bf16.msrb.mxu2 %v887_v13  ;;  %622 = vmatpush.bf16.msrb.mxu3 %v891_v14 }
  0x4c   : > { %524 = vmatpush.bf16.msrb.mxu1 %v883_v18  ;;  %671 = vmatpush.bf16.msrb.mxu0 %v895_v19 }
  0x4e   : > { %574 = vmatmul.bf16.vlgmr.msrb.gmra.mxu2 %v1238_v43  ;;  %623 = vmatmul.bf16.vlgmr.msrb.gmra.mxu3 %v1238_v43 }
  0x4f   : > { %525 = vmatmul.bf16.vlgmr.msrb.gmra.mxu1 %v1238_v43  ;;  %672 = vmatmul.bf16.vlgmr.msrb.gmra.mxu0 %v1238_v43 }
  0x5e   : > { %579 = vmatmul.bf16.gmra.mxu2 %v1354_v39  ;;  %628 = vmatmul.bf16.gmra.mxu3 %v1354_v39 }
  0x5f   : > { %530 = vmatmul.bf16.gmra.mxu1 %v1354_v39  ;;  %677 = vmatmul.bf16.gmra.mxu0 %v1354_v39 }
  0x6e   : > { %584 = vmatmul.bf16.gmra.mxu2 %v1240_v44  ;;  %633 = vmatmul.bf16.gmra.mxu3 %v1240_v44 }
  0x6f   : > { %535 = vmatmul.bf16.gmra.mxu1 %v1240_v44  ;;  %682 = vmatmul.bf16.gmra.mxu0 %v1240_v44 }
  0x7e   : > { %589 = vmatmul.bf16.gmra.mxu2 %v1356_v40  ;;  %638 = vmatmul.bf16.gmra.mxu3 %v1356_v40 }
  0x7f   : > { %540 = vmatmul.bf16.gmra.mxu1 %v1356_v40  ;;  %687 = vmatmul.bf16.gmra.mxu0 %v1356_v40 }
  0x8e   : > { %594 = vmatmul.bf16.gmra.mxu2 %v1251_v48  ;;  %643 = vmatmul.bf16.gmra.mxu3 %v1251_v48 }
  0x8f   : > { %545 = vmatmul.bf16.gmra.mxu1 %v1251_v48  ;;  %692 = vmatmul.bf16.gmra.mxu0 %v1251_v48 }
  0x9e   : > { %599 = vmatmul.bf16.gmra.mxu2 %v1367_v46  ;;  %648 = vmatmul.bf16.gmra.mxu3 %v1367_v46 }
  0x9f   : > { %550 = vmatmul.bf16.gmra.mxu1 %v1367_v46  ;;  %697 = vmatmul.bf16.gmra.mxu0 %v1367_v46 }
  0xaa   : > { %v477_v43 = vpop.f32.mrf.mxu0  ;;  %v1459_v44 = vpop.f32.mrf.mxu1 }
  0xae   : > { %604 = vmatmul.bf16.gmra.mxu2 %v1253_v49  ;;  %653 = vmatmul.bf16.gmra.mxu3 %v1253_v49 }
  0xaf   : > { %555 = vmatmul.bf16.gmra.mxu1 %v1253_v49  ;;  %702 = vmatmul.bf16.gmra.mxu0 %v1253_v49 }
  0xb1   : > { %v497_v48 = vpop.f32.mrf.mxu2  ;;  %v507_v22 = vpop.f32.mrf.mxu3 }
  0xb2   : > { %v1471_v23 = vadd.f32 %v497_v48, %v1464_v21  ;;  %v1474_v24 = vadd.f32 %v507_v22, %v1464_v21  ;;  %v479_v25 = vpop.f32.mrf.mxu0  ;;  %v1476_v26 = vpop.f32.mrf.mxu1 }
  0xb3   : > { %v480_v62 = vadd.f32 %v479_v25, %v1464_v21 }
  0xb9   : > { %v499_v27 = vpop.f32.mrf.mxu2  ;;  %v509_v28 = vpop.f32.mrf.mxu3 }
  0xba   : > { %v1479_v29 = vadd.f32 %v499_v27, %v1464_v21  ;;  %v1482_v30 = vadd.f32 %v509_v28, %v1464_v21  ;;  %v482_v49 = vpop.f32.mrf.mxu0  ;;  %v1484_v31 = vpop.f32.mrf.mxu1 }
  0xbb   : > { %v483_v10 = vadd.f32 %v482_v49, %v1464_v21 }
  0xbe   : > { %609 = vmatmul.bf16.gmra.mxu2 %v1369_v47  ;;  %658 = vmatmul.bf16.gmra.mxu3 %v1369_v47 }
  0xbf   : > { %560 = vmatmul.bf16.gmra.mxu1 %v1369_v47  ;;  %707 = vmatmul.bf16.gmra.mxu0 %v1369_v47  ;;  %v478_v47 = vadd.f32 %v477_v43, %v1464_v21 }
  0xc1   : > { %v502_v32 = vpop.f32.mrf.mxu2  ;;  %v512_v33 = vpop.f32.mrf.mxu3 }
  0xc2   : > { %v1491_v34 = vadd.f32 %v502_v32, %v1464_v21  ;;  %v1494_v35 = vadd.f32 %v512_v33, %v1464_v21  ;;  %v484_v36 = vpop.f32.mrf.mxu0  ;;  %v1496_v37 = vpop.f32.mrf.mxu1 }
  0xc3   : > { %v485_v48 = vadd.f32 %v484_v36, %v1464_v21 }
  0xc9   : > { %v504_v39 = vpop.f32.mrf.mxu2  ;;  %v514_v40 = vpop.f32.mrf.mxu3 }
  0xca   : > { %v1504_v42 = vadd.f32 %v504_v39, %v1464_v21  ;;  %v1507_v45 = vadd.f32 %v514_v40, %v1464_v21 }
  0xcc   : > { %v526_v46 = vpop.f32.mrf.mxu1  ;;  %v673_v51 = vpop.f32.mrf.mxu0 }
  0xcd   : > { %v527_v50 = vadd.f32 %v526_v46, %v1498_v38  ;;  %v674_v52 = vadd.f32 %v673_v51, %v1501_v41 }
  0xcf   : > { %v713_v53 = vpack.c.bf16 %v527_v50, %v478_v47  ;;  %v715_v55 = vpack.c.bf16 %v674_v52, %v674_v52  ;;  %v488_v47 = vadd.f32 %v1459_v44, %v1464_v21 }
  0xd1   : > { %761 = vst [vmem:[%s1514_s30] sm:$0xff] %v713_v53  ;;  %v575_v57 = vpop.f32.mrf.mxu2  ;;  %v624_v59 = vpop.f32.mrf.mxu3 }
  0xd2   : > { %763 = vst [vmem:[%s1514_s30 + $0x10] sm:$0xf] %v715_v55  ;;  %v576_v58 = vadd.f32 %v575_v57, %v1517_v54  ;;  %v625_v60 = vadd.f32 %v624_v59, %v1519_v56 }
  0xd4   : > { %v528_v61 = vpop.f32.mrf.mxu1  ;;  %v675_v0 = vpop.f32.mrf.mxu0  ;;  %v714_v1 = vpack.c.bf16 %v625_v60, %v576_v58 }
  0xd5   : > { %v529_v63 = vadd.f32 %v528_v61, %v1498_v38  ;;  %v676_v2 = vadd.f32 %v675_v0, %v1501_v41 }
  0xd6   : > { %762 = vst [vmem:[%s1514_s30 + $0x8] sm:$0xff] %v714_v1 }
  0xd7   : > { %v716_v3 = vpack.c.bf16 %v529_v63, %v480_v62  ;;  %v718_v4 = vpack.c.bf16 %v676_v2, %v676_v2  ;;  %v490_v62 = vadd.f32 %v1476_v26, %v1464_v21 }
  0xd9   : > { %764 = vst [vmem:[%s1514_s30 + $0x14] sm:$0xff] %v716_v3  ;;  %v577_v5 = vpop.f32.mrf.mxu2  ;;  %v626_v7 = vpop.f32.mrf.mxu3 }
  0xda   : > { %766 = vst [vmem:[%s1514_s30 + $0x24] sm:$0xf] %v718_v4  ;;  %v578_v6 = vadd.f32 %v577_v5, %v1517_v54  ;;  %v627_v8 = vadd.f32 %v626_v7, %v1519_v56 }
  0xdc   : > { %v531_v9 = vpop.f32.mrf.mxu1  ;;  %v678_v12 = vpop.f32.mrf.mxu0  ;;  %v717_v13 = vpack.c.bf16 %v627_v8, %v578_v6 }
  0xdd   : > { %v532_v11 = vadd.f32 %v531_v9, %v1498_v38  ;;  %v679_v14 = vadd.f32 %v678_v12, %v1501_v41  ;;  %v493_v9 = vadd.f32 %v1484_v31, %v1464_v21 }
  0xde   : > { %765 = vst [vmem:[%s1514_s30 + $0x1c] sm:$0xff] %v717_v13 }
  0xdf   : > { %v719_v15 = vpack.c.bf16 %v532_v11, %v483_v10  ;;  %v721_v16 = vpack.c.bf16 %v679_v14, %v679_v14 }
  0xe1   : > { %767 = vst [vmem:[%s1514_s30 + $0x28] sm:$0xff] %v719_v15  ;;  %v580_v17 = vpop.f32.mrf.mxu2  ;;  %v629_v19 = vpop.f32.mrf.mxu3 }
  0xe2   : > { %769 = vst [vmem:[%s1514_s30 + $0x38] sm:$0xf] %v721_v16  ;;  %v581_v18 = vadd.f32 %v580_v17, %v1517_v54  ;;  %v630_v43 = vadd.f32 %v629_v19, %v1519_v56 }
  0xe4   : > { %v533_v20 = vpop.f32.mrf.mxu1  ;;  %v680_v25 = vpop.f32.mrf.mxu0  ;;  %v720_v27 = vpack.c.bf16 %v630_v43, %v581_v18  ;;  %v495_v43 = vadd.f32 %v1496_v37, %v1464_v21 }
  0xe5   : > { %v534_v22 = vadd.f32 %v533_v20, %v1498_v38  ;;  %v681_v28 = vadd.f32 %v680_v25, %v1501_v41 }
  0xe6   : > { %768 = vst [vmem:[%s1514_s30 + $0x30] sm:$0xff] %v720_v27 }
  0xe7   : > { %v722_v49 = vpack.c.bf16 %v534_v22, %v485_v48  ;;  %v724_v32 = vpack.c.bf16 %v681_v28, %v681_v28 }
  0xe9   : > { %770 = vst [vmem:[%s1514_s30 + $0x3c] sm:$0xff] %v722_v49  ;;  %v582_v33 = vpop.f32.mrf.mxu2  ;;  %v631_v40 = vpop.f32.mrf.mxu3 }
  0xea   : > { %772 = vst [vmem:[%s1514_s30 + $0x4c] sm:$0xf] %v724_v32  ;;  %v583_v39 = vadd.f32 %v582_v33, %v1517_v54  ;;  %v632_v36 = vadd.f32 %v631_v40, %v1519_v56 }
  0xec   : > { %v536_v46 = vpop.f32.mrf.mxu1  ;;  %v683_v51 = vpop.f32.mrf.mxu0  ;;  %v723_v52 = vpack.c.bf16 %v632_v36, %v583_v39 }
  0xed   : > { %v537_v50 = vadd.f32 %v536_v46, %v1498_v38  ;;  %v684_v53 = vadd.f32 %v683_v51, %v1501_v41 }
  0xee   : > { %771 = vst [vmem:[%s1514_s30 + $0x44] sm:$0xff] %v723_v52 }
  0xef   : > { %v725_v55 = vpack.c.bf16 %v537_v50, %v488_v47  ;;  %v727_v57 = vpack.c.bf16 %v684_v53, %v684_v53 }
  0xf1   : > { %773 = vst [vmem:[%s1514_s30 + $0x50] sm:$0xff] %v725_v55  ;;  %v585_v58 = vpop.f32.mrf.mxu2  ;;  %v634_v60 = vpop.f32.mrf.mxu3 }
  0xf2   : > { %775 = vst [vmem:[%s1514_s30 + $0x60] sm:$0xf] %v727_v57  ;;  %v586_v59 = vadd.f32 %v585_v58, %v1517_v54  ;;  %v635_v44 = vadd.f32 %v634_v60, %v1519_v56 }
  0xf4   : > { %v538_v61 = vpop.f32.mrf.mxu1  ;;  %v685_v0 = vpop.f32.mrf.mxu0  ;;  %v726_v1 = vpack.c.bf16 %v635_v44, %v586_v59 }
  0xf5   : > { %v539_v63 = vadd.f32 %v538_v61, %v1498_v38  ;;  %v686_v2 = vadd.f32 %v685_v0, %v1501_v41 }
  0xf6   : > { %774 = vst [vmem:[%s1514_s30 + $0x58] sm:$0xff] %v726_v1 }
  0xf7   : > { %v728_v3 = vpack.c.bf16 %v539_v63, %v490_v62  ;;  %v730_v4 = vpack.c.bf16 %v686_v2, %v686_v2 }
  0xf9   : > { %776 = vst [vmem:[%s1514_s30 + $0x64] sm:$0xff] %v728_v3  ;;  %v587_v5 = vpop.f32.mrf.mxu2  ;;  %v636_v7 = vpop.f32.mrf.mxu3 }
  0xfa   : > { %778 = vst [vmem:[%s1514_s30 + $0x74] sm:$0xf] %v730_v4  ;;  %v588_v6 = vadd.f32 %v587_v5, %v1517_v54  ;;  %v637_v26 = vadd.f32 %v636_v7, %v1519_v56 }
  0xfc   : > { %v541_v8 = vpop.f32.mrf.mxu1  ;;  %v688_v11 = vpop.f32.mrf.mxu0  ;;  %v729_v12 = vpack.c.bf16 %v637_v26, %v588_v6 }
  0xfd   : > { %v542_v10 = vadd.f32 %v541_v8, %v1498_v38  ;;  %v689_v13 = vadd.f32 %v688_v11, %v1501_v41 }
  0xfe   : > { %777 = vst [vmem:[%s1514_s30 + $0x6c] sm:$0xff] %v729_v12 }
  0xff   : > { %v731_v14 = vpack.c.bf16 %v542_v10, %v493_v9  ;;  %v733_v15 = vpack.c.bf16 %v689_v13, %v689_v13 }
 0x101   : > { %779 = vst [vmem:[%s1514_s30 + $0x78] sm:$0xff] %v731_v14  ;;  %v590_v16 = vpop.f32.mrf.mxu2  ;;  %v639_v18 = vpop.f32.mrf.mxu3 }
 0x102   : > { %781 = vst [vmem:[%s1514_s30 + $0x88] sm:$0xf] %v733_v15  ;;  %v591_v17 = vadd.f32 %v590_v16, %v1517_v54  ;;  %v640_v31 = vadd.f32 %v639_v18, %v1519_v56 }
 0x104   : > { %v543_v19 = vpop.f32.mrf.mxu1  ;;  %v690_v48 = vpop.f32.mrf.mxu0  ;;  %v732_v22 = vpack.c.bf16 %v640_v31, %v591_v17 }
 0x105   : > { %v544_v20 = vadd.f32 %v543_v19, %v1498_v38  ;;  %v691_v25 = vadd.f32 %v690_v48, %v1501_v41 }
 0x106   : > { %780 = vst [vmem:[%s1514_s30 + $0x80] sm:$0xff] %v732_v22 }
 0x107   : > { %v734_v27 = vpack.c.bf16 %v544_v20, %v495_v43  ;;  %v736_v28 = vpack.c.bf16 %v691_v25, %v691_v25 }
 0x109   : > { %782 = vst [vmem:[%s1514_s30 + $0x8c] sm:$0xff] %v734_v27  ;;  %v592_v49 = vpop.f32.mrf.mxu2  ;;  %v641_v33 = vpop.f32.mrf.mxu3 }
 0x10a   : > { %784 = vst [vmem:[%s1514_s30 + $0x9c] sm:$0xf] %v736_v28  ;;  %v593_v32 = vadd.f32 %v592_v49, %v1517_v54  ;;  %v642_v21 = vadd.f32 %v641_v33, %v1519_v56 }
 0x10c   : > { %v546_v37 = vpop.f32.mrf.mxu1  ;;  %v693_v40 = vpop.f32.mrf.mxu0  ;;  %v735_v36 = vpack.c.bf16 %v642_v21, %v593_v32 }
 0x10d   : > { %v547_v39 = vadd.f32 %v546_v37, %v1498_v38  ;;  %v694_v46 = vadd.f32 %v693_v40, %v1501_v41 }
 0x10e   : > { %783 = vst [vmem:[%s1514_s30 + $0x94] sm:$0xff] %v735_v36 }
 0x10f   : > { %v737_v47 = vpack.c.bf16 %v547_v39, %v1471_v23  ;;  %v739_v50 = vpack.c.bf16 %v694_v46, %v694_v46 }
 0x111   : > { %785 = vst [vmem:[%s1514_s30 + $0xa0] sm:$0xff] %v737_v47  ;;  %v595_v51 = vpop.f32.mrf.mxu2  ;;  %v644_v53 = vpop.f32.mrf.mxu3 }
 0x112   : > { %787 = vst [vmem:[%s1514_s30 + $0xb0] sm:$0xf] %v739_v50  ;;  %v596_v52 = vadd.f32 %v595_v51, %v1517_v54  ;;  %v645_v55 = vadd.f32 %v644_v53, %v1519_v56 }
 0x114   : > { %v548_v57 = vpop.f32.mrf.mxu1  ;;  %v695_v59 = vpop.f32.mrf.mxu0  ;;  %v738_v60 = vpack.c.bf16 %v645_v55, %v596_v52 }
 0x115   : > { %v549_v58 = vadd.f32 %v548_v57, %v1498_v38  ;;  %v696_v44 = vadd.f32 %v695_v59, %v1501_v41 }
 0x116   : > { %786 = vst [vmem:[%s1514_s30 + $0xa8] sm:$0xff] %v738_v60 }
 0x117   : > { %v740_v23 = vpack.c.bf16 %v549_v58, %v1479_v29  ;;  %v742_v61 = vpack.c.bf16 %v696_v44, %v696_v44 }
 0x119   : > { %788 = vst [vmem:[%s1514_s30 + $0xb4] sm:$0xff] %v740_v23  ;;  %v597_v62 = vpop.f32.mrf.mxu2  ;;  %v646_v0 = vpop.f32.mrf.mxu3 }
 0x11a   : > { %790 = vst [vmem:[%s1514_s30 + $0xc4] sm:$0xf] %v742_v61  ;;  %v598_v63 = vadd.f32 %v597_v62, %v1517_v54  ;;  %v647_v1 = vadd.f32 %v646_v0, %v1519_v56 }
 0x11c   : > { %v551_v2 = vpop.f32.mrf.mxu1  ;;  %v698_v4 = vpop.f32.mrf.mxu0  ;;  %v741_v5 = vpack.c.bf16 %v647_v1, %v598_v63 }
 0x11d   : > { %v552_v3 = vadd.f32 %v551_v2, %v1498_v38  ;;  %v699_v6 = vadd.f32 %v698_v4, %v1501_v41 }
 0x11e   : > { %789 = vst [vmem:[%s1514_s30 + $0xbc] sm:$0xff] %v741_v5 }
 0x11f   : > { %v743_v29 = vpack.c.bf16 %v552_v3, %v1491_v34  ;;  %v745_v7 = vpack.c.bf16 %v699_v6, %v699_v6 }
 0x121   : > { %791 = vst [vmem:[%s1514_s30 + $0xc8] sm:$0xff] %v743_v29  ;;  %v600_v26 = vpop.f32.mrf.mxu2  ;;  %v649_v9 = vpop.f32.mrf.mxu3 }
 0x122   : > { %793 = vst [vmem:[%s1514_s30 + $0xd8] sm:$0xf] %v745_v7  ;;  %v601_v8 = vadd.f32 %v600_v26, %v1517_v54  ;;  %v650_v10 = vadd.f32 %v649_v9, %v1519_v56 }
 0x124   : > { %v553_v11 = vpop.f32.mrf.mxu1  ;;  %v700_v13 = vpop.f32.mrf.mxu0  ;;  %v744_v14 = vpack.c.bf16 %v650_v10, %v601_v8 }
 0x125   : > { %v554_v12 = vadd.f32 %v553_v11, %v1498_v38  ;;  %v701_v15 = vadd.f32 %v700_v13, %v1501_v41 }
 0x126   : > { %792 = vst [vmem:[%s1514_s30 + $0xd0] sm:$0xff] %v744_v14 }
 0x127   : > { %v746_v34 = vpack.c.bf16 %v554_v12, %v1504_v42  ;;  %v748_v16 = vpack.c.bf16 %v701_v15, %v701_v15 }
 0x129   : > { %794 = vst [vmem:[%s1514_s30 + $0xdc] sm:$0xff] %v746_v34  ;;  %v602_v17 = vpop.f32.mrf.mxu2  ;;  %v651_v31 = vpop.f32.mrf.mxu3 }
 0x12a   : > { %796 = vst [vmem:[%s1514_s30 + $0xec] sm:$0xf] %v748_v16  ;;  %v603_v18 = vadd.f32 %v602_v17, %v1517_v54  ;;  %v652_v19 = vadd.f32 %v651_v31, %v1519_v56 }
 0x12c   : > { %v556_v43 = vpop.f32.mrf.mxu1  ;;  %v703_v48 = vpop.f32.mrf.mxu0  ;;  %v747_v22 = vpack.c.bf16 %v652_v19, %v603_v18 }
 0x12d   : > { %v557_v20 = vadd.f32 %v556_v43, %v1498_v38  ;;  %v704_v25 = vadd.f32 %v703_v48, %v1501_v41 }
 0x12e   : > { %795 = vst [vmem:[%s1514_s30 + $0xe4] sm:$0xff] %v747_v22 }
 0x12f   : > { %v749_v42 = vpack.c.bf16 %v557_v20, %v1474_v24  ;;  %v751_v27 = vpack.c.bf16 %v704_v25, %v704_v25 }
 0x131   : > { %797 = vst [vmem:[%s1514_s30 + $0xf0] sm:$0xff] %v749_v42  ;;  %v605_v28 = vpop.f32.mrf.mxu2  ;;  %v654_v32 = vpop.f32.mrf.mxu3 }
 0x132   : > { %799 = vst [vmem:[%s1514_s30 + $0x100] sm:$0xf] %v751_v27  ;;  %v606_v49 = vadd.f32 %v605_v28, %v1517_v54  ;;  %v655_v33 = vadd.f32 %v654_v32, %v1519_v56 }
 0x134   : > { %v558_v21 = vpop.f32.mrf.mxu1  ;;  %v705_v39 = vpop.f32.mrf.mxu0  ;;  %v750_v40 = vpack.c.bf16 %v655_v33, %v606_v49 }
 0x135   : > { %v559_v37 = vadd.f32 %v558_v21, %v1498_v38  ;;  %v706_v36 = vadd.f32 %v705_v39, %v1501_v41 }
 0x136   : > { %798 = vst [vmem:[%s1514_s30 + $0xf8] sm:$0xff] %v750_v40 }
 0x137   : > { %v752_v24 = vpack.c.bf16 %v559_v37, %v1482_v30  ;;  %v754_v46 = vpack.c.bf16 %v706_v36, %v706_v36 }
 0x139   : > { %800 = vst [vmem:[%s1514_s30 + $0x104] sm:$0xff] %v752_v24  ;;  %v607_v47 = vpop.f32.mrf.mxu2  ;;  %v656_v51 = vpop.f32.mrf.mxu3 }
 0x13a   : > { %802 = vst [vmem:[%s1514_s30 + $0x114] sm:$0xf] %v754_v46  ;;  %v608_v50 = vadd.f32 %v607_v47, %v1517_v54  ;;  %v657_v52 = vadd.f32 %v656_v51, %v1519_v56 }
 0x13c   : > { %v561_v53 = vpop.f32.mrf.mxu1  ;;  %v708_v57 = vpop.f32.mrf.mxu0  ;;  %v753_v58 = vpack.c.bf16 %v657_v52, %v608_v50 }
 0x13d   : > { %v562_v55 = vadd.f32 %v561_v53, %v1498_v38  ;;  %v709_v59 = vadd.f32 %v708_v57, %v1501_v41 }
 0x13e   : > { %801 = vst [vmem:[%s1514_s30 + $0x10c] sm:$0xff] %v753_v58 }
 0x13f   : > { %v755_v30 = vpack.c.bf16 %v562_v55, %v1494_v35  ;;  %v757_v60 = vpack.c.bf16 %v709_v59, %v709_v59 }
 0x141   : > { %803 = vst [vmem:[%s1514_s30 + $0x118] sm:$0xff] %v755_v30  ;;  %v610_v44 = vpop.f32.mrf.mxu2  ;;  %v659_v61 = vpop.f32.mrf.mxu3 }
 0x142   : > { %805 = vst [vmem:[%s1514_s30 + $0x128] sm:$0xf] %v757_v60  ;;  %v611_v23 = vadd.f32 %v610_v44, %v1517_v54  ;;  %v660_v62 = vadd.f32 %v659_v61, %v1519_v56 }
 0x144   : > { %v563_v63 = vpop.f32.mrf.mxu1  ;;  %v710_v1 = vpop.f32.mrf.mxu0  ;;  %v756_v2 = vpack.c.bf16 %v660_v62, %v611_v23 }
 0x145   : > { %v564_v0 = vadd.f32 %v563_v63, %v1498_v38  ;;  %v711_v35 = vadd.f32 %v710_v1, %v1501_v41 }
 0x146   : > { %804 = vst [vmem:[%s1514_s30 + $0x120] sm:$0xff] %v756_v2 }
 0x147   : > { %v758_v3 = vpack.c.bf16 %v564_v0, %v1507_v45  ;;  %v760_v4 = vpack.c.bf16 %v711_v35, %v711_v35 }
 0x149   : > { %806 = vst [vmem:[%s1514_s30 + $0x12c] sm:$0xff] %v758_v3  ;;  %v612_v5 = vpop.f32.mrf.mxu2  ;;  %v661_v29 = vpop.f32.mrf.mxu3 }
 0x14a   : > { %808 = vst [vmem:[%s1514_s30 + $0x13c] sm:$0xf] %v760_v4  ;;  %v613_v6 = vadd.f32 %v612_v5, %v1517_v54  ;;  %v662_v7 = vadd.f32 %v661_v29, %v1519_v56 }
 0x14c   : > { %v759_v26 = vpack.c.bf16 %v662_v7, %v613_v6 }
 0x14e   : > { %807 = vst [vmem:[%s1514_s30 + $0x134] sm:$0xff] %v759_v26 }
 0x14f PF: > { %s13_s12 = sadd.s32 1, %s1117_s12  }
 0x150   : > { %p10_p4 = scmp.ge.s32.totalorder %s13_s12, 5  }
 0x152   :  { %12 = sbr.rel (!%p10_p4) target bundleno = 1 (0x1), region = 62 }

// kernel: sym_gated_gcn.4
= control target key start
LH: loop header
LB: loop body
LE: loop exit
PB: predicated region body
PF: predicated region fallthrough
CT: control target
= control target key end

     0   :  { %s7620_s13 = smov 0   ;;  %s7622_s14 = smov 0   ;;  %s13605_s0 = inlined_call_operand.vmem [shape: s32[1024,1], index: 0, kind: input, shape index: {}]   ;;  %s13606_s1 = inlined_call_operand.vmem [shape: s32[1024,1], index: 1, kind: input, shape index: {}]   ;;  %s13607_s2 = inlined_call_operand.vmem [shape: f32[1024,128], index: 2, kind: input, shape index: {}, may-alias: {2,6}]   ;;  %s13608_s3 = inlined_call_operand.vmem [shape: bf16[384,640], index: 3, kind: input, shape index: {}]   ;;  %s13609_s4 = inlined_call_operand.vmem [shape: bf16[128,128], index: 4, kind: input, shape index: {}]   ;;  %s13610_s5 = inlined_call_operand.vmem [shape: f32[1,128], index: 5, kind: input, shape index: {}]   ;;  %s13611_s6 = inlined_call_operand.vmem [shape: f32[1024,128], index: 6, kind: output, shape index: {0}, may-alias: {2,6}]   ;;  %s13612_s7 = inlined_call_operand.vmem [shape: f32[2,384,128], index: 7, kind: output, shape index: {1}]   ;;  %s13613_s8 = inlined_call_operand.vmem [shape: f32[2,384,128], index: 8, kind: output, shape index: {2}]   ;;  %s13614_s9 = inlined_call_operand.vmem [shape: f32[2,384,128], index: 9, kind: output, shape index: {3}]   ;;  %s13615_s10 = inlined_call_operand.vmem [shape: f32[2,384,128], index: 10, kind: output, shape index: {4}]  }
   0x1   :  { %13981 = sst [smem:[#allocation115_spill]] %s13605_s0  ;;  %s7624_s15 = smov 0  }
   0x2   :  { %13982 = sst [smem:[#allocation116_spill]] %s13606_s1  ;;  %s7626_s16 = smov 0  }
   0x3   :  { %13983 = sst [smem:[#allocation117_spill]] %s13607_s2  ;;  %s7628_s17 = smov 0  }
   0x4 LB: > { %s30_s18 = sadd.s32 1, %s7543_s15  ;;  %s33_s19 = sadd.s32 1, %s7547_s16  ;;  %s7551_s17 = sphi %s7628_s17, %s21_s17   ;;  %s7547_s16 = sphi %s7626_s16, %s15001_s16   ;;  %s7543_s15 = sphi %s7624_s15, %s15000_s15   ;;  %s7539_s14 = sphi %s7622_s14, %s14999_s14   ;;  %s7535_s13 = sphi %s7620_s13, %s14998_s13  }
   0x5   : > { %p31_p0 = scmp.ge.s32.totalorder %s30_s18, 2  ;;  %p5907_p1 = scmp.ge.s32.totalorder %s7551_s17, 1 }
   0x6   : > { %p384_p2 = scmp.lt.s32.totalorder %s7551_s17, 5 }
   0x7   : > { %s15003_s18 = smov (%p31_p0, %s30_s18), 0  ;;  %s15005_s19 = smov (!%p31_p0, %s33_s19), %s7547_s16 }
   0x8   : > { %13984 = sst [smem:[#allocation2_spill]] %s15003_s18  ;;  %p385_p3 = pnand %p5907_p1, %p384_p2 }
   0x9   : > { %p35_p4 = scmp.ge.s32.totalorder %s15005_s19, 2 }
   0xa   : > { %388 = sbr.rel (%p385_p3) target bundleno = 2264 (0x8d8), region = 44 }
   0xb   : > { %s15007_s19 = smov (%p35_p4, %s15005_s19), 0 }
   0xc   : > { %13985 = sst [smem:[#allocation3_spill]] %s15007_s19 }
   0xf   : > { %s5908_s20 = sshll.u32 %s7539_s14, 1  ;;  %p500_p5 = scmp.lt.s32.totalorder %s7539_s14, 1 }
  0x10   : > { %s461_s21 = sadd.s32 %s7535_s13, %s5908_s20  ;;  %s13986_s0 = sld [smem:[#allocation115_spill]] }
  0x11   : > { %s5909_s22 = sshll.u32 %s461_s21, 5  ;;  %s15009_s14 = smov (!%p500_p5, %s7539_s14), 1 }
  0x12   : > { %p463_p6 = scmp.lt.s32.totalorder %s5909_s22, 127  ;;  %s7399_s23 = smul.u32 384, %s15009_s14 }
  0x13   : > { %s13987_s1 = sld [smem:[#allocation116_spill]]  ;;  %p5924_p7 = scmp.ne.s32.totalorder %s7535_s13, 0 }
  0x14   : > { %s15011_s22 = smov (!%p463_p6, %s5909_s22), 127  ;;  %s13988_s2 = sld [smem:[#allocation117_spill]] }
  0x15   : > { %s5910_s24 = sshll.u32 %s15011_s22, 3  ;;  %s7676_s25 = scalar_lea.vmem %s13612_s7, %s7399_s23 }
  0x16   : > { %s7656_s27 = scalar_lea.vmem %s13986_s0, %s5910_s24  ;;  %s7671_s14 = scalar_lea.vmem %s13611_s6, %s5910_s24 }
  0x17   : > { %s7681_s28 = scalar_lea.vmem %s13613_s8, %s7399_s23  ;;  %s7686_s11 = scalar_lea.vmem %s13614_s9, %s7399_s23 }
  0x18   : > { %s7691_s19 = scalar_lea.vmem %s13615_s10, %s7399_s23  ;;  %523 = sbr.rel (%p5924_p7) target bundleno = 222 (0xde), region = 48 }
  0x19   : > { %s7661_s30 = scalar_lea.vmem %s13987_s1, %s5910_s24 }
  0x1a   : > { %s7666_s20 = scalar_lea.vmem %s13988_s2, %s5910_s24 }
  0x1d   : > { %v7553_v0 = vmov 0.0  }
  0x1e   : > { %524 = vst [vmem:[%s7676_s25] sm:$0xff] %v7553_v0 }
  0x1f   : > { %525 = vst [vmem:[%s7676_s25 + $0x8] sm:$0xff] %v7553_v0 }
  0x20   : > { %526 = vst [vmem:[%s7676_s25 + $0x10] sm:$0xff] %v7553_v0 }
  0x21   : > { %527 = vst [vmem:[%s7676_s25 + $0x18] sm:$0xff] %v7553_v0 }
  0x22   : > { %528 = vst [vmem:[%s7676_s25 + $0x20] sm:$0xff] %v7553_v0 }
  0x23   : > { %529 = vst [vmem:[%s7676_s25 + $0x28] sm:$0xff] %v7553_v0 }
  0x24   : > { %530 = vst [vmem:[%s7676_s25 + $0x30] sm:$0xff] %v7553_v0 }
  0x25   : > { %531 = vst [vmem:[%s7676_s25 + $0x38] sm:$0xff] %v7553_v0 }
  0x26   : > { %532 = vst [vmem:[%s7676_s25 + $0x40] sm:$0xff] %v7553_v0 }
  0x27   : > { %533 = vst [vmem:[%s7676_s25 + $0x48] sm:$0xff] %v7553_v0 }
  0x28   : > { %534 = vst [vmem:[%s7676_s25 + $0x50] sm:$0xff] %v7553_v0 }
  0x29   : > { %535 = vst [vmem:[%s7676_s25 + $0x58] sm:$0xff] %v7553_v0 }
  0x2a   : > { %536 = vst [vmem:[%s7676_s25 + $0x60] sm:$0xff] %v7553_v0 }
  0x2b   : > { %537 = vst [vmem:[%s7676_s25 + $0x68] sm:$0xff] %v7553_v0 }
  0x2c   : > { %538 = vst [vmem:[%s7676_s25 + $0x70] sm:$0xff] %v7553_v0 }
  0x2d   : > { %539 = vst [vmem:[%s7676_s25 + $0x78] sm:$0xff] %v7553_v0 }
  0x2e   : > { %540 = vst [vmem:[%s7676_s25 + $0x80] sm:$0xff] %v7553_v0 }
  0x2f   : > { %541 = vst [vmem:[%s7676_s25 + $0x88] sm:$0xff] %v7553_v0 }
  0x30   : > { %542 = vst [vmem:[%s7676_s25 + $0x90] sm:$0xff] %v7553_v0 }
  0x31   : > { %543 = vst [vmem:[%s7676_s25 + $0x98] sm:$0xff] %v7553_v0 }
  0x32   : > { %544 = vst [vmem:[%s7676_s25 + $0xa0] sm:$0xff] %v7553_v0 }
  0x33   : > { %545 = vst [vmem:[%s7676_s25 + $0xa8] sm:$0xff] %v7553_v0 }
  0x34   : > { %546 = vst [vmem:[%s7676_s25 + $0xb0] sm:$0xff] %v7553_v0 }
  0x35   : > { %547 = vst [vmem:[%s7676_s25 + $0xb8] sm:$0xff] %v7553_v0 }
  0x36   : > { %548 = vst [vmem:[%s7676_s25 + $0xc0] sm:$0xff] %v7553_v0 }
  0x37   : > { %549 = vst [vmem:[%s7676_s25 + $0xc8] sm:$0xff] %v7553_v0 }
  0x38   : > { %550 = vst [vmem:[%s7676_s25 + $0xd0] sm:$0xff] %v7553_v0 }
  0x39   : > { %551 = vst [vmem:[%s7676_s25 + $0xd8] sm:$0xff] %v7553_v0 }
  0x3a   : > { %552 = vst [vmem:[%s7676_s25 + $0xe0] sm:$0xff] %v7553_v0 }
  0x3b   : > { %553 = vst [vmem:[%s7676_s25 + $0xe8] sm:$0xff] %v7553_v0 }
  0x3c   : > { %554 = vst [vmem:[%s7676_s25 + $0xf0] sm:$0xff] %v7553_v0 }
  0x3d   : > { %555 = vst [vmem:[%s7676_s25 + $0xf8] sm:$0xff] %v7553_v0 }
  0x3e   : > { %556 = vst [vmem:[%s7676_s25 + $0x100] sm:$0xff] %v7553_v0 }
  0x3f   : > { %557 = vst [vmem:[%s7676_s25 + $0x108] sm:$0xff] %v7553_v0 }
  0x40   : > { %558 = vst [vmem:[%s7676_s25 + $0x110] sm:$0xff] %v7553_v0 }
  0x41   : > { %559 = vst [vmem:[%s7676_s25 + $0x118] sm:$0xff] %v7553_v0 }
  0x42   : > { %560 = vst [vmem:[%s7676_s25 + $0x120] sm:$0xff] %v7553_v0 }
  0x43   : > { %561 = vst [vmem:[%s7676_s25 + $0x128] sm:$0xff] %v7553_v0 }
  0x44   : > { %562 = vst [vmem:[%s7676_s25 + $0x130] sm:$0xff] %v7553_v0 }
  0x45   : > { %563 = vst [vmem:[%s7676_s25 + $0x138] sm:$0xff] %v7553_v0 }
  0x46   : > { %564 = vst [vmem:[%s7676_s25 + $0x140] sm:$0xff] %v7553_v0 }
  0x47   : > { %565 = vst [vmem:[%s7676_s25 + $0x148] sm:$0xff] %v7553_v0 }
  0x48   : > { %566 = vst [vmem:[%s7676_s25 + $0x150] sm:$0xff] %v7553_v0 }
  0x49   : > { %567 = vst [vmem:[%s7676_s25 + $0x158] sm:$0xff] %v7553_v0 }
  0x4a   : > { %568 = vst [vmem:[%s7676_s25 + $0x160] sm:$0xff] %v7553_v0 }
  0x4b   : > { %569 = vst [vmem:[%s7676_s25 + $0x168] sm:$0xff] %v7553_v0 }
  0x4c   : > { %570 = vst [vmem:[%s7676_s25 + $0x170] sm:$0xff] %v7553_v0 }
  0x4d   : > { %571 = vst [vmem:[%s7676_s25 + $0x178] sm:$0xff] %v7553_v0 }
  0x4e   : > { %572 = vst [vmem:[%s7681_s28] sm:$0xff] %v7553_v0 }
  0x4f   : > { %573 = vst [vmem:[%s7681_s28 + $0x8] sm:$0xff] %v7553_v0 }
  0x50   : > { %574 = vst [vmem:[%s7681_s28 + $0x10] sm:$0xff] %v7553_v0 }
  0x51   : > { %575 = vst [vmem:[%s7681_s28 + $0x18] sm:$0xff] %v7553_v0 }
  0x52   : > { %576 = vst [vmem:[%s7681_s28 + $0x20] sm:$0xff] %v7553_v0 }
  0x53   : > { %577 = vst [vmem:[%s7681_s28 + $0x28] sm:$0xff] %v7553_v0 }
  0x54   : > { %578 = vst [vmem:[%s7681_s28 + $0x30] sm:$0xff] %v7553_v0 }
  0x55   : > { %579 = vst [vmem:[%s7681_s28 + $0x38] sm:$0xff] %v7553_v0 }
  0x56   : > { %580 = vst [vmem:[%s7681_s28 + $0x40] sm:$0xff] %v7553_v0 }
  0x57   : > { %581 = vst [vmem:[%s7681_s28 + $0x48] sm:$0xff] %v7553_v0 }
  0x58   : > { %582 = vst [vmem:[%s7681_s28 + $0x50] sm:$0xff] %v7553_v0 }
  0x59   : > { %583 = vst [vmem:[%s7681_s28 + $0x58] sm:$0xff] %v7553_v0 }
  0x5a   : > { %584 = vst [vmem:[%s7681_s28 + $0x60] sm:$0xff] %v7553_v0 }
  0x5b   : > { %585 = vst [vmem:[%s7681_s28 + $0x68] sm:$0xff] %v7553_v0 }
  0x5c   : > { %586 = vst [vmem:[%s7681_s28 + $0x70] sm:$0xff] %v7553_v0 }
  0x5d   : > { %587 = vst [vmem:[%s7681_s28 + $0x78] sm:$0xff] %v7553_v0 }
  0x5e   : > { %588 = vst [vmem:[%s7681_s28 + $0x80] sm:$0xff] %v7553_v0 }
  0x5f   : > { %589 = vst [vmem:[%s7681_s28 + $0x88] sm:$0xff] %v7553_v0 }
  0x60   : > { %590 = vst [vmem:[%s7681_s28 + $0x90] sm:$0xff] %v7553_v0 }
  0x61   : > { %591 = vst [vmem:[%s7681_s28 + $0x98] sm:$0xff] %v7553_v0 }
  0x62   : > { %592 = vst [vmem:[%s7681_s28 + $0xa0] sm:$0xff] %v7553_v0 }
  0x63   : > { %593 = vst [vmem:[%s7681_s28 + $0xa8] sm:$0xff] %v7553_v0 }
  0x64   : > { %594 = vst [vmem:[%s7681_s28 + $0xb0] sm:$0xff] %v7553_v0 }
  0x65   : > { %595 = vst [vmem:[%s7681_s28 + $0xb8] sm:$0xff] %v7553_v0 }
  0x66   : > { %596 = vst [vmem:[%s7681_s28 + $0xc0] sm:$0xff] %v7553_v0 }
  0x67   : > { %597 = vst [vmem:[%s7681_s28 + $0xc8] sm:$0xff] %v7553_v0 }
  0x68   : > { %598 = vst [vmem:[%s7681_s28 + $0xd0] sm:$0xff] %v7553_v0 }
  0x69   : > { %599 = vst [vmem:[%s7681_s28 + $0xd8] sm:$0xff] %v7553_v0 }
  0x6a   : > { %600 = vst [vmem:[%s7681_s28 + $0xe0] sm:$0xff] %v7553_v0 }
  0x6b   : > { %601 = vst [vmem:[%s7681_s28 + $0xe8] sm:$0xff] %v7553_v0 }
  0x6c   : > { %602 = vst [vmem:[%s7681_s28 + $0xf0] sm:$0xff] %v7553_v0 }
  0x6d   : > { %603 = vst [vmem:[%s7681_s28 + $0xf8] sm:$0xff] %v7553_v0 }
  0x6e   : > { %604 = vst [vmem:[%s7681_s28 + $0x100] sm:$0xff] %v7553_v0 }
  0x6f   : > { %605 = vst [vmem:[%s7681_s28 + $0x108] sm:$0xff] %v7553_v0 }
  0x70   : > { %606 = vst [vmem:[%s7681_s28 + $0x110] sm:$0xff] %v7553_v0 }
  0x71   : > { %607 = vst [vmem:[%s7681_s28 + $0x118] sm:$0xff] %v7553_v0 }
  0x72   : > { %608 = vst [vmem:[%s7681_s28 + $0x120] sm:$0xff] %v7553_v0 }
  0x73   : > { %609 = vst [vmem:[%s7681_s28 + $0x128] sm:$0xff] %v7553_v0 }
  0x74   : > { %610 = vst [vmem:[%s7681_s28 + $0x130] sm:$0xff] %v7553_v0 }
  0x75   : > { %611 = vst [vmem:[%s7681_s28 + $0x138] sm:$0xff] %v7553_v0 }
  0x76   : > { %612 = vst [vmem:[%s7681_s28 + $0x140] sm:$0xff] %v7553_v0 }
  0x77   : > { %613 = vst [vmem:[%s7681_s28 + $0x148] sm:$0xff] %v7553_v0 }
  0x78   : > { %614 = vst [vmem:[%s7681_s28 + $0x150] sm:$0xff] %v7553_v0 }
  0x79   : > { %615 = vst [vmem:[%s7681_s28 + $0x158] sm:$0xff] %v7553_v0 }
  0x7a   : > { %616 = vst [vmem:[%s7681_s28 + $0x160] sm:$0xff] %v7553_v0 }
  0x7b   : > { %617 = vst [vmem:[%s7681_s28 + $0x168] sm:$0xff] %v7553_v0 }
  0x7c   : > { %618 = vst [vmem:[%s7681_s28 + $0x170] sm:$0xff] %v7553_v0 }
  0x7d   : > { %619 = vst [vmem:[%s7681_s28 + $0x178] sm:$0xff] %v7553_v0 }
  0x7e   : > { %620 = vst [vmem:[%s7686_s11] sm:$0xff] %v7553_v0 }
  0x7f   : > { %621 = vst [vmem:[%s7686_s11 + $0x8] sm:$0xff] %v7553_v0 }
  0x80   : > { %622 = vst [vmem:[%s7686_s11 + $0x10] sm:$0xff] %v7553_v0 }
  0x81   : > { %623 = vst [vmem:[%s7686_s11 + $0x18] sm:$0xff] %v7553_v0 }
  0x82   : > { %624 = vst [vmem:[%s7686_s11 + $0x20] sm:$0xff] %v7553_v0 }
  0x83   : > { %625 = vst [vmem:[%s7686_s11 + $0x28] sm:$0xff] %v7553_v0 }
  0x84   : > { %626 = vst [vmem:[%s7686_s11 + $0x30] sm:$0xff] %v7553_v0 }
  0x85   : > { %627 = vst [vmem:[%s7686_s11 + $0x38] sm:$0xff] %v7553_v0 }
  0x86   : > { %628 = vst [vmem:[%s7686_s11 + $0x40] sm:$0xff] %v7553_v0 }
  0x87   : > { %629 = vst [vmem:[%s7686_s11 + $0x48] sm:$0xff] %v7553_v0 }
  0x88   : > { %630 = vst [vmem:[%s7686_s11 + $0x50] sm:$0xff] %v7553_v0 }
  0x89   : > { %631 = vst [vmem:[%s7686_s11 + $0x58] sm:$0xff] %v7553_v0 }
  0x8a   : > { %632 = vst [vmem:[%s7686_s11 + $0x60] sm:$0xff] %v7553_v0 }
  0x8b   : > { %633 = vst [vmem:[%s7686_s11 + $0x68] sm:$0xff] %v7553_v0 }
  0x8c   : > { %634 = vst [vmem:[%s7686_s11 + $0x70] sm:$0xff] %v7553_v0 }
  0x8d   : > { %635 = vst [vmem:[%s7686_s11 + $0x78] sm:$0xff] %v7553_v0 }
  0x8e   : > { %636 = vst [vmem:[%s7686_s11 + $0x80] sm:$0xff] %v7553_v0 }
  0x8f   : > { %637 = vst [vmem:[%s7686_s11 + $0x88] sm:$0xff] %v7553_v0 }
  0x90   : > { %638 = vst [vmem:[%s7686_s11 + $0x90] sm:$0xff] %v7553_v0 }
  0x91   : > { %639 = vst [vmem:[%s7686_s11 + $0x98] sm:$0xff] %v7553_v0 }
  0x92   : > { %640 = vst [vmem:[%s7686_s11 + $0xa0] sm:$0xff] %v7553_v0 }
  0x93   : > { %641 = vst [vmem:[%s7686_s11 + $0xa8] sm:$0xff] %v7553_v0 }
  0x94   : > { %642 = vst [vmem:[%s7686_s11 + $0xb0] sm:$0xff] %v7553_v0 }
  0x95   : > { %643 = vst [vmem:[%s7686_s11 + $0xb8] sm:$0xff] %v7553_v0 }
  0x96   : > { %644 = vst [vmem:[%s7686_s11 + $0xc0] sm:$0xff] %v7553_v0 }
  0x97   : > { %645 = vst [vmem:[%s7686_s11 + $0xc8] sm:$0xff] %v7553_v0 }
  0x98   : > { %646 = vst [vmem:[%s7686_s11 + $0xd0] sm:$0xff] %v7553_v0 }
  0x99   : > { %647 = vst [vmem:[%s7686_s11 + $0xd8] sm:$0xff] %v7553_v0 }
  0x9a   : > { %648 = vst [vmem:[%s7686_s11 + $0xe0] sm:$0xff] %v7553_v0 }
  0x9b   : > { %649 = vst [vmem:[%s7686_s11 + $0xe8] sm:$0xff] %v7553_v0 }
  0x9c   : > { %650 = vst [vmem:[%s7686_s11 + $0xf0] sm:$0xff] %v7553_v0 }
  0x9d   : > { %651 = vst [vmem:[%s7686_s11 + $0xf8] sm:$0xff] %v7553_v0 }
  0x9e   : > { %652 = vst [vmem:[%s7686_s11 + $0x100] sm:$0xff] %v7553_v0 }
  0x9f   : > { %653 = vst [vmem:[%s7686_s11 + $0x108] sm:$0xff] %v7553_v0 }
  0xa0   : > { %654 = vst [vmem:[%s7686_s11 + $0x110] sm:$0xff] %v7553_v0 }
  0xa1   : > { %655 = vst [vmem:[%s7686_s11 + $0x118] sm:$0xff] %v7553_v0 }
  0xa2   : > { %656 = vst [vmem:[%s7686_s11 + $0x120] sm:$0xff] %v7553_v0 }
  0xa3   : > { %657 = vst [vmem:[%s7686_s11 + $0x128] sm:$0xff] %v7553_v0 }
  0xa4   : > { %658 = vst [vmem:[%s7686_s11 + $0x130] sm:$0xff] %v7553_v0 }
  0xa5   : > { %659 = vst [vmem:[%s7686_s11 + $0x138] sm:$0xff] %v7553_v0 }
  0xa6   : > { %660 = vst [vmem:[%s7686_s11 + $0x140] sm:$0xff] %v7553_v0 }
  0xa7   : > { %661 = vst [vmem:[%s7686_s11 + $0x148] sm:$0xff] %v7553_v0 }
  0xa8   : > { %662 = vst [vmem:[%s7686_s11 + $0x150] sm:$0xff] %v7553_v0 }
  0xa9   : > { %663 = vst [vmem:[%s7686_s11 + $0x158] sm:$0xff] %v7553_v0 }
  0xaa   : > { %664 = vst [vmem:[%s7686_s11 + $0x160] sm:$0xff] %v7553_v0 }
  0xab   : > { %665 = vst [vmem:[%s7686_s11 + $0x168] sm:$0xff] %v7553_v0 }
  0xac   : > { %666 = vst [vmem:[%s7686_s11 + $0x170] sm:$0xff] %v7553_v0 }
  0xad   : > { %667 = vst [vmem:[%s7686_s11 + $0x178] sm:$0xff] %v7553_v0 }
  0xae   : > { %668 = vst [vmem:[%s7691_s19] sm:$0xff] %v7553_v0 }
  0xaf   : > { %669 = vst [vmem:[%s7691_s19 + $0x8] sm:$0xff] %v7553_v0 }
  0xb0   : > { %670 = vst [vmem:[%s7691_s19 + $0x10] sm:$0xff] %v7553_v0 }
  0xb1   : > { %671 = vst [vmem:[%s7691_s19 + $0x18] sm:$0xff] %v7553_v0 }
  0xb2   : > { %672 = vst [vmem:[%s7691_s19 + $0x20] sm:$0xff] %v7553_v0 }
  0xb3   : > { %673 = vst [vmem:[%s7691_s19 + $0x28] sm:$0xff] %v7553_v0 }
  0xb4   : > { %674 = vst [vmem:[%s7691_s19 + $0x30] sm:$0xff] %v7553_v0 }
  0xb5   : > { %675 = vst [vmem:[%s7691_s19 + $0x38] sm:$0xff] %v7553_v0 }
  0xb6   : > { %676 = vst [vmem:[%s7691_s19 + $0x40] sm:$0xff] %v7553_v0 }
  0xb7   : > { %677 = vst [vmem:[%s7691_s19 + $0x48] sm:$0xff] %v7553_v0 }
  0xb8   : > { %678 = vst [vmem:[%s7691_s19 + $0x50] sm:$0xff] %v7553_v0 }
  0xb9   : > { %679 = vst [vmem:[%s7691_s19 + $0x58] sm:$0xff] %v7553_v0 }
  0xba   : > { %680 = vst [vmem:[%s7691_s19 + $0x60] sm:$0xff] %v7553_v0 }
  0xbb   : > { %681 = vst [vmem:[%s7691_s19 + $0x68] sm:$0xff] %v7553_v0 }
  0xbc   : > { %682 = vst [vmem:[%s7691_s19 + $0x70] sm:$0xff] %v7553_v0 }
  0xbd   : > { %683 = vst [vmem:[%s7691_s19 + $0x78] sm:$0xff] %v7553_v0 }
  0xbe   : > { %684 = vst [vmem:[%s7691_s19 + $0x80] sm:$0xff] %v7553_v0 }
  0xbf   : > { %685 = vst [vmem:[%s7691_s19 + $0x88] sm:$0xff] %v7553_v0 }
  0xc0   : > { %686 = vst [vmem:[%s7691_s19 + $0x90] sm:$0xff] %v7553_v0 }
  0xc1   : > { %687 = vst [vmem:[%s7691_s19 + $0x98] sm:$0xff] %v7553_v0 }
  0xc2   : > { %688 = vst [vmem:[%s7691_s19 + $0xa0] sm:$0xff] %v7553_v0 }
  0xc3   : > { %689 = vst [vmem:[%s7691_s19 + $0xa8] sm:$0xff] %v7553_v0 }
  0xc4   : > { %690 = vst [vmem:[%s7691_s19 + $0xb0] sm:$0xff] %v7553_v0 }
  0xc5   : > { %691 = vst [vmem:[%s7691_s19 + $0xb8] sm:$0xff] %v7553_v0 }
  0xc6   : > { %692 = vst [vmem:[%s7691_s19 + $0xc0] sm:$0xff] %v7553_v0 }
  0xc7   : > { %693 = vst [vmem:[%s7691_s19 + $0xc8] sm:$0xff] %v7553_v0 }
  0xc8   : > { %694 = vst [vmem:[%s7691_s19 + $0xd0] sm:$0xff] %v7553_v0 }
  0xc9   : > { %695 = vst [vmem:[%s7691_s19 + $0xd8] sm:$0xff] %v7553_v0 }
  0xca   : > { %696 = vst [vmem:[%s7691_s19 + $0xe0] sm:$0xff] %v7553_v0 }
  0xcb   : > { %697 = vst [vmem:[%s7691_s19 + $0xe8] sm:$0xff] %v7553_v0 }
  0xcc   : > { %698 = vst [vmem:[%s7691_s19 + $0xf0] sm:$0xff] %v7553_v0 }
  0xcd   : > { %699 = vst [vmem:[%s7691_s19 + $0xf8] sm:$0xff] %v7553_v0 }
  0xce   : > { %700 = vst [vmem:[%s7691_s19 + $0x100] sm:$0xff] %v7553_v0 }
  0xcf   : > { %701 = vst [vmem:[%s7691_s19 + $0x108] sm:$0xff] %v7553_v0 }
  0xd0   : > { %702 = vst [vmem:[%s7691_s19 + $0x110] sm:$0xff] %v7553_v0 }
  0xd1   : > { %703 = vst [vmem:[%s7691_s19 + $0x118] sm:$0xff] %v7553_v0 }
  0xd2   : > { %704 = vst [vmem:[%s7691_s19 + $0x120] sm:$0xff] %v7553_v0 }
  0xd3   : > { %705 = vst [vmem:[%s7691_s19 + $0x128] sm:$0xff] %v7553_v0 }
  0xd4   : > { %706 = vst [vmem:[%s7691_s19 + $0x130] sm:$0xff] %v7553_v0 }
  0xd5   : > { %707 = vst [vmem:[%s7691_s19 + $0x138] sm:$0xff] %v7553_v0 }
  0xd6   : > { %708 = vst [vmem:[%s7691_s19 + $0x140] sm:$0xff] %v7553_v0 }
  0xd7   : > { %709 = vst [vmem:[%s7691_s19 + $0x148] sm:$0xff] %v7553_v0 }
  0xd8   : > { %710 = vst [vmem:[%s7691_s19 + $0x150] sm:$0xff] %v7553_v0 }
  0xd9   : > { %711 = vst [vmem:[%s7691_s19 + $0x158] sm:$0xff] %v7553_v0 }
  0xda   : > { %712 = vst [vmem:[%s7691_s19 + $0x160] sm:$0xff] %v7553_v0 }
  0xdb   : > { %713 = vst [vmem:[%s7691_s19 + $0x168] sm:$0xff] %v7553_v0 }
  0xdc   : > { %714 = vst [vmem:[%s7691_s19 + $0x170] sm:$0xff] %v7553_v0 }
  0xdd   : > { %715 = vst [vmem:[%s7691_s19 + $0x178] sm:$0xff] %v7553_v0 }
  0xde PF: > { %v720_v1 = vld [vmem:[%s7656_s27 + $0x20] sm:$0xff]  ;;  %v718_v2 = vld [vmem:[%s7656_s27 + $0x10] sm:$0xff]  ;;  %v7554_v4 = vmov 0   ;;  %v721_v5 = vld [vmem:[%s7656_s27 + $0x28] sm:$0xff] }
  0xdf   : > { %v716_v3 = vld [vmem:[%s7656_s27] sm:$0xff]  ;;  %7446 = vset.pattern.permute.xlu2 %v7554_v4  ;;  %7445 = vset.pattern.permute.xlu1 %v7554_v4  ;;  %v719_v6 = vld [vmem:[%s7656_s27 + $0x18] sm:$0xff]  ;;  %v717_v7 = vld [vmem:[%s7656_s27 + $0x8] sm:$0xff] }
  0xe0   : > { %7444 = vset.pattern.permute.xlu0 %v7554_v4  ;;  %797 = vperm.xlu2 %7446, %v720_v1   ;;  %v724_v8 = vld [vmem:[%s7656_s27 + $0x40] sm:$0xff]  ;;  %v723_v9 = vld [vmem:[%s7656_s27 + $0x38] sm:$0xff]  ;;  %v722_v10 = vld [vmem:[%s7656_s27 + $0x30] sm:$0xff] }
  0xe1   : > { %791 = vperm.xlu1 %7445, %v718_v2   ;;  %785 = vperm.xlu0 %7444, %v716_v3   ;;  %v727_v11 = vld [vmem:[%s7656_s27 + $0x58] sm:$0xff]  ;;  %v726_v12 = vld [vmem:[%s7656_s27 + $0x50] sm:$0xff]  ;;  %v725_v13 = vld [vmem:[%s7656_s27 + $0x48] sm:$0xff] }
  0xe2   : > { %v732_v14 = vld [vmem:[%s7656_s27 + $0x80] sm:$0xff]  ;;  %v729_v15 = vld [vmem:[%s7656_s27 + $0x68] sm:$0xff]  ;;  %v734_v20 = vld [vmem:[%s7656_s27 + $0x90] sm:$0xff] }
  0xe3   : > { %v728_v16 = vld [vmem:[%s7656_s27 + $0x60] sm:$0xff]  ;;  %v741_v17 = vld [vmem:[%s7656_s27 + $0xc8] sm:$0xff]  ;;  %v731_v21 = vld [vmem:[%s7656_s27 + $0x78] sm:$0xff] }
  0xe4   : > { %v740_v18 = vld [vmem:[%s7656_s27 + $0xc0] sm:$0xff]  ;;  %v733_v19 = vld [vmem:[%s7656_s27 + $0x88] sm:$0xff]  ;;  %v730_v22 = vld [vmem:[%s7656_s27 + $0x70] sm:$0xff] }
  0xe5   : > { %v743_v23 = vld [vmem:[%s7656_s27 + $0xd8] sm:$0xff]  ;;  %v742_v24 = vld [vmem:[%s7656_s27 + $0xd0] sm:$0xff]  ;;  %v6934_v27 = vld [vmem:[%s13608_s3 + $0x128] sm:$0xf0] }
  0xe6   : > { %v735_v25 = vld [vmem:[%s7656_s27 + $0x98] sm:$0xff]  ;;  %v744_v29 = vld [vmem:[%s7656_s27 + $0xe0] sm:$0xff]  ;;  %v737_v30 = vld [vmem:[%s7656_s27 + $0xa8] sm:$0xff] }
  0xe7   : > { %v6175_v26 = vld [vmem:[%s13608_s3 + $0x118] sm:$0xf]  ;;  %v736_v31 = vld [vmem:[%s7656_s27 + $0xa0] sm:$0xff]  ;;  %v6167_v32 = vld [vmem:[%s13608_s3 + $0xf0] sm:$0xf] }
  0xe8   : > { %800 = vperm.xlu2 %7446, %v721_v5   ;;  %v6176_v28 = vor.u32 %v6934_v27, %v6175_v26  ;;  %v6932_v33 = vld [vmem:[%s13608_s3 + $0x100] sm:$0xf0]  ;;  %v6159_v35 = vld [vmem:[%s13608_s3 + $0xc8] sm:$0xf]  ;;  %v6930_v36 = vld [vmem:[%s13608_s3 + $0xd8] sm:$0xf0] }
  0xe9   : > { %794 = vperm.xlu1 %7445, %v719_v6   ;;  %788 = vperm.xlu0 %7444, %v717_v7   ;;  %v6168_v34 = vor.u32 %v6932_v33, %v6167_v32  ;;  %v6160_v37 = vor.u32 %v6930_v36, %v6159_v35  ;;  %v739_v38 = vld [vmem:[%s7656_s27 + $0xb8] sm:$0xff]  ;;  %v738_v39 = vld [vmem:[%s7656_s27 + $0xb0] sm:$0xff]  ;;  %v745_v40 = vld [vmem:[%s7656_s27 + $0xe8] sm:$0xff]  ;;  %v780_v7 = vlaneseq }
  0xea   : > { %1936 = vmatpush.bf16.msra.mxu0 %v6176_v28  ;;  %7023 = vmatpush.bf16.msra.mxu1 %v6176_v28  ;;  %v6151_v41 = vld [vmem:[%s13608_s3 + $0xa0] sm:$0xf]  ;;  %v6928_v42 = vld [vmem:[%s13608_s3 + $0xb0] sm:$0xf0]  ;;  %v6143_v44 = vld [vmem:[%s13608_s3 + $0x78] sm:$0xf] }
  0xeb   : > { %7024 = vmatpush.bf16.msra.mxu2 %v6176_v28  ;;  %7025 = vmatpush.bf16.msra.mxu3 %v6176_v28  ;;  %v6152_v43 = vor.u32 %v6928_v42, %v6151_v41  ;;  %v6926_v45 = vld [vmem:[%s13608_s3 + $0x88] sm:$0xf0]  ;;  %v748_v47 = vld [vmem:[%s7661_s30] sm:$0xff]  ;;  %v747_v48 = vld [vmem:[%s7656_s27 + $0xf8] sm:$0xff] }
  0xec   : > { %v6144_v46 = vor.u32 %v6926_v45, %v6143_v44  ;;  %v746_v49 = vld [vmem:[%s7656_s27 + $0xf0] sm:$0xff]  ;;  %v6924_v51 = vld [vmem:[%s13608_s3 + $0x60] sm:$0xf0]  ;;  %v6127_v53 = vld [vmem:[%s13608_s3 + $0x28] sm:$0xf] }
  0xed   : > { %v6135_v50 = vld [vmem:[%s13608_s3 + $0x50] sm:$0xf]  ;;  %v6922_v54 = vld [vmem:[%s13608_s3 + $0x38] sm:$0xf0]  ;;  %v749_v58 = vld [vmem:[%s7661_s30 + $0x8] sm:$0xff] }
  0xee   : > { %1937 = vmatpush.bf16.msra.mxu0 %v6168_v34  ;;  %7026 = vmatpush.bf16.msra.mxu1 %v6168_v34  ;;  %v6136_v52 = vor.u32 %v6924_v51, %v6135_v50  ;;  %v751_v55 = vld [vmem:[%s7661_s30 + $0x18] sm:$0xff]  ;;  %v6128_v56 = vor.u32 %v6922_v54, %v6127_v53  ;;  %v750_v57 = vld [vmem:[%s7661_s30 + $0x10] sm:$0xff]  ;;  %v6119_v59 = vld [vmem:[%s13608_s3] sm:$0xf] }
  0xef   : > { %7027 = vmatpush.bf16.msra.mxu2 %v6168_v34  ;;  %7028 = vmatpush.bf16.msra.mxu3 %v6168_v34  ;;  %v6920_v60 = vld [vmem:[%s13608_s3 + $0x10] sm:$0xf0]  ;;  %v753_v0 = vld [vmem:[%s7661_s30 + $0x28] sm:$0xff]  ;;  %v752_v1 = vld [vmem:[%s7661_s30 + $0x20] sm:$0xff] }
  0xf0   : > { %809 = vperm.xlu2 %7446, %v724_v8   ;;  %v6120_v62 = vor.u32 %v6920_v60, %v6119_v59  ;;  %v754_v63 = vld [vmem:[%s7661_s30 + $0x30] sm:$0xff]  ;;  %v757_v3 = vld [vmem:[%s7661_s30 + $0x48] sm:$0xff]  ;;  %v756_v4 = vld [vmem:[%s7661_s30 + $0x40] sm:$0xff] }
  0xf1   : > { %806 = vperm.xlu1 %7445, %v723_v9   ;;  %803 = vperm.xlu0 %7444, %v722_v10   ;;  %v755_v5 = vld [vmem:[%s7661_s30 + $0x38] sm:$0xff]  ;;  %v760_v8 = vld [vmem:[%s7661_s30 + $0x60] sm:$0xff]  ;;  %v758_v10 = vld [vmem:[%s7661_s30 + $0x50] sm:$0xff] }
  0xf2   : > { %1938 = vmatpush.bf16.msra.mxu0 %v6160_v37  ;;  %7029 = vmatpush.bf16.msra.mxu1 %v6160_v37  ;;  %v759_v9 = vld [vmem:[%s7661_s30 + $0x58] sm:$0xff]  ;;  %v766_v34 = vld [vmem:[%s7661_s30 + $0x90] sm:$0xff]  ;;  %v773_v53 = vld [vmem:[%s7661_s30 + $0xc8] sm:$0xff] }
  0xf3   : > { %7030 = vmatpush.bf16.msra.mxu2 %v6160_v37  ;;  %7031 = vmatpush.bf16.msra.mxu3 %v6160_v37  ;;  %v6949_v45 = vld [vmem:[%s13608_s3 + $0x25c] sm:$0xf]  ;;  %v6223_v41 = vld [vmem:[%s13608_s3 + $0x208] sm:$0xf] }
  0xf6   : > { %1939 = vmatpush.bf16.msra.mxu0 %v6152_v43  ;;  %7032 = vmatpush.bf16.msra.mxu1 %v6152_v43 }
  0xf7   : > { %7033 = vmatpush.bf16.msra.mxu2 %v6152_v43  ;;  %7034 = vmatpush.bf16.msra.mxu3 %v6152_v43 }
  0xf8   : > { %818 = vperm.xlu2 %7446, %v727_v11   ;;  %v8177_v11 = vand.u32 127, %v780_v7  ;;  %v767_v7 = vld [vmem:[%s7661_s30 + $0x98] sm:$0xff] }
  0xf9   : > { %815 = vperm.xlu1 %7445, %v726_v12   ;;  %812 = vperm.xlu0 %7444, %v725_v13  }
  0xfa   : > { %1940 = vmatpush.bf16.msra.mxu0 %v6144_v46  ;;  %7035 = vmatpush.bf16.msra.mxu1 %v6144_v46  ;;  %v8182_v13 = vadd.s32 256, %v8177_v11 }
  0xfb   : > { %7036 = vmatpush.bf16.msra.mxu2 %v6144_v46  ;;  %7037 = vmatpush.bf16.msra.mxu3 %v6144_v46  ;;  %v6241_v46 = vld [vmem:[%s13608_s3 + $0x26c] sm:$0xf0] }
  0xfc   : > { %v6244_v50 = vor.u32 %v6949_v45, %v6241_v46 }
  0xfe   : > { %1941 = vmatpush.bf16.msra.mxu0 %v6136_v52  ;;  %7038 = vmatpush.bf16.msra.mxu1 %v6136_v52 }
  0xff   : > { %7039 = vmatpush.bf16.msra.mxu2 %v6136_v52  ;;  %7040 = vmatpush.bf16.msra.mxu3 %v6136_v52  ;;  %v13627_v52 = vmov 1.0|1.0  }
 0x100   : > { %833 = vperm.xlu2 %7446, %v732_v14  }
 0x101   : > { %824 = vperm.xlu1 %7445, %v729_v15   ;;  %821 = vperm.xlu0 %7444, %v728_v16   ;;  %v8187_v15 = vadd.s32 128, %v8177_v11 }
 0x102   : > { %1942 = vmatpush.bf16.msra.mxu0 %v6128_v56  ;;  %7041 = vmatpush.bf16.msra.mxu1 %v6128_v56 }
 0x103   : > { %7042 = vmatpush.bf16.msra.mxu2 %v6128_v56  ;;  %7043 = vmatpush.bf16.msra.mxu3 %v6128_v56  ;;  %v6947_v56 = vld [vmem:[%s13608_s3 + $0x234] sm:$0xf] }
 0x106   : > { %1943 = vmatpush.bf16.msra.mxu0 %v6120_v62  ;;  %7044 = vmatpush.bf16.msra.mxu1 %v6120_v62 }
 0x107   : > { %7045 = vmatpush.bf16.msra.mxu2 %v6120_v62  ;;  %7046 = vmatpush.bf16.msra.mxu3 %v6120_v62 }
 0x108   : > { %860 = vperm.xlu2 %7446, %v741_v17   ;;  %v763_v17 = vld [vmem:[%s7661_s30 + $0x78] sm:$0xff] }
 0x109   : > { %857 = vperm.xlu1 %7445, %v740_v18   ;;  %836 = vperm.xlu0 %7444, %v733_v19   ;;  %v762_v18 = vld [vmem:[%s7661_s30 + $0x70] sm:$0xff]  ;;  %v761_v19 = vld [vmem:[%s7661_s30 + $0x68] sm:$0xff] }
 0x110   : > { %839 = vperm.xlu2 %7446, %v734_v20   ;;  %v13647_v20 = vmov 0.0  }
 0x111   : > { %830 = vperm.xlu1 %7445, %v731_v21   ;;  %827 = vperm.xlu0 %7444, %v730_v22  }
 0x118   : > { %866 = vperm.xlu2 %7446, %v743_v23   ;;  %v14019_v23 = vmov 0 }
 0x119   : > { %863 = vperm.xlu1 %7445, %v742_v24   ;;  %842 = vperm.xlu0 %7444, %v735_v25   ;;  %v13989_v25 = vmov 0 }
 0x120   : > { %869 = vperm.xlu2 %7446, %v744_v29   ;;  %v6939_v29 = vld [vmem:[%s13608_s3 + $0x194] sm:$0xf] }
 0x121   : > { %848 = vperm.xlu1 %7445, %v737_v30   ;;  %845 = vperm.xlu0 %7444, %v736_v31  }
 0x128   : > { %854 = vperm.xlu2 %7446, %v739_v38  }
 0x129   : > { %851 = vperm.xlu1 %7445, %v738_v39   ;;  %872 = vperm.xlu0 %7444, %v745_v40   ;;  %v765_v39 = vld [vmem:[%s7661_s30 + $0x88] sm:$0xff]  ;;  %v764_v40 = vld [vmem:[%s7661_s30 + $0x80] sm:$0xff] }
 0x130   : > { %1217 = vperm.xlu2 %7446, %v748_v47  }
 0x131   : > { %878 = vperm.xlu1 %7445, %v747_v48   ;;  %875 = vperm.xlu0 %7444, %v746_v49   ;;  %v14239_v48 = vmov 0 }
 0x138   : > { %1226 = vperm.xlu2 %7446, %v751_v55  }
 0x139   : > { %1223 = vperm.xlu1 %7445, %v750_v57   ;;  %1220 = vperm.xlu0 %7444, %v749_v58   ;;  %v6233_v57 = vld [vmem:[%s13608_s3 + $0x244] sm:$0xf0] }
 0x13a   : > { %v8162_v61 = vpop.permute.xlu2 %797  ;;  %v6236_v62 = vor.u32 %v6947_v56, %v6233_v57  ;;  %v772_v56 = vld [vmem:[%s7661_s30 + $0xc0] sm:$0xff] }
 0x13b   : > { %vm894_vm0 = vcmp.eq.s32.totalorder %v8182_v13, %v8162_v61  ;;  %vm13619_vm2 = vcmp.eq.s32.totalorder %v8177_v11, %v8162_v61  ;;  %vm893_vm5 = vcmp.eq.s32.totalorder %v8187_v15, %v8162_v61 }
 0x13c   : > { %v8205_v21 = vsel %vm13619_vm2, 1.0, %v13647_v20  ;;  %v8221_v24 = vsel %vm893_vm5, 1.0, %v13647_v20 }
 0x140   : > { %1235 = vperm.xlu2 %7446, %v754_v63   ;;  %v6945_v63 = vld [vmem:[%s13608_s3 + $0x20c] sm:$0xf] }
 0x141   : > { %1232 = vperm.xlu1 %7445, %v753_v0   ;;  %1229 = vperm.xlu0 %7444, %v752_v1   ;;  %v6225_v0 = vld [vmem:[%s13608_s3 + $0x21c] sm:$0xf0]  ;;  %v769_v1 = vld [vmem:[%s7661_s30 + $0xa8] sm:$0xff] }
 0x142   : > { %v8167_v2 = vpop.permute.xlu2 %800 }
 0x143   : > { %vm897_vm1 = vcmp.eq.s32.totalorder %v8182_v13, %v8167_v2  ;;  %vm13616_vm3 = vcmp.eq.s32.totalorder %v8177_v11, %v8167_v2  ;;  %vm896_vm7 = vcmp.eq.s32.totalorder %v8187_v15, %v8167_v2 }
 0x144   : > { %v8211_v22 = vsel %vm13616_vm3, 1.0, %v13647_v20  ;;  %vm8229_vm8 = vmpackc.low %vm897_vm1, %vm894_vm0  ;;  %v8238_v26 = vsel %vm896_vm7, 1.0, %v13647_v20 }
 0x145   : > { %v13990_v25 = vsel %vm8229_vm8, 4294967295, %v13989_v25  ;;  %vm8240_vm11 = vmpackc.low %vm896_vm7, %vm893_vm5 }
 0x146   : > { %13991 = vst [vmem:[#allocation4_spill] sm:$0xff] %v13990_v25 }
 0x148   : > { %1244 = vperm.xlu2 %7446, %v757_v3   ;;  %v6228_v3 = vor.u32 %v6945_v63, %v6225_v0  ;;  %v14011_v0 = vmov 0 }
 0x149   : > { %1241 = vperm.xlu1 %7445, %v756_v4   ;;  %1238 = vperm.xlu0 %7444, %v755_v5   ;;  %v14004_v4 = vmov 0  ;;  %v768_v5 = vld [vmem:[%s7661_s30 + $0xa0] sm:$0xff] }
 0x14a   : > { %v8172_v6 = vpop.permute.xlu2 %809 }
 0x150   : > { %1253 = vperm.xlu2 %7446, %v760_v8  }
 0x151   : > { %1250 = vperm.xlu1 %7445, %v759_v9   ;;  %1247 = vperm.xlu0 %7444, %v758_v10  }
 0x152   : > { %v8179_v12 = vpop.permute.xlu2 %818 }
 0x153   : > { %v8184_v14 = vpop.permute.xlu1 %791  ;;  %v786_v16 = vpop.permute.xlu0 %785 }
 0x154   : > { %vm881_vm4 = vcmp.eq.s32.totalorder %v8187_v15, %v786_v16  ;;  %vm880_vm6 = vcmp.eq.s32.totalorder %v8177_v11, %v786_v16  ;;  %vm886_vm9 = vcmp.eq.s32.totalorder %v8177_v11, %v8184_v14  ;;  %vm887_vm10 = vcmp.eq.s32.totalorder %v8187_v15, %v8184_v14 }
 0x155   : > { %vm888_vm12 = vcmp.eq.s32.totalorder %v8182_v13, %v8184_v14  ;;  %vm882_vm13 = vcmp.eq.s32.totalorder %v8182_v13, %v786_v16  ;;  %v8254_v30 = vsel %vm881_vm4, 1.0, %v13647_v20  ;;  %v8261_v33 = vsel %vm880_vm6, 1.0, %v13647_v20  ;;  %v6239_v14 = vld [vmem:[%s13608_s3 + $0x258] sm:$0xf]  ;;  %v6941_v16 = vld [vmem:[%s13608_s3 + $0x1bc] sm:$0xf] }
 0x156   : > { %v8270_v35 = vsel %vm886_vm9, 1.0, %v13647_v20  ;;  %v8276_v36 = vsel %vm887_vm10, 1.0, %v13647_v20 }
 0x158   : > { %1262 = vperm.xlu2 %7446, %v763_v17  }
 0x159   : > { %1259 = vperm.xlu1 %7445, %v762_v18   ;;  %1256 = vperm.xlu0 %7444, %v761_v19   ;;  %v14007_v18 = vmov 0 }
 0x15a   : > { %v8244_v28 = vpop.permute.xlu2 %833 }
 0x15b   : > { %v8256_v31 = vpop.permute.xlu1 %794  ;;  %v789_v32 = vpop.permute.xlu0 %788 }
 0x15c   : > { %vm884_vm14 = vcmp.eq.s32.totalorder %v8187_v15, %v789_v32  ;;  %vm885_vm15 = vcmp.eq.s32.totalorder %v8182_v13, %v789_v32  ;;  %vm891_vm0 = vcmp.eq.s32.totalorder %v8182_v13, %v8256_v31  ;;  %vm883_vm5 = vcmp.eq.s32.totalorder %v8177_v11, %v789_v32 }
 0x15d   : > { %v8281_v37 = vsel %vm884_vm14, 1.0, %v13647_v20  ;;  %vm8285_vm1 = vmpackc.low %vm884_vm14, %vm881_vm4  ;;  %vm13621_vm7 = vcmp.eq.s32.totalorder %v8177_v11, %v8256_v31  ;;  %v8303_v43 = vsel %vm883_vm5, 1.0, %v13647_v20  ;;  %vm890_vm4 = vcmp.eq.s32.totalorder %v8187_v15, %v8256_v31 }
 0x15e   : > { %vm8298_vm3 = vmpackc.low %vm885_vm15, %vm882_vm13  ;;  %v8309_v44 = vsel %vm13621_vm7, 1.0, %v13647_v20  ;;  %v8330_v51 = vsel %vm890_vm4, 1.0, %v13647_v20 }
 0x15f   : > { %vm8323_vm13 = vmpackc.low %vm883_vm5, %vm880_vm6 }
 0x160   : > { %6310 = vmatmul.msk.bf16.vlgmr.msra.gmra.mxu0 %vm8323_vm13, %v13627_v52  ;;  %1271 = vperm.xlu2 %7446, %v766_v34   ;;  %vm8340_vm6 = vmpackc.low %vm890_vm4, %vm887_vm10  ;;  %v6943_v34 = vld [vmem:[%s13608_s3 + $0x1e4] sm:$0xf] }
 0x161   : > { %1268 = vperm.xlu1 %7445, %v765_v39   ;;  %1265 = vperm.xlu0 %7444, %v764_v40   ;;  %vm8358_vm10 = vmpackc.low %vm891_vm0, %vm888_vm12  ;;  %v6217_v39 = vld [vmem:[%s13608_s3 + $0x1f4] sm:$0xf0] }
 0x162   : > { %v8344_v55 = vpop.permute.xlu2 %860  ;;  %2292 = vmatpush.bf16.msra.mxu0 %v6244_v50  ;;  %v6220_v50 = vor.u32 %v6943_v34, %v6217_v39 }
 0x163   : > { %v8362_v59 = vpop.permute.xlu1 %806  ;;  %v8364_v60 = vpop.permute.xlu0 %803 }
 0x164   : > { %vm903_vm14 = vcmp.eq.s32.totalorder %v8182_v13, %v8362_v59  ;;  %vm900_vm15 = vcmp.eq.s32.totalorder %v8182_v13, %v8364_v60  ;;  %vm13618_vm12 = vcmp.eq.s32.totalorder %v8177_v11, %v8364_v60  ;;  %vm13617_vm0 = vcmp.eq.s32.totalorder %v8177_v11, %v8362_v59 }
 0x165   : > { %vm899_vm5 = vcmp.eq.s32.totalorder %v8187_v15, %v8364_v60  ;;  %vm8383_vm4 = vmpackc.low %vm903_vm14, %vm900_vm15  ;;  %v8393_v8 = vsel %vm13618_vm12, 1.0, %v13647_v20  ;;  %v8399_v9 = vsel %vm13617_vm0, 1.0, %v13647_v20  ;;  %vm902_vm14 = vcmp.eq.s32.totalorder %v8187_v15, %v8362_v59 }
 0x166   : > { %v14005_v4 = vsel %vm8383_vm4, 4294967295, %v14004_v4  ;;  %2293 = vmatpush.bf16.msra.mxu0 %v6236_v62  ;;  %v8404_v10 = vsel %vm899_vm5, 1.0, %v13647_v20  ;;  %v8409_v17 = vsel %vm902_vm14, 1.0, %v13647_v20  ;;  %vm8411_vm15 = vmpackc.low %vm902_vm14, %vm899_vm5  ;;  %vm904_vm0 = vcmp.eq.s32.totalorder %v8177_v11, %v8172_v6 }
 0x167   : > { %14006 = vst [vmem:[#allocation5_spill] sm:$0xff] %v14005_v4  ;;  %v14008_v18 = vsel %vm8411_vm15, 4294967295, %v14007_v18  ;;  %vm13620_vm12 = vcmp.eq.s32.totalorder %v8177_v11, %v8179_v12  ;;  %vm13622_vm5 = vcmp.eq.s32.totalorder %v8187_v15, %v8172_v6  ;;  %v8437_v46 = vsel %vm904_vm0, 1.0, %v13647_v20 }
 0x168   : > { %1280 = vperm.xlu2 %7446, %v769_v1   ;;  %v8445_v57 = vsel %vm13620_vm12, 1.0, %v13647_v20  ;;  %v8451_v62 = vsel %vm13622_vm5, 1.0, %v13647_v20  ;;  %v771_v1 = vld [vmem:[%s7661_s30 + $0xb8] sm:$0xff]  ;;  %vm14014_vm5 = vcmp.eq.s32.totalorder %v8177_v11, %v8256_v31  ;;  %v6950_v31 = vld [vmem:[%s13608_s3 + $0x268] sm:$0xf0]  ;;  %v14055_v4 = vmov 0.0  }
 0x169   : > { %1277 = vperm.xlu1 %7445, %v768_v5   ;;  %1274 = vperm.xlu0 %7444, %v767_v7   ;;  %14009 = vst [vmem:[#allocation6_spill] sm:$0xff] %v8445_v57  ;;  %vm8474_vm4 = vmpackc.low %vm14014_vm5, %vm886_vm9  ;;  %v14015_v5 = vmov 0  ;;  %v6240_v19 = vor.u32 %v6950_v31, %v6239_v14  ;;  %vm14018_vm9 = vcmp.eq.s32.totalorder %v8187_v15, %v8172_v6  ;;  %v6231_v31 = vld [vmem:[%s13608_s3 + $0x230] sm:$0xf]  ;;  %v6948_v7 = vld [vmem:[%s13608_s3 + $0x240] sm:$0xf0] }
 0x16a   : > { %v8423_v32 = vpop.permute.xlu2 %839  ;;  %2294 = vmatpush.bf16.msra.mxu0 %v6228_v3  ;;  %14010 = vst [vmem:[#allocation7_spill] sm:$0xff] %v8451_v62  ;;  %v770_v3 = vld [vmem:[%s7661_s30 + $0xb0] sm:$0xff]  ;;  %v14016_v5 = vsel %vm8474_vm4, 4294967295, %v14015_v5  ;;  %vm906_vm5 = vcmp.eq.s32.totalorder %v8182_v13, %v8172_v6  ;;  %v14031_v57 = vmov 0 }
 0x16b   : > { %v8431_v40 = vpop.permute.xlu1 %815  ;;  %v813_v45 = vpop.permute.xlu0 %812 }
 0x16c   : > { %vm907_vm14 = vcmp.eq.s32.totalorder %v8177_v11, %v813_v45  ;;  %vm13624_vm12 = vcmp.eq.s32.totalorder %v8177_v11, %v8431_v40  ;;  %vm908_vm7 = vcmp.eq.s32.totalorder %v8187_v15, %v813_v45 }
 0x16d   : > { %v8454_v63 = vsel %vm907_vm14, 1.0, %v13647_v20  ;;  %vm8459_vm2 = vmpackc.low %vm907_vm14, %vm904_vm0  ;;  %v8487_v34 = vsel %vm13624_vm12, 1.0, %v13647_v20  ;;  %v8496_v39 = vsel %vm908_vm7, 1.0, %v13647_v20  ;;  %vm909_vm14 = vcmp.eq.s32.totalorder %v8182_v13, %v813_v45 }
 0x16e   : > { %v14012_v0 = vsel %vm8459_vm2, 4294967295, %v14011_v0  ;;  %6318 = vmatmul.msk.bf16.vlgmr.msra.gmra.mxu1 %vm8459_vm2, %v13627_v52  ;;  %14017 = vst [vmem:[#allocation9_spill] sm:$0xff] %v8487_v34  ;;  %2295 = vmatpush.bf16.msra.mxu0 %v6220_v50  ;;  %v6209_v50 = vld [vmem:[%s13608_s3 + $0x1cc] sm:$0xf0]  ;;  %vm8511_vm0 = vmpackc.low %vm908_vm7, %vm14018_vm9 }
 0x16f   : > { %14013 = vst [vmem:[#allocation8_spill] sm:$0xff] %v14012_v0  ;;  %v14020_v23 = vsel %vm8511_vm0, 4294967295, %v14019_v23  ;;  %v6212_v14 = vor.u32 %v6941_v16, %v6209_v50  ;;  %2025 = vmatpush.bf16.msra.mxu1 %v6240_v19  ;;  %v6201_v19 = vld [vmem:[%s13608_s3 + $0x1a4] sm:$0xf0]  ;;  %vm8542_vm7 = vmpackc.low %vm909_vm14, %vm906_vm5 }
 0x170   : > { %6312 = vmatmul.msk.bf16.gmra.mxu0 %vm8474_vm4, %v13627_v52  ;;  %1289 = vperm.xlu2 %7446, %v772_v56   ;;  %v6204_v45 = vor.u32 %v6939_v29, %v6201_v19  ;;  %v6946_v29 = vld [vmem:[%s13608_s3 + $0x218] sm:$0xf0]  ;;  %v6193_v52 = vld [vmem:[%s13608_s3 + $0x17c] sm:$0xf0] }
 0x171   : > { %1286 = vperm.xlu1 %7445, %v771_v1   ;;  %1283 = vperm.xlu0 %7444, %v770_v3   ;;  %v6232_v1 = vor.u32 %v6948_v7, %v6231_v31  ;;  %v14021_v3 = vmov 0  ;;  %v775_v7 = vld [vmem:[%s7661_s30 + $0xd8] sm:$0xff]  ;;  %v14025_v31 = vmov 0  ;;  %v6224_v47 = vor.u32 %v6946_v29, %v6223_v41 }
 0x172   : > { %2296 = vmatpush.bf16.msra.mxu0 %v6212_v14  ;;  %v14022_v3 = vsel %vm8542_vm7, 4294967295, %v14021_v3  ;;  %v8546_v50 = vpop.permute.xlu2 %866  ;;  %v774_v14 = vld [vmem:[%s7661_s30 + $0xd0] sm:$0xff]  ;;  %vm14037_vm7 = vcmp.eq.s32.totalorder %v8177_v11, %v8167_v2 }
 0x173   : > { %v8530_v56 = vpop.permute.xlu1 %824  ;;  %v8532_v16 = vpop.permute.xlu0 %821  ;;  %14023 = vst [vmem:[#allocation10_spill] sm:$0xff] %v14022_v3  ;;  %2026 = vmatpush.bf16.msra.mxu1 %v6232_v1  ;;  %v6937_v1 = vld [vmem:[%s13608_s3 + $0x16c] sm:$0xf]  ;;  %v6207_v3 = vld [vmem:[%s13608_s3 + $0x1b8] sm:$0xf] }
 0x174   : > { %vm921_vm9 = vcmp.eq.s32.totalorder %v8182_v13, %v8530_v56  ;;  %vm918_vm12 = vcmp.eq.s32.totalorder %v8182_v13, %v8532_v16  ;;  %vm13633_vm2 = vcmp.eq.s32.totalorder %v8177_v11, %v8532_v16  ;;  %vm13631_vm0 = vcmp.eq.s32.totalorder %v8177_v11, %v8530_v56 }
 0x175   : > { %v8562_v6 = vsel %vm13633_vm2, 1.0, %v13647_v20  ;;  %vm8564_vm5 = vmpackc.low %vm921_vm9, %vm918_vm12  ;;  %v8575_v49 = vsel %vm13631_vm0, 1.0, %v13647_v20  ;;  %vm917_vm12 = vcmp.eq.s32.totalorder %v8187_v15, %v8532_v16  ;;  %vm920_vm9 = vcmp.eq.s32.totalorder %v8187_v15, %v8530_v56 }
 0x176   : > { %14024 = vst [vmem:[#allocation11_spill] sm:$0xff] %v8562_v6  ;;  %v14026_v31 = vsel %vm8564_vm5, 4294967295, %v14025_v31  ;;  %2297 = vmatpush.bf16.msra.mxu0 %v6204_v45  ;;  %v8596_v0 = vsel %vm917_vm12, 1.0, %v13647_v20  ;;  %v8599_v34 = vsel %vm920_vm9, 1.0, %v13647_v20  ;;  %vm8601_vm0 = vmpackc.low %vm920_vm9, %vm917_vm12  ;;  %vm13635_vm2 = vcmp.eq.s32.totalorder %v8177_v11, %v8244_v28  ;;  %v6185_v45 = vld [vmem:[%s13608_s3 + $0x154] sm:$0xf0] }
 0x177   : > { %14027 = vst [vmem:[#allocation12_spill] sm:$0xff] %v14026_v31  ;;  %v14032_v57 = vsel %vm8601_vm0, 4294967295, %v14031_v57  ;;  %v6196_v41 = vor.u32 %v6937_v1, %v6193_v52  ;;  %vm14034_vm12 = vcmp.eq.s32.totalorder %v8187_v15, %v8244_v28  ;;  %2027 = vmatpush.bf16.msra.mxu1 %v6224_v47  ;;  %v6215_v52 = vld [vmem:[%s13608_s3 + $0x1e0] sm:$0xf]  ;;  %v14038_v47 = vmov 0 }
 0x178   : > { %14028 = vst [vmem:[#allocation13_spill] sm:$0xff] %v8575_v49  ;;  %1298 = vperm.xlu2 %7446, %v775_v7   ;;  %v8617_v7 = vsel %vm14034_vm12, 1.0, %v13647_v20  ;;  %vm14036_vm12 = vcmp.eq.s32.totalorder %v8177_v11, %v8162_v61  ;;  %v8643_v1 = vsel %vm13635_vm2, 1.0, %v13647_v20  ;;  %vm14043_vm9 = vcmp.eq.s32.totalorder %v8177_v11, %v8431_v40  ;;  %v776_v6 = vld [vmem:[%s7661_s30 + $0xe0] sm:$0xff] }
 0x179   : > { %14029 = vst [vmem:[#allocation14_spill] sm:$0xff] %v8596_v0  ;;  %1295 = vperm.xlu1 %7445, %v774_v14   ;;  %1292 = vperm.xlu0 %7444, %v773_v53   ;;  %v6944_v14 = vld [vmem:[%s13608_s3 + $0x1f0] sm:$0xf0]  ;;  %vm8635_vm14 = vmpackc.low %vm14037_vm7, %vm14036_vm12  ;;  %vm14041_vm7 = vcmp.eq.s32.totalorder %v8187_v15, %v8344_v55  ;;  %vm14044_vm5 = vcmp.eq.s32.totalorder %v8177_v11, %v8179_v12  ;;  %v14051_v49 = vmov 0  ;;  %v14054_v31 = vmov 1.0|1.0  }
 0x17a   : > { %14030 = vst [vmem:[#allocation15_spill] sm:$0xff] %v8599_v34  ;;  %v14039_v47 = vsel %vm8635_vm14, 4294967295, %v14038_v47  ;;  %2298 = vmatpush.bf16.msra.mxu0 %v6196_v41  ;;  %v6216_v61 = vor.u32 %v6944_v14, %v6215_v52  ;;  %v8651_v2 = vsel %vm14041_vm7, 1.0, %v13647_v20  ;;  %vm8664_vm8 = vmpackc.low %vm14044_vm5, %vm14043_vm9  ;;  %v14045_v41 = vmov 0  ;;  %v778_v52 = vld [vmem:[%s7661_s30 + $0xf0] sm:$0xff]  ;;  %v777_v34 = vld [vmem:[%s7661_s30 + $0xe8] sm:$0xff] }
 0x17b   : > { %14033 = vst [vmem:[#allocation16_spill] sm:$0xff] %v14032_v57  ;;  %v8627_v53 = vpop.permute.xlu1 %857  ;;  %v837_v29 = vpop.permute.xlu0 %836  ;;  %v14046_v41 = vsel %vm8664_vm8, 4294967295, %v14045_v41  ;;  %v6935_v14 = vld [vmem:[%s13608_s3 + $0x144] sm:$0xf]  ;;  %vm14050_vm7 = vcmp.eq.s32.totalorder %v8187_v15, %v8244_v28 }
 0x17c   : > { %14035 = vst [vmem:[#allocation17_spill] sm:$0xff] %v8617_v7  ;;  %vm13656_vm12 = vcmp.eq.s32.totalorder %v8187_v15, %v8627_v53  ;;  %vm932_vm0 = vcmp.eq.s32.totalorder %v8187_v15, %v837_v29  ;;  %vm931_vm9 = vcmp.eq.s32.totalorder %v8177_v11, %v837_v29  ;;  %v8695_v57 = vpop.permute.xlu2 %869  ;;  %2028 = vmatpush.bf16.msra.mxu1 %v6216_v61 }
 0x17d   : > { %14040 = vst [vmem:[#allocation18_spill] sm:$0xff] %v8643_v1  ;;  %v8679_v19 = vsel %vm13656_vm12, 1.0, %v13647_v20  ;;  %v8683_v0 = vsel %vm932_vm0, 1.0, %v13647_v20  ;;  %vm8691_vm2 = vmpackc.low %vm932_vm0, %vm14050_vm7  ;;  %v8705_v62 = vsel %vm931_vm9, 1.0, %v14055_v4  ;;  %vm14057_vm0 = vcmp.eq.s32.totalorder %v8177_v11, %v8244_v28  ;;  %v6942_v20 = vld [vmem:[%s13608_s3 + $0x1c8] sm:$0xf0] }
 0x17e   : > { %14042 = vst [vmem:[#allocation19_spill] sm:$0xff] %v8651_v2  ;;  %v14052_v49 = vsel %vm8691_vm2, 4294967295, %v14051_v49  ;;  %6320 = vmatmul.msk.bf16.gmra.mxu1 %vm8664_vm8, %v14054_v31  ;;  %vm8710_vm7 = vmpackc.low %vm931_vm9, %vm14057_vm0  ;;  %vm952_vm12 = vcmp.eq.s32.totalorder %v8177_v11, %v8627_v53  ;;  %vm14062_vm9 = vcmp.eq.s32.totalorder %v8177_v11, %v8344_v55  ;;  %v6303_v1 = vld [vmem:[%s13608_s3 + $0x398] sm:$0xf] }
 0x17f   : > { %14047 = vst [vmem:[#allocation20_spill] sm:$0xff] %v14046_v41  ;;  %6326 = vmatmul.msk.bf16.vlgmr.msra.gmra.mxu2 %vm8710_vm7, %v14054_v31  ;;  %v8728_v2 = vsel %vm952_vm12, 1.0, %v14055_v4  ;;  %v8734_v7 = vsel %vm14062_vm9, 1.0, %v14055_v4  ;;  %vm14064_vm0 = vmmov %vm14062_vm9  ;;  %v6177_v41 = vld [vmem:[%s13608_s3 + $0x12c] sm:$0xf0]  ;;  %vm14069_vm9 = vcmp.eq.s32.totalorder %v8182_v13, %v8344_v55 }
 0x180   : > { %14048 = vst [vmem:[#allocation21_spill] sm:$0xff] %v8679_v19  ;;  %vm8739_vm5 = vmpackc.low %vm14064_vm0, %vm952_vm12  ;;  %v6188_v19 = vor.u32 %v6935_v14, %v6185_v45  ;;  %6314 = vmatmul.msk.bf16.gmra.mxu0 %vm8635_vm14, %v14054_v31  ;;  %v6208_v45 = vor.u32 %v6942_v20, %v6207_v3  ;;  %v6933_v14 = vld [vmem:[%s13608_s3 + $0x11c] sm:$0xf]  ;;  %vm14068_vm12 = vcmp.eq.s32.totalorder %v8182_v13, %v8627_v53  ;;  %v6931_v3 = vld [vmem:[%s13608_s3 + $0xf4] sm:$0xf] }
 0x181   : > { %14049 = vst [vmem:[#allocation22_spill] sm:$0xff] %v8683_v0  ;;  %v14065_v0 = vmov 0  ;;  %6334 = vmatmul.msk.bf16.vlgmr.msra.gmra.mxu3 %vm8739_vm5, %v14054_v31  ;;  %vm8769_vm0 = vmpackc.low %vm14069_vm9, %vm14068_vm12  ;;  %1307 = vperm.xlu2 %7446, %v778_v52   ;;  %v6180_v20 = vor.u32 %v6933_v14, %v6177_v41  ;;  %v6964_v41 = vld [vmem:[%s13608_s3 + $0x380] sm:$0xf0] }
 0x182   : > { %14053 = vst [vmem:[#allocation23_spill] sm:$0xff] %v14052_v49  ;;  %v14058_v49 = vmov 0  ;;  %v14066_v0 = vsel %vm8739_vm5, 4294967295, %v14065_v0  ;;  %1304 = vperm.xlu1 %7445, %v777_v34   ;;  %vm14073_vm5 = vcmp.eq.s32.totalorder %v8182_v13, %v8244_v28  ;;  %1301 = vperm.xlu0 %7444, %v776_v6   ;;  %v6169_v34 = vld [vmem:[%s13608_s3 + $0x104] sm:$0xf0] }
 0x183   : > { %14056 = vst [vmem:[#allocation24_spill] sm:$0xff] %v8705_v62  ;;  %v14059_v49 = vsel %vm8710_vm7, 4294967295, %v14058_v49  ;;  %v6966_v62 = vld [vmem:[%s13608_s3 + $0x3a8] sm:$0xf0]  ;;  %vm14074_vm7 = vcmp.eq.s32.totalorder %v8182_v13, %v837_v29  ;;  %2299 = vmatpush.bf16.msra.mxu0 %v6188_v19  ;;  %v6199_v28 = vld [vmem:[%s13608_s3 + $0x190] sm:$0xf]  ;;  %v8793_v29 = vpop.permute.xlu1 %830  ;;  %2029 = vmatpush.bf16.msra.mxu1 %v6208_v45  ;;  %v6172_v52 = vor.u32 %v6931_v3, %v6169_v34 }
 0x184   : > { %14060 = vst [vmem:[#allocation25_spill] sm:$0xff] %v14059_v49  ;;  %v6304_v61 = vor.u32 %v6966_v62, %v6303_v1  ;;  %v14070_v49 = vmov 0  ;;  %vm8778_vm2 = vmpackc.low %vm14074_vm7, %vm14073_vm5  ;;  %v14075_v62 = vmov 0  ;;  %v8795_v1 = vpop.permute.xlu0 %827  ;;  %v6940_v6 = vld [vmem:[%s13608_s3 + $0x1a0] sm:$0xf0]  ;;  %vm927_vm7 = vcmp.eq.s32.totalorder %v8182_v13, %v8793_v29  ;;  %2203 = vmatpush.bf16.msra.mxu3 %v6180_v20 }
 0x185   : > { %14061 = vst [vmem:[#allocation26_spill] sm:$0xff] %v8728_v2  ;;  %v14071_v49 = vsel %vm8769_vm0, 4294967295, %v14070_v49  ;;  %v14076_v62 = vsel %vm8778_vm2, 4294967295, %v14075_v62  ;;  %v6295_v19 = vld [vmem:[%s13608_s3 + $0x370] sm:$0xf]  ;;  %vm924_vm12 = vcmp.eq.s32.totalorder %v8182_v13, %v8795_v1  ;;  %vm13676_vm9 = vcmp.eq.s32.totalorder %v8177_v11, %v8795_v1 }
 0x186   : > { %14063 = vst [vmem:[#allocation27_spill] sm:$0xff] %v8734_v7  ;;  %2114 = vmatpush.bf16.msra.mxu2 %v6304_v61  ;;  %vm14078_vm5 = vcmp.eq.s32.totalorder %v8187_v15, %v8627_v53  ;;  %vm14079_vm2 = vcmp.eq.s32.totalorder %v8187_v15, %v8344_v55  ;;  %v14080_v45 = vmov 0  ;;  %vm13675_vm8 = vcmp.eq.s32.totalorder %v8177_v11, %v8793_v29  ;;  %vm8830_vm14 = vmpackc.low %vm927_vm7, %vm924_vm12  ;;  %v779_v55 = vld [vmem:[%s7661_s30 + $0xf8] sm:$0xff]  ;;  %v6191_v34 = vld [vmem:[%s13608_s3 + $0x168] sm:$0xf] }
 0x187   : > { %14067 = vst [vmem:[#allocation28_spill] sm:$0xff] %v14066_v0  ;;  %vm8818_vm0 = vmpackc.low %vm14079_vm2, %vm14078_vm5  ;;  %v8828_v61 = vsel %vm13676_vm9, 1.0, %v14055_v4  ;;  %v6200_v14 = vor.u32 %v6940_v6, %v6199_v28  ;;  %v6296_v20 = vor.u32 %v6964_v41, %v6295_v19  ;;  %v14084_v53 = vmov 0  ;;  %v6938_v28 = vld [vmem:[%s13608_s3 + $0x178] sm:$0xf0]  ;;  %v8866_v0 = vpop.permute.xlu2 %854 }
 0x188   : > { %14072 = vst [vmem:[#allocation29_spill] sm:$0xff] %v14071_v49  ;;  %v14081_v45 = vsel %vm8818_vm0, 4294967295, %v14080_v45  ;;  %v14085_v53 = vsel %vm8830_vm14, 4294967295, %v14084_v53  ;;  %v8841_v3 = vsel %vm13675_vm8, 1.0, %v14055_v4  ;;  %vm923_vm5 = vcmp.eq.s32.totalorder %v8187_v15, %v8795_v1  ;;  %v6287_v41 = vld [vmem:[%s13608_s3 + $0x348] sm:$0xf]  ;;  %2204 = vmatpush.bf16.msra.mxu3 %v6172_v52 }
 0x189   : > { %14077 = vst [vmem:[#allocation30_spill] sm:$0xff] %v14076_v62  ;;  %vm926_vm7 = vcmp.eq.s32.totalorder %v8187_v15, %v8793_v29  ;;  %2030 = vmatpush.bf16.msra.mxu1 %v6200_v14  ;;  %v6192_v19 = vor.u32 %v6938_v28, %v6191_v34  ;;  %v6962_v2 = vld [vmem:[%s13608_s3 + $0x358] sm:$0xf0]  ;;  %v6929_v7 = vld [vmem:[%s13608_s3 + $0xcc] sm:$0xf]  ;;  %v8877_v34 = vsel %vm923_vm5, 1.0, %v14055_v4  ;;  %vm14093_vm8 = vcmp.eq.s32.totalorder %v8177_v11, %v8364_v60 }
 0x18a   : > { %14082 = vst [vmem:[#allocation31_spill] sm:$0xff] %v14081_v45  ;;  %2115 = vmatpush.bf16.msra.mxu2 %v6296_v20  ;;  %v6288_v14 = vor.u32 %v6962_v2, %v6287_v41  ;;  %v6161_v20 = vld [vmem:[%s13608_s3 + $0xdc] sm:$0xf0]  ;;  %v8883_v28 = vsel %vm926_vm7, 1.0, %v14055_v4  ;;  %vm8891_vm9 = vmpackc.low %vm926_vm7, %vm923_vm5  ;;  %v14090_v2 = vmov 0  ;;  %1310 = vperm.xlu0 %7444, %v779_v55   ;;  %vm14094_vm2 = vcmp.eq.s32.totalorder %v8177_v11, %v8362_v59 }
 0x18b   : > { %14083 = vst [vmem:[#allocation32_spill] sm:$0xff] %v8828_v61  ;;  %v14091_v2 = vsel %vm8891_vm9, 4294967295, %v14090_v2  ;;  %v6164_v52 = vor.u32 %v6929_v7, %v6161_v20  ;;  %vm8903_vm12 = vmpackc.low %vm14094_vm2, %vm14093_vm8  ;;  %v14095_v6 = vmov 0  ;;  %vm14097_vm5 = vcmp.eq.s32.totalorder %v8187_v15, %v8423_v32  ;;  %v864_v60 = vpop.permute.xlu1 %863  ;;  %v6960_v49 = vld [vmem:[%s13608_s3 + $0x330] sm:$0xf0] }
 0x18c   : > { %14086 = vst [vmem:[#allocation33_spill] sm:$0xff] %v14085_v53  ;;  %v14096_v6 = vsel %vm8903_vm12, 4294967295, %v14095_v6  ;;  %v8911_v45 = vsel %vm14097_vm5, 1.0, %v14055_v4  ;;  %vm14099_vm7 = vcmp.eq.s32.totalorder %v8187_v15, %v8546_v50  ;;  %v843_v55 = vpop.permute.xlu0 %842  ;;  %vm14101_vm8 = vcmp.eq.s32.totalorder %v8177_v11, %v8532_v16  ;;  %v6153_v16 = vld [vmem:[%s13608_s3 + $0xb4] sm:$0xf0] }
 0x18d   : > { %14087 = vst [vmem:[#allocation34_spill] sm:$0xff] %v8841_v3  ;;  %v8917_v7 = vsel %vm14099_vm7, 1.0, %v14055_v4  ;;  %vm14102_vm2 = vcmp.eq.s32.totalorder %v8177_v11, %v8530_v56  ;;  %v14103_v59 = vmov 0  ;;  %vm14106_vm5 = vcmp.eq.s32.totalorder %v8177_v11, %v8423_v32  ;;  %2031 = vmatpush.bf16.msra.mxu1 %v6192_v19  ;;  %v6927_v56 = vld [vmem:[%s13608_s3 + $0xa4] sm:$0xf]  ;;  %2205 = vmatpush.bf16.msra.mxu3 %v6164_v52 }
 0x18e   : > { %14088 = vst [vmem:[#allocation35_spill] sm:$0xff] %v8877_v34  ;;  %vm8925_vm0 = vmpackc.low %vm14102_vm2, %vm14101_vm8  ;;  %v8933_v20 = vsel %vm14106_vm5, 1.0, %v14055_v4  ;;  %vm14108_vm7 = vcmp.eq.s32.totalorder %v8177_v11, %v8546_v50  ;;  %2116 = vmatpush.bf16.msra.mxu2 %v6288_v14  ;;  %vm963_vm2 = vcmp.eq.s32.totalorder %v8182_v13, %v8546_v50  ;;  %vm13693_vm5 = vcmp.eq.s32.totalorder %v8187_v15, %v864_v60  ;;  %v6183_v19 = vld [vmem:[%s13608_s3 + $0x140] sm:$0xf]  ;;  %v6936_v14 = vld [vmem:[%s13608_s3 + $0x150] sm:$0xf0] }
 0x18f   : > { %14089 = vst [vmem:[#allocation36_spill] sm:$0xff] %v8883_v28  ;;  %v14104_v59 = vsel %vm8925_vm0, 4294967295, %v14103_v59  ;;  %v8939_v41 = vsel %vm14108_vm7, 1.0, %v14055_v4  ;;  %vm960_vm9 = vcmp.eq.s32.totalorder %v8182_v13, %v864_v60  ;;  %v8962_v62 = vsel %vm13693_vm5, 1.0, %v14055_v4  ;;  %v6279_v52 = vld [vmem:[%s13608_s3 + $0x320] sm:$0xf]  ;;  %6322 = vmatmul.msk.bf16.gmra.mxu1 %vm8925_vm0, %v14054_v31 }
 0x190   : > { %14092 = vst [vmem:[#allocation37_spill] sm:$0xff] %v14091_v2  ;;  %vm938_vm7 = vcmp.eq.s32.totalorder %v8187_v15, %v843_v55  ;;  %vm937_vm14 = vcmp.eq.s32.totalorder %v8177_v11, %v843_v55  ;;  %vm8973_vm15 = vmpackc.low %vm963_vm2, %vm960_vm9  ;;  %v14111_v34 = vmov 0  ;;  %vm14116_vm9 = vcmp.eq.s32.totalorder %v8177_v11, %v8423_v32  ;;  %v6271_v28 = vld [vmem:[%s13608_s3 + $0x2f8] sm:$0xf]  ;;  %6316 = vmatmul.msk.bf16.gmra.mxu0 %vm8903_vm12, %v14054_v31 }
 0x191   : > { %14098 = vst [vmem:[#allocation38_spill] sm:$0xff] %v8911_v45  ;;  %v14112_v34 = vsel %vm8973_vm15, 4294967295, %v14111_v34  ;;  %v8982_v61 = vsel %vm938_vm7, 1.0, %v14055_v4  ;;  %v8988_v3 = vsel %vm937_vm14, 1.0, %v14055_v4  ;;  %vm8993_vm2 = vmpackc.low %vm937_vm14, %vm14116_vm9  ;;  %vm958_vm5 = vcmp.eq.s32.totalorder %v8177_v11, %v864_v60 }
 0x192   : > { %14100 = vst [vmem:[#allocation39_spill] sm:$0xff] %v8917_v7  ;;  %6328 = vmatmul.msk.bf16.gmra.mxu2 %vm8993_vm2, %v14054_v31  ;;  %v9006_v7 = vsel %vm958_vm5, 1.0, %v14055_v4  ;;  %vm14121_vm14 = vcmp.eq.s32.totalorder %v8177_v11, %v8546_v50  ;;  %v6156_v2 = vor.u32 %v6927_v56, %v6153_v16  ;;  %v6184_v56 = vor.u32 %v6936_v14, %v6183_v19  ;;  %v9053_v14 = vpop.permute.xlu2 %1217 }
 0x193   : > { %14105 = vst [vmem:[#allocation40_spill] sm:$0xff] %v14104_v59  ;;  %vm9011_vm9 = vmpackc.low %vm14121_vm14, %vm958_vm5  ;;  %v14122_v59 = vmov 0  ;;  %v6280_v16 = vor.u32 %v6960_v49, %v6279_v52  ;;  %vm14125_vm5 = vcmp.eq.s32.totalorder %v8187_v15, %v8423_v32  ;;  %v14126_v45 = vmov 0 }
 0x194   : > { %14107 = vst [vmem:[#allocation41_spill] sm:$0xff] %v8933_v20  ;;  %v14123_v59 = vsel %vm9011_vm9, 4294967295, %v14122_v59  ;;  %6336 = vmatmul.msk.bf16.gmra.mxu3 %vm9011_vm9, %v14054_v31  ;;  %v6145_v20 = vld [vmem:[%s13608_s3 + $0x8c] sm:$0xf0]  ;;  %vm9040_vm14 = vmpackc.low %vm938_vm7, %vm14125_vm5  ;;  %vm14128_vm8 = vcmp.eq.s32.totalorder %v8182_v13, %v8423_v32  ;;  %vm14129_vm9 = vcmp.eq.s32.totalorder %v8182_v13, %v843_v55  ;;  %v14130_v49 = vmov 0  ;;  %2032 = vmatpush.bf16.msra.mxu1 %v6184_v56  ;;  %v849_v32 = vpop.permute.xlu1 %848 }
 0x195   : > { %14109 = vst [vmem:[#allocation42_spill] sm:$0xff] %v8939_v41  ;;  %v14127_v45 = vsel %vm9040_vm14, 4294967295, %v14126_v45  ;;  %2206 = vmatpush.bf16.msra.mxu3 %v6156_v2  ;;  %2117 = vmatpush.bf16.msra.mxu2 %v6280_v16  ;;  %vm14133_vm7 = vcmp.eq.s32.totalorder %v8187_v15, %v864_v60  ;;  %vm14134_vm5 = vcmp.eq.s32.totalorder %v8187_v15, %v8546_v50  ;;  %v846_v2 = vpop.permute.xlu0 %845  ;;  %v6923_v55 = vld [vmem:[%s13608_s3 + $0x54] sm:$0xf]  ;;  %v6263_v50 = vld [vmem:[%s13608_s3 + $0x2d0] sm:$0xf] }
 0x196   : > { %14110 = vst [vmem:[#allocation43_spill] sm:$0xff] %v8962_v62  ;;  %v6958_v62 = vld [vmem:[%s13608_s3 + $0x308] sm:$0xf0]  ;;  %vm9060_vm14 = vmpackc.low %vm14134_vm5, %vm14133_vm7  ;;  %vm941_vm7 = vcmp.eq.s32.totalorder %v8187_v15, %v846_v2  ;;  %vm942_vm5 = vcmp.eq.s32.totalorder %v8182_v13, %v846_v2  ;;  %vm14160_vm15 = vcmp.eq.s32.totalorder %v8177_v11, %v849_v32 }
 0x197   : > { %14113 = vst [vmem:[#allocation44_spill] sm:$0xff] %v14112_v34  ;;  %v14117_v34 = vmov 0  ;;  %v6272_v52 = vor.u32 %v6958_v62, %v6271_v28  ;;  %v6956_v62 = vld [vmem:[%s13608_s3 + $0x2e0] sm:$0xf0]  ;;  %v9089_v60 = vsel %vm941_vm7, 1.0, %v14055_v4 }
 0x198   : > { %14114 = vst [vmem:[#allocation45_spill] sm:$0xff] %v8982_v61  ;;  %v14118_v34 = vsel %vm8993_vm2, 4294967295, %v14117_v34  ;;  %v6925_v61 = vld [vmem:[%s13608_s3 + $0x7c] sm:$0xf]  ;;  %vm9049_vm2 = vmpackc.low %vm14129_vm9, %vm14128_vm8  ;;  %vm13707_vm8 = vcmp.eq.s32.totalorder %v8187_v15, %v849_v32  ;;  %vm945_vm9 = vcmp.eq.s32.totalorder %v8182_v13, %v849_v32 }
 0x199   : > { %14115 = vst [vmem:[#allocation46_spill] sm:$0xff] %v8988_v3  ;;  %v6148_v19 = vor.u32 %v6925_v61, %v6145_v20  ;;  %v14131_v49 = vsel %vm9049_vm2, 4294967295, %v14130_v49  ;;  %v14135_v61 = vmov 0  ;;  %v6137_v20 = vld [vmem:[%s13608_s3 + $0x64] sm:$0xf0]  ;;  %v9081_v28 = vsel %vm13707_vm8, 1.0, %v14055_v4  ;;  %2118 = vmatpush.bf16.msra.mxu2 %v6272_v52  ;;  %vm9097_vm8 = vmpackc.low %vm945_vm9, %vm942_vm5 }
 0x19a   : > { %14119 = vst [vmem:[#allocation47_spill] sm:$0xff] %v14118_v34  ;;  %v14136_v61 = vsel %vm9060_vm14, 4294967295, %v14135_v61  ;;  %vm13714_vm14 = vcmp.eq.s32.totalorder %v8177_v11, %v846_v2  ;;  %vm13713_vm2 = vcmp.eq.s32.totalorder %v8177_v11, %v849_v32  ;;  %v6140_v16 = vor.u32 %v6923_v55, %v6137_v20  ;;  %v6954_v52 = vld [vmem:[%s13608_s3 + $0x2b8] sm:$0xf0]  ;;  %v6921_v20 = vld [vmem:[%s13608_s3 + $0x2c] sm:$0xf] }
 0x19b   : > { %14120 = vst [vmem:[#allocation48_spill] sm:$0xff] %v9006_v7  ;;  %2207 = vmatpush.bf16.msra.mxu3 %v6148_v19  ;;  %v9095_v56 = vsel %vm13714_vm14, 1.0, %v14055_v4  ;;  %v14141_v7 = vmov 0  ;;  %v9106_v41 = vsel %vm13713_vm2, 1.0, %v14055_v4  ;;  %vm14145_vm2 = vcmp.eq.s32.totalorder %v8187_v15, %v849_v32 }
 0x19c   : > { %14124 = vst [vmem:[#allocation49_spill] sm:$0xff] %v14123_v59  ;;  %v14142_v7 = vsel %vm9097_vm8, 4294967295, %v14141_v7  ;;  %v6264_v59 = vor.u32 %v6956_v62, %v6263_v50  ;;  %v6129_v50 = vld [vmem:[%s13608_s3 + $0x3c] sm:$0xf0]  ;;  %vm9130_vm14 = vmpackc.low %vm14145_vm2, %vm941_vm7  ;;  %v14146_v62 = vmov 0  ;;  %vm14149_vm2 = vcmp.eq.s32.totalorder %v8187_v15, %v8695_v57 }
 0x19d   : > { %14132 = vst [vmem:[#allocation50_spill] sm:$0xff] %v14131_v49  ;;  %v14147_v62 = vsel %vm9130_vm14, 4294967295, %v14146_v62  ;;  %v6132_v19 = vor.u32 %v6921_v20, %v6129_v50  ;;  %vm14151_vm5 = vcmp.eq.s32.totalorder %v8177_v11, %v8795_v1  ;;  %vm14152_vm9 = vcmp.eq.s32.totalorder %v8177_v11, %v8793_v29  ;;  %v9170_v1 = vpop.permute.xlu2 %1226  ;;  %v6919_v20 = vld [vmem:[%s13608_s3 + $0x4] sm:$0xf]  ;;  %v6247_v50 = vld [vmem:[%s13608_s3 + $0x280] sm:$0xf] }
 0x19e   : > { %14137 = vst [vmem:[#allocation51_spill] sm:$0xff] %v14136_v61  ;;  %v6255_v61 = vld [vmem:[%s13608_s3 + $0x2a8] sm:$0xf]  ;;  %2119 = vmatpush.bf16.msra.mxu2 %v6264_v59  ;;  %vm9154_vm14 = vmpackc.low %vm14152_vm9, %vm14151_vm5  ;;  %v14153_v59 = vmov 0  ;;  %vm14157_vm8 = vcmp.eq.s32.totalorder %v8187_v15, %v8866_v0  ;;  %vm14159_vm5 = vcmp.eq.s32.totalorder %v8177_v11, %v846_v2  ;;  %v14161_v29 = vmov 0 }
 0x19f   : > { %14138 = vst [vmem:[#allocation52_spill] sm:$0xff] %v9081_v28  ;;  %2208 = vmatpush.bf16.msra.mxu3 %v6140_v16  ;;  %v6256_v55 = vor.u32 %v6954_v52, %v6255_v61  ;;  %v852_v28 = vpop.permute.xlu1 %851  ;;  %v14154_v59 = vsel %vm9154_vm14, 4294967295, %v14153_v59  ;;  %v9168_v16 = vsel %vm14157_vm8, 1.0, %v14055_v4  ;;  %vm9178_vm0 = vmpackc.low %vm14160_vm15, %vm14159_vm5  ;;  %v6121_v2 = vld [vmem:[%s13608_s3 + $0x14] sm:$0xf0]  ;;  %v14167_v3 = vmov 0  ;;  %6324 = vmatmul.msk.bf16.gmra.mxu1 %vm9154_vm14, %v14054_v31 }
 0x1a0   : > { %14139 = vst [vmem:[#allocation53_spill] sm:$0xff] %v9089_v60  ;;  %v9144_v60 = vsel %vm14149_vm2, 1.0, %v14055_v4  ;;  %vm14155_vm2 = vcmp.eq.s32.totalorder %v8177_v11, %v8695_v57  ;;  %vm13723_vm7 = vcmp.eq.s32.totalorder %v8187_v15, %v852_v28  ;;  %vm948_vm9 = vcmp.eq.s32.totalorder %v8182_v13, %v852_v28  ;;  %6438 = vmatmul.msk.bf16.vlgmr.msra.gmra.mxu0 %vm8285_vm1, %v14054_v31 }
 0x1a1   : > { %14140 = vst [vmem:[#allocation54_spill] sm:$0xff] %v9095_v56  ;;  %v873_v56 = vpop.permute.xlu0 %872  ;;  %v9162_v61 = vsel %vm14155_vm2, 1.0, %v14055_v4  ;;  %v14162_v29 = vsel %vm9178_vm0, 4294967295, %v14161_v29  ;;  %vm14163_vm2 = vcmp.eq.s32.totalorder %v8177_v11, %v8866_v0  ;;  %v9197_v32 = vsel %vm13723_vm7, 1.0, %v14055_v4 }
 0x1a2   : > { %14143 = vst [vmem:[#allocation55_spill] sm:$0xff] %v14142_v7  ;;  %v9186_v52 = vsel %vm14163_vm2, 1.0, %v14055_v4  ;;  %vm13735_vm15 = vcmp.eq.s32.totalorder %v8187_v15, %v873_v56  ;;  %vm967_vm5 = vcmp.eq.s32.totalorder %v8177_v11, %v873_v56  ;;  %vm14166_vm2 = vcmp.eq.s32.totalorder %v8182_v13, %v8866_v0  ;;  %2120 = vmatpush.bf16.msra.mxu2 %v6256_v55 }
 0x1a3   : > { %14144 = vst [vmem:[#allocation56_spill] sm:$0xff] %v9106_v41  ;;  %2209 = vmatpush.bf16.msra.mxu3 %v6132_v19  ;;  %v6952_v41 = vld [vmem:[%s13608_s3 + $0x290] sm:$0xf0]  ;;  %vm9211_vm7 = vmpackc.low %vm14166_vm2, %vm948_vm9  ;;  %v9220_v19 = vsel %vm13735_vm15, 1.0, %v14055_v4  ;;  %vm14172_vm9 = vcmp.eq.s32.totalorder %v8177_v11, %v8695_v57  ;;  %v14173_v49 = vmov 0  ;;  %vm13734_vm8 = vcmp.eq.s32.totalorder %v8177_v11, %v852_v28  ;;  %6330 = vmatmul.msk.bf16.gmra.mxu2 %vm9178_vm0, %v14054_v31 }
 0x1a4   : > { %14148 = vst [vmem:[#allocation57_spill] sm:$0xff] %v14147_v62  ;;  %v14168_v3 = vsel %vm9211_vm7, 4294967295, %v14167_v3  ;;  %v9226_v62 = vsel %vm967_vm5, 1.0, %v14055_v4  ;;  %vm9231_vm2 = vmpackc.low %vm967_vm5, %vm14172_vm9  ;;  %v6124_v7 = vor.u32 %v6919_v20, %v6121_v2  ;;  %v6248_v34 = vor.u32 %v6952_v41, %v6247_v50 }
 0x1a5   : > { %14150 = vst [vmem:[#allocation58_spill] sm:$0xff] %v9144_v60  ;;  %v14174_v49 = vsel %vm9231_vm2, 4294967295, %v14173_v49  ;;  %6338 = vmatmul.msk.bf16.gmra.mxu3 %vm9231_vm2, %v14054_v31  ;;  %vm14177_vm5 = vcmp.eq.s32.totalorder %v8182_v13, %v8695_v57  ;;  %vm14178_vm9 = vcmp.eq.s32.totalorder %v8182_v13, %v873_v56  ;;  %vm14181_vm15 = vcmp.eq.s32.totalorder %v8187_v15, %v852_v28 }
 0x1a6   : > { %14156 = vst [vmem:[#allocation59_spill] sm:$0xff] %v9162_v61  ;;  %vm14182_vm2 = vcmp.eq.s32.totalorder %v8187_v15, %v8866_v0  ;;  %v14183_v20 = vmov 0  ;;  %2121 = vmatpush.bf16.msra.mxu2 %v6248_v34  ;;  %vm14185_vm7 = vcmp.eq.s32.totalorder %v8187_v15, %v8695_v57  ;;  %vm14186_vm14 = vcmp.eq.s32.totalorder %v8187_v15, %v873_v56  ;;  %v9291_v57 = vpop.permute.xlu2 %1235 }
 0x1a7   : > { %14158 = vst [vmem:[#allocation60_spill] sm:$0xff] %v9168_v16  ;;  %v9246_v16 = vsel %vm13734_vm8, 1.0, %v14055_v4  ;;  %vm9261_vm8 = vmpackc.low %vm14178_vm9, %vm14177_vm5  ;;  %2210 = vmatpush.bf16.msra.mxu3 %v6124_v7  ;;  %v14187_v41 = vmov 0  ;;  %v879_v7 = vpop.permute.xlu1 %878  ;;  %v14192_v55 = vmov 0  ;;  %v14200_v60 = vmov 0 }
 0x1a8   : > { %14164 = vst [vmem:[#allocation61_spill] sm:$0xff] %v9186_v52  ;;  %vm9270_vm0 = vmpackc.low %vm14182_vm2, %vm14181_vm15  ;;  %vm974_vm9 = vcmp.eq.s32.totalorder %v8187_v15, %v879_v7  ;;  %v14202_v61 = vpack.c.bf16 %v8303_v43, %v8261_v33  ;;  %v14211_v33 = vmov 0 }
 0x1a9   : > { %14165 = vst [vmem:[#allocation62_spill] sm:$0xff] %v9197_v32  ;;  %v14179_v32 = vmov 0  ;;  %v14184_v20 = vsel %vm9270_vm0, 4294967295, %v14183_v20  ;;  %vm9279_vm5 = vmpackc.low %vm14186_vm14, %vm14185_vm7  ;;  %v876_v2 = vpop.permute.xlu0 %875  ;;  %v9286_v50 = vsel %vm974_vm9, 1.0, %v14055_v4  ;;  %vm973_vm14 = vcmp.eq.s32.totalorder %v8177_v11, %v879_v7 }
 0x1aa   : > { %14169 = vst [vmem:[#allocation63_spill] sm:$0xff] %v14168_v3  ;;  %v14180_v32 = vsel %vm9261_vm8, 4294967295, %v14179_v32  ;;  %v14188_v41 = vsel %vm9279_vm5, 4294967295, %v14187_v41  ;;  %vm975_vm8 = vcmp.eq.s32.totalorder %v8182_v13, %v879_v7  ;;  %vm971_vm15 = vcmp.eq.s32.totalorder %v8187_v15, %v876_v2 }
 0x1ab   : > { %14170 = vst [vmem:[#allocation64_spill] sm:$0xff] %v9220_v19  ;;  %vm972_vm2 = vcmp.eq.s32.totalorder %v8182_v13, %v876_v2  ;;  %vm13748_vm0 = vcmp.eq.s32.totalorder %v8177_v11, %v876_v2  ;;  %v9294_v34 = vsel %vm971_vm15, 1.0, %v14055_v4  ;;  %v9309_v19 = vsel %vm973_vm14, 1.0, %v14055_v4  ;;  %vm9313_vm5 = vmpackc.low %vm974_vm9, %vm971_vm15 }
 0x1ac   : > { %14171 = vst [vmem:[#allocation65_spill] sm:$0xff] %v9226_v62  ;;  %v9300_v56 = vsel %vm13748_vm0, 1.0, %v14055_v4  ;;  %vm9302_vm7 = vmpackc.low %vm975_vm8, %vm972_vm2  ;;  %v14195_v7 = vmov 0  ;;  %vm14198_vm8 = vcmp.eq.s32.totalorder %v8177_v11, %v852_v28  ;;  %vm14199_vm2 = vcmp.eq.s32.totalorder %v8177_v11, %v8866_v0 }
 0x1ad   : > { %14175 = vst [vmem:[#allocation66_spill] sm:$0xff] %v14174_v49  ;;  %v14193_v55 = vsel %vm9302_vm7, 4294967295, %v14192_v55  ;;  %v14196_v7 = vsel %vm9313_vm5, 4294967295, %v14195_v7  ;;  %vm9326_vm0 = vmpackc.low %vm14199_vm2, %vm14198_vm8  ;;  %vm13754_vm7 = vcmp.eq.s32.totalorder %v8177_v11, %v9170_v1  ;;  %vm14204_vm15 = vcmp.eq.s32.totalorder %v8177_v11, %v876_v2 }
 0x1ae   : > { %14176 = vst [vmem:[#allocation67_spill] sm:$0xff] %v9246_v16  ;;  %v14201_v60 = vsel %vm9326_vm0, 4294967295, %v14200_v60  ;;  %vm9342_vm5 = vmpackc.low %vm973_vm14, %vm14204_vm15  ;;  %v14205_v0 = vmov 0  ;;  %vm13756_vm8 = vcmp.eq.s32.totalorder %v8177_v11, %v9053_v14  ;;  %vm1313_vm14 = vcmp.eq.s32.totalorder %v8187_v15, %v9053_v14  ;;  %v9383_v43 = vpop.permute.xlu2 %1244 }
 0x1af   : > { %14189 = vst [vmem:[#allocation68_spill] sm:$0xff] %v9286_v50  ;;  %v9317_v62 = vpop.permute.xlu1 %1223  ;;  %v14206_v0 = vsel %vm9342_vm5, 4294967295, %v14205_v0  ;;  %6342 = vmatmul.msk.bf16.vlgmr.msra.gmra.mxu1 %vm8285_vm1, %v14054_v31  ;;  %vm13763_vm1 = vcmp.eq.s32.totalorder %v8187_v15, %v9170_v1  ;;  %v14283_v16 = vmov 0 }
 0x1b0   : > { %14190 = vst [vmem:[#allocation69_spill] sm:$0xff] %v9294_v34  ;;  %vm13755_vm9 = vcmp.eq.s32.totalorder %v8177_v11, %v9317_v62  ;;  %v14203_v34 = vpack.c.bf16 %v8281_v37, %v8254_v30  ;;  %v14208_v30 = vmov 0  ;;  %v14214_v37 = vmov 0  ;;  %6440 = vmatmul.msk.bf16.gmra.mxu0 %vm8340_vm6, %v14054_v31 }
 0x1b1   : > { %14191 = vst [vmem:[#allocation70_spill] sm:$0xff] %v9300_v56  ;;  %v9319_v49 = vpop.permute.xlu0 %1220  ;;  %vm9356_vm12 = vmpackc.low %vm13754_vm7, %vm13755_vm9  ;;  %vm13764_vm7 = vcmp.eq.s32.totalorder %v8187_v15, %v9317_v62 }
 0x1b2   : > { %14194 = vst [vmem:[#allocation71_spill] sm:$0xff] %v9309_v19  ;;  %4829 = vxpose.binary.xlu0.c.b16.start [1/16] %v14203_v34, %v14202_v61, 128  ;;  %vm1315_vm2 = vcmp.eq.s32.totalorder %v8177_v11, %v9319_v49  ;;  %v14209_v30 = vsel %vm9356_vm12, 4294967295, %v14208_v30  ;;  %vm1316_vm15 = vcmp.eq.s32.totalorder %v8187_v15, %v9319_v49  ;;  %v14217_v61 = vmov 0 }
 0x1b3   : > { %14197 = vst [vmem:[#allocation72_spill] sm:$0xff] %v14196_v7  ;;  %vm9367_vm4 = vmpackc.low %vm1315_vm2, %vm13756_vm8  ;;  %6332 = vmatmul.msk.bf16.gmra.mxu2 %vm9326_vm0, %v14054_v31  ;;  %v6024_v38 = vsel %vm1315_vm2, 1.0, %v14055_v4  ;;  %v6025_v28 = vsel %vm1316_vm15, 1.0, %v14055_v4  ;;  %vm14220_vm12 = vcmp.eq.s32.totalorder %v8177_v11, %v9053_v14  ;;  %v6022_v34 = vsel %vm1313_vm14, 1.0, %v14055_v4 }
 0x1b4   : > { %14207 = vst [vmem:[#allocation73_spill] sm:$0xff] %v14206_v0  ;;  %v14212_v33 = vsel %vm9367_vm4, 4294967295, %v14211_v33  ;;  %vm9376_vm9 = vmpackc.low %vm1316_vm15, %vm1313_vm14  ;;  %v6021_v2 = vsel %vm14220_vm12, 1.0, %v14055_v4  ;;  %v1601_v19 = vpack.c.bf16 %v6025_v28, %v6022_v34  ;;  %v14224_v28 = vmov 0 }
 0x1b5   : > { %14210 = vst [vmem:[#allocation74_spill] sm:$0xff] %v14209_v30  ;;  %v14215_v37 = vsel %vm9376_vm9, 4294967295, %v14214_v37  ;;  %6340 = vmatmul.msk.bf16.gmra.mxu3 %vm9342_vm5, %v14054_v31  ;;  %vm9401_vm8 = vmpackc.low %vm13763_vm1, %vm13764_vm7  ;;  %v1600_v56 = vpack.c.bf16 %v6024_v38, %v6021_v2  ;;  %v14221_v38 = vmov 0  ;;  %v14227_v34 = vpack.c.bf16 %v8309_v44, %v8270_v35 }
 0x1b6   : > { %14213 = vst [vmem:[#allocation75_spill] sm:$0xff] %v14212_v33  ;;  %v14218_v61 = vsel %vm9401_vm8, 4294967295, %v14217_v61  ;;  %v14233_v35 = vmov 0  ;;  %v14274_v7 = vmov 0  ;;  %vm14367_vm4 = vcmp.eq.s32.totalorder %v8187_v15, %v8179_v12 }
 0x1b7   : > { %14216 = vst [vmem:[#allocation76_spill] sm:$0xff] %v14215_v37  ;;  %v9410_v30 = vpop.permute.xlu1 %1232  ;;  %3945 = vxpose.binary.xlu1.c.b16.start [1/16] %v1601_v19, %v1600_v56, 128  ;;  %v9442_v19 = vpop.permute.xlu2 %1253 }
 0x1b8   : > { %14219 = vst [vmem:[#allocation77_spill] sm:$0xff] %v14218_v61  ;;  %vm13766_vm2 = vcmp.eq.s32.totalorder %v8177_v11, %v9410_v30  ;;  %vm13770_vm15 = vcmp.eq.s32.totalorder %v8187_v15, %v9410_v30 }
 0x1b9   : > { %v9412_v50 = vpop.permute.xlu0 %1229 }
 0x1ba   : > { %vm13765_vm1 = vcmp.eq.s32.totalorder %v8177_v11, %v9412_v50  ;;  %vm13769_vm12 = vcmp.eq.s32.totalorder %v8187_v15, %v9412_v50 }
 0x1bb   : > { %vm9428_vm14 = vmpackc.low %vm13766_vm2, %vm13765_vm1  ;;  %vm13775_vm1 = vcmp.eq.s32.totalorder %v8177_v11, %v9383_v43 }
 0x1bc   : > { %v14222_v38 = vsel %vm9428_vm14, 4294967295, %v14221_v38  ;;  %vm9438_vm7 = vmpackc.low %vm13770_vm15, %vm13769_vm12  ;;  %vm13777_vm12 = vcmp.eq.s32.totalorder %v8177_v11, %v9291_v57 }
 0x1bd   : > { %14223 = vst [vmem:[#allocation78_spill] sm:$0xff] %v14222_v38  ;;  %v14225_v28 = vsel %vm9438_vm7, 4294967295, %v14224_v28  ;;  %v14228_v38 = vpack.c.bf16 %v8330_v51, %v8276_v36  ;;  %vm14237_vm7 = vcmp.eq.s32.totalorder %v8187_v15, %v9317_v62  ;;  %v14244_v51 = vmov 0 }
 0x1be   : > { %14226 = vst [vmem:[#allocation79_spill] sm:$0xff] %v14225_v28  ;;  %v14229_v28 = vmov 0  ;;  %v6028_v44 = vsel %vm14237_vm7, 1.0, %v14055_v4  ;;  %vm14247_vm7 = vcmp.eq.s32.totalorder %v8177_v11, %v9170_v1 }
 0x1bf   : > { %v9444_v56 = vpop.permute.xlu1 %1241  ;;  %6344 = vmatmul.msk.bf16.gmra.mxu1 %vm8340_vm6, %v14054_v31  ;;  %v6030_v54 = vsel %vm14247_vm7, 1.0, %v14055_v4 }
 0x1c0   : > { %vm13776_vm2 = vcmp.eq.s32.totalorder %v8177_v11, %v9444_v56  ;;  %6442 = vmatmul.msk.bf16.gmra.mxu0 %vm8240_vm11, %v14054_v31  ;;  %vm14242_vm14 = vcmp.eq.s32.totalorder %v8187_v15, %v9444_v56 }
 0x1c1   : > { %v9446_v2 = vpop.permute.xlu0 %1238  ;;  %vm9466_vm15 = vmpackc.low %vm13775_vm1, %vm13776_vm2  ;;  %vm13787_vm1 = vcmp.eq.s32.totalorder %v8187_v15, %v9291_v57 }
 0x1c2   : > { %4830 = vxpose.binary.xlu0.c.b16.cont [2/16] %v14228_v38, %v14227_v34, 128  ;;  %v14230_v28 = vsel %vm9466_vm15, 4294967295, %v14229_v28  ;;  %vm14232_vm6 = vcmp.eq.s32.totalorder %v8177_v11, %v9446_v2 }
 0x1c3   : > { %14231 = vst [vmem:[#allocation80_spill] sm:$0xff] %v14230_v28  ;;  %6374 = vmatmul.msk.bf16.vlgmr.msra.gmra.mxu2 %vm8298_vm3, %v14054_v31  ;;  %vm9496_vm2 = vmpackc.low %vm14232_vm6, %vm13777_vm12  ;;  %vm14238_vm6 = vcmp.eq.s32.totalorder %v8187_v15, %v9446_v2 }
 0x1c4   : > { %v14234_v35 = vsel %vm9496_vm2, 4294967295, %v14233_v35  ;;  %vm9516_vm12 = vmpackc.low %vm14238_vm6, %vm13787_vm1  ;;  %vm14248_vm6 = vcmp.eq.s32.totalorder %v8187_v15, %v9170_v1 }
 0x1c5   : > { %6406 = vmatmul.msk.bf16.vlgmr.msra.gmra.mxu3 %vm8323_vm13, %v14054_v31  ;;  %14235 = vst [vmem:[#allocation81_spill] sm:$0xff] %v14234_v35  ;;  %vm14236_vm13 = vcmp.eq.s32.totalorder %v8177_v11, %v9317_v62  ;;  %v14240_v48 = vsel %vm9516_vm12, 4294967295, %v14239_v48  ;;  %v6031_v38 = vsel %vm14248_vm6, 1.0, %v14055_v4 }
 0x1c6   : > { %v6027_v36 = vsel %vm14236_vm13, 1.0, %v14055_v4  ;;  %14241 = vst [vmem:[#allocation82_spill] sm:$0xff] %v14240_v48  ;;  %vm14243_vm13 = vcmp.eq.s32.totalorder %v8187_v15, %v9383_v43  ;;  %v1604_v35 = vpack.c.bf16 %v6031_v38, %v6028_v44  ;;  %v14252_v44 = vmov 0 }
 0x1c7   : > { %vm9526_vm15 = vmpackc.low %vm14243_vm13, %vm14242_vm14  ;;  %v9538_v34 = vpop.permute.xlu1 %1250  ;;  %v1603_v48 = vpack.c.bf16 %v6030_v54, %v6027_v36  ;;  %v14249_v36 = vmov 0 }
 0x1c8   : > { %v14245_v51 = vsel %vm9526_vm15, 4294967295, %v14244_v51  ;;  %vm13792_vm14 = vcmp.eq.s32.totalorder %v8177_v11, %v9538_v34  ;;  %vm13796_vm13 = vcmp.eq.s32.totalorder %v8187_v15, %v9538_v34 }
 0x1c9   : > { %14246 = vst [vmem:[#allocation83_spill] sm:$0xff] %v14245_v51  ;;  %v9540_v28 = vpop.permute.xlu0 %1247  ;;  %v1263_v51 = vpop.permute.xlu2 %1262  ;;  %3946 = vxpose.binary.xlu1.c.b16.cont [2/16] %v1604_v35, %v1603_v48, 128 }
 0x1ca   : > { %vm13791_vm7 = vcmp.eq.s32.totalorder %v8177_v11, %v9540_v28  ;;  %vm13795_vm1 = vcmp.eq.s32.totalorder %v8187_v15, %v9540_v28  ;;  %vm1357_vm12 = vcmp.eq.s32.totalorder %v8177_v11, %v1263_v51  ;;  %vm13805_vm2 = vcmp.eq.s32.totalorder %v8187_v15, %v1263_v51 }
 0x1cb   : > { %vm9556_vm6 = vmpackc.low %vm13792_vm14, %vm13791_vm7  ;;  %v9582_v54 = vsel %vm1357_vm12, 1.0, %v14055_v4  ;;  %v9587_v38 = vsel %vm13805_vm2, 1.0, %v14055_v4  ;;  %vm14265_vm7 = vcmp.eq.s32.totalorder %v8187_v15, %v9442_v19 }
 0x1cc   : > { %v14250_v36 = vsel %vm9556_vm6, 4294967295, %v14249_v36  ;;  %vm9566_vm15 = vmpackc.low %vm13796_vm13, %vm13795_vm1 }
 0x1cd   : > { %14251 = vst [vmem:[#allocation84_spill] sm:$0xff] %v14250_v36  ;;  %v14253_v44 = vsel %vm9566_vm15, 4294967295, %v14252_v44  ;;  %v14256_v36 = vpack.c.bf16 %v8238_v26, %v8221_v24  ;;  %v14261_v26 = vmov 0  ;;  %vm14287_vm15 = vcmp.eq.s32.totalorder %v8187_v15, %v1263_v51 }
 0x1ce   : > { %14254 = vst [vmem:[#allocation85_spill] sm:$0xff] %v14253_v44  ;;  %v14255_v44 = vpack.c.bf16 %v8211_v22, %v8205_v21  ;;  %v14257_v21 = vmov 0 }
 0x1cf   : > { %v1260_v35 = vpop.permute.xlu1 %1259  ;;  %6346 = vmatmul.msk.bf16.gmra.mxu1 %vm8240_vm11, %v14054_v31 }
 0x1d0   : > { %vm1354_vm1 = vcmp.eq.s32.totalorder %v8177_v11, %v1260_v35  ;;  %vm13806_vm13 = vcmp.eq.s32.totalorder %v8187_v15, %v1260_v35  ;;  %vm1356_vm6 = vcmp.eq.s32.totalorder %v8182_v13, %v1260_v35 }
 0x1d1   : > { %v1257_v48 = vpop.permute.xlu0 %1256  ;;  %v9599_v61 = vsel %vm1354_vm1, 1.0, %v14055_v4  ;;  %v9604_v37 = vsel %vm13806_vm13, 1.0, %v14055_v4  ;;  %vm9609_vm14 = vmpackc.low %vm1357_vm12, %vm1354_vm1  ;;  %vm14260_vm13 = vcmp.eq.s32.totalorder %v8182_v13, %v1263_v51  ;;  %vm14264_vm12 = vcmp.eq.s32.totalorder %v8177_v11, %v9442_v19  ;;  %v9640_v27 = vpop.permute.xlu2 %1271 }
 0x1d2   : > { %4831 = vxpose.binary.xlu0.c.b16.cont [3/16] %v14256_v36, %v14255_v44, 128  ;;  %vm1351_vm2 = vcmp.eq.s32.totalorder %v8177_v11, %v1257_v48  ;;  %v14258_v21 = vsel %vm9609_vm14, 4294967295, %v14257_v21  ;;  %vm1353_vm8 = vcmp.eq.s32.totalorder %v8182_v13, %v1257_v48  ;;  %vm9624_vm1 = vmpackc.low %vm14260_vm13, %vm1356_vm6  ;;  %v9632_v36 = vsel %vm14264_vm12, 1.0, %v14055_v4 }
 0x1d3   : > { %14259 = vst [vmem:[#allocation86_spill] sm:$0xff] %v14258_v21  ;;  %v14262_v26 = vsel %vm9624_vm1, 4294967295, %v14261_v26  ;;  %v9638_v44 = vsel %vm14265_vm7, 1.0, %v14055_v4  ;;  %v9645_v24 = vsel %vm1351_vm2, 1.0, %v14055_v4  ;;  %vm14266_vm11 = vcmp.eq.s32.totalorder %v8187_v15, %v1257_v48  ;;  %6376 = vmatmul.msk.bf16.gmra.mxu2 %vm8358_vm10, %v14054_v31  ;;  %7272 = vmatpush.lsf.msk.bf16.msk.msrb.mxu1 %vm9624_vm1, %v14054_v31 }
 0x1d4   : > { %14263 = vst [vmem:[#allocation87_spill] sm:$0xff] %v14262_v26  ;;  %v9650_v22 = vsel %vm14266_vm11, 1.0, %v14055_v4  ;;  %vm14267_vm13 = vcmp.eq.s32.totalorder %v8182_v13, %v9442_v19  ;;  %v14268_v21 = vmov 0  ;;  %vm14271_vm6 = vnez %v14016_v5  ;;  %7304 = vmatpush.lsf.msk.bf16.msk.msrb.mxu3 %vm9624_vm1, %v14054_v31 }
 0x1d5   : > { %vm9661_vm7 = vmpackc.low %vm1353_vm8, %vm14267_vm13  ;;  %6408 = vmatmul.msk.bf16.gmra.mxu3 %vm14271_vm6, %v14054_v31  ;;  %vm14272_vm12 = vnez %v14008_v18  ;;  %vm14273_vm8 = vcmp.eq.s32.totalorder %v8177_v11, %v9442_v19  ;;  %vm14277_vm13 = vcmp.eq.s32.totalorder %v8177_v11, %v9410_v30  ;;  %vm14278_vm6 = vcmp.eq.s32.totalorder %v8187_v15, %v9410_v30 }
 0x1d6   : > { %v14269_v21 = vsel %vm9661_vm7, 4294967295, %v14268_v21  ;;  %6444 = vmatmul.msk.bf16.gmra.mxu0 %vm14272_vm12, %v14054_v31  ;;  %vm9680_vm11 = vmpackc.low %vm1351_vm2, %vm14273_vm8  ;;  %v6036_v0 = vsel %vm14277_vm13, 1.0, %v14055_v4  ;;  %v6037_v5 = vsel %vm14278_vm6, 1.0, %v14055_v4  ;;  %vm14279_vm14 = vcmp.eq.s32.totalorder %v8177_v11, %v9412_v50 }
 0x1d7   : > { %14270 = vst [vmem:[#allocation88_spill] sm:$0xff] %v14269_v21  ;;  %v14275_v7 = vsel %vm9680_vm11, 4294967295, %v14274_v7  ;;  %v6033_v33 = vsel %vm14279_vm14, 1.0, %v14055_v4  ;;  %vm14280_vm2 = vcmp.eq.s32.totalorder %v8187_v15, %v9412_v50  ;;  %vm14281_vm8 = vcmp.eq.s32.totalorder %v8187_v15, %v9442_v19  ;;  %7274 = vmatpush.lsf.msk.bf16.msk.msrb.mxu1 %vm9661_vm7, %v14054_v31  ;;  %v1269_v19 = vpop.permute.xlu1 %1268 }
 0x1d8   : > { %14276 = vst [vmem:[#allocation89_spill] sm:$0xff] %v14275_v7  ;;  %v6034_v7 = vsel %vm14280_vm2, 1.0, %v14055_v4  ;;  %vm14282_vm13 = vcmp.eq.s32.totalorder %v8187_v15, %v1257_v48  ;;  %vm1347_vm14 = vcmp.eq.s32.totalorder %v8182_v13, %v9538_v34  ;;  %vm1344_vm11 = vcmp.eq.s32.totalorder %v8182_v13, %v9540_v28  ;;  %7306 = vmatpush.lsf.msk.bf16.msk.msrb.mxu3 %vm9661_vm7, %v14054_v31 }
 0x1d9   : > { %vm9708_vm6 = vmpackc.low %vm14282_vm13, %vm14281_vm8  ;;  %vm14286_vm2 = vcmp.eq.s32.totalorder %v8187_v15, %v1260_v35  ;;  %v14288_v26 = vmov 0  ;;  %v1266_v48 = vpop.permute.xlu0 %1265  ;;  %v1607_v52 = vpack.c.bf16 %v6037_v5, %v6034_v7  ;;  %vm1363_vm8 = vcmp.eq.s32.totalorder %v8177_v11, %v1269_v19 }
 0x1da   : > { %v14284_v16 = vsel %vm9708_vm6, 4294967295, %v14283_v16  ;;  %vm9720_vm1 = vmpackc.low %vm14287_vm15, %vm14286_vm2  ;;  %vm13832_vm13 = vcmp.eq.s32.totalorder %v8187_v15, %v1269_v19  ;;  %vm1365_vm15 = vcmp.eq.s32.totalorder %v8182_v13, %v1269_v19  ;;  %v6072_v51 = vsel %vm1363_vm8, 1.0, %v14055_v4 }
 0x1db   : > { %14285 = vst [vmem:[#allocation90_spill] sm:$0xff] %v14284_v16  ;;  %v14289_v26 = vsel %vm9720_vm1, 4294967295, %v14288_v26  ;;  %v1606_v16 = vpack.c.bf16 %v6036_v0, %v6033_v33  ;;  %v6073_v35 = vsel %vm13832_vm13, 1.0, %v14055_v4  ;;  %vm1360_vm2 = vcmp.eq.s32.totalorder %v8177_v11, %v1266_v48  ;;  %vm9741_vm1 = vmpackc.low %vm1347_vm14, %vm1344_vm11 }
 0x1dc   : > { %14290 = vst [vmem:[#allocation91_spill] sm:$0xff] %v14289_v26  ;;  %v14291_v7 = vmov 0  ;;  %vm1361_vm6 = vcmp.eq.s32.totalorder %v8187_v15, %v1266_v48  ;;  %vm1362_vm7 = vcmp.eq.s32.totalorder %v8182_v13, %v1266_v48  ;;  %v6069_v0 = vsel %vm1360_vm2, 1.0, %v14055_v4  ;;  %vm9748_vm9 = vmpackc.low %vm1363_vm8, %vm1360_vm2  ;;  %7276 = vmatpush.lsf.msk.bf16.msk.msrb.mxu1 %vm9741_vm1, %v14054_v31  ;;  %7308 = vmatpush.lsf.msk.bf16.msk.msrb.mxu3 %vm9741_vm1, %v14054_v31 }
 0x1dd   : > { %v14292_v7 = vsel %vm9741_vm1, 4294967295, %v14291_v7  ;;  %3947 = vxpose.binary.xlu1.c.b16.cont [3/16] %v1607_v52, %v1606_v16, 128  ;;  %v14294_v33 = vmov 0  ;;  %vm1338_vm13 = vcmp.eq.s32.totalorder %v8182_v13, %v9444_v56  ;;  %v6070_v5 = vsel %vm1361_vm6, 1.0, %v14055_v4  ;;  %vm9758_vm11 = vmpackc.low %vm1365_vm15, %vm1362_vm7  ;;  %v9770_v52 = vpop.permute.xlu2 %1280 }
 0x1de   : > { %14293 = vst [vmem:[#allocation92_spill] sm:$0xff] %v14292_v7  ;;  %v14295_v33 = vsel %vm9748_vm9, 4294967295, %v14294_v33  ;;  %v1624_v26 = vpack.c.bf16 %v6072_v51, %v6069_v0  ;;  %v14297_v21 = vmov 0  ;;  %v1625_v48 = vpack.c.bf16 %v6073_v35, %v6070_v5 }
 0x1df   : > { %14296 = vst [vmem:[#allocation93_spill] sm:$0xff] %v14295_v33  ;;  %v14298_v21 = vsel %vm9758_vm11, 4294967295, %v14297_v21  ;;  %vm14300_vm14 = vcmp.eq.s32.totalorder %v8187_v15, %v1269_v19  ;;  %v14301_v16 = vmov 0  ;;  %vm1341_vm2 = vcmp.eq.s32.totalorder %v8182_v13, %v9383_v43  ;;  %v9782_v19 = vpop.permute.xlu1 %1277  ;;  %6348 = vmatmul.msk.bf16.gmra.mxu1 %vm14272_vm12, %v14054_v31 }
 0x1e0   : > { %14299 = vst [vmem:[#allocation94_spill] sm:$0xff] %v14298_v21  ;;  %vm9764_vm8 = vmpackc.low %vm14300_vm14, %vm1361_vm6  ;;  %3985 = vxpose.binary.xlu2.c.b16.start [1/16] %v1625_v48, %v1624_v26, 128  ;;  %v14304_v51 = vmov 0  ;;  %vm13838_vm6 = vcmp.eq.s32.totalorder %v8177_v11, %v9770_v52  ;;  %vm13839_vm15 = vcmp.eq.s32.totalorder %v8177_v11, %v9782_v19  ;;  %v9795_v26 = vpop.f32.mrf.mxu0  ;;  %v14307_v0 = vmov 0 }
 0x1e1   : > { %v14302_v16 = vsel %vm9764_vm8, 4294967295, %v14301_v16  ;;  %vm9775_vm7 = vmpackc.low %vm1341_vm2, %vm1338_vm13  ;;  %v9788_v35 = vpop.permute.xlu0 %1274  ;;  %v14310_v5 = vpack.c.bf16 %v8399_v9, %v8393_v8  ;;  %v14311_v48 = vpack.c.bf16 %v8409_v17, %v8404_v10  ;;  %vm14312_vm2 = vnez %v13990_v25 }
 0x1e2   : > { %14303 = vst [vmem:[#allocation95_spill] sm:$0xff] %v14302_v16  ;;  %v14305_v51 = vsel %vm9775_vm7, 4294967295, %v14304_v51  ;;  %7278 = vmatpush.lsf.msk.bf16.msk.msrb.mxu1 %vm9775_vm7, %v14054_v31  ;;  %7310 = vmatpush.lsf.msk.bf16.msk.msrb.mxu3 %vm9775_vm7, %v14054_v31  ;;  %vm9803_vm14 = vmpackc.low %vm13838_vm6, %vm13839_vm15  ;;  %vm1332_vm6 = vcmp.eq.s32.totalorder %v8182_v13, %v9291_v57  ;;  %vm14313_vm13 = vcmp.eq.s32.totalorder %v8177_v11, %v9640_v27  ;;  %v14315_v8 = vmov 0 }
 0x1e3   : > { %14306 = vst [vmem:[#allocation96_spill] sm:$0xff] %v14305_v51  ;;  %v14308_v0 = vsel %vm9803_vm14, 4294967295, %v14307_v0  ;;  %4832 = vxpose.binary.xlu0.c.b16.cont [4/16] %v14311_v48, %v14310_v5, 128  ;;  %vm14314_vm8 = vcmp.eq.s32.totalorder %v8177_v11, %v9788_v35  ;;  %vm14318_vm9 = vnez %v14039_v47  ;;  %vm14319_vm1 = vnez %v14020_v23 }
 0x1e4   : > { %14309 = vst [vmem:[#allocation97_spill] sm:$0xff] %v14308_v0  ;;  %6378 = vmatmul.msk.bf16.gmra.mxu2 %vm14312_vm2, %v14054_v31  ;;  %vm9835_vm14 = vmpackc.low %vm14314_vm8, %vm14313_vm13  ;;  %vm14320_vm8 = vcmp.eq.s32.totalorder %v8182_v13, %v9446_v2  ;;  %v14321_v9 = vmov 0  ;;  %vm14324_vm12 = vcmp.eq.s32.totalorder %v8177_v11, %v9446_v2  ;;  %v14328_v18 = vmov 0 }
 0x1e5   : > { %v14316_v8 = vsel %vm9835_vm14, 4294967295, %v14315_v8  ;;  %6410 = vmatmul.msk.bf16.gmra.mxu3 %vm14318_vm9, %v14054_v31  ;;  %vm9852_vm13 = vmpackc.low %vm14320_vm8, %vm1332_vm6  ;;  %v6042_v10 = vsel %vm14324_vm12, 1.0, %v14055_v4  ;;  %vm14325_vm9 = vcmp.eq.s32.totalorder %v8187_v15, %v9446_v2  ;;  %vm13855_vm14 = vcmp.eq.s32.totalorder %v8187_v15, %v9770_v52  ;;  %v9904_v48 = vpop.permute.xlu2 %1289 }
 0x1e6   : > { %14317 = vst [vmem:[#allocation98_spill] sm:$0xff] %v14316_v8  ;;  %6446 = vmatmul.msk.bf16.gmra.mxu0 %vm14319_vm1, %v14054_v31  ;;  %v14322_v9 = vsel %vm9852_vm13, 4294967295, %v14321_v9  ;;  %v6043_v17 = vsel %vm14325_vm9, 1.0, %v14055_v4  ;;  %7280 = vmatpush.lsf.msk.bf16.msk.msrb.mxu1 %vm9852_vm13, %v14054_v31  ;;  %vm14326_vm6 = vcmp.eq.s32.totalorder %v8187_v15, %v9640_v27  ;;  %vm14327_vm12 = vcmp.eq.s32.totalorder %v8187_v15, %v9788_v35 }
 0x1e7   : > { %14323 = vst [vmem:[#allocation99_spill] sm:$0xff] %v14322_v9  ;;  %7312 = vmatpush.lsf.msk.bf16.msk.msrb.mxu3 %vm9852_vm13, %v14054_v31  ;;  %vm9880_vm8 = vmpackc.low %vm14327_vm12, %vm14326_vm6  ;;  %vm14331_vm9 = vcmp.eq.s32.totalorder %v8187_v15, %v9782_v19  ;;  %v14332_v47 = vmov 0  ;;  %vm14335_vm7 = vcmp.eq.s32.totalorder %v8177_v11, %v9291_v57  ;;  %vm14336_vm6 = vcmp.eq.s32.totalorder %v8187_v15, %v9291_v57  ;;  %v9906_v0 = vpop.permute.xlu1 %1286 }
 0x1e8   : > { %v14329_v18 = vsel %vm9880_vm8, 4294967295, %v14328_v18  ;;  %vm9890_vm15 = vmpackc.low %vm13855_vm14, %vm14331_vm9  ;;  %v6039_v2 = vsel %vm14335_vm7, 1.0, %v14055_v4  ;;  %v6040_v5 = vsel %vm14336_vm6, 1.0, %v14055_v4  ;;  %vm14337_vm9 = vcmp.eq.s32.totalorder %v8177_v11, %v9788_v35 }
 0x1e9   : > { %14330 = vst [vmem:[#allocation100_spill] sm:$0xff] %v14329_v18  ;;  %v14333_v47 = vsel %vm9890_vm15, 4294967295, %v14332_v47  ;;  %v1609_v18 = vpack.c.bf16 %v6042_v10, %v6039_v2  ;;  %v1610_v8 = vpack.c.bf16 %v6043_v17, %v6040_v5  ;;  %vm14338_vm7 = vcmp.eq.s32.totalorder %v8182_v13, %v9412_v50  ;;  %v9924_v10 = vpop.permute.xlu0 %1283  ;;  %v9938_v50 = vpop.f32.mrf.mxu0 }
 0x1ea   : > { %14334 = vst [vmem:[#allocation101_spill] sm:$0xff] %v14333_v47  ;;  %v6078_v47 = vsel %vm14337_vm9, 1.0, %v14055_v4  ;;  %vm14339_vm6 = vcmp.eq.s32.totalorder %v8182_v13, %v9410_v30  ;;  %v14340_v57 = vmov 0  ;;  %vm13863_vm12 = vcmp.eq.s32.totalorder %v8177_v11, %v9906_v0 }
 0x1eb   : > { %vm9918_vm14 = vmpackc.low %vm14339_vm6, %vm14338_vm7  ;;  %vm14343_vm15 = vcmp.eq.s32.totalorder %v8187_v15, %v9788_v35  ;;  %vm13862_vm7 = vcmp.eq.s32.totalorder %v8177_v11, %v9924_v10  ;;  %v14344_v30 = vmov 0  ;;  %vm14347_vm9 = vcmp.eq.s32.totalorder %v8177_v11, %v9640_v27 }
 0x1ec   : > { %v14341_v57 = vsel %vm9918_vm14, 4294967295, %v14340_v57  ;;  %v6079_v17 = vsel %vm14343_vm15, 1.0, %v14055_v4  ;;  %7282 = vmatpush.lsf.msk.bf16.msk.msrb.mxu1 %vm9918_vm14, %v14054_v31  ;;  %7314 = vmatpush.lsf.msk.bf16.msk.msrb.mxu3 %vm9918_vm14, %v14054_v31  ;;  %vm1323_vm15 = vcmp.eq.s32.totalorder %v8182_v13, %v9170_v1  ;;  %vm9952_vm8 = vmpackc.low %vm13863_vm12, %vm13862_vm7  ;;  %v6075_v2 = vsel %vm14347_vm9, 1.0, %v14055_v4 }
 0x1ed   : > { %14342 = vst [vmem:[#allocation102_spill] sm:$0xff] %v14341_v57  ;;  %3948 = vxpose.binary.xlu1.c.b16.cont [4/16] %v1610_v8, %v1609_v18, 128  ;;  %v14345_v30 = vsel %vm9952_vm8, 4294967295, %v14344_v30  ;;  %vm14348_vm6 = vcmp.eq.s32.totalorder %v8187_v15, %v9640_v27  ;;  %vm14349_vm13 = vcmp.eq.s32.totalorder %v8182_v13, %v9317_v62  ;;  %v14350_v8 = vmov 0 }
 0x1ee   : > { %14346 = vst [vmem:[#allocation103_spill] sm:$0xff] %v14345_v30  ;;  %v6076_v1 = vsel %vm14348_vm6, 1.0, %v14055_v4  ;;  %vm9967_vm14 = vmpackc.low %vm1323_vm15, %vm14349_vm13  ;;  %v1627_v18 = vpack.c.bf16 %v6078_v47, %v6075_v2  ;;  %vm14353_vm7 = vcmp.eq.s32.totalorder %v8187_v15, %v9924_v10  ;;  %vm14354_vm9 = vcmp.eq.s32.totalorder %v8187_v15, %v9906_v0  ;;  %v9993_v47 = vpop.f32.mrf.mxu1 }
 0x1ef   : > { %v14351_v8 = vsel %vm9967_vm14, 4294967295, %v14350_v8  ;;  %v1628_v5 = vpack.c.bf16 %v6079_v17, %v6076_v1  ;;  %vm9977_vm12 = vmpackc.low %vm14354_vm9, %vm14353_vm7  ;;  %v14355_v30 = vmov 0  ;;  %vm1317_vm6 = vcmp.eq.s32.totalorder %v8182_v13, %v9319_v49  ;;  %v9991_v62 = vpop.permute.xlu1 %1295  ;;  %6350 = vmatmul.msk.bf16.gmra.mxu1 %vm14319_vm1, %v14054_v31 }
 0x1f0   : > { %14352 = vst [vmem:[#allocation104_spill] sm:$0xff] %v14351_v8  ;;  %v14356_v30 = vsel %vm9977_vm12, 4294967295, %v14355_v30  ;;  %7284 = vmatpush.lsf.msk.bf16.msk.msrb.mxu1 %vm9967_vm14, %v14054_v31  ;;  %7316 = vmatpush.lsf.msk.bf16.msk.msrb.mxu3 %vm9967_vm14, %v14054_v31  ;;  %vm1314_vm13 = vcmp.eq.s32.totalorder %v8182_v13, %v9053_v14  ;;  %v14358_v17 = vmov 0  ;;  %vm13873_vm12 = vcmp.eq.s32.totalorder %v8177_v11, %v9904_v48  ;;  %v10007_v14 = vpop.permute.xlu2 %1298 }
 0x1f1   : > { %14357 = vst [vmem:[#allocation105_spill] sm:$0xff] %v14356_v30  ;;  %3986 = vxpose.binary.xlu2.c.b16.cont [2/16] %v1628_v5, %v1627_v18, 128  ;;  %vm9995_vm7 = vmpackc.low %vm1317_vm6, %vm1314_vm13  ;;  %v9999_v49 = vpop.permute.xlu0 %1292  ;;  %v10015_v2 = vpop.f32.mrf.mxu0  ;;  %v14360_v1 = vpack.c.bf16 %v8454_v63, %v8437_v46  ;;  %v14361_v18 = vld [vmem:[#allocation7_spill] sm:$0xff]  ;;  %v14363_v30 = vmov 0  ;;  %vm13875_vm9 = vcmp.eq.s32.totalorder %v8187_v15, %v9904_v48  ;;  %v14370_v63 = vld [vmem:[#allocation5_spill] sm:$0xff]  ;;  %v14404_v51 = vmov 0 }
 0x1f2   : > { %v14359_v17 = vsel %vm9995_vm7, 4294967295, %v14358_v17  ;;  %vm13874_vm6 = vcmp.eq.s32.totalorder %v8177_v11, %v9999_v49  ;;  %v14362_v5 = vpack.c.bf16 %v8496_v39, %v14361_v18  ;;  %vm14366_vm8 = vcmp.eq.s32.totalorder %v8187_v15, %v8431_v40  ;;  %v14429_v46 = vld [vmem:[#allocation16_spill] sm:$0xff] }
 0x1f3   : > { %vm10035_vm15 = vmpackc.low %vm13874_vm6, %vm13873_vm12  ;;  %vm14371_vm6 = vnez %v14370_v63  ;;  %v14373_v39 = vmov 0  ;;  %vm14376_vm13 = vcmp.eq.s32.totalorder %v8177_v11, %v9444_v56  ;;  %vm14377_vm12 = vnez %v14096_v6 }
 0x1f4   : > { %7286 = vmatpush.lsf.msk.bf16.msk.msrb.mxu1 %vm9995_vm7, %v14054_v31  ;;  %7318 = vmatpush.lsf.msk.bf16.msk.msrb.mxu3 %vm9995_vm7, %v14054_v31  ;;  %v14364_v30 = vsel %vm10035_vm15, 4294967295, %v14363_v30  ;;  %vm10049_vm14 = vmpackc.low %vm14367_vm4, %vm14366_vm8  ;;  %vm14372_vm4 = vcmp.eq.s32.totalorder %v8187_v15, %v9999_v49  ;;  %v6045_v23 = vsel %vm14376_vm13, 1.0, %v14055_v4  ;;  %vm14383_vm13 = vcmp.eq.s32.totalorder %v8187_v15, %v9444_v56 }
 0x1f5   : > { %4833 = vxpose.binary.xlu0.c.b16.cont [5/16] %v14362_v5, %v14360_v1, 128  ;;  %14365 = vst [vmem:[#allocation7_spill] sm:$0xff] %v14364_v30  ;;  %vm10067_vm8 = vmpackc.low %vm14372_vm4, %vm13875_vm9  ;;  %vm14378_vm4 = vcmp.eq.s32.totalorder %v8177_v11, %v9991_v62  ;;  %vm14379_vm9 = vcmp.eq.s32.totalorder %v8177_v11, %v10007_v14  ;;  %v14380_v1 = vmov 0  ;;  %v6046_v6 = vsel %vm14383_vm13, 1.0, %v14055_v4 }
 0x1f6   : > { %7117 = vllmr.16.mxu1  ;;  %7229 = vllmr.16.mxu3  ;;  %v14374_v39 = vsel %vm10067_vm8, 4294967295, %v14373_v39  ;;  %vm10089_vm8 = vmpackc.low %vm14379_vm9, %vm14378_vm4  ;;  %vm14385_vm1 = vcmp.eq.s32.totalorder %v8187_v15, %v9991_v62  ;;  %vm14386_vm9 = vcmp.eq.s32.totalorder %v8187_v15, %v10007_v14  ;;  %v14387_v18 = vmov 0 }
 0x1f7   : > { %6380 = vmatmul.msk.bf16.gmra.mxu2 %vm14371_vm6, %v14054_v31  ;;  %14375 = vst [vmem:[#allocation106_spill] sm:$0xff] %v14374_v39  ;;  %6412 = vmatmul.msk.bf16.gmra.mxu3 %vm14377_vm12, %v14054_v31  ;;  %v14381_v1 = vsel %vm10089_vm8, 4294967295, %v14380_v1  ;;  %vm14384_vm12 = vnez %v14085_v53  ;;  %vm10109_vm4 = vmpackc.low %vm14386_vm9, %vm14385_vm1  ;;  %vm14390_vm13 = vcmp.eq.s32.totalorder %v8177_v11, %v9383_v43  ;;  %v10117_v5 = vpop.permute.xlu1 %1304  ;;  %vm14391_vm8 = vcmp.eq.s32.totalorder %v8187_v15, %v9383_v43 }
 0x1f8   : > { %6448 = vmatmul.msk.bf16.gmra.mxu0 %vm10049_vm14, %v14054_v31  ;;  %14382 = vst [vmem:[#allocation107_spill] sm:$0xff] %v14381_v1  ;;  %7336 = vmatpush.lsf.msk.bf16.msk.msrb.mxu1 %vm14384_vm12, %v14054_v31  ;;  %v14388_v18 = vsel %vm10109_vm4, 4294967295, %v14387_v18  ;;  %v6048_v56 = vsel %vm14390_vm13, 1.0, %v14055_v4  ;;  %v10119_v1 = vpop.f32.mrf.mxu1  ;;  %v6049_v39 = vsel %vm14391_vm8, 1.0, %v14055_v4  ;;  %vm14392_vm1 = vcmp.eq.s32.totalorder %v8177_v11, %v9782_v19 }
 0x1f9   : > { %7368 = vmatpush.lsf.msk.bf16.msk.msrb.mxu3 %vm14384_vm12, %v14054_v31  ;;  %14389 = vst [vmem:[#allocation108_spill] sm:$0xff] %v14388_v18  ;;  %v1612_v30 = vpack.c.bf16 %v6048_v56, %v6045_v23  ;;  %v10127_v16 = vpop.permute.xlu0 %1301  ;;  %v1613_v18 = vpack.c.bf16 %v6049_v39, %v6046_v6  ;;  %v10131_v33 = vpop.f32.mrf.mxu0  ;;  %v6081_v43 = vsel %vm14392_vm1, 1.0, %v14055_v4  ;;  %vm14393_vm9 = vcmp.eq.s32.totalorder %v8187_v15, %v9782_v19  ;;  %v14394_v23 = vld [vmem:[#allocation12_spill] sm:$0xff] }
 0x1fa   : > { %vm13897_vm13 = vcmp.eq.s32.totalorder %v8177_v11, %v10127_v16  ;;  %v6082_v39 = vsel %vm14393_vm9, 1.0, %v14055_v4  ;;  %vm14395_vm15 = vnez %v14394_v23  ;;  %vm915_vm8 = vcmp.eq.s32.totalorder %v8182_v13, %v8179_v12 }
 0x1fb   : > { %vm14396_vm1 = vcmp.eq.s32.totalorder %v8177_v11, %v10117_v5  ;;  %v14397_v6 = vmov 0  ;;  %vm14400_vm9 = vcmp.eq.s32.totalorder %v8177_v11, %v9770_v52  ;;  %vm14401_vm5 = vcmp.eq.s32.totalorder %v8187_v15, %v9770_v52 }
 0x1fc   : > { %7338 = vmatpush.lsf.msk.bf16.msk.msrb.mxu1 %vm14395_vm15, %v14054_v31  ;;  %vm10161_vm4 = vmpackc.low %vm14396_vm1, %vm13897_vm13  ;;  %v6084_v56 = vsel %vm14400_vm9, 1.0, %v14055_v4  ;;  %v6085_v7 = vsel %vm14401_vm5, 1.0, %v14055_v4  ;;  %vm14402_vm7 = vcmp.eq.s32.totalorder %v8187_v15, %v10127_v16  ;;  %vm14403_vm1 = vcmp.eq.s32.totalorder %v8187_v15, %v10117_v5 }
 0x1fd   : > { %7370 = vmatpush.lsf.msk.bf16.msk.msrb.mxu3 %vm14395_vm15, %v14054_v31  ;;  %v14398_v6 = vsel %vm10161_vm4, 4294967295, %v14397_v6  ;;  %vm10179_vm13 = vmpackc.low %vm14403_vm1, %vm14402_vm7  ;;  %vm14407_vm9 = vcmp.eq.s32.totalorder %v8187_v15, %v8431_v40  ;;  %vm14408_vm5 = vcmp.eq.s32.totalorder %v8187_v15, %v8179_v12  ;;  %vm14409_vm4 = vcmp.eq.s32.totalorder %v8182_v13, %v8431_v40 }
 0x1fe   : > { %14399 = vst [vmem:[#allocation109_spill] sm:$0xff] %v14398_v6  ;;  %3949 = vxpose.binary.xlu1.c.b16.cont [5/16] %v1613_v18, %v1612_v30, 128  ;;  %v14405_v51 = vsel %vm10179_vm13, 4294967295, %v14404_v51  ;;  %v1630_v30 = vpack.c.bf16 %v6084_v56, %v6081_v43  ;;  %v1631_v18 = vpack.c.bf16 %v6085_v7, %v6082_v39  ;;  %v5956_v6 = vsel %vm14407_vm9, 1.0, %v14055_v4  ;;  %vm10194_vm0 = vmpackc.low %vm915_vm8, %vm14409_vm4  ;;  %v14418_v56 = vld [vmem:[#allocation9_spill] sm:$0xff] }
 0x1ff   : > { %14406 = vst [vmem:[#allocation110_spill] sm:$0xff] %v14405_v51  ;;  %v5959_v9 = vsel %vm14408_vm5, 1.0, %v14055_v4  ;;  %v14410_v57 = vmov 0  ;;  %v10198_v51 = vpop.permute.xlu2 %1307  ;;  %v14414_v39 = vmov 0  ;;  %6352 = vmatmul.msk.bf16.gmra.mxu1 %vm10049_vm14, %v14054_v31  ;;  %vm14430_vm14 = vnez %v14429_v46 }
 0x200   : > { %v14411_v57 = vsel %vm10194_vm0, 4294967295, %v14410_v57  ;;  %7340 = vmatpush.lsf.msk.bf16.msk.msrb.mxu1 %vm10194_vm0, %v14054_v31  ;;  %v10206_v12 = vpop.f32.mrf.mxu1  ;;  %v1184_v7 = vpack.c.bf16 %v5959_v9, %v5956_v6  ;;  %vm1404_vm7 = vcmp.eq.s32.totalorder %v8182_v13, %v10198_v51  ;;  %vm13912_vm9 = vcmp.eq.s32.totalorder %v8177_v11, %v10198_v51  ;;  %v14412_v9 = vld [vmem:[#allocation10_spill] sm:$0xff] }
 0x201   : > { %7372 = vmatpush.lsf.msk.bf16.msk.msrb.mxu3 %vm10194_vm0, %v14054_v31  ;;  %v10208_v43 = vpop.permute.xlu0 %1310  ;;  %v10212_v40 = vpop.f32.mrf.mxu0  ;;  %vm14413_vm5 = vnez %v14412_v9  ;;  %vm13915_vm8 = vcmp.eq.s32.totalorder %v8187_v15, %v10198_v51  ;;  %v14417_v6 = vld [vmem:[#allocation6_spill] sm:$0xff]  ;;  %v14437_v9 = vmov 0 }
 0x202   : > { %3987 = vxpose.binary.xlu2.c.b16.cont [3/16] %v1631_v18, %v1630_v30, 128  ;;  %vm13913_vm4 = vcmp.eq.s32.totalorder %v8177_v11, %v10208_v43  ;;  %vm1407_vm1 = vcmp.eq.s32.totalorder %v8182_v13, %v10208_v43  ;;  %v14419_v30 = vpack.c.bf16 %v14417_v6, %v14418_v56  ;;  %v14420_v18 = vmov 0  ;;  %v14427_v6 = vld [vmem:[#allocation8_spill] sm:$0xff]  ;;  %v10279_v56 = vpop.f32.mrf.mxu2 }
 0x203   : > { %vm10228_vm13 = vmpackc.low %vm1407_vm1, %vm1404_vm7  ;;  %vm14423_vm7 = vcmp.eq.s32.totalorder %v8187_v15, %v10208_v43  ;;  %14431 = vst [vmem:[#allocation8_spill] sm:$0xff] %v10279_v56 }
 0x204   : > { %7342 = vmatpush.lsf.msk.bf16.msk.msrb.mxu1 %vm14413_vm5, %v14054_v31  ;;  %v14415_v39 = vsel %vm10228_vm13, 4294967295, %v14414_v39  ;;  %vm10243_vm12 = vmpackc.low %vm13913_vm4, %vm13912_vm9  ;;  %vm14428_vm9 = vnez %v14427_v6  ;;  %vm1401_vm4 = vcmp.eq.s32.totalorder %v8182_v13, %v10117_v5  ;;  %7288 = vmatpush.lsf.msk.bf16.msk.msrb.mxu2 %vm10228_vm13, %v14054_v31 }
 0x205   : > { %7374 = vmatpush.lsf.msk.bf16.msk.msrb.mxu3 %vm14413_vm5, %v14054_v31  ;;  %14416 = vst [vmem:[#allocation111_spill] sm:$0xff] %v14415_v39  ;;  %v14421_v18 = vsel %vm10243_vm12, 4294967295, %v14420_v18  ;;  %vm10259_vm1 = vmpackc.low %vm14423_vm7, %vm13915_vm8  ;;  %vm1398_vm12 = vcmp.eq.s32.totalorder %v8182_v13, %v10127_v16  ;;  %7320 = vmatpush.lsf.msk.bf16.msk.msrb.mxu0 %vm10228_vm13, %v14054_v31  ;;  %vm14433_vm7 = vcmp.eq.s32.totalorder %v8187_v15, %v9538_v34 }
 0x206   : > { %4834 = vxpose.binary.xlu0.c.b16.cont [6/16] %v1184_v7, %v14419_v30, 128  ;;  %14422 = vst [vmem:[#allocation6_spill] sm:$0xff] %v14421_v18  ;;  %v14424_v7 = vmov 0  ;;  %v6055_v6 = vsel %vm14433_vm7, 1.0, %v14055_v4  ;;  %vm14434_vm8 = vcmp.eq.s32.totalorder %v8177_v11, %v9540_v28  ;;  %vm14443_vm7 = vcmp.eq.s32.totalorder %v8187_v15, %v9924_v10 }
 0x207   : > { %6382 = vmatmul.msk.bf16.gmra.mxu2 %vm14413_vm5, %v14054_v31  ;;  %v14425_v7 = vsel %vm10259_vm1, 4294967295, %v14424_v7  ;;  %6414 = vmatmul.msk.bf16.gmra.mxu3 %vm14428_vm9, %v14054_v31  ;;  %vm14432_vm9 = vcmp.eq.s32.totalorder %v8177_v11, %v9538_v34  ;;  %vm14435_vm1 = vcmp.eq.s32.totalorder %v8187_v15, %v9540_v28  ;;  %v10303_v34 = vpop.f32.mrf.mxu3  ;;  %vm1380_vm13 = vcmp.eq.s32.totalorder %v8182_v13, %v9924_v10 }
 0x208   : > { %14426 = vst [vmem:[#allocation9_spill] sm:$0xff] %v14425_v7  ;;  %6450 = vmatmul.msk.bf16.gmra.mxu0 %vm14430_vm14, %v14054_v31  ;;  %v6054_v30 = vsel %vm14432_vm9, 1.0, %v14055_v4  ;;  %v6051_v7 = vsel %vm14434_vm8, 1.0, %v14055_v4  ;;  %v6052_v18 = vsel %vm14435_vm1, 1.0, %v14055_v4  ;;  %7344 = vmatpush.lsf.msk.bf16.msk.msrb.mxu1 %vm14371_vm6, %v14054_v31  ;;  %v10305_v39 = vpop.f32.mrf.mxu1  ;;  %vm10307_vm9 = vmpackc.low %vm1401_vm4, %vm1398_vm12  ;;  %vm1392_vm8 = vcmp.eq.s32.totalorder %v8182_v13, %v9991_v62 }
 0x209   : > { %7376 = vmatpush.lsf.msk.bf16.msk.msrb.mxu3 %vm14371_vm6, %v14054_v31  ;;  %14436 = vst [vmem:[#allocation16_spill] sm:$0xff] %v10303_v34  ;;  %v14438_v9 = vsel %vm10307_vm9, 4294967295, %v14437_v9  ;;  %v10311_v56 = vpop.f32.mrf.mxu0  ;;  %v1615_v28 = vpack.c.bf16 %v6054_v30, %v6051_v7  ;;  %v1616_v8 = vpack.c.bf16 %v6055_v6, %v6052_v18  ;;  %7290 = vmatpush.lsf.msk.bf16.msk.msrb.mxu2 %vm10307_vm9, %v14054_v31  ;;  %v6088_v30 = vsel %vm14443_vm7, 1.0, %v14055_v4 }
 0x20a   : > { %14439 = vst [vmem:[#allocation112_spill] sm:$0xff] %v14438_v9  ;;  %7322 = vmatpush.lsf.msk.bf16.msk.msrb.mxu0 %vm10307_vm9, %v14054_v31  ;;  %vm14440_vm12 = vcmp.eq.s32.totalorder %v8177_v11, %v9906_v0  ;;  %vm14441_vm4 = vcmp.eq.s32.totalorder %v8187_v15, %v9906_v0  ;;  %vm14442_vm1 = vcmp.eq.s32.totalorder %v8177_v11, %v9924_v10  ;;  %v14444_v6 = vmov 0  ;;  %v10357_v25 = vpop.f32.mrf.mxu2  ;;  %v14458_v10 = vld [vmem:[#allocation37_spill] sm:$0xff] }
 0x20b   : > { %v6090_v34 = vsel %vm14440_vm12, 1.0, %v14055_v4  ;;  %v6091_v18 = vsel %vm14441_vm4, 1.0, %v14055_v4  ;;  %v6087_v7 = vsel %vm14442_vm1, 1.0, %v14055_v4  ;;  %vm1395_vm12 = vcmp.eq.s32.totalorder %v8182_v13, %v10007_v14 }
 0x20c   : > { %7346 = vmatpush.lsf.msk.bf16.msk.msrb.mxu1 %vm14312_vm2, %v14054_v31  ;;  %vm10345_vm4 = vmpackc.low %vm1395_vm12, %vm1392_vm8  ;;  %v1633_v9 = vpack.c.bf16 %v6090_v34, %v6087_v7  ;;  %v1634_v63 = vpack.c.bf16 %v6091_v18, %v6088_v30  ;;  %vm1389_vm1 = vcmp.eq.s32.totalorder %v8182_v13, %v9999_v49  ;;  %vm1386_vm8 = vcmp.eq.s32.totalorder %v8182_v13, %v9904_v48  ;;  %v14453_v30 = vld [vmem:[#allocation15_spill] sm:$0xff] }
 0x20d   : > { %7378 = vmatpush.lsf.msk.bf16.msk.msrb.mxu3 %vm14312_vm2, %v14054_v31  ;;  %v14445_v6 = vsel %vm10345_vm4, 4294967295, %v14444_v6  ;;  %7292 = vmatpush.lsf.msk.bf16.msk.msrb.mxu2 %vm10345_vm4, %v14054_v31  ;;  %vm10371_vm7 = vmpackc.low %vm1389_vm1, %vm1386_vm8  ;;  %vm1383_vm12 = vcmp.eq.s32.totalorder %v8182_v13, %v9906_v0  ;;  %v14456_v0 = vld [vmem:[#allocation20_spill] sm:$0xff]  ;;  %vm14459_vm8 = vnez %v14458_v10  ;;  %vm14526_vm5 = vcmp.eq.s32.totalorder %v8187_v15, %v10198_v51 }
 0x20e   : > { %3950 = vxpose.binary.xlu1.c.b16.cont [6/16] %v1616_v8, %v1615_v28, 128  ;;  %14446 = vst [vmem:[#allocation113_spill] sm:$0xff] %v14445_v6  ;;  %v14447_v28 = vmov 0  ;;  %v14454_v6 = vld [vmem:[#allocation14_spill] sm:$0xff]  ;;  %vm14457_vm1 = vnez %v14456_v0  ;;  %vm10411_vm9 = vmpackc.low %vm1383_vm12, %vm1380_vm13  ;;  %vm1377_vm13 = vcmp.eq.s32.totalorder %v8182_v13, %v9770_v52  ;;  %v14469_v52 = vpack.c.bf16 %v9645_v24, %v9632_v36 }
 0x20f   : > { %7324 = vmatpush.lsf.msk.bf16.msk.msrb.mxu0 %vm10345_vm4, %v14054_v31  ;;  %v10365_v8 = vpop.f32.mrf.mxu3  ;;  %v14448_v28 = vsel %vm10371_vm7, 4294967295, %v14447_v28  ;;  %6354 = vmatmul.msk.bf16.gmra.mxu1 %vm14430_vm14, %v14054_v31  ;;  %vm1374_vm14 = vcmp.eq.s32.totalorder %v8182_v13, %v9782_v19  ;;  %vm14467_vm4 = vcmp.eq.s32.totalorder %v8177_v11, %v9999_v49  ;;  %v14473_v24 = vmov 0 }
 0x210   : > { %7348 = vmatpush.lsf.msk.bf16.msk.msrb.mxu1 %vm8358_vm10, %v14054_v31  ;;  %v10367_v34 = vpop.f32.mrf.mxu1  ;;  %14449 = vst [vmem:[#allocation114_spill] sm:$0xff] %v14448_v28  ;;  %v14455_v28 = vpack.c.bf16 %v14453_v30, %v14454_v6  ;;  %vm10433_vm12 = vmpackc.low %vm1377_vm13, %vm1374_vm14  ;;  %v6096_v19 = vsel %vm14467_vm4, 1.0, %v14055_v4  ;;  %vm1368_vm4 = vcmp.eq.s32.totalorder %v8182_v13, %v9640_v27  ;;  %vm14472_vm14 = vcmp.eq.s32.totalorder %v8187_v15, %v9904_v48  ;;  %v14477_v27 = vld [vmem:[#allocation34_spill] sm:$0xff] }
 0x211   : > { %7380 = vmatpush.lsf.msk.bf16.msk.msrb.mxu3 %vm8358_vm10, %v14054_v31  ;;  %v10375_v18 = vpop.f32.mrf.mxu0  ;;  %7294 = vmatpush.lsf.msk.bf16.msk.msrb.mxu2 %vm10371_vm7, %v14054_v31  ;;  %v6094_v0 = vsel %vm14472_vm14, 1.0, %v14055_v4  ;;  %vm14490_vm14 = vcmp.eq.s32.totalorder %v8187_v15, %v9991_v62 }
 0x212   : > { %3988 = vxpose.binary.xlu2.c.b16.cont [4/16] %v1634_v63, %v1633_v9, 128  ;;  %v14450_v63 = vld [vmem:[#allocation13_spill] sm:$0xff]  ;;  %v14451_v9 = vld [vmem:[#allocation11_spill] sm:$0xff] }
 0x213   : > { %7326 = vmatpush.lsf.msk.bf16.msk.msrb.mxu0 %vm10371_vm7, %v14054_v31  ;;  %v14452_v7 = vpack.c.bf16 %v14450_v63, %v14451_v9  ;;  %v14460_v63 = vmov 0  ;;  %vm14468_vm7 = vcmp.eq.s32.totalorder %v8187_v15, %v9999_v49 }
 0x214   : > { %7350 = vmatpush.lsf.msk.bf16.msk.msrb.mxu1 %vm8298_vm3, %v14054_v31  ;;  %v14461_v63 = vsel %vm10411_vm9, 4294967295, %v14460_v63  ;;  %v6097_v30 = vsel %vm14468_vm7, 1.0, %v14055_v4  ;;  %vm14471_vm7 = vcmp.eq.s32.totalorder %v8177_v11, %v9904_v48  ;;  %v14478_v48 = vld [vmem:[#allocation32_spill] sm:$0xff] }
 0x215   : > { %7382 = vmatpush.lsf.msk.bf16.msk.msrb.mxu3 %vm8298_vm3, %v14054_v31  ;;  %14462 = vst [vmem:[#allocation13_spill] sm:$0xff] %v14461_v63  ;;  %v10415_v6 = vpop.f32.mrf.mxu2  ;;  %7296 = vmatpush.lsf.msk.bf16.msk.msrb.mxu2 %vm10411_vm9, %v14054_v31  ;;  %v6093_v49 = vsel %vm14471_vm7, 1.0, %v14055_v4  ;;  %vm14489_vm7 = vcmp.eq.s32.totalorder %v8177_v11, %v9991_v62 }
 0x216   : > { %4835 = vxpose.binary.xlu0.c.b16.cont [7/16] %v14455_v28, %v14452_v7, 128  ;;  %v14464_v7 = vmov 0  ;;  %v1636_v63 = vpack.c.bf16 %v6096_v19, %v6093_v49  ;;  %v14479_v19 = vpack.c.bf16 %v14477_v27, %v14478_v48  ;;  %v14485_v49 = vld [vmem:[#allocation23_spill] sm:$0xff]  ;;  %v6099_v48 = vsel %vm14489_vm7, 1.0, %v14055_v4 }
 0x217   : > { %6384 = vmatmul.msk.bf16.gmra.mxu2 %vm10194_vm0, %v14054_v31  ;;  %6416 = vmatmul.msk.bf16.gmra.mxu3 %vm14457_vm1, %v14054_v31  ;;  %v10425_v46 = vpop.f32.mrf.mxu3  ;;  %v14465_v7 = vsel %vm10433_vm12, 4294967295, %v14464_v7  ;;  %vm1371_vm1 = vcmp.eq.s32.totalorder %v8182_v13, %v9788_v35  ;;  %v14470_v35 = vpack.c.bf16 %v9650_v22, %v9638_v44  ;;  %vm14494_vm7 = vcmp.eq.s32.totalorder %v8177_v11, %v10007_v14 }
 0x218   : > { %6452 = vmatmul.msk.bf16.gmra.mxu0 %vm14459_vm8, %v14054_v31  ;;  %14463 = vst [vmem:[#allocation11_spill] sm:$0xff] %v10425_v46  ;;  %v10427_v28 = vpop.f32.mrf.mxu1  ;;  %vm10469_vm13 = vmpackc.low %vm1371_vm1, %vm1368_vm4  ;;  %vm14486_vm4 = vnez %v14485_v49  ;;  %v6102_v62 = vsel %vm14494_vm7, 1.0, %v14055_v4 }
 0x219   : > { %7328 = vmatpush.lsf.msk.bf16.msk.msrb.mxu0 %vm10411_vm9, %v14054_v31  ;;  %v10431_v9 = vpop.f32.mrf.mxu0  ;;  %14466 = vst [vmem:[#allocation15_spill] sm:$0xff] %v14465_v7  ;;  %7298 = vmatpush.lsf.msk.bf16.msk.msrb.mxu2 %vm10433_vm12, %v14054_v31  ;;  %v1637_v7 = vpack.c.bf16 %v6097_v30, %v6094_v0  ;;  %v14474_v24 = vsel %vm10469_vm13, 4294967295, %v14473_v24  ;;  %v14480_v30 = vld [vmem:[#allocation36_spill] sm:$0xff] }
 0x21a   : > { %14475 = vst [vmem:[#allocation14_spill] sm:$0xff] %v14474_v24  ;;  %v1639_v24 = vpack.c.bf16 %v6102_v62, %v6099_v48 }
 0x21d   : > { %7330 = vmatpush.lsf.msk.bf16.msk.msrb.mxu0 %vm10433_vm12, %v14054_v31  ;;  %v10473_v22 = vpop.f32.mrf.mxu2  ;;  %7300 = vmatpush.lsf.msk.bf16.msk.msrb.mxu2 %vm10469_vm13, %v14054_v31  ;;  %vm14502_vm12 = vnez %v14154_v59 }
 0x21e   : > { %3951 = vxpose.binary.xlu1.c.b16.cont [7/16] %v14470_v35, %v14469_v52, 128  ;;  %v14481_v52 = vld [vmem:[#allocation35_spill] sm:$0xff] }
 0x21f   : > { %v10481_v13 = vpop.f32.mrf.mxu3  ;;  %v14482_v35 = vpack.c.bf16 %v14480_v30, %v14481_v52  ;;  %6356 = vmatmul.msk.bf16.gmra.mxu1 %vm14459_vm8, %v14054_v31  ;;  %vm14488_vm8 = vnez %v14193_v55  ;;  %v14492_v30 = vpack.c.bf16 %v9582_v54, %v9599_v61  ;;  %v14493_v52 = vpack.c.bf16 %v9587_v38, %v9604_v37  ;;  %v14497_v37 = vld [vmem:[#allocation44_spill] sm:$0xff]  ;;  %v14499_v38 = vld [vmem:[#allocation29_spill] sm:$0xff] }
 0x220   : > { %14476 = vst [vmem:[#allocation20_spill] sm:$0xff] %v10481_v13  ;;  %v10483_v36 = vpop.f32.mrf.mxu1  ;;  %vm14498_vm9 = vnez %v14497_v37  ;;  %vm14500_vm7 = vnez %v14499_v38  ;;  %v14515_v13 = vld [vmem:[#allocation30_spill] sm:$0xff]  ;;  %v6529_v37 = vld [vmem:[%s13608_s3 + $0x94] sm:$0xf0] }
 0x221   : > { %7332 = vmatpush.lsf.msk.bf16.msk.msrb.mxu0 %vm10469_vm13, %v14054_v31  ;;  %v10485_v44 = vpop.f32.mrf.mxu0  ;;  %7302 = vmatpush.lsf.msk.bf16.msk.msrb.mxu2 %vm9758_vm11, %v14054_v31  ;;  %vm14503_vm13 = vnez %v14127_v45 }
 0x222   : > { %3989 = vxpose.binary.xlu2.c.b16.cont [5/16] %v1637_v7, %v1636_v63, 128  ;;  %v14483_v7 = vld [vmem:[#allocation40_spill] sm:$0xff] }
 0x223   : > { %vm14484_vm1 = vnez %v14483_v7 }
 0x225   : > { %7334 = vmatpush.lsf.msk.bf16.msk.msrb.mxu0 %vm9758_vm11, %v14054_v31  ;;  %vm14507_vm11 = vcmp.eq.s32.totalorder %v8187_v15, %v10117_v5 }
 0x226   : > { %4836 = vxpose.binary.xlu0.c.b16.end [8/16] %v14482_v35, %v14479_v19, 128  ;;  %v10505_v63 = vpop.f32.mrf.mxu2  ;;  %v6100_v19 = vsel %vm14490_vm14, 1.0, %v14055_v4  ;;  %vm14495_vm14 = vcmp.eq.s32.totalorder %v8187_v15, %v10007_v14  ;;  %v6109_v48 = vsel %vm14507_vm11, 1.0, %v14055_v4 }
 0x227   : > { %7173 = vllmr.16.mxu2  ;;  %7061 = vllmr.16.mxu0  ;;  %v6103_v35 = vsel %vm14495_vm14, 1.0, %v14055_v4  ;;  %vm14501_vm14 = vnez %v14085_v53  ;;  %v14513_v53 = vld [vmem:[#allocation50_spill] sm:$0xff] }
 0x228   : > { %6386 = vmatmul.msk.bf16.gmra.mxu2 %vm14395_vm15, %v14054_v31  ;;  %6418 = vmatmul.msk.bf16.gmra.mxu3 %vm14484_vm1, %v14054_v31  ;;  %v10513_v0 = vpop.f32.mrf.mxu3  ;;  %v10515_v27 = vpop.f32.mrf.mxu1  ;;  %vm14491_vm1 = vnez %v14180_v32  ;;  %vm14509_vm15 = vcmp.eq.s32.totalorder %v8187_v15, %v10127_v16  ;;  %vm14514_vm11 = vnez %v14513_v53  ;;  %v6593_v32 = vld [vmem:[%s13608_s3 + $0x1d4] sm:$0xf0] }
 0x229   : > { %6454 = vmatmul.msk.bf16.gmra.mxu0 %vm14486_vm4, %v14054_v31  ;;  %14487 = vst [vmem:[#allocation37_spill] sm:$0xff] %v10513_v0  ;;  %7352 = vmatpush.lsf.msk.bf16.msk.msrb.mxu2 %vm14488_vm8, %v14054_v31  ;;  %v10523_v10 = vpop.f32.mrf.mxu0  ;;  %v1640_v0 = vpack.c.bf16 %v6103_v35, %v6100_v19 }
 0x22a   : > { %7384 = vmatpush.lsf.msk.bf16.msk.msrb.mxu0 %vm14488_vm8, %v14054_v31 }
 0x22d   : > { %7354 = vmatpush.lsf.msk.bf16.msk.msrb.mxu2 %vm14491_vm1, %v14054_v31 }
 0x22e   : > { %7386 = vmatpush.lsf.msk.bf16.msk.msrb.mxu0 %vm14491_vm1, %v14054_v31  ;;  %v10553_v7 = vpop.f32.mrf.mxu2 }
 0x22f   : > { %3952 = vxpose.binary.xlu1.c.b16.end [8/16] %v14493_v52, %v14492_v30, 128  ;;  %v6106_v30 = vsel %vm14509_vm15, 1.0, %v14055_v4  ;;  %v14510_v52 = vld [vmem:[#allocation55_spill] sm:$0xff]  ;;  %vm14516_vm15 = vnez %v14515_v13 }
 0x230   : > { %v10555_v21 = vpop.f32.mrf.mxu3  ;;  %v2034_v61 = vpop.f32.mrf.mxu1  ;;  %6358 = vmatmul.msk.bf16.gmra.mxu1 %vm14486_vm4, %v14054_v31  ;;  %vm14505_vm4 = vnez %v14168_v3  ;;  %vm14511_vm0 = vnez %v14510_v52  ;;  %v1643_v35 = vpack.c.bf16 %v6109_v48, %v6106_v30  ;;  %v14519_v30 = vld [vmem:[#allocation57_spill] sm:$0xff] }
 0x231   : > { %14496 = vst [vmem:[#allocation34_spill] sm:$0xff] %v10555_v21  ;;  %7356 = vmatpush.lsf.msk.bf16.msk.msrb.mxu2 %vm14498_vm9, %v14054_v31  ;;  %v10563_v54 = vpop.f32.mrf.mxu0 }
 0x232   : > { %7388 = vmatpush.lsf.msk.bf16.msk.msrb.mxu0 %vm14498_vm9, %v14054_v31 }
 0x233   : > { %3990 = vxpose.binary.xlu2.c.b16.cont [6/16] %v1640_v0, %v1639_v24, 128 }
 0x235   : > { %7358 = vmatpush.lsf.msk.bf16.msk.msrb.mxu2 %vm14500_vm7, %v14054_v31 }
 0x236   : > { %7390 = vmatpush.lsf.msk.bf16.msk.msrb.mxu0 %vm14500_vm7, %v14054_v31  ;;  %v10577_v14 = vpop.f32.mrf.mxu2 }
 0x238   : > { %6388 = vmatmul.msk.bf16.gmra.mxu2 %vm14501_vm14, %v14054_v31  ;;  %6420 = vmatmul.msk.bf16.gmra.mxu3 %vm14502_vm12, %v14054_v31  ;;  %v10585_v24 = vpop.f32.mrf.mxu3  ;;  %v2036_v0 = vpop.f32.mrf.mxu1  ;;  %vm14506_vm12 = vcmp.eq.s32.totalorder %v8177_v11, %v10117_v5  ;;  %vm14508_vm14 = vcmp.eq.s32.totalorder %v8177_v11, %v10127_v16 }
 0x239   : > { %6456 = vmatmul.msk.bf16.gmra.mxu0 %vm14503_vm13, %v14054_v31  ;;  %14504 = vst [vmem:[#allocation32_spill] sm:$0xff] %v10585_v24  ;;  %7360 = vmatpush.lsf.msk.bf16.msk.msrb.mxu2 %vm14505_vm4, %v14054_v31  ;;  %v2308_v49 = vpop.f32.mrf.mxu0  ;;  %v6108_v59 = vsel %vm14506_vm12, 1.0, %v14055_v4  ;;  %v6105_v19 = vsel %vm14508_vm14, 1.0, %v14055_v4  ;;  %vm14520_vm12 = vnez %v14519_v30  ;;  %v2037_v13 = vadd.f32 %v2036_v0, %v9938_v50 }
 0x23a   : > { %7392 = vmatpush.lsf.msk.bf16.msk.msrb.mxu0 %vm14505_vm4, %v14054_v31  ;;  %v1642_v62 = vpack.c.bf16 %v6108_v59, %v6105_v19  ;;  %v2035_v59 = vadd.f32 %v2034_v61, %v9795_v26  ;;  %v14517_v19 = vld [vmem:[#allocation25_spill] sm:$0xff] }
 0x23b   : > { %vm14518_vm14 = vnez %v14517_v19 }
 0x23d   : > { %7362 = vmatpush.lsf.msk.bf16.msk.msrb.mxu2 %vm14511_vm0, %v14054_v31 }
 0x23e   : > { %7394 = vmatpush.lsf.msk.bf16.msk.msrb.mxu0 %vm14511_vm0, %v14054_v31  ;;  %v10615_v5 = vpop.f32.mrf.mxu2 }
 0x240   : > { %v10617_v24 = vpop.f32.mrf.mxu3  ;;  %v2039_v21 = vpop.f32.mrf.mxu1  ;;  %6360 = vmatmul.msk.bf16.gmra.mxu1 %vm14503_vm13, %v14054_v31  ;;  %vm14523_vm13 = vcmp.eq.s32.totalorder %v8177_v11, %v10208_v43 }
 0x241   : > { %14512 = vst [vmem:[#allocation36_spill] sm:$0xff] %v10617_v24  ;;  %7364 = vmatpush.lsf.msk.bf16.msk.msrb.mxu2 %vm14514_vm11, %v14054_v31  ;;  %v2311_v16 = vpop.f32.mrf.mxu0  ;;  %v6114_v24 = vsel %vm14523_vm13, 1.0, %v14055_v4 }
 0x242   : > { %7396 = vmatpush.lsf.msk.bf16.msk.msrb.mxu0 %vm14514_vm11, %v14054_v31 }
 0x243   : > { %3991 = vxpose.binary.xlu2.c.b16.cont [7/16] %v1643_v35, %v1642_v62, 128 }
 0x245   : > { %7366 = vmatpush.lsf.msk.bf16.msk.msrb.mxu2 %vm14516_vm15, %v14054_v31 }
 0x246   : > { %7398 = vmatpush.lsf.msk.bf16.msk.msrb.mxu0 %vm14516_vm15, %v14054_v31  ;;  %v2123_v48 = vpop.f32.mrf.mxu2 }
 0x247   : > { %v10644_v62 = vadd.f32 %v2123_v48, %v2035_v59 }
 0x248   : > { %6390 = vmatmul.msk.bf16.gmra.mxu2 %vm14516_vm15, %v14054_v31  ;;  %6422 = vmatmul.msk.bf16.gmra.mxu3 %vm14518_vm14, %v14054_v31  ;;  %v2212_v26 = vpop.f32.mrf.mxu3  ;;  %v2041_v61 = vpop.f32.mrf.mxu1  ;;  %vm14524_vm14 = vcmp.eq.s32.totalorder %v8187_v15, %v10208_v43  ;;  %vm14525_vm15 = vcmp.eq.s32.totalorder %v8177_v11, %v10198_v51  ;;  %v2040_v11 = vadd.f32 %v2039_v21, %v10015_v2 }
 0x249   : > { %6458 = vmatmul.msk.bf16.gmra.mxu0 %vm14520_vm12, %v14054_v31  ;;  %14521 = vst [vmem:[#allocation35_spill] sm:$0xff] %v10644_v62  ;;  %v10647_v45 = vadd.f32 %v10485_v44, %v2212_v26  ;;  %v2313_v35 = vpop.f32.mrf.mxu0  ;;  %v6115_v19 = vsel %vm14524_vm14, 1.0, %v14055_v4  ;;  %v6111_v59 = vsel %vm14525_vm15, 1.0, %v14055_v4  ;;  %v6112_v44 = vsel %vm14526_vm5, 1.0, %v14055_v4  ;;  %v14527_v4 = vld [vmem:[#allocation47_spill] sm:$0xff] }
 0x24a   : > { %v1645_v26 = vpack.c.bf16 %v6114_v24, %v6111_v59  ;;  %v1646_v62 = vpack.c.bf16 %v6115_v19, %v6112_v44  ;;  %vm14528_vm5 = vnez %v14527_v4  ;;  %vm14529_vm15 = vnez %v14184_v20  ;;  %v14532_v59 = vld [vmem:[#allocation24_spill] sm:$0xff]  ;;  %v14533_v44 = vld [vmem:[#allocation18_spill] sm:$0xff] }
 0x24b   : > { %14522 = vst [vmem:[#allocation40_spill] sm:$0xff] %v10647_v45  ;;  %v6687_v20 = vld [vmem:[%s13608_s3 + $0x3a0] sm:$0xf]  ;;  %vm14549_vm14 = vnez %v14201_v60 }
 0x24e   : > { %v2125_v48 = vpop.f32.mrf.mxu2 }
 0x24f   : > { %v10666_v45 = vadd.f32 %v2125_v48, %v2037_v13  ;;  %v14534_v48 = vpack.c.bf16 %v14532_v59, %v14533_v44  ;;  %v7012_v59 = vld [vmem:[%s13608_s3 + $0x388] sm:$0xf0] }
 0x250   : > { %v2214_v46 = vpop.f32.mrf.mxu3  ;;  %v2044_v43 = vpop.f32.mrf.mxu1  ;;  %6362 = vmatmul.msk.bf16.gmra.mxu1 %vm14520_vm12, %v14054_v31  ;;  %vm14538_vm12 = vnez %v14162_v29 }
 0x251   : > { %v10669_v23 = vadd.f32 %v10523_v10, %v2214_v46  ;;  %v2042_v10 = vadd.f32 %v2041_v61, %v10131_v33  ;;  %v2045_v4 = vadd.f32 %v2044_v43, %v10212_v40  ;;  %v7014_v43 = vld [vmem:[%s13608_s3 + $0x3b0] sm:$0xf0] }
 0x252   : > { %v6688_v29 = vor.u32 %v7014_v43, %v6687_v20  ;;  %v14543_v20 = vld [vmem:[#allocation46_spill] sm:$0xff]  ;;  %v14544_v43 = vld [vmem:[#allocation41_spill] sm:$0xff] }
 0x253   : > { %3992 = vxpose.binary.xlu2.c.b16.end [8/16] %v1646_v62, %v1645_v26, 128  ;;  %v10671_v50 = vpop.f32.mrf.mxu0  ;;  %v14535_v26 = vld [vmem:[#allocation22_spill] sm:$0xff] }
 0x254   : > { %2936 = vmatpush.bf16.msra.mxu0 %v6688_v29  ;;  %v14545_v29 = vpack.c.bf16 %v14543_v20, %v14544_v43 }
 0x256   : > { %v2128_v15 = vpop.f32.mrf.mxu2 }
 0x257   : > { %v10686_v51 = vadd.f32 %v2128_v15, %v2040_v11  ;;  %v14536_v11 = vld [vmem:[#allocation17_spill] sm:$0xff] }
 0x258   : > { %6392 = vmatmul.msk.bf16.gmra.mxu2 %vm14514_vm11, %v14054_v31  ;;  %6424 = vmatmul.msk.bf16.gmra.mxu3 %vm14528_vm5, %v14054_v31  ;;  %v2217_v21 = vpop.f32.mrf.mxu3  ;;  %v2046_v2 = vpop.f32.mrf.mxu1  ;;  %v14537_v15 = vpack.c.bf16 %v14535_v26, %v14536_v11 }
 0x259   : > { %6460 = vmatmul.msk.bf16.gmra.mxu0 %vm14529_vm15, %v14054_v31  ;;  %14530 = vst [vmem:[#allocation23_spill] sm:$0xff] %v10686_v51  ;;  %v10689_v46 = vadd.f32 %v10563_v54, %v2217_v21  ;;  %v2047_v26 = vadd.f32 %v2046_v2, %v10311_v56  ;;  %v6663_v56 = vld [vmem:[%s13608_s3 + $0x328] sm:$0xf] }
 0x25b   : > { %v10691_v13 = vpop.f32.mrf.mxu0 }
 0x25e   : > { %v2130_v24 = vpop.f32.mrf.mxu2 }
 0x25f   : > { %v10694_v0 = vadd.f32 %v2130_v24, %v2042_v10 }
 0x260   : > { %v2219_v30 = vpop.f32.mrf.mxu3  ;;  %v2049_v19 = vpop.f32.mrf.mxu1  ;;  %6364 = vmatmul.msk.bf16.gmra.mxu1 %vm14529_vm15, %v14054_v31 }
 0x261   : > { %14531 = vst [vmem:[#allocation44_spill] sm:$0xff] %v10694_v0  ;;  %v10696_v62 = vadd.f32 %v2308_v49, %v2219_v30  ;;  %v14539_v49 = vld [vmem:[#allocation31_spill] sm:$0xff] }
 0x262   : > { %vm14540_vm13 = vnez %v14539_v49  ;;  %v6679_v30 = vld [vmem:[%s13608_s3 + $0x378] sm:$0xf]  ;;  %v6655_v49 = vld [vmem:[%s13608_s3 + $0x300] sm:$0xf] }
 0x263   : > { %4869 = vxpose.binary.xlu2.c.b16.start [1/16] %v14537_v15, %v14534_v48, 128  ;;  %v10704_v54 = vpop.f32.mrf.mxu0  ;;  %v6680_v44 = vor.u32 %v7012_v59, %v6679_v30  ;;  %v6671_v48 = vld [vmem:[%s13608_s3 + $0x350] sm:$0xf]  ;;  %v14546_v30 = vld [vmem:[#allocation45_spill] sm:$0xff] }
 0x264   : > { %v14547_v59 = vld [vmem:[#allocation38_spill] sm:$0xff] }
 0x265   : > { %2937 = vmatpush.bf16.msra.mxu0 %v6680_v44  ;;  %v2050_v44 = vadd.f32 %v2049_v19, %v10375_v18  ;;  %v6965_v18 = vld [vmem:[%s13608_s3 + $0x39c] sm:$0xf]  ;;  %v6305_v19 = vld [vmem:[%s13608_s3 + $0x3ac] sm:$0xf0] }
 0x267   : > { %v2133_v33 = vpop.f32.mrf.mxu2 }
 0x268   : > { %6394 = vmatmul.msk.bf16.gmra.mxu2 %vm14511_vm0, %v14054_v31  ;;  %6426 = vmatmul.msk.bf16.gmra.mxu3 %vm14538_vm12, %v14054_v31  ;;  %v10719_v61 = vadd.f32 %v2133_v33, %v2045_v4  ;;  %v2222_v40 = vpop.f32.mrf.mxu3  ;;  %v2051_v10 = vpop.f32.mrf.mxu1  ;;  %vm14563_vm12 = vnez %v14188_v41  ;;  %v6527_v41 = vld [vmem:[%s13608_s3 + $0x80] sm:$0xf] }
 0x269   : > { %6462 = vmatmul.msk.bf16.gmra.mxu0 %vm14540_vm13, %v14054_v31  ;;  %v10727_v21 = vadd.f32 %v2311_v16, %v2222_v40  ;;  %v7010_v16 = vld [vmem:[%s13608_s3 + $0x360] sm:$0xf0] }
 0x26a   : > { %14541 = vst [vmem:[#allocation55_spill] sm:$0xff] %v10719_v61  ;;  %v6672_v15 = vor.u32 %v7010_v16, %v6671_v48  ;;  %v14548_v61 = vpack.c.bf16 %v14546_v30, %v14547_v59  ;;  %v6297_v30 = vld [vmem:[%s13608_s3 + $0x384] sm:$0xf0]  ;;  %v6647_v59 = vld [vmem:[%s13608_s3 + $0x2d8] sm:$0xf] }
 0x26b   : > { %v10729_v24 = vpop.f32.mrf.mxu0 }
 0x26c   : > { %2938 = vmatpush.bf16.msra.mxu0 %v6672_v15 }
 0x26f   : > { %v2135_v11 = vpop.f32.mrf.mxu2 }
 0x270   : > { %v10744_v4 = vadd.f32 %v2135_v11, %v2047_v26  ;;  %v2224_v33 = vpop.f32.mrf.mxu3  ;;  %v2054_v0 = vpop.f32.mrf.mxu1  ;;  %6366 = vmatmul.msk.bf16.gmra.mxu1 %vm14540_vm13, %v14054_v31  ;;  %v6308_v26 = vor.u32 %v6965_v18, %v6305_v19  ;;  %v7006_v11 = vld [vmem:[%s13608_s3 + $0x310] sm:$0xf0]  ;;  %v7002_v18 = vld [vmem:[%s13608_s3 + $0x2c0] sm:$0xf0]  ;;  %v2052_v19 = vadd.f32 %v2051_v10, %v10431_v9 }
 0x271   : > { %v10746_v40 = vadd.f32 %v2313_v35, %v2224_v33  ;;  %v7008_v35 = vld [vmem:[%s13608_s3 + $0x338] sm:$0xf0]  ;;  %v6656_v20 = vor.u32 %v7006_v11, %v6655_v49  ;;  %v6959_v10 = vld [vmem:[%s13608_s3 + $0x324] sm:$0xf] }
 0x272   : > { %14542 = vst [vmem:[#allocation50_spill] sm:$0xff] %v10744_v4  ;;  %v6664_v2 = vor.u32 %v7008_v35, %v6663_v56  ;;  %2381 = vmatpush.bf16.msra.mxu1 %v6308_v26  ;;  %v7004_v56 = vld [vmem:[%s13608_s3 + $0x2e8] sm:$0xf0] }
 0x273   : > { %4870 = vxpose.binary.xlu2.c.b16.cont [2/16] %v14548_v61, %v14545_v29, 128  ;;  %v14550_v61 = vld [vmem:[#allocation51_spill] sm:$0xff]  ;;  %v6963_v29 = vld [vmem:[%s13608_s3 + $0x374] sm:$0xf]  ;;  %v6961_v35 = vld [vmem:[%s13608_s3 + $0x34c] sm:$0xf] }
 0x274   : > { %vm14551_vm5 = vnez %v14550_v61  ;;  %2939 = vmatpush.bf16.msra.mxu0 %v6664_v2  ;;  %v6289_v2 = vld [vmem:[%s13608_s3 + $0x35c] sm:$0xf0] }
 0x275   : > { %v10754_v51 = vpop.f32.mrf.mxu0  ;;  %v6292_v49 = vor.u32 %v6961_v35, %v6289_v2  ;;  %v2055_v2 = vadd.f32 %v2054_v0, %v9993_v47  ;;  %v6957_v47 = vld [vmem:[%s13608_s3 + $0x2fc] sm:$0xf]  ;;  %v6273_v0 = vld [vmem:[%s13608_s3 + $0x30c] sm:$0xf0]  ;;  %v6559_v61 = vld [vmem:[%s13608_s3 + $0x120] sm:$0xf] }
 0x278   : > { %6396 = vmatmul.msk.bf16.gmra.mxu2 %vm14505_vm4, %v14054_v31  ;;  %6428 = vmatmul.msk.bf16.gmra.mxu3 %vm14549_vm14, %v14054_v31  ;;  %v10792_v33 = vpop.f32.mrf.mxu1 }
 0x279   : > { %6464 = vmatmul.msk.bf16.gmra.mxu0 %vm14551_vm5, %v14054_v31 }
 0x27a   : > { %v2138_v48 = vpop.f32.mrf.mxu2  ;;  %v2227_v60 = vpop.f32.mrf.mxu3  ;;  %2940 = vmatpush.bf16.msra.mxu0 %v6656_v20 }
 0x27b   : > { %v10784_v16 = vadd.f32 %v2138_v48, %v2050_v44  ;;  %v10790_v15 = vadd.f32 %v10671_v50, %v2227_v60  ;;  %v6300_v50 = vor.u32 %v6963_v29, %v6297_v30  ;;  %v6648_v44 = vor.u32 %v7004_v56, %v6647_v59  ;;  %v6639_v48 = vld [vmem:[%s13608_s3 + $0x2b0] sm:$0xf]  ;;  %v14555_v29 = vld [vmem:[#allocation56_spill] sm:$0xff] }
 0x27c   : > { %v6640_v20 = vor.u32 %v7002_v18, %v6639_v48  ;;  %v14556_v30 = vld [vmem:[#allocation54_spill] sm:$0xff]  ;;  %v14558_v56 = vld [vmem:[#allocation52_spill] sm:$0xff] }
 0x27d   : > { %14552 = vst [vmem:[#allocation25_spill] sm:$0xff] %v10784_v16  ;;  %v10794_v43 = vpop.f32.mrf.mxu0  ;;  %2382 = vmatpush.bf16.msra.mxu1 %v6300_v50  ;;  %v14557_v59 = vpack.c.bf16 %v14555_v29, %v14556_v30  ;;  %v14559_v16 = vld [vmem:[#allocation53_spill] sm:$0xff]  ;;  %v6281_v50 = vld [vmem:[%s13608_s3 + $0x334] sm:$0xf0] }
 0x27e   : > { %14553 = vst [vmem:[#allocation57_spill] sm:$0xff] %v10790_v15  ;;  %2941 = vmatpush.bf16.msra.mxu0 %v6648_v44  ;;  %v14560_v4 = vpack.c.bf16 %v14558_v56, %v14559_v16  ;;  %v7000_v16 = vld [vmem:[%s13608_s3 + $0x298] sm:$0xf0]  ;;  %v14561_v44 = vld [vmem:[#allocation28_spill] sm:$0xff] }
 0x27f   : > { %vm14562_vm15 = vnez %v14561_v44 }
 0x280   : > { %v10832_v15 = vpop.f32.mrf.mxu1  ;;  %6368 = vmatmul.msk.bf16.gmra.mxu1 %vm14551_vm5, %v14054_v31 }
 0x281   : > { %2383 = vmatpush.bf16.msra.mxu1 %v6292_v49  ;;  %v6276_v49 = vor.u32 %v6957_v47, %v6273_v0  ;;  %v6953_v47 = vld [vmem:[%s13608_s3 + $0x2ac] sm:$0xf]  ;;  %v6257_v0 = vld [vmem:[%s13608_s3 + $0x2bc] sm:$0xf0] }
 0x282   : > { %v2140_v60 = vpop.f32.mrf.mxu2  ;;  %v2229_v11 = vpop.f32.mrf.mxu3  ;;  %2942 = vmatpush.bf16.msra.mxu0 %v6640_v20  ;;  %v6998_v20 = vld [vmem:[%s13608_s3 + $0x270] sm:$0xf0] }
 0x283   : > { %v10821_v26 = vadd.f32 %v2140_v60, %v2052_v19  ;;  %4871 = vxpose.binary.xlu2.c.b16.cont [3/16] %v14560_v4, %v14557_v59, 128  ;;  %v10830_v3 = vadd.f32 %v10691_v13, %v2229_v11  ;;  %v6631_v4 = vld [vmem:[%s13608_s3 + $0x288] sm:$0xf]  ;;  %v6284_v13 = vor.u32 %v6959_v10, %v6281_v50  ;;  %v6982_v60 = vld [vmem:[%s13608_s3 + $0x130] sm:$0xf0]  ;;  %v6623_v11 = vld [vmem:[%s13608_s3 + $0x260] sm:$0xf] }
 0x284   : > { %v6632_v35 = vor.u32 %v7000_v16, %v6631_v4  ;;  %v6560_v59 = vor.u32 %v6982_v60, %v6559_v61  ;;  %v6624_v56 = vor.u32 %v6998_v20, %v6623_v11  ;;  %v6955_v50 = vld [vmem:[%s13608_s3 + $0x2d4] sm:$0xf]  ;;  %v6265_v4 = vld [vmem:[%s13608_s3 + $0x2e4] sm:$0xf0]  ;;  %v6980_v16 = vld [vmem:[%s13608_s3 + $0x108] sm:$0xf0] }
 0x285   : > { %14554 = vst [vmem:[#allocation47_spill] sm:$0xff] %v10821_v26  ;;  %v10834_v9 = vpop.f32.mrf.mxu0  ;;  %2384 = vmatpush.bf16.msra.mxu1 %v6284_v13  ;;  %v6268_v13 = vor.u32 %v6955_v50, %v6265_v4  ;;  %v6543_v61 = vld [vmem:[%s13608_s3 + $0xd0] sm:$0xf]  ;;  %v6994_v11 = vld [vmem:[%s13608_s3 + $0x220] sm:$0xf0]  ;;  %v14565_v4 = vld [vmem:[#allocation61_spill] sm:$0xff] }
 0x286   : > { %2943 = vmatpush.bf16.msra.mxu0 %v6632_v35  ;;  %2758 = vmatpush.bf16.msra.mxu2 %v6560_v59  ;;  %v6615_v35 = vld [vmem:[%s13608_s3 + $0x238] sm:$0xf]  ;;  %v6607_v60 = vld [vmem:[%s13608_s3 + $0x210] sm:$0xf] }
 0x287   : > { %2847 = vmatpush.bf16.msra.mxu3 %v6624_v56  ;;  %v6608_v56 = vor.u32 %v6994_v11, %v6607_v60  ;;  %v2060_v60 = vadd.f32 %v10832_v15, %v10206_v12  ;;  %v14571_v11 = vld [vmem:[#allocation49_spill] sm:$0xff]  ;;  %v6591_v12 = vld [vmem:[%s13608_s3 + $0x1c0] sm:$0xf] }
 0x288   : > { %6398 = vmatmul.msk.bf16.gmra.mxu2 %vm14500_vm7, %v14054_v31  ;;  %6430 = vmatmul.msk.bf16.gmra.mxu3 %vm14562_vm15, %v14054_v31  ;;  %v10884_v30 = vpop.f32.mrf.mxu1  ;;  %vm14572_vm13 = vnez %v14571_v11  ;;  %v14575_v11 = vld [vmem:[#allocation27_spill] sm:$0xff]  ;;  %vm14583_vm15 = vnez %v14359_v17 }
 0x289   : > { %6466 = vmatmul.msk.bf16.gmra.mxu0 %vm14563_vm12, %v14054_v31  ;;  %2385 = vmatpush.bf16.msra.mxu1 %v6276_v49  ;;  %v6978_v49 = vld [vmem:[%s13608_s3 + $0xe0] sm:$0xf0]  ;;  %v11723_v17 = vld [vmem:[%s7666_s20 + $0x38] sm:$0xff] }
 0x28a   : > { %v2143_v48 = vpop.f32.mrf.mxu2  ;;  %v2232_v19 = vpop.f32.mrf.mxu3  ;;  %v6544_v59 = vor.u32 %v6978_v49, %v6543_v61  ;;  %v6992_v61 = vld [vmem:[%s13608_s3 + $0x1f8] sm:$0xf0] }
 0x28b   : > { %v10870_v18 = vadd.f32 %v2143_v48, %v2055_v2  ;;  %v10882_v29 = vadd.f32 %v10704_v54, %v2232_v19  ;;  %v6551_v54 = vld [vmem:[%s13608_s3 + $0xf8] sm:$0xf]  ;;  %v6996_v2 = vld [vmem:[%s13608_s3 + $0x248] sm:$0xf0]  ;;  %v2057_v19 = vadd.f32 %v10792_v33, %v10119_v1  ;;  %v6260_v33 = vor.u32 %v6953_v47, %v6257_v0  ;;  %v6976_v47 = vld [vmem:[%s13608_s3 + $0xb8] sm:$0xf0] }
 0x28c   : > { %v6552_v44 = vor.u32 %v6980_v16, %v6551_v54  ;;  %v6616_v48 = vor.u32 %v6996_v2, %v6615_v35  ;;  %v14566_v54 = vld [vmem:[#allocation67_spill] sm:$0xff]  ;;  %v14568_v35 = vld [vmem:[#allocation60_spill] sm:$0xff]  ;;  %v14569_v2 = vld [vmem:[#allocation62_spill] sm:$0xff] }
 0x28d   : > { %14564 = vst [vmem:[#allocation24_spill] sm:$0xff] %v10870_v18  ;;  %v10886_v10 = vpop.f32.mrf.mxu0  ;;  %2386 = vmatpush.bf16.msra.mxu1 %v6268_v13  ;;  %v14567_v16 = vpack.c.bf16 %v14565_v4, %v14566_v54  ;;  %v14570_v18 = vpack.c.bf16 %v14568_v35, %v14569_v2  ;;  %v6951_v13 = vld [vmem:[%s13608_s3 + $0x284] sm:$0xf]  ;;  %v6599_v0 = vld [vmem:[%s13608_s3 + $0x1e8] sm:$0xf] }
 0x28e   : > { %2759 = vmatpush.bf16.msra.mxu2 %v6552_v44  ;;  %2848 = vmatpush.bf16.msra.mxu3 %v6616_v48  ;;  %v6249_v48 = vld [vmem:[%s13608_s3 + $0x294] sm:$0xf0]  ;;  %v6600_v49 = vor.u32 %v6992_v61, %v6599_v0  ;;  %v6970_v0 = vld [vmem:[%s13608_s3 + $0x40] sm:$0xf0] }
 0x290   : > { %v10937_v38 = vpop.f32.mrf.mxu1  ;;  %6370 = vmatmul.msk.bf16.gmra.mxu1 %vm14563_vm12, %v14054_v31 }
 0x291   : > { %2387 = vmatpush.bf16.msra.mxu1 %v6260_v33 }
 0x292   : > { %v2145_v20 = vpop.f32.mrf.mxu2  ;;  %v2234_v1 = vpop.f32.mrf.mxu3  ;;  %2760 = vmatpush.bf16.msra.mxu2 %v6544_v59  ;;  %2849 = vmatpush.bf16.msra.mxu3 %v6608_v56  ;;  %v6974_v59 = vld [vmem:[%s13608_s3 + $0x90] sm:$0xf0] }
 0x293   : > { %v10926_v50 = vadd.f32 %v2145_v20, %v2057_v19  ;;  %4872 = vxpose.binary.xlu2.c.b16.cont [4/16] %v14570_v18, %v14567_v16, 128  ;;  %v10935_v26 = vadd.f32 %v10729_v24, %v2234_v1  ;;  %v6535_v18 = vld [vmem:[%s13608_s3 + $0xa8] sm:$0xf]  ;;  %v6252_v24 = vor.u32 %v6951_v13, %v6249_v48  ;;  %v14573_v20 = vld [vmem:[#allocation72_spill] sm:$0xff]  ;;  %v6990_v1 = vld [vmem:[%s13608_s3 + $0x1d0] sm:$0xf0] }
 0x294   : > { %v6536_v19 = vor.u32 %v6976_v47, %v6535_v18  ;;  %vm14574_vm14 = vnez %v14573_v20  ;;  %v6528_v56 = vor.u32 %v6974_v59, %v6527_v41  ;;  %v6592_v54 = vor.u32 %v6990_v1, %v6591_v12  ;;  %v6519_v13 = vld [vmem:[%s13608_s3 + $0x58] sm:$0xf]  ;;  %v6972_v48 = vld [vmem:[%s13608_s3 + $0x68] sm:$0xf0]  ;;  %v6511_v47 = vld [vmem:[%s13608_s3 + $0x30] sm:$0xf] }
 0x295   : > { %v10939_v44 = vpop.f32.mrf.mxu0  ;;  %2388 = vmatpush.bf16.msra.mxu1 %v6252_v24  ;;  %v6583_v18 = vld [vmem:[%s13608_s3 + $0x198] sm:$0xf]  ;;  %v6520_v24 = vor.u32 %v6972_v48, %v6519_v13  ;;  %v14576_v41 = vld [vmem:[#allocation26_spill] sm:$0xff]  ;;  %v6503_v48 = vld [vmem:[%s13608_s3 + $0x8] sm:$0xf] }
 0x296   : > { %2761 = vmatpush.bf16.msra.mxu2 %v6536_v19  ;;  %2850 = vmatpush.bf16.msra.mxu3 %v6600_v49  ;;  %v2062_v19 = vadd.f32 %v10884_v30, %v10305_v39  ;;  %v14577_v59 = vpack.c.bf16 %v14575_v11, %v14576_v41  ;;  %v14578_v12 = vld [vmem:[#allocation19_spill] sm:$0xff]  ;;  %v6986_v39 = vld [vmem:[%s13608_s3 + $0x180] sm:$0xf0] }
 0x298   : > { %6400 = vmatmul.msk.bf16.gmra.mxu2 %vm14498_vm9, %v14054_v31  ;;  %6432 = vmatmul.msk.bf16.gmra.mxu3 %vm14572_vm13, %v14054_v31  ;;  %v2066_v35 = vpop.f32.mrf.mxu1 }
 0x299   : > { %6468 = vmatmul.msk.bf16.gmra.mxu0 %vm14574_vm14, %v14054_v31 }
 0x29a   : > { %v2148_v15 = vpop.f32.mrf.mxu2  ;;  %v2237_v4 = vpop.f32.mrf.mxu3  ;;  %2762 = vmatpush.bf16.msra.mxu2 %v6528_v56  ;;  %2851 = vmatpush.bf16.msra.mxu3 %v6592_v54  ;;  %v6575_v54 = vld [vmem:[%s13608_s3 + $0x170] sm:$0xf] }
 0x29b   : > { %v10985_v33 = vadd.f32 %v2148_v15, %v2060_v60  ;;  %v10988_v16 = vadd.f32 %v10754_v51, %v2237_v4  ;;  %v6988_v51 = vld [vmem:[%s13608_s3 + $0x1a8] sm:$0xf0]  ;;  %v6512_v60 = vor.u32 %v6970_v0, %v6511_v47  ;;  %v6567_v0 = vld [vmem:[%s13608_s3 + $0x148] sm:$0xf] }
 0x29c   : > { %v6584_v61 = vor.u32 %v6988_v51, %v6583_v18  ;;  %v14579_v15 = vld [vmem:[#allocation21_spill] sm:$0xff]  ;;  %v6968_v18 = vld [vmem:[%s13608_s3 + $0x18] sm:$0xf0]  ;;  %v6576_v51 = vor.u32 %v6986_v39, %v6575_v54 }
 0x29d   : > { %v10990_v2 = vpop.f32.mrf.mxu0  ;;  %v14580_v56 = vpack.c.bf16 %v14578_v12, %v14579_v15  ;;  %v6504_v47 = vor.u32 %v6968_v18, %v6503_v48  ;;  %v2067_v15 = vadd.f32 %v2066_v35, %v10427_v28  ;;  %v14587_v39 = vld [vmem:[#allocation39_spill] sm:$0xff]  ;;  %v14590_v28 = vld [vmem:[#allocation73_spill] sm:$0xff]  ;;  %v14592_v35 = vld [vmem:[#allocation104_spill] sm:$0xff] }
 0x29e   : > { %2763 = vmatpush.bf16.msra.mxu2 %v6520_v24  ;;  %2852 = vmatpush.bf16.msra.mxu3 %v6584_v61  ;;  %v14581_v61 = vld [vmem:[#allocation66_spill] sm:$0xff]  ;;  %vm14591_vm12 = vnez %v14590_v28  ;;  %vm14593_vm13 = vnez %v14592_v35 }
 0x29f   : > { %vm14582_vm5 = vnez %v14581_v61  ;;  %v14605_v28 = vld [vmem:[#allocation102_spill] sm:$0xff] }
 0x2a0   : > { %v2069_v13 = vpop.f32.mrf.mxu1  ;;  %6372 = vmatmul.msk.bf16.gmra.mxu1 %vm14574_vm14, %v14054_v31 }
 0x2a2   : > { %v2150_v49 = vpop.f32.mrf.mxu2  ;;  %v2239_v4 = vpop.f32.mrf.mxu3  ;;  %2764 = vmatpush.bf16.msra.mxu2 %v6512_v60  ;;  %2853 = vmatpush.bf16.msra.mxu3 %v6576_v51 }
 0x2a3   : > { %4873 = vxpose.binary.xlu2.c.b16.cont [5/16] %v14580_v56, %v14577_v59, 128  ;;  %v11018_v1 = vadd.f32 %v2150_v49, %v2062_v19  ;;  %v11027_v30 = vadd.f32 %v10794_v43, %v2239_v4  ;;  %v6984_v43 = vld [vmem:[%s13608_s3 + $0x158] sm:$0xf0]  ;;  %v2065_v19 = vadd.f32 %v10937_v38, %v10367_v34  ;;  %v14584_v56 = vld [vmem:[#allocation42_spill] sm:$0xff]  ;;  %v14585_v4 = vld [vmem:[#allocation48_spill] sm:$0xff] }
 0x2a4   : > { %v6568_v49 = vor.u32 %v6984_v43, %v6567_v0  ;;  %v14586_v54 = vpack.c.bf16 %v14584_v56, %v14585_v4  ;;  %v14588_v34 = vld [vmem:[#allocation43_spill] sm:$0xff] }
 0x2a5   : > { %v14589_v38 = vpack.c.bf16 %v14587_v39, %v14588_v34  ;;  %v14595_v56 = vld [vmem:[#allocation59_spill] sm:$0xff]  ;;  %v14598_v39 = vld [vmem:[#allocation58_spill] sm:$0xff] }
 0x2a6   : > { %v2341_v24 = vpop.f32.mrf.mxu0  ;;  %2765 = vmatpush.bf16.msra.mxu2 %v6504_v47  ;;  %2854 = vmatpush.bf16.msra.mxu3 %v6568_v49 }
 0x2a8   : > { %6402 = vmatmul.msk.bf16.gmra.mxu2 %vm14491_vm1, %v14054_v31  ;;  %6434 = vmatmul.msk.bf16.gmra.mxu3 %vm14582_vm5, %v14054_v31  ;;  %v2071_v59 = vpop.f32.mrf.mxu1  ;;  %vm14606_vm5 = vnez %v14605_v28 }
 0x2a9   : > { %6758 = vmatmul.msk.bf16.vlgmr.msra.gmra.mxu0 %vm14583_vm15, %v14054_v31 }
 0x2ab   : > { %v2153_v20 = vpop.f32.mrf.mxu2  ;;  %v2242_v11 = vpop.f32.mrf.mxu3 }
 0x2ac   : > { %v11055_v60 = vadd.f32 %v2153_v20, %v2065_v19  ;;  %v11058_v41 = vadd.f32 %v10834_v9, %v2242_v11  ;;  %v2072_v11 = vadd.f32 %v2071_v59, %v10515_v27  ;;  %v14601_v27 = vld [vmem:[#allocation75_spill] sm:$0xff]  ;;  %v14603_v59 = vld [vmem:[#allocation76_spill] sm:$0xff] }
 0x2ad   : > { %vm14604_vm14 = vnez %v14603_v59 }
 0x2ae   : > { %v2343_v12 = vpop.f32.mrf.mxu0 }
 0x2b0   : > { %v2074_v9 = vpop.f32.mrf.mxu1  ;;  %6470 = vmatmul.msk.bf16.vlgmr.msra.gmra.mxu1 %vm8298_vm3, %v14054_v31  ;;  %vm14602_vm3 = vnez %v14601_v27 }
 0x2b3   : > { %4874 = vxpose.binary.xlu2.c.b16.cont [6/16] %v14589_v38, %v14586_v54, 128  ;;  %v2155_v48 = vpop.f32.mrf.mxu2  ;;  %v2244_v51 = vpop.f32.mrf.mxu3  ;;  %v14597_v54 = vld [vmem:[#allocation64_spill] sm:$0xff] }
 0x2b4   : > { %v11067_v18 = vadd.f32 %v2155_v48, %v2067_v15  ;;  %v11070_v47 = vadd.f32 %v10886_v10, %v2244_v51  ;;  %v2070_v10 = vadd.f32 %v2069_v13, %v10483_v36  ;;  %v14594_v15 = vld [vmem:[#allocation65_spill] sm:$0xff]  ;;  %v14599_v34 = vpack.c.bf16 %v14597_v54, %v14598_v39  ;;  %v14608_v54 = vld [vmem:[#allocation71_spill] sm:$0xff]  ;;  %v14609_v39 = vld [vmem:[#allocation70_spill] sm:$0xff] }
 0x2b5   : > { %v14596_v4 = vpack.c.bf16 %v14594_v15, %v14595_v56 }
 0x2b6   : > { %v2346_v0 = vpop.f32.mrf.mxu0 }
 0x2b8   : > { %6404 = vmatmul.msk.bf16.gmra.mxu2 %vm14488_vm8, %v14054_v31  ;;  %6436 = vmatmul.msk.bf16.gmra.mxu3 %vm14591_vm12, %v14054_v31  ;;  %v2076_v20 = vpop.f32.mrf.mxu1 }
 0x2b9   : > { %6760 = vmatmul.msk.bf16.gmra.mxu0 %vm14593_vm13, %v14054_v31 }
 0x2bb   : > { %v2158_v43 = vpop.f32.mrf.mxu2  ;;  %v2247_v19 = vpop.f32.mrf.mxu3 }
 0x2bc   : > { %v11085_v61 = vadd.f32 %v2158_v43, %v2070_v10  ;;  %v11088_v49 = vadd.f32 %v10939_v44, %v2247_v19 }
 0x2be   : > { %v2348_v42 = vpop.f32.mrf.mxu0 }
 0x2c0   : > { %v2079_v44 = vpop.f32.mrf.mxu1  ;;  %6472 = vmatmul.msk.bf16.gmra.mxu1 %vm8358_vm10, %v14054_v31 }
 0x2c3   : > { %4875 = vxpose.binary.xlu2.c.b16.cont [7/16] %v14599_v34, %v14596_v4, 128  ;;  %v2160_v38 = vpop.f32.mrf.mxu2  ;;  %v2249_v13 = vpop.f32.mrf.mxu3  ;;  %v2077_v4 = vadd.f32 %v2076_v20, %v10357_v25  ;;  %v14610_v34 = vpack.c.bf16 %v14608_v54, %v14609_v39  ;;  %v14616_v25 = vld [vmem:[#allocation74_spill] sm:$0xff]  ;;  %v14618_v20 = vld [vmem:[#allocation77_spill] sm:$0xff] }
 0x2c4   : > { %v11097_v36 = vadd.f32 %v2160_v38, %v2072_v11  ;;  %v11100_v48 = vadd.f32 %v10990_v2, %v2249_v13  ;;  %v14607_v2 = vld [vmem:[#allocation8_spill] sm:$0xff]  ;;  %v14612_v13 = vld [vmem:[#allocation69_spill] sm:$0xff]  ;;  %vm14617_vm10 = vnez %v14616_v25  ;;  %vm14619_vm12 = vnez %v14618_v20 }
 0x2c5   : > { %v2075_v10 = vadd.f32 %v2074_v9, %v14607_v2  ;;  %v14611_v38 = vld [vmem:[#allocation68_spill] sm:$0xff] }
 0x2c6   : > { %14600 = vst [vmem:[#allocation18_spill] sm:$0xff] %v11097_v36  ;;  %v2351_v51 = vpop.f32.mrf.mxu0  ;;  %v14613_v35 = vpack.c.bf16 %v14611_v38, %v14612_v13 }
 0x2c8   : > { %6694 = vmatmul.msk.bf16.vlgmr.msra.gmra.mxu2 %vm14602_vm3, %v14054_v31  ;;  %6726 = vmatmul.msk.bf16.vlgmr.msra.gmra.mxu3 %vm14604_vm14, %v14054_v31  ;;  %v2081_v15 = vpop.f32.mrf.mxu1 }
 0x2c9   : > { %6762 = vmatmul.msk.bf16.gmra.mxu0 %vm14606_vm5, %v14054_v31  ;;  %v2082_v38 = vadd.f32 %v2081_v15, %v10473_v22  ;;  %v14629_v22 = vld [vmem:[#allocation96_spill] sm:$0xff] }
 0x2ca   : > { %vm14630_vm13 = vnez %v14629_v22 }
 0x2cb   : > { %v2163_v43 = vpop.f32.mrf.mxu2  ;;  %v2252_v11 = vpop.f32.mrf.mxu3 }
 0x2cc   : > { %v11115_v19 = vadd.f32 %v2163_v43, %v2075_v10  ;;  %v11117_v58 = vadd.f32 %v2341_v24, %v2252_v11 }
 0x2ce   : > { %v2353_v56 = vpop.f32.mrf.mxu0 }
 0x2d0   : > { %v2084_v10 = vpop.f32.mrf.mxu1  ;;  %6474 = vmatmul.msk.bf16.gmra.mxu1 %vm14312_vm2, %v14054_v31 }
 0x2d3   : > { %4876 = vxpose.binary.xlu2.c.b16.end [8/16] %v14613_v35, %v14610_v34, 128  ;;  %v2165_v28 = vpop.f32.mrf.mxu2  ;;  %v2254_v9 = vpop.f32.mrf.mxu3  ;;  %v14620_v35 = vld [vmem:[#allocation99_spill] sm:$0xff] }
 0x2d4   : > { %v11126_v36 = vadd.f32 %v2165_v28, %v2077_v4  ;;  %v11128_v2 = vadd.f32 %v2343_v12, %v2254_v9  ;;  %vm14621_vm5 = vnez %v14620_v35  ;;  %v2080_v12 = vadd.f32 %v2079_v44, %v10415_v6  ;;  %v14625_v44 = vld [vmem:[#allocation78_spill] sm:$0xff] }
 0x2d5   : > { %vm14626_vm2 = vnez %v14625_v44 }
 0x2d6   : > { %14614 = vst [vmem:[#allocation22_spill] sm:$0xff] %v11126_v36  ;;  %v2356_v24 = vpop.f32.mrf.mxu0 }
 0x2d8   : > { %6696 = vmatmul.msk.bf16.gmra.mxu2 %vm14617_vm10, %v14054_v31  ;;  %6728 = vmatmul.msk.bf16.gmra.mxu3 %vm14619_vm12, %v14054_v31  ;;  %v2086_v39 = vpop.f32.mrf.mxu1 }
 0x2d9   : > { %6764 = vmatmul.msk.bf16.gmra.mxu0 %vm14621_vm5, %v14054_v31 }
 0x2db   : > { %v2168_v28 = vpop.f32.mrf.mxu2  ;;  %v2257_v4 = vpop.f32.mrf.mxu3 }
 0x2dc   : > { %v11143_v11 = vadd.f32 %v2168_v28, %v2080_v12  ;;  %v11145_v54 = vadd.f32 %v2346_v0, %v2257_v4  ;;  %v14627_v0 = vld [vmem:[#allocation79_spill] sm:$0xff] }
 0x2dd   : > { %vm14628_vm5 = vnez %v14627_v0 }
 0x2de   : > { %14622 = vst [vmem:[#allocation17_spill] sm:$0xff] %v11143_v11  ;;  %v2358_v34 = vpop.f32.mrf.mxu0 }
 0x2e0   : > { %v2089_v35 = vpop.f32.mrf.mxu1  ;;  %6476 = vmatmul.msk.bf16.gmra.mxu1 %vm14371_vm6, %v14054_v31 }
 0x2e3   : > { %v2170_v13 = vpop.f32.mrf.mxu2  ;;  %v2259_v43 = vpop.f32.mrf.mxu3 }
 0x2e4   : > { %v11148_v9 = vadd.f32 %v2170_v13, %v2082_v38  ;;  %v11150_v36 = vadd.f32 %v2348_v42, %v2259_v43  ;;  %v2085_v42 = vadd.f32 %v2084_v10, %v10505_v63  ;;  %v2087_v43 = vadd.f32 %v2086_v39, %v10553_v7  ;;  %v14633_v63 = vld [vmem:[#allocation10_spill] sm:$0xff]  ;;  %v14635_v10 = vld [vmem:[#allocation81_spill] sm:$0xff]  ;;  %v14639_v7 = vld [vmem:[#allocation92_spill] sm:$0xff] }
 0x2e5   : > { %vm14634_vm6 = vnez %v14633_v63  ;;  %vm14640_vm12 = vnez %v14639_v7 }
 0x2e6   : > { %14623 = vst [vmem:[#allocation31_spill] sm:$0xff] %v11148_v9  ;;  %v2361_v20 = vpop.f32.mrf.mxu0 }
 0x2e8   : > { %6698 = vmatmul.msk.bf16.gmra.mxu2 %vm14626_vm2, %v14054_v31  ;;  %6730 = vmatmul.msk.bf16.gmra.mxu3 %vm14628_vm5, %v14054_v31  ;;  %v2091_v38 = vpop.f32.mrf.mxu1 }
 0x2e9   : > { %6766 = vmatmul.msk.bf16.gmra.mxu0 %vm14630_vm13, %v14054_v31  ;;  %vm14636_vm13 = vnez %v14635_v10 }
 0x2eb   : > { %v2173_v15 = vpop.f32.mrf.mxu2  ;;  %v2262_v28 = vpop.f32.mrf.mxu3 }
 0x2ec   : > { %v11165_v12 = vadd.f32 %v2173_v15, %v2085_v42  ;;  %v11167_v4 = vadd.f32 %v2351_v51, %v2262_v28  ;;  %v14637_v51 = vld [vmem:[#allocation82_spill] sm:$0xff] }
 0x2ed   : > { %vm14638_vm5 = vnez %v14637_v51 }
 0x2ee   : > { %14631 = vst [vmem:[#allocation46_spill] sm:$0xff] %v11165_v12  ;;  %v2363_v13 = vpop.f32.mrf.mxu0 }
 0x2f0   : > { %v2094_v22 = vpop.f32.mrf.mxu1  ;;  %6478 = vmatmul.msk.bf16.gmra.mxu1 %vm14634_vm6, %v14054_v31  ;;  %vm14644_vm6 = vnez %v14411_v57 }
 0x2f3   : > { %v2175_v6 = vpop.f32.mrf.mxu2  ;;  %v2264_v0 = vpop.f32.mrf.mxu3 }
 0x2f4   : > { %v11170_v9 = vadd.f32 %v2175_v6, %v2087_v43  ;;  %v11172_v11 = vadd.f32 %v2353_v56, %v2264_v0  ;;  %v2090_v56 = vadd.f32 %v2089_v35, %v10577_v14  ;;  %v2092_v6 = vadd.f32 %v2091_v38, %v10615_v5  ;;  %v14645_v14 = vld [vmem:[#allocation80_spill] sm:$0xff] }
 0x2f5   : > { %v14649_v5 = vld [vmem:[#allocation88_spill] sm:$0xff] }
 0x2f6   : > { %14632 = vst [vmem:[#allocation41_spill] sm:$0xff] %v11170_v9  ;;  %v2366_v44 = vpop.f32.mrf.mxu0  ;;  %v14651_v35 = vld [vmem:[#allocation16_spill] sm:$0xff] }
 0x2f8   : > { %6700 = vmatmul.msk.bf16.gmra.mxu2 %vm14636_vm13, %v14054_v31  ;;  %6732 = vmatmul.msk.bf16.gmra.mxu3 %vm14638_vm5, %v14054_v31  ;;  %v2096_v28 = vpop.f32.mrf.mxu1  ;;  %vm14650_vm13 = vnez %v14649_v5 }
 0x2f9   : > { %6768 = vmatmul.msk.bf16.gmra.mxu0 %vm14640_vm12, %v14054_v31  ;;  %vm14646_vm12 = vnez %v14645_v14 }
 0x2fb   : > { %v2178_v39 = vpop.f32.mrf.mxu2  ;;  %v2267_v42 = vpop.f32.mrf.mxu3 }
 0x2fc   : > { %v11187_v0 = vadd.f32 %v2178_v39, %v2090_v56  ;;  %v11189_v15 = vadd.f32 %v2356_v24, %v2267_v42  ;;  %v14647_v24 = vld [vmem:[#allocation83_spill] sm:$0xff] }
 0x2fd   : > { %vm14648_vm5 = vnez %v14647_v24 }
 0x2fe   : > { %14641 = vst [vmem:[#allocation45_spill] sm:$0xff] %v11187_v0  ;;  %v2368_v43 = vpop.f32.mrf.mxu0 }
 0x300   : > { %v2099_v7 = vpop.f32.mrf.mxu1  ;;  %6480 = vmatmul.msk.bf16.gmra.mxu1 %vm14644_vm6, %v14054_v31 }
 0x303   : > { %v2180_v63 = vpop.f32.mrf.mxu2  ;;  %v2269_v51 = vpop.f32.mrf.mxu3 }
 0x304   : > { %v11192_v9 = vadd.f32 %v2180_v63, %v2092_v6  ;;  %v11194_v12 = vadd.f32 %v2358_v34, %v2269_v51  ;;  %v2095_v34 = vadd.f32 %v2094_v22, %v14651_v35  ;;  %v2097_v6 = vadd.f32 %v2096_v28, %v10365_v8  ;;  %v14656_v22 = vld [vmem:[#allocation12_spill] sm:$0xff]  ;;  %v14662_v8 = vld [vmem:[#allocation87_spill] sm:$0xff] }
 0x305   : > { %vm14657_vm6 = vnez %v14656_v22  ;;  %v14658_v35 = vld [vmem:[#allocation84_spill] sm:$0xff] }
 0x306   : > { %14642 = vst [vmem:[#allocation38_spill] sm:$0xff] %v11192_v9  ;;  %v2371_v10 = vpop.f32.mrf.mxu0  ;;  %v14667_v22 = vld [vmem:[#allocation20_spill] sm:$0xff] }
 0x307   : > { %14643 = vst [vmem:[#allocation51_spill] sm:$0xff] %v11194_v12 }
 0x308   : > { %6702 = vmatmul.msk.bf16.gmra.mxu2 %vm14646_vm12, %v14054_v31  ;;  %6734 = vmatmul.msk.bf16.gmra.mxu3 %vm14648_vm5, %v14054_v31  ;;  %v2101_v39 = vpop.f32.mrf.mxu1  ;;  %vm14663_vm12 = vnez %v14662_v8 }
 0x309   : > { %6770 = vmatmul.msk.bf16.gmra.mxu0 %vm14650_vm13, %v14054_v31  ;;  %vm14659_vm13 = vnez %v14658_v35 }
 0x30b   : > { %v2183_v38 = vpop.f32.mrf.mxu2  ;;  %v2272_v56 = vpop.f32.mrf.mxu3 }
 0x30c   : > { %v11209_v51 = vadd.f32 %v2183_v38, %v2095_v34  ;;  %v11211_v57 = vadd.f32 %v2361_v20, %v2272_v56  ;;  %v14660_v20 = vld [vmem:[#allocation85_spill] sm:$0xff] }
 0x30d   : > { %vm14661_vm5 = vnez %v14660_v20 }
 0x30e   : > { %14652 = vst [vmem:[#allocation56_spill] sm:$0xff] %v11209_v51  ;;  %v2373_v42 = vpop.f32.mrf.mxu0 }
 0x30f   : > { %14653 = vst [vmem:[#allocation54_spill] sm:$0xff] %v11211_v57 }
 0x310   : > { %v2104_v5 = vpop.f32.mrf.mxu1  ;;  %6482 = vmatmul.msk.bf16.gmra.mxu1 %vm14657_vm6, %v14054_v31 }
 0x313   : > { %v2185_v63 = vpop.f32.mrf.mxu2  ;;  %v2274_v24 = vpop.f32.mrf.mxu3 }
 0x314   : > { %v11214_v9 = vadd.f32 %v2185_v63, %v2097_v6  ;;  %v11216_v0 = vadd.f32 %v2363_v13, %v2274_v24  ;;  %v14664_v13 = vld [vmem:[#allocation11_spill] sm:$0xff] }
 0x315   : > { %v2100_v28 = vadd.f32 %v2099_v7, %v14664_v13  ;;  %v14670_v7 = vld [vmem:[#allocation33_spill] sm:$0xff] }
 0x316   : > { %14654 = vst [vmem:[#allocation52_spill] sm:$0xff] %v11214_v9  ;;  %v2376_v14 = vpop.f32.mrf.mxu0  ;;  %v2102_v9 = vadd.f32 %v2101_v39, %v14667_v22  ;;  %vm14671_vm6 = vnez %v14670_v7  ;;  %v14672_v13 = vld [vmem:[#allocation89_spill] sm:$0xff]  ;;  %v14680_v7 = vld [vmem:[#allocation34_spill] sm:$0xff] }
 0x317   : > { %14655 = vst [vmem:[#allocation53_spill] sm:$0xff] %v11216_v0 }
 0x318   : > { %6704 = vmatmul.msk.bf16.gmra.mxu2 %vm14659_vm13, %v14054_v31  ;;  %6736 = vmatmul.msk.bf16.gmra.mxu3 %vm14661_vm5, %v14054_v31  ;;  %v2106_v6 = vpop.f32.mrf.mxu1 }
 0x319   : > { %6772 = vmatmul.msk.bf16.gmra.mxu0 %vm14663_vm12, %v14054_v31  ;;  %vm14673_vm12 = vnez %v14672_v13 }
 0x31b   : > { %v2188_v24 = vpop.f32.mrf.mxu2  ;;  %v2277_v38 = vpop.f32.mrf.mxu3 }
 0x31c   : > { %v11231_v34 = vadd.f32 %v2188_v24, %v2100_v28  ;;  %v11233_v56 = vadd.f32 %v2366_v44, %v2277_v38  ;;  %v14674_v44 = vld [vmem:[#allocation90_spill] sm:$0xff] }
 0x31d   : > { %vm14675_vm5 = vnez %v14674_v44 }
 0x31e   : > { %14665 = vst [vmem:[#allocation28_spill] sm:$0xff] %v11231_v34  ;;  %v2378_v63 = vpop.f32.mrf.mxu0 }
 0x31f   : > { %14666 = vst [vmem:[#allocation61_spill] sm:$0xff] %v11233_v56  ;;  %v14682_v56 = vld [vmem:[#allocation40_spill] sm:$0xff] }
 0x320   : > { %v2109_v8 = vpop.f32.mrf.mxu1  ;;  %6484 = vmatmul.msk.bf16.gmra.mxu1 %vm14671_vm6, %v14054_v31 }
 0x323   : > { %v2190_v51 = vpop.f32.mrf.mxu2  ;;  %v2279_v20 = vpop.f32.mrf.mxu3 }
 0x324   : > { %v11236_v35 = vadd.f32 %v2190_v51, %v2102_v9  ;;  %v11238_v0 = vadd.f32 %v2368_v43, %v2279_v20  ;;  %v14676_v9 = vld [vmem:[#allocation94_spill] sm:$0xff]  ;;  %v14678_v43 = vld [vmem:[#allocation37_spill] sm:$0xff] }
 0x325   : > { %vm14677_vm13 = vnez %v14676_v9  ;;  %v2105_v51 = vadd.f32 %v2104_v5, %v14678_v43  ;;  %v14684_v43 = vld [vmem:[#allocation30_spill] sm:$0xff] }
 0x326   : > { %14668 = vst [vmem:[#allocation67_spill] sm:$0xff] %v11236_v35  ;;  %v2945_v57 = vpop.f32.mrf.mxu0  ;;  %v2107_v35 = vadd.f32 %v2106_v6, %v14680_v7  ;;  %vm14685_vm6 = vnez %v14684_v43  ;;  %v14688_v6 = vld [vmem:[#allocation91_spill] sm:$0xff]  ;;  %v14694_v43 = vld [vmem:[#allocation36_spill] sm:$0xff] }
 0x327   : > { %14669 = vst [vmem:[#allocation60_spill] sm:$0xff] %v11238_v0 }
 0x328   : > { %6706 = vmatmul.msk.bf16.gmra.mxu2 %vm14673_vm12, %v14054_v31  ;;  %6738 = vmatmul.msk.bf16.gmra.mxu3 %vm14675_vm5, %v14054_v31  ;;  %v2111_v38 = vpop.f32.mrf.mxu1  ;;  %vm14689_vm5 = vnez %v14688_v6 }
 0x329   : > { %6774 = vmatmul.msk.bf16.gmra.mxu0 %vm14677_vm13, %v14054_v31 }
 0x32b   : > { %v2193_v39 = vpop.f32.mrf.mxu2  ;;  %v2282_v28 = vpop.f32.mrf.mxu3 }
 0x32c   : > { %v11253_v20 = vadd.f32 %v2193_v39, %v2105_v51  ;;  %v11255_v24 = vadd.f32 %v2371_v10, %v2282_v28  ;;  %v14686_v10 = vld [vmem:[#allocation86_spill] sm:$0xff] }
 0x32d   : > { %vm14687_vm13 = vnez %v14686_v10  ;;  %v11903_v10 = vld [vmem:[%s7666_s20 + $0x90] sm:$0xff] }
 0x32e   : > { %14679 = vst [vmem:[#allocation62_spill] sm:$0xff] %v11253_v20  ;;  %v2947_v22 = vpop.f32.mrf.mxu0 }
 0x330   : > { %v2390_v9 = vpop.f32.mrf.mxu1  ;;  %6486 = vmatmul.msk.bf16.gmra.mxu1 %vm14685_vm6, %v14054_v31 }
 0x331   : > { %v11263_v12 = vadd.f32 %v2390_v9, %v14682_v56 }
 0x333   : > { %v2195_v34 = vpop.f32.mrf.mxu2  ;;  %v2284_v44 = vpop.f32.mrf.mxu3  ;;  %14683 = vst [vmem:[#allocation72_spill] sm:$0xff] %v11263_v12  ;;  %v2112_v12 = vadd.f32 %v2111_v38, %v14694_v43 }
 0x334   : > { %v11258_v13 = vadd.f32 %v2195_v34, %v2107_v35  ;;  %v11260_v0 = vadd.f32 %v2373_v42, %v2284_v44  ;;  %v14690_v42 = vld [vmem:[#allocation14_spill] sm:$0xff]  ;;  %v14692_v35 = vld [vmem:[#allocation32_spill] sm:$0xff] }
 0x335   : > { %vm14691_vm12 = vnez %v14690_v42  ;;  %v2110_v34 = vadd.f32 %v2109_v8, %v14692_v35 }
 0x336   : > { %14681 = vst [vmem:[#allocation49_spill] sm:$0xff] %v11258_v13  ;;  %v2950_v5 = vpop.f32.mrf.mxu0 }
 0x338   : > { %6708 = vmatmul.msk.bf16.gmra.mxu2 %vm14687_vm13, %v14054_v31  ;;  %6740 = vmatmul.msk.bf16.gmra.mxu3 %vm14689_vm5, %v14054_v31  ;;  %v2392_v39 = vpop.f32.mrf.mxu1 }
 0x339   : > { %6776 = vmatmul.msk.bf16.gmra.mxu0 %vm14691_vm12, %v14054_v31  ;;  %v11283_v28 = vadd.f32 %v2392_v39, %v10669_v23  ;;  %v14697_v23 = vld [vmem:[#allocation93_spill] sm:$0xff] }
 0x33a   : > { %vm14698_vm6 = vnez %v14697_v23 }
 0x33b   : > { %v2198_v56 = vpop.f32.mrf.mxu2  ;;  %v2287_v9 = vpop.f32.mrf.mxu3  ;;  %14693 = vst [vmem:[#allocation27_spill] sm:$0xff] %v11283_v28 }
 0x33c   : > { %v11278_v44 = vadd.f32 %v2198_v56, %v2110_v34  ;;  %v11280_v51 = vadd.f32 %v2376_v14, %v2287_v9  ;;  %v14699_v14 = vld [vmem:[#allocation95_spill] sm:$0xff] }
 0x33d   : > { %vm14700_vm12 = vnez %v14699_v14  ;;  %v14704_v9 = vld [vmem:[#allocation35_spill] sm:$0xff] }
 0x33e   : > { %v2952_v7 = vpop.f32.mrf.mxu0 }
 0x340   : > { %v2395_v8 = vpop.f32.mrf.mxu1  ;;  %6488 = vmatmul.msk.bf16.gmra.mxu1 %vm14514_vm11, %v14054_v31 }
 0x341   : > { %v11291_v35 = vadd.f32 %v2395_v8, %v10689_v46 }
 0x343   : > { %v2200_v13 = vpop.f32.mrf.mxu2  ;;  %v2289_v42 = vpop.f32.mrf.mxu3  ;;  %14696 = vst [vmem:[#allocation19_spill] sm:$0xff] %v11291_v35 }
 0x344   : > { %v11286_v6 = vadd.f32 %v2200_v13, %v2112_v12  ;;  %v11288_v20 = vadd.f32 %v2378_v63, %v2289_v42  ;;  %v14701_v12 = vld [vmem:[#allocation15_spill] sm:$0xff] }
 0x345   : > { %vm14702_vm5 = vnez %v14701_v12 }
 0x346   : > { %14695 = vst [vmem:[#allocation26_spill] sm:$0xff] %v11286_v6  ;;  %v2955_v34 = vpop.f32.mrf.mxu0 }
 0x348   : > { %6710 = vmatmul.msk.bf16.gmra.mxu2 %vm14698_vm6, %v14054_v31  ;;  %6742 = vmatmul.msk.bf16.gmra.mxu3 %vm14700_vm12, %v14054_v31  ;;  %v2397_v38 = vpop.f32.mrf.mxu1 }
 0x349   : > { %6778 = vmatmul.msk.bf16.gmra.mxu0 %vm14702_vm5, %v14054_v31  ;;  %v11306_v42 = vadd.f32 %v2397_v38, %v10696_v62  ;;  %v14706_v62 = vld [vmem:[#allocation98_spill] sm:$0xff] }
 0x34a   : > { %vm14707_vm11 = vnez %v14706_v62 }
 0x34b   : > { %v2767_v63 = vpop.f32.mrf.mxu2  ;;  %v2856_v46 = vpop.f32.mrf.mxu3  ;;  %14703 = vst [vmem:[#allocation21_spill] sm:$0xff] %v11306_v42  ;;  %v6967_v42 = vld [vmem:[%s13608_s3 + $0xc] sm:$0xf] }
 0x34c   : > { %v2857_v13 = vadd.f32 %v2856_v46, %v2767_v63  ;;  %v14710_v63 = vld [vmem:[#allocation13_spill] sm:$0xff] }
 0x34d   : > { %vm14711_vm12 = vnez %v14710_v63 }
 0x34e   : > { %v2957_v53 = vpop.f32.mrf.mxu0  ;;  %v2946_v56 = vadd.f32 %v2945_v57, %v2857_v13  ;;  %v14708_v57 = vld [vmem:[#allocation100_spill] sm:$0xff] }
 0x34f   : > { %vm14709_vm5 = vnez %v14708_v57  ;;  %v14714_v57 = vld [vmem:[#allocation57_spill] sm:$0xff] }
 0x350   : > { %v11309_v39 = vadd.f32 %v2946_v56, %v14704_v9  ;;  %v2400_v6 = vpop.f32.mrf.mxu1  ;;  %6490 = vmatmul.msk.bf16.gmra.mxu1 %vm14511_vm0, %v14054_v31  ;;  %v14713_v56 = vld [vmem:[#allocation23_spill] sm:$0xff] }
 0x351   : > { %v11312_v14 = vadd.f32 %v2400_v6, %v10727_v21 }
 0x353   : > { %v2769_v43 = vpop.f32.mrf.mxu2  ;;  %v2858_v8 = vpop.f32.mrf.mxu3  ;;  %14705 = vst [vmem:[#allocation66_spill] sm:$0xff] %v11312_v14 }
 0x354   : > { %v2859_v35 = vadd.f32 %v2858_v8, %v2769_v43 }
 0x356   : > { %v11314_v12 = vpop.f32.mrf.mxu0  ;;  %v2948_v28 = vadd.f32 %v2947_v22, %v2859_v35 }
 0x358   : > { %6712 = vmatmul.msk.bf16.gmra.mxu2 %vm14707_vm11, %v14054_v31  ;;  %6744 = vmatmul.msk.bf16.gmra.mxu3 %vm14709_vm5, %v14054_v31  ;;  %v11329_v21 = vadd.f32 %v2948_v28, %v10666_v45  ;;  %v2402_v52 = vpop.f32.mrf.mxu1 }
 0x359   : > { %6780 = vmatmul.msk.bf16.gmra.mxu0 %vm14711_vm12, %v14054_v31  ;;  %v11332_v46 = vadd.f32 %v2402_v52, %v10746_v40  ;;  %v14717_v40 = vld [vmem:[#allocation97_spill] sm:$0xff] }
 0x35a   : > { %vm14718_vm0 = vnez %v14717_v40 }
 0x35b   : > { %v2772_v22 = vpop.f32.mrf.mxu2  ;;  %v2861_v6 = vpop.f32.mrf.mxu3  ;;  %14712 = vst [vmem:[#allocation42_spill] sm:$0xff] %v11332_v46 }
 0x35c   : > { %v2862_v35 = vadd.f32 %v2861_v6, %v2772_v22  ;;  %v7021_v6 = vld [vmem:[%s13609_s4 + $0x30] sm:$0xff] }
 0x35e   : > { %v11334_v13 = vpop.f32.mrf.mxu0  ;;  %v2951_v38 = vadd.f32 %v2950_v5, %v2862_v35  ;;  %v14719_v5 = vld [vmem:[#allocation101_spill] sm:$0xff]  ;;  %v14721_v35 = vld [vmem:[#allocation114_spill] sm:$0xff] }
 0x35f   : > { %vm14720_vm12 = vnez %v14719_v5  ;;  %vm14722_vm5 = vnez %v14721_v35  ;;  %v6979_v5 = vld [vmem:[%s13608_s3 + $0xfc] sm:$0xf] }
 0x360   : > { %v11337_v9 = vadd.f32 %v2951_v38, %v14713_v56  ;;  %v2405_v14 = vpop.f32.mrf.mxu1  ;;  %6492 = vmatmul.msk.bf16.gmra.mxu1 %vm14505_vm4, %v14054_v31 }
 0x361   : > { %v11340_v45 = vadd.f32 %v2405_v14, %v14714_v57  ;;  %v14723_v14 = vld [vmem:[#allocation44_spill] sm:$0xff] }
 0x363   : > { %v2774_v43 = vpop.f32.mrf.mxu2  ;;  %v2863_v8 = vpop.f32.mrf.mxu3  ;;  %14715 = vst [vmem:[#allocation48_spill] sm:$0xff] %v11340_v45 }
 0x364   : > { %v2864_v63 = vadd.f32 %v2863_v8, %v2774_v43 }
 0x366   : > { %v11342_v28 = vpop.f32.mrf.mxu0  ;;  %v2953_v22 = vadd.f32 %v2952_v7, %v2864_v63  ;;  %v7022_v7 = vld [vmem:[%s13609_s4 + $0x38] sm:$0xff] }
 0x367   : > { %3408 = vmatpush.bf16.msra.mxu0 %v7022_v7 }
 0x368   : > { %6714 = vmatmul.msk.bf16.gmra.mxu2 %vm14718_vm0, %v14054_v31  ;;  %6746 = vmatmul.msk.bf16.gmra.mxu3 %vm14720_vm12, %v14054_v31  ;;  %v11360_v57 = vadd.f32 %v2953_v22, %v14723_v14  ;;  %v2407_v56 = vpop.f32.mrf.mxu1  ;;  %v7020_v22 = vld [vmem:[%s13609_s4 + $0x28] sm:$0xff]  ;;  %v14725_v14 = vld [vmem:[#allocation55_spill] sm:$0xff] }
 0x369   : > { %6782 = vmatmul.msk.bf16.gmra.mxu0 %vm14722_vm5, %v14054_v31  ;;  %v11363_v43 = vadd.f32 %v2407_v56, %v10830_v3 }
 0x36b   : > { %v2777_v63 = vpop.f32.mrf.mxu2  ;;  %v2866_v52 = vpop.f32.mrf.mxu3  ;;  %14724 = vst [vmem:[#allocation39_spill] sm:$0xff] %v11363_v43  ;;  %3409 = vmatpush.bf16.msra.mxu0 %v7021_v6 }
 0x36c   : > { %v2867_v38 = vadd.f32 %v2866_v52, %v2777_v63 }
 0x36e   : > { %v11365_v8 = vpop.f32.mrf.mxu0  ;;  %v2956_v35 = vadd.f32 %v2955_v34, %v2867_v38  ;;  %v7019_v34 = vld [vmem:[%s13609_s4 + $0x20] sm:$0xff] }
 0x36f   : > { %3410 = vmatpush.bf16.msra.mxu0 %v7020_v22  ;;  %v14730_v22 = vld [vmem:[#allocation105_spill] sm:$0xff] }
 0x370   : > { %v11374_v7 = vadd.f32 %v2956_v35, %v14725_v14  ;;  %v2410_v56 = vpop.f32.mrf.mxu1  ;;  %6494 = vmatmul.msk.bf16.gmra.mxu1 %vm14500_vm7, %v14054_v31  ;;  %v14728_v35 = vld [vmem:[#allocation103_spill] sm:$0xff]  ;;  %vm14731_vm5 = vnez %v14730_v22 }
 0x371   : > { %v11377_v43 = vadd.f32 %v2410_v56, %v10882_v29  ;;  %vm14729_vm4 = vnez %v14728_v35  ;;  %v14732_v29 = vld [vmem:[#allocation113_spill] sm:$0xff]  ;;  %v6561_v14 = vld [vmem:[%s13608_s3 + $0x134] sm:$0xf0] }
 0x372   : > { %vm14733_vm12 = vnez %v14732_v29  ;;  %v7018_v56 = vld [vmem:[%s13609_s4 + $0x18] sm:$0xff]  ;;  %v6975_v35 = vld [vmem:[%s13608_s3 + $0xac] sm:$0xf] }
 0x373   : > { %v2779_v63 = vpop.f32.mrf.mxu2  ;;  %v2868_v52 = vpop.f32.mrf.mxu3  ;;  %14726 = vst [vmem:[#allocation43_spill] sm:$0xff] %v11377_v43  ;;  %3411 = vmatpush.bf16.msra.mxu0 %v7019_v34 }
 0x374   : > { %v2869_v3 = vadd.f32 %v2868_v52, %v2779_v63  ;;  %v14734_v63 = vld [vmem:[#allocation50_spill] sm:$0xff] }
 0x376   : > { %v11379_v45 = vpop.f32.mrf.mxu0  ;;  %v2958_v38 = vadd.f32 %v2957_v53, %v2869_v3  ;;  %v6981_v53 = vld [vmem:[%s13608_s3 + $0x124] sm:$0xf] }
 0x377   : > { %v6564_v3 = vor.u32 %v6981_v53, %v6561_v14  ;;  %3412 = vmatpush.bf16.msra.mxu0 %v7018_v56 }
 0x378   : > { %6716 = vmatmul.msk.bf16.gmra.mxu2 %vm14729_vm4, %v14054_v31  ;;  %6748 = vmatmul.msk.bf16.gmra.mxu3 %vm14731_vm5, %v14054_v31  ;;  %v11403_v52 = vadd.f32 %v2958_v38, %v14734_v63  ;;  %v2412_v22 = vpop.f32.mrf.mxu1  ;;  %v6553_v38 = vld [vmem:[%s13608_s3 + $0x10c] sm:$0xf0] }
 0x379   : > { %6784 = vmatmul.msk.bf16.gmra.mxu0 %vm14733_vm12, %v14054_v31  ;;  %3025 = vmatpush.bf16.msra.mxu1 %v6564_v3  ;;  %v11415_v34 = vadd.f32 %v2412_v22, %v10935_v26  ;;  %v6556_v14 = vor.u32 %v6979_v5, %v6553_v38  ;;  %v6977_v3 = vld [vmem:[%s13608_s3 + $0xd4] sm:$0xf]  ;;  %v14736_v22 = vld [vmem:[#allocation25_spill] sm:$0xff] }
 0x37a   : > { %v7016_v5 = vld [vmem:[%s13609_s4 + $0x8] sm:$0xff] }
 0x37b   : > { %v2782_v6 = vpop.f32.mrf.mxu2  ;;  %v2871_v29 = vpop.f32.mrf.mxu3  ;;  %14735 = vst [vmem:[#allocation73_spill] sm:$0xff] %v11415_v34 }
 0x37c   : > { %v2872_v43 = vadd.f32 %v2871_v29, %v2782_v6  ;;  %v7017_v29 = vld [vmem:[%s13609_s4 + $0x10] sm:$0xff]  ;;  %v6545_v6 = vld [vmem:[%s13608_s3 + $0xe4] sm:$0xf0] }
 0x37d   : > { %3026 = vmatpush.bf16.msra.mxu1 %v6556_v14  ;;  %v6548_v26 = vor.u32 %v6977_v3, %v6545_v6  ;;  %3413 = vmatpush.bf16.msra.mxu0 %v7017_v29  ;;  %v6537_v14 = vld [vmem:[%s13608_s3 + $0xbc] sm:$0xf0] }
 0x37e   : > { %v11417_v53 = vpop.f32.mrf.mxu0  ;;  %v2961_v63 = vadd.f32 %v11314_v12, %v2872_v43  ;;  %v6540_v3 = vor.u32 %v6975_v35, %v6537_v14  ;;  %v7015_v6 = vld [vmem:[%s13609_s4] sm:$0xff] }
 0x37f   : > { %v14743_v35 = vld [vmem:[#allocation112_spill] sm:$0xff] }
 0x380   : > { %v11430_v34 = vadd.f32 %v2961_v63, %v14736_v22  ;;  %v2415_v38 = vpop.f32.mrf.mxu1  ;;  %6496 = vmatmul.msk.bf16.gmra.mxu1 %vm14498_vm9, %v14054_v31  ;;  %v14739_v22 = vld [vmem:[#allocation7_spill] sm:$0xff]  ;;  %vm14744_vm5 = vnez %v14743_v35  ;;  %v7013_v14 = vld [vmem:[%s13608_s3 + $0x3a4] sm:$0xf] }
 0x381   : > { %3027 = vmatpush.bf16.msra.mxu1 %v6548_v26  ;;  %v11442_v63 = vadd.f32 %v2415_v38, %v10988_v16  ;;  %3414 = vmatpush.bf16.msra.mxu0 %v7016_v5  ;;  %vm14740_vm7 = vnez %v14739_v22  ;;  %v14741_v16 = vld [vmem:[#allocation106_spill] sm:$0xff]  ;;  %v6997_v5 = vld [vmem:[%s13608_s3 + $0x264] sm:$0xf]  ;;  %v6625_v38 = vld [vmem:[%s13608_s3 + $0x274] sm:$0xf0] }
 0x382   : > { %14737 = vst [vmem:[#allocation65_spill] sm:$0xff] %v11430_v34  ;;  %vm14742_vm12 = vnez %v14741_v16  ;;  %v6689_v35 = vld [vmem:[%s13608_s3 + $0x3b4] sm:$0xf0]  ;;  %v6628_v16 = vor.u32 %v6997_v5, %v6625_v38  ;;  %v6681_v38 = vld [vmem:[%s13608_s3 + $0x38c] sm:$0xf0] }
 0x383   : > { %v2784_v56 = vpop.f32.mrf.mxu2  ;;  %v2873_v12 = vpop.f32.mrf.mxu3  ;;  %14738 = vst [vmem:[#allocation59_spill] sm:$0xff] %v11442_v63  ;;  %v6692_v22 = vor.u32 %v7013_v14, %v6689_v35 }
 0x384   : > { %v2874_v43 = vadd.f32 %v2873_v12, %v2784_v56  ;;  %v14745_v56 = vld [vmem:[#allocation47_spill] sm:$0xff]  ;;  %3114 = vmatpush.bf16.msra.mxu2 %v6628_v16 }
 0x385   : > { %3028 = vmatpush.bf16.msra.mxu1 %v6540_v3  ;;  %3415 = vmatpush.bf16.msra.mxu0 %v7015_v6  ;;  %v6971_v6 = vld [vmem:[%s13608_s3 + $0x5c] sm:$0xf] }
 0x386   : > { %v11444_v29 = vpop.f32.mrf.mxu0  ;;  %v2963_v26 = vadd.f32 %v11334_v13, %v2874_v43  ;;  %v6973_v13 = vld [vmem:[%s13608_s3 + $0x84] sm:$0xf]  ;;  %3203 = vmatpush.bf16.msra.mxu3 %v6692_v22  ;;  %v6617_v22 = vld [vmem:[%s13608_s3 + $0x24c] sm:$0xf0]  ;;  %v7011_v16 = vld [vmem:[%s13608_s3 + $0x37c] sm:$0xf] }
 0x387   : > { %v6532_v43 = vor.u32 %v6973_v13, %v6529_v37  ;;  %v6521_v13 = vld [vmem:[%s13608_s3 + $0x6c] sm:$0xf0]  ;;  %v6995_v37 = vld [vmem:[%s13608_s3 + $0x23c] sm:$0xf] }
 0x388   : > { %6718 = vmatmul.msk.bf16.gmra.mxu2 %vm14740_vm7, %v14054_v31  ;;  %6750 = vmatmul.msk.bf16.gmra.mxu3 %vm14742_vm12, %v14054_v31  ;;  %v11472_v12 = vadd.f32 %v2963_v26, %v14745_v56  ;;  %v2417_v3 = vpop.f32.mrf.mxu1 }
 0x389   : > { %6786 = vmatmul.msk.bf16.gmra.mxu0 %vm14744_vm5, %v14054_v31  ;;  %v11493_v5 = vadd.f32 %v2417_v3, %v11027_v30  ;;  %3029 = vmatpush.bf16.msra.mxu1 %v6532_v43  ;;  %v6620_v30 = vor.u32 %v6995_v37, %v6617_v22  ;;  %v6969_v43 = vld [vmem:[%s13608_s3 + $0x34] sm:$0xf]  ;;  %v6513_v3 = vld [vmem:[%s13608_s3 + $0x44] sm:$0xf0] }
 0x38a   : > { %14746 = vst [vmem:[#allocation64_spill] sm:$0xff] %v11472_v12 }
 0x38b   : > { %v2787_v63 = vpop.f32.mrf.mxu2  ;;  %v2876_v26 = vpop.f32.mrf.mxu3  ;;  %14747 = vst [vmem:[#allocation58_spill] sm:$0xff] %v11493_v5  ;;  %3115 = vmatpush.bf16.msra.mxu2 %v6620_v30  ;;  %v6516_v5 = vor.u32 %v6969_v43, %v6513_v3  ;;  %v6505_v30 = vld [vmem:[%s13608_s3 + $0x1c] sm:$0xf0]  ;;  %v7007_v43 = vld [vmem:[%s13608_s3 + $0x32c] sm:$0xf] }
 0x38c   : > { %v2877_v56 = vadd.f32 %v2876_v26, %v2787_v63  ;;  %v6524_v63 = vor.u32 %v6971_v6, %v6521_v13  ;;  %v6684_v26 = vor.u32 %v7011_v16, %v6681_v38  ;;  %v6993_v6 = vld [vmem:[%s13608_s3 + $0x214] sm:$0xf]  ;;  %v6609_v13 = vld [vmem:[%s13608_s3 + $0x224] sm:$0xf0]  ;;  %v14748_v16 = vld [vmem:[#allocation24_spill] sm:$0xff] }
 0x38d   : > { %v6612_v37 = vor.u32 %v6993_v6, %v6609_v13  ;;  %v6665_v3 = vld [vmem:[%s13608_s3 + $0x33c] sm:$0xf0]  ;;  %v14754_v13 = vld [vmem:[#allocation111_spill] sm:$0xff] }
 0x38e   : > { %v11495_v35 = vpop.f32.mrf.mxu0  ;;  %v2966_v14 = vadd.f32 %v11342_v28, %v2877_v56  ;;  %v7009_v28 = vld [vmem:[%s13608_s3 + $0x354] sm:$0xf]  ;;  %v6673_v56 = vld [vmem:[%s13608_s3 + $0x364] sm:$0xf0]  ;;  %3204 = vmatpush.bf16.msra.mxu3 %v6684_v26  ;;  %3030 = vmatpush.bf16.msra.mxu1 %v6524_v63  ;;  %vm14755_vm12 = vnez %v14754_v13 }
 0x38f   : > { %v6676_v22 = vor.u32 %v7009_v28, %v6673_v56  ;;  %3116 = vmatpush.bf16.msra.mxu2 %v6612_v37  ;;  %v6657_v37 = vld [vmem:[%s13608_s3 + $0x314] sm:$0xf0]  ;;  %v11692_v13 = vld [vmem:[%s7666_s20 + $0x28] sm:$0xff] }
 0x390   : > { %v11526_v38 = vadd.f32 %v2966_v14, %v14748_v16  ;;  %v2420_v40 = vpop.f32.mrf.mxu1  ;;  %v6991_v14 = vld [vmem:[%s13608_s3 + $0x1ec] sm:$0xf]  ;;  %6498 = vmatmul.msk.bf16.gmra.mxu1 %vm14491_vm1, %v14054_v31 }
 0x391   : > { %v11538_v63 = vadd.f32 %v2420_v40, %v11058_v41  ;;  %v6668_v40 = vor.u32 %v7007_v43, %v6665_v3  ;;  %v6987_v43 = vld [vmem:[%s13608_s3 + $0x19c] sm:$0xf] }
 0x392   : > { %3205 = vmatpush.bf16.msra.mxu3 %v6676_v22  ;;  %3031 = vmatpush.bf16.msra.mxu1 %v6516_v5  ;;  %v14752_v5 = vld [vmem:[#allocation108_spill] sm:$0xff] }
 0x393   : > { %v2789_v46 = vpop.f32.mrf.mxu2  ;;  %v2878_v12 = vpop.f32.mrf.mxu3  ;;  %14749 = vst [vmem:[#allocation75_spill] sm:$0xff] %v11538_v63  ;;  %vm14753_vm5 = vnez %v14752_v5  ;;  %v14858_v5 = vld [vmem:[#allocation62_spill] sm:$0xff] }
 0x394   : > { %v2879_v34 = vadd.f32 %v2878_v12, %v2789_v46  ;;  %v6508_v46 = vor.u32 %v6967_v42, %v6505_v30  ;;  %v6601_v12 = vld [vmem:[%s13608_s3 + $0x1fc] sm:$0xf0]  ;;  %v14750_v42 = vld [vmem:[#allocation107_spill] sm:$0xff] }
 0x395   : > { %v6604_v41 = vor.u32 %v6991_v14, %v6601_v12  ;;  %vm14751_vm9 = vnez %v14750_v42 }
 0x396   : > { %v11540_v26 = vpop.f32.mrf.mxu0  ;;  %v2968_v6 = vadd.f32 %v11365_v8, %v2879_v34  ;;  %v6989_v8 = vld [vmem:[%s13608_s3 + $0x1c4] sm:$0xf]  ;;  %3032 = vmatpush.bf16.msra.mxu1 %v6508_v46  ;;  %3206 = vmatpush.bf16.msra.mxu3 %v6668_v40  ;;  %v7003_v46 = vld [vmem:[%s13608_s3 + $0x2dc] sm:$0xf]  ;;  %v6649_v40 = vld [vmem:[%s13608_s3 + $0x2ec] sm:$0xf0] }
 0x397   : > { %v7005_v34 = vld [vmem:[%s13608_s3 + $0x304] sm:$0xf]  ;;  %3117 = vmatpush.bf16.msra.mxu2 %v6604_v41  ;;  %v6596_v56 = vor.u32 %v6989_v8, %v6593_v32  ;;  %v6652_v32 = vor.u32 %v7003_v46, %v6649_v40 }
 0x398   : > { %6720 = vmatmul.msk.bf16.gmra.mxu2 %vm14751_vm9, %v14054_v31  ;;  %6752 = vmatmul.msk.bf16.gmra.mxu3 %vm14753_vm5, %v14054_v31  ;;  %v11574_v28 = vadd.f32 %v2968_v6, %v10926_v50  ;;  %v6660_v16 = vor.u32 %v7005_v34, %v6657_v37  ;;  %v2422_v12 = vpop.f32.mrf.mxu1  ;;  %v6585_v50 = vld [vmem:[%s13608_s3 + $0x1ac] sm:$0xf0]  ;;  %v6985_v34 = vld [vmem:[%s13608_s3 + $0x174] sm:$0xf]  ;;  %v6641_v37 = vld [vmem:[%s13608_s3 + $0x2c4] sm:$0xf0] }
 0x399   : > { %6788 = vmatmul.msk.bf16.gmra.mxu0 %vm14755_vm12, %v14054_v31  ;;  %v11589_v3 = vadd.f32 %v2422_v12, %v11070_v47  ;;  %v6588_v41 = vor.u32 %v6987_v43, %v6585_v50  ;;  %v6577_v47 = vld [vmem:[%s13608_s3 + $0x184] sm:$0xf0] }
 0x39a   : > { %3207 = vmatpush.bf16.msra.mxu3 %v6660_v16  ;;  %v11616_v16 = vld [vmem:[%s7666_s20 + $0x8] sm:$0xff] }
 0x39b   : > { %v2792_v22 = vpop.f32.mrf.mxu2  ;;  %v2881_v30 = vpop.f32.mrf.mxu3  ;;  %14756 = vst [vmem:[#allocation76_spill] sm:$0xff] %v11589_v3  ;;  %3118 = vmatpush.bf16.msra.mxu2 %v6596_v56  ;;  %v7001_v56 = vld [vmem:[%s13608_s3 + $0x2b4] sm:$0xf] }
 0x39c   : > { %v2882_v14 = vadd.f32 %v2881_v30, %v2792_v22  ;;  %v11613_v22 = vld [vmem:[%s7666_s20] sm:$0xff]  ;;  %v6580_v30 = vor.u32 %v6985_v34, %v6577_v47  ;;  %v6644_v12 = vor.u32 %v7001_v56, %v6641_v37 }
 0x39d   : > { %v3324_v40 = vpack.c.bf16 %v11616_v16, %v11613_v22  ;;  %v6633_v56 = vld [vmem:[%s13608_s3 + $0x29c] sm:$0xf0] }
 0x39e   : > { %v11591_v6 = vpop.f32.mrf.mxu0  ;;  %v2971_v8 = vadd.f32 %v11379_v45, %v2882_v14  ;;  %3208 = vmatpush.bf16.msra.mxu3 %v6652_v32 }
 0x39f   : > { %3119 = vmatpush.bf16.msra.mxu2 %v6588_v41  ;;  %v6999_v41 = vld [vmem:[%s13608_s3 + $0x28c] sm:$0xf] }
 0x3a0   : > { %v11610_v45 = vadd.f32 %v2971_v8, %v10985_v33  ;;  %v2425_v46 = vpop.f32.mrf.mxu1  ;;  %v6983_v33 = vld [vmem:[%s13608_s3 + $0x14c] sm:$0xf]  ;;  %v6569_v8 = vld [vmem:[%s13608_s3 + $0x15c] sm:$0xf0]  ;;  %6500 = vmatmul.msk.bf16.gmra.mxu1 %vm14488_vm8, %v14054_v31 }
 0x3a1   : > { %v11630_v32 = vadd.f32 %v2425_v46, %v11088_v49  ;;  %v6572_v47 = vor.u32 %v6983_v33, %v6569_v8  ;;  %v14758_v49 = vld [vmem:[#allocation109_spill] sm:$0xff] }
 0x3a2   : > { %3209 = vmatpush.bf16.msra.mxu3 %v6644_v12  ;;  %vm14759_vm1 = vnez %v14758_v49 }
 0x3a3   : > { %v2794_v14 = vpop.f32.mrf.mxu2  ;;  %v2883_v43 = vpop.f32.mrf.mxu3  ;;  %14757 = vst [vmem:[#allocation8_spill] sm:$0xff] %v11630_v32  ;;  %3120 = vmatpush.bf16.msra.mxu2 %v6580_v30  ;;  %v14760_v30 = vld [vmem:[#allocation110_spill] sm:$0xff]  ;;  %v11807_v32 = vld [vmem:[%s7666_s20 + $0x60] sm:$0xff] }
 0x3a4   : > { %v2884_v50 = vadd.f32 %v2883_v43, %v2794_v14  ;;  %v6636_v14 = vor.u32 %v6999_v41, %v6633_v56  ;;  %vm14761_vm12 = vnez %v14760_v30  ;;  %v11658_v56 = vld [vmem:[%s7666_s20 + $0x10] sm:$0xff] }
 0x3a5   : > { %v11840_v30 = vld [vmem:[%s7666_s20 + $0x70] sm:$0xff] }
 0x3a6   : > { %v11632_v34 = vpop.f32.mrf.mxu0  ;;  %v2973_v37 = vadd.f32 %v11417_v53, %v2884_v50  ;;  %3210 = vmatpush.bf16.msra.mxu3 %v6636_v14  ;;  %14827 = vst [vmem:[#allocation57_spill] sm:$0xff] %v11840_v30 }
 0x3a7   : > { %3121 = vmatpush.bf16.msra.mxu2 %v6572_v47 }
 0x3a8   : > { %6722 = vmatmul.msk.bf16.gmra.mxu2 %vm14759_vm1, %v14054_v31  ;;  %6754 = vmatmul.msk.bf16.gmra.mxu3 %vm14761_vm12, %v14054_v31  ;;  %v11648_v43 = vadd.f32 %v2973_v37, %v11018_v1  ;;  %v2427_v50 = vpop.f32.mrf.mxu1 }
 0x3a9   : > { %3416 = vmatmul.bf16.vlgmr.msra.gmra.mxu0 %v3324_v40  ;;  %v11651_v46 = vadd.f32 %v2427_v50, %v11100_v48  ;;  %v11661_v40 = vld [vmem:[%s7666_s20 + $0x18] sm:$0xff] }
 0x3ab   : > { %v2797_v53 = vpop.f32.mrf.mxu2  ;;  %v2886_v12 = vpop.f32.mrf.mxu3  ;;  %14762 = vst [vmem:[#allocation71_spill] sm:$0xff] %v11651_v46  ;;  %v11778_v46 = vld [vmem:[%s7666_s20 + $0x50] sm:$0xff] }
 0x3ac   : > { %v2887_v55 = vadd.f32 %v2886_v12, %v2797_v53  ;;  %v3325_v53 = vpack.c.bf16 %v11661_v40, %v11658_v56 }
 0x3ae   : > { %v2987_v33 = vpop.f32.mrf.mxu0  ;;  %v2976_v8 = vadd.f32 %v11444_v29, %v2887_v55  ;;  %v14764_v29 = vld [vmem:[#allocation6_spill] sm:$0xff]  ;;  %v14766_v55 = vld [vmem:[#allocation9_spill] sm:$0xff] }
 0x3af   : > { %vm14765_vm8 = vnez %v14764_v29  ;;  %vm14767_vm12 = vnez %v14766_v55 }
 0x3b0   : > { %v11655_v41 = vadd.f32 %v2976_v8, %v11055_v60  ;;  %v2430_v14 = vpop.f32.mrf.mxu1  ;;  %6790 = vmatmul.msk.bf16.vlgmr.msra.gmra.mxu1 %vm14602_vm3, %v14054_v31 }
 0x3b1   : > { %v11666_v48 = vadd.f32 %v2430_v14, %v11117_v58 }
 0x3b3   : > { %v2799_v1 = vpop.f32.mrf.mxu2  ;;  %v2888_v47 = vpop.f32.mrf.mxu3  ;;  %14763 = vst [vmem:[#allocation70_spill] sm:$0xff] %v11666_v48  ;;  %v11689_v48 = vld [vmem:[%s7666_s20 + $0x20] sm:$0xff] }
 0x3b4   : > { %v2889_v37 = vadd.f32 %v2888_v47, %v2799_v1 }
 0x3b6   : > { %v2990_v12 = vpop.f32.mrf.mxu0  ;;  %v2978_v60 = vadd.f32 %v11495_v35, %v2889_v37 }
 0x3b8   : > { %6724 = vmatmul.msk.bf16.gmra.mxu2 %vm14765_vm8, %v14054_v31  ;;  %6756 = vmatmul.msk.bf16.gmra.mxu3 %vm14767_vm12, %v14054_v31  ;;  %v11679_v58 = vadd.f32 %v2978_v60, %v11067_v18  ;;  %v2432_v35 = vpop.f32.mrf.mxu1 }
 0x3b9   : > { %3421 = vmatmul.bf16.gmra.mxu0 %v3325_v53  ;;  %v11682_v47 = vadd.f32 %v2432_v35, %v11128_v2 }
 0x3bb   : > { %v2802_v50 = vpop.f32.mrf.mxu2  ;;  %v2891_v8 = vpop.f32.mrf.mxu3  ;;  %14768 = vst [vmem:[#allocation68_spill] sm:$0xff] %v11682_v47 }
 0x3bc   : > { %v2892_v1 = vadd.f32 %v2891_v8, %v2802_v50  ;;  %v3326_v50 = vpack.c.bf16 %v11692_v13, %v11689_v48 }
 0x3be   : > { %v2992_v37 = vpop.f32.mrf.mxu0  ;;  %v2981_v14 = vadd.f32 %v11540_v26, %v2892_v1 }
 0x3c0   : > { %v11686_v27 = vadd.f32 %v2981_v14, %v11085_v61  ;;  %v2435_v55 = vpop.f32.mrf.mxu1  ;;  %6792 = vmatmul.msk.bf16.gmra.mxu1 %vm14617_vm10, %v14054_v31 }
 0x3c1   : > { %v11697_v2 = vadd.f32 %v2435_v55, %v11145_v54  ;;  %v14771_v54 = vld [vmem:[#allocation18_spill] sm:$0xff] }
 0x3c2   : > { %14769 = vst [vmem:[#allocation69_spill] sm:$0xff] %v11686_v27 }
 0x3c3   : > { %v2804_v53 = vpop.f32.mrf.mxu2  ;;  %v2893_v18 = vpop.f32.mrf.mxu3  ;;  %14770 = vst [vmem:[#allocation4_spill] sm:$0xff] %v11697_v2  ;;  %v11749_v2 = vld [vmem:[%s7666_s20 + $0x40] sm:$0xff] }
 0x3c4   : > { %v2894_v60 = vadd.f32 %v2893_v18, %v2804_v53  ;;  %v11720_v18 = vld [vmem:[%s7666_s20 + $0x30] sm:$0xff] }
 0x3c6   : > { %v2995_v8 = vpop.f32.mrf.mxu0  ;;  %v2983_v61 = vadd.f32 %v11591_v6, %v2894_v60 }
 0x3c8   : > { %6822 = vmatmul.msk.bf16.vlgmr.msra.gmra.mxu2 %vm14604_vm14, %v14054_v31  ;;  %6854 = vmatmul.msk.bf16.vlgmr.msra.gmra.mxu3 %vm14583_vm15, %v14054_v31  ;;  %v11710_v26 = vadd.f32 %v2983_v61, %v14771_v54  ;;  %v2437_v6 = vpop.f32.mrf.mxu1 }
 0x3c9   : > { %3426 = vmatmul.bf16.gmra.mxu0 %v3326_v50  ;;  %v11713_v14 = vadd.f32 %v2437_v6, %v11150_v36  ;;  %v14779_v6 = vld [vmem:[#allocation104_spill] sm:$0xff] }
 0x3ca   : > { %14772 = vst [vmem:[#allocation74_spill] sm:$0xff] %v11710_v26  ;;  %vm14780_vm3 = vnez %v14779_v6  ;;  %v11752_v6 = vld [vmem:[%s7666_s20 + $0x48] sm:$0xff] }
 0x3cb   : > { %v2807_v55 = vpop.f32.mrf.mxu2  ;;  %v2896_v1 = vpop.f32.mrf.mxu3  ;;  %14773 = vst [vmem:[#allocation5_spill] sm:$0xff] %v11713_v14  ;;  %v14784_v14 = vld [vmem:[#allocation17_spill] sm:$0xff] }
 0x3cc   : > { %v2897_v35 = vadd.f32 %v2896_v1, %v2807_v55  ;;  %v3327_v55 = vpack.c.bf16 %v11723_v17, %v11720_v18 }
 0x3ce   : > { %v2997_v25 = vpop.f32.mrf.mxu0  ;;  %v2986_v53 = vadd.f32 %v11632_v34, %v2897_v35  ;;  %v14777_v35 = vld [vmem:[#allocation77_spill] sm:$0xff] }
 0x3cf   : > { %vm14778_vm15 = vnez %v14777_v35 }
 0x3d0   : > { %v11717_v59 = vadd.f32 %v2986_v53, %v11115_v19  ;;  %v2440_v54 = vpop.f32.mrf.mxu1  ;;  %6794 = vmatmul.msk.bf16.gmra.mxu1 %vm14626_vm2, %v14054_v31  ;;  %v14781_v53 = vld [vmem:[#allocation22_spill] sm:$0xff] }
 0x3d1   : > { %v11728_v36 = vadd.f32 %v2440_v54, %v11167_v4 }
 0x3d2   : > { %14774 = vst [vmem:[#allocation10_spill] sm:$0xff] %v11717_v59 }
 0x3d3   : > { %v2809_v60 = vpop.f32.mrf.mxu2  ;;  %v2898_v50 = vpop.f32.mrf.mxu3  ;;  %14775 = vst [vmem:[#allocation16_spill] sm:$0xff] %v11728_v36 }
 0x3d4   : > { %v2899_v61 = vadd.f32 %v2898_v50, %v2809_v60 }
 0x3d6   : > { %v3000_v1 = vpop.f32.mrf.mxu0  ;;  %v2988_v34 = vadd.f32 %v2987_v33, %v2899_v61 }
 0x3d8   : > { %6824 = vmatmul.msk.bf16.gmra.mxu2 %vm14778_vm15, %v14054_v31  ;;  %6856 = vmatmul.msk.bf16.gmra.mxu3 %vm14780_vm3, %v14054_v31  ;;  %v11740_v4 = vadd.f32 %v2988_v34, %v14781_v53  ;;  %v2442_v33 = vpop.f32.mrf.mxu1 }
 0x3d9   : > { %3431 = vmatmul.bf16.gmra.mxu0 %v3327_v55  ;;  %v11743_v61 = vadd.f32 %v2442_v33, %v11172_v11 }
 0x3da   : > { %14782 = vst [vmem:[#allocation12_spill] sm:$0xff] %v11740_v4 }
 0x3db   : > { %v2812_v60 = vpop.f32.mrf.mxu2  ;;  %v2901_v50 = vpop.f32.mrf.mxu3  ;;  %14783 = vst [vmem:[#allocation11_spill] sm:$0xff] %v11743_v61 }
 0x3dc   : > { %v2902_v54 = vadd.f32 %v2901_v50, %v2812_v60  ;;  %v3328_v60 = vpack.c.bf16 %v11752_v6, %v11749_v2 }
 0x3de   : > { %v3002_v19 = vpop.f32.mrf.mxu0  ;;  %v2991_v36 = vadd.f32 %v2990_v12, %v2902_v54  ;;  %v14793_v54 = vld [vmem:[#allocation31_spill] sm:$0xff] }
 0x3e0   : > { %v11746_v35 = vadd.f32 %v2991_v36, %v14784_v14  ;;  %v2445_v53 = vpop.f32.mrf.mxu1  ;;  %v14787_v14 = vld [vmem:[#allocation81_spill] sm:$0xff]  ;;  %v14789_v36 = vld [vmem:[#allocation79_spill] sm:$0xff] }
 0x3e1   : > { %v11757_v50 = vadd.f32 %v2445_v53, %v11189_v15  ;;  %vm14788_vm14 = vnez %v14787_v14  ;;  %vm14790_vm10 = vnez %v14789_v36 }
 0x3e2   : > { %14785 = vst [vmem:[#allocation20_spill] sm:$0xff] %v11746_v35  ;;  %6796 = vmatmul.msk.bf16.gmra.mxu1 %vm14788_vm14, %v14054_v31  ;;  %v14797_v35 = vld [vmem:[#allocation46_spill] sm:$0xff] }
 0x3e3   : > { %v2814_v55 = vpop.f32.mrf.mxu2  ;;  %v2903_v47 = vpop.f32.mrf.mxu3  ;;  %14786 = vst [vmem:[#allocation33_spill] sm:$0xff] %v11757_v50 }
 0x3e4   : > { %v2904_v34 = vadd.f32 %v2903_v47, %v2814_v55  ;;  %v14791_v47 = vld [vmem:[#allocation102_spill] sm:$0xff] }
 0x3e5   : > { %vm14792_vm2 = vnez %v14791_v47  ;;  %v11781_v47 = vld [vmem:[%s7666_s20 + $0x58] sm:$0xff] }
 0x3e6   : > { %v3005_v11 = vpop.f32.mrf.mxu0  ;;  %v2993_v12 = vadd.f32 %v2992_v37, %v2904_v34  ;;  %v14795_v34 = vld [vmem:[#allocation51_spill] sm:$0xff] }
 0x3e8   : > { %6826 = vmatmul.msk.bf16.gmra.mxu2 %vm14790_vm10, %v14054_v31  ;;  %6858 = vmatmul.msk.bf16.gmra.mxu3 %vm14792_vm2, %v14054_v31  ;;  %v11769_v15 = vadd.f32 %v2993_v12, %v14793_v54  ;;  %v2447_v37 = vpop.f32.mrf.mxu1 }
 0x3e9   : > { %3436 = vmatmul.bf16.gmra.mxu0 %v3328_v60  ;;  %v11772_v50 = vadd.f32 %v2447_v37, %v14795_v34 }
 0x3ea   : > { %14794 = vst [vmem:[#allocation37_spill] sm:$0xff] %v11769_v15 }
 0x3eb   : > { %v2817_v33 = vpop.f32.mrf.mxu2  ;;  %v2906_v55 = vpop.f32.mrf.mxu3  ;;  %14796 = vst [vmem:[#allocation34_spill] sm:$0xff] %v11772_v50 }
 0x3ec   : > { %v2907_v53 = vadd.f32 %v2906_v55, %v2817_v33  ;;  %v3329_v33 = vpack.c.bf16 %v11781_v47, %v11778_v46  ;;  %v14799_v55 = vld [vmem:[#allocation54_spill] sm:$0xff] }
 0x3ee   : > { %v3007_v14 = vpop.f32.mrf.mxu0  ;;  %v2996_v61 = vadd.f32 %v2995_v8, %v2907_v53  ;;  %v14807_v53 = vld [vmem:[#allocation41_spill] sm:$0xff] }
 0x3f0   : > { %v11775_v36 = vadd.f32 %v2996_v61, %v14797_v35  ;;  %v2450_v54 = vpop.f32.mrf.mxu1  ;;  %v14801_v61 = vld [vmem:[#allocation80_spill] sm:$0xff]  ;;  %v14803_v35 = vld [vmem:[#allocation82_spill] sm:$0xff] }
 0x3f1   : > { %v11786_v15 = vadd.f32 %v2450_v54, %v14799_v55  ;;  %vm14802_vm15 = vnez %v14801_v61  ;;  %vm14804_vm3 = vnez %v14803_v35 }
 0x3f2   : > { %14798 = vst [vmem:[#allocation40_spill] sm:$0xff] %v11775_v36  ;;  %6798 = vmatmul.msk.bf16.gmra.mxu1 %vm14802_vm15, %v14054_v31  ;;  %v14811_v36 = vld [vmem:[#allocation45_spill] sm:$0xff] }
 0x3f3   : > { %v2819_v60 = vpop.f32.mrf.mxu2  ;;  %v2908_v4 = vpop.f32.mrf.mxu3  ;;  %14800 = vst [vmem:[#allocation30_spill] sm:$0xff] %v11786_v15 }
 0x3f4   : > { %v2909_v12 = vadd.f32 %v2908_v4, %v2819_v60  ;;  %v14805_v4 = vld [vmem:[#allocation99_spill] sm:$0xff] }
 0x3f5   : > { %vm14806_vm14 = vnez %v14805_v4  ;;  %v11810_v4 = vld [vmem:[%s7666_s20 + $0x68] sm:$0xff] }
 0x3f6   : > { %v3010_v37 = vpop.f32.mrf.mxu0  ;;  %v2998_v8 = vadd.f32 %v2997_v25, %v2909_v12  ;;  %v14809_v12 = vld [vmem:[#allocation53_spill] sm:$0xff] }
 0x3f8   : > { %6828 = vmatmul.msk.bf16.gmra.mxu2 %vm14804_vm3, %v14054_v31  ;;  %6860 = vmatmul.msk.bf16.gmra.mxu3 %vm14806_vm14, %v14054_v31  ;;  %v11798_v34 = vadd.f32 %v2998_v8, %v14807_v53  ;;  %v2452_v25 = vpop.f32.mrf.mxu1 }
 0x3f9   : > { %3441 = vmatmul.bf16.gmra.mxu0 %v3329_v33  ;;  %v11801_v15 = vadd.f32 %v2452_v25, %v14809_v12 }
 0x3fa   : > { %14808 = vst [vmem:[#allocation86_spill] sm:$0xff] %v11798_v34 }
 0x3fb   : > { %v2822_v60 = vpop.f32.mrf.mxu2  ;;  %v2911_v54 = vpop.f32.mrf.mxu3  ;;  %14810 = vst [vmem:[#allocation32_spill] sm:$0xff] %v11801_v15 }
 0x3fc   : > { %v2912_v55 = vadd.f32 %v2911_v54, %v2822_v60  ;;  %v3330_v60 = vpack.c.bf16 %v11810_v4, %v11807_v32  ;;  %v14813_v54 = vld [vmem:[#allocation61_spill] sm:$0xff] }
 0x3fe   : > { %v3012_v61 = vpop.f32.mrf.mxu0  ;;  %v3001_v50 = vadd.f32 %v3000_v1, %v2912_v55  ;;  %v14821_v55 = vld [vmem:[#allocation38_spill] sm:$0xff] }
 0x400   : > { %v11804_v35 = vadd.f32 %v3001_v50, %v14811_v36  ;;  %v2455_v53 = vpop.f32.mrf.mxu1  ;;  %v14815_v50 = vld [vmem:[#allocation84_spill] sm:$0xff]  ;;  %v14817_v36 = vld [vmem:[#allocation83_spill] sm:$0xff] }
 0x401   : > { %v11815_v34 = vadd.f32 %v2455_v53, %v14813_v54  ;;  %vm14816_vm10 = vnez %v14815_v50  ;;  %vm14818_vm2 = vnez %v14817_v36  ;;  %v14825_v36 = vld [vmem:[#allocation56_spill] sm:$0xff] }
 0x402   : > { %14812 = vst [vmem:[#allocation36_spill] sm:$0xff] %v11804_v35  ;;  %6800 = vmatmul.msk.bf16.gmra.mxu1 %vm14816_vm10, %v14054_v31 }
 0x403   : > { %v2824_v33 = vpop.f32.mrf.mxu2  ;;  %v2913_v59 = vpop.f32.mrf.mxu3  ;;  %14814 = vst [vmem:[#allocation93_spill] sm:$0xff] %v11815_v34 }
 0x404   : > { %v2914_v8 = vadd.f32 %v2913_v59, %v2824_v33  ;;  %v14819_v59 = vld [vmem:[#allocation96_spill] sm:$0xff] }
 0x405   : > { %vm14820_vm15 = vnez %v14819_v59  ;;  %v11843_v59 = vld [vmem:[%s7666_s20 + $0x78] sm:$0xff] }
 0x406   : > { %v11817_v25 = vpop.f32.mrf.mxu0  ;;  %v3003_v1 = vadd.f32 %v3002_v19, %v2914_v8  ;;  %v14823_v8 = vld [vmem:[#allocation60_spill] sm:$0xff]  ;;  %14828 = vst [vmem:[#allocation63_spill] sm:$0xff] %v11843_v59 }
 0x408   : > { %6830 = vmatmul.msk.bf16.gmra.mxu2 %vm14818_vm2, %v14054_v31  ;;  %6862 = vmatmul.msk.bf16.gmra.mxu3 %vm14820_vm15, %v14054_v31  ;;  %v11829_v12 = vadd.f32 %v3003_v1, %v14821_v55  ;;  %v2457_v19 = vpop.f32.mrf.mxu1 }
 0x409   : > { %3446 = vmatmul.bf16.gmra.mxu0 %v3330_v60  ;;  %v11832_v34 = vadd.f32 %v2457_v19, %v14823_v8  ;;  %v14834_v8 = vld [vmem:[#allocation92_spill] sm:$0xff] }
 0x40a   : > { %14822 = vst [vmem:[#allocation35_spill] sm:$0xff] %v11829_v12  ;;  %vm14835_vm10 = vnez %v14834_v8  ;;  %v11876_v8 = vld [vmem:[%s7666_s20 + $0x88] sm:$0xff] }
 0x40b   : > { %v2827_v33 = vpop.f32.mrf.mxu2  ;;  %v2916_v53 = vpop.f32.mrf.mxu3  ;;  %14824 = vst [vmem:[#allocation98_spill] sm:$0xff] %v11832_v34 }
 0x40c   : > { %v2917_v54 = vadd.f32 %v2916_v53, %v2827_v33  ;;  %v3331_v33 = vpack.c.bf16 %v11843_v59, %v11840_v30  ;;  %14842 = vst [vmem:[#allocation47_spill] sm:$0xff] %v11876_v8 }
 0x40e   : > { %v11834_v50 = vpop.f32.mrf.mxu0  ;;  %v3006_v15 = vadd.f32 %v3005_v11, %v2917_v54  ;;  %v14832_v54 = vld [vmem:[#allocation85_spill] sm:$0xff] }
 0x40f   : > { %vm14833_vm14 = vnez %v14832_v54  ;;  %v14839_v54 = vld [vmem:[#allocation28_spill] sm:$0xff] }
 0x410   : > { %v11837_v35 = vadd.f32 %v3006_v15, %v14825_v36  ;;  %v2460_v12 = vpop.f32.mrf.mxu1  ;;  %v14830_v15 = vld [vmem:[#allocation89_spill] sm:$0xff] }
 0x411   : > { %v11848_v53 = vadd.f32 %v2460_v12, %v11255_v24  ;;  %vm14831_vm3 = vnez %v14830_v15  ;;  %v14836_v24 = vld [vmem:[#allocation52_spill] sm:$0xff] }
 0x412   : > { %14826 = vst [vmem:[#allocation23_spill] sm:$0xff] %v11837_v35  ;;  %6802 = vmatmul.msk.bf16.gmra.mxu1 %vm14831_vm3, %v14054_v31  ;;  %v11873_v35 = vld [vmem:[%s7666_s20 + $0x80] sm:$0xff] }
 0x413   : > { %v2829_v60 = vpop.f32.mrf.mxu2  ;;  %v2918_v1 = vpop.f32.mrf.mxu3  ;;  %14829 = vst [vmem:[#allocation44_spill] sm:$0xff] %v11848_v53 }
 0x414   : > { %v2919_v55 = vadd.f32 %v2918_v1, %v2829_v60  ;;  %14841 = vst [vmem:[#allocation25_spill] sm:$0xff] %v11873_v35 }
 0x416   : > { %v11850_v19 = vpop.f32.mrf.mxu0  ;;  %v3008_v11 = vadd.f32 %v3007_v14, %v2919_v55 }
 0x418   : > { %6832 = vmatmul.msk.bf16.gmra.mxu2 %vm14833_vm14, %v14054_v31  ;;  %6864 = vmatmul.msk.bf16.gmra.mxu3 %vm14835_vm10, %v14054_v31  ;;  %v11862_v12 = vadd.f32 %v3008_v11, %v14836_v24  ;;  %v2462_v14 = vpop.f32.mrf.mxu1  ;;  %v11881_v11 = vld [vmem:[%s13610_s5] ss:$0 sm:$0xff] }
 0x419   : > { %3451 = vmatmul.bf16.gmra.mxu0 %v3331_v33  ;;  %v11865_v55 = vadd.f32 %v2462_v14, %v11260_v0 }
 0x41a   : > { %14837 = vst [vmem:[#allocation55_spill] sm:$0xff] %v11862_v12  ;;  %v11939_v12 = vld [vmem:[%s7666_s20 + $0xf0] sm:$0xff] }
 0x41b   : > { %v2832_v36 = vpop.f32.mrf.mxu2  ;;  %v2921_v60 = vpop.f32.mrf.mxu3  ;;  %14838 = vst [vmem:[#allocation29_spill] sm:$0xff] %v11865_v55  ;;  %v11933_v55 = vld [vmem:[%s7666_s20 + $0xe0] sm:$0xff] }
 0x41c   : > { %v2922_v1 = vadd.f32 %v2921_v60, %v2832_v36  ;;  %14853 = vst [vmem:[#allocation104_spill] sm:$0xff] %v11933_v55 }
 0x41d   : > { %14855 = vst [vmem:[#allocation17_spill] sm:$0xff] %v11939_v12 }
 0x41e   : > { %v11867_v15 = vpop.f32.mrf.mxu0  ;;  %v3011_v53 = vadd.f32 %v3010_v37, %v2922_v1 }
 0x420   : > { %v11870_v34 = vadd.f32 %v3011_v53, %v14839_v54  ;;  %v2465_v37 = vpop.f32.mrf.mxu1  ;;  %v3332_v53 = vpack.c.bf16 %v11876_v8, %v11873_v35  ;;  %v14844_v54 = vld [vmem:[#allocation90_spill] sm:$0xff]  ;;  %v11942_v8 = vld [vmem:[%s7666_s20 + $0xf8] sm:$0xff] }
 0x421   : > { %v11886_v36 = vadd.f32 %v2465_v37, %v11280_v51  ;;  %vm14845_vm2 = vnez %v14844_v54  ;;  %v14846_v51 = vld [vmem:[#allocation88_spill] sm:$0xff]  ;;  %14856 = vst [vmem:[#allocation81_spill] sm:$0xff] %v11942_v8 }
 0x422   : > { %14840 = vst [vmem:[#allocation50_spill] sm:$0xff] %v11870_v34  ;;  %6804 = vmatmul.msk.bf16.gmra.mxu1 %vm14687_vm13, %v14054_v31  ;;  %vm14847_vm15 = vnez %v14846_v51  ;;  %v11909_v37 = vld [vmem:[%s7666_s20 + $0xa0] sm:$0xff]  ;;  %v11936_v34 = vld [vmem:[%s7666_s20 + $0xe8] sm:$0xff] }
 0x423   : > { %v2834_v33 = vpop.f32.mrf.mxu2  ;;  %v2923_v0 = vpop.f32.mrf.mxu3  ;;  %14843 = vst [vmem:[#allocation24_spill] sm:$0xff] %v11886_v36  ;;  %v11921_v54 = vld [vmem:[%s7666_s20 + $0xc0] sm:$0xff]  ;;  %v11930_v36 = vld [vmem:[%s7666_s20 + $0xd8] sm:$0xff] }
 0x424   : > { %v2924_v24 = vadd.f32 %v2923_v0, %v2834_v33  ;;  %14852 = vst [vmem:[#allocation77_spill] sm:$0xff] %v11930_v36 }
 0x425   : > { %14854 = vst [vmem:[#allocation22_spill] sm:$0xff] %v11936_v34 }
 0x426   : > { %v3417_v60 = vpop.f32.mrf.mxu0  ;;  %v3013_v1 = vadd.f32 %v3012_v61, %v2924_v24  ;;  %v14848_v61 = vld [vmem:[#allocation67_spill] sm:$0xff] }
 0x427   : > { %v3418_v14 = vadd.f32 %v11881_v11, %v3417_v60  ;;  %v11906_v24 = vld [vmem:[%s7666_s20 + $0x98] sm:$0xff]  ;;  %v11912_v60 = vld [vmem:[%s7666_s20 + $0xa8] sm:$0xff] }
 0x428   : > { %6834 = vmatmul.msk.bf16.gmra.mxu2 %vm14845_vm2, %v14054_v31  ;;  %6866 = vmatmul.msk.bf16.gmra.mxu3 %vm14847_vm15, %v14054_v31  ;;  %v11900_v0 = vadd.f32 %v3013_v1, %v14848_v61  ;;  %v11927_v61 = vld [vmem:[%s7666_s20 + $0xd0] sm:$0xff]  ;;  %v2467_v59 = vpop.f32.mrf.mxu1 }
 0x429   : > { %v3529_v33 = vadd.f32 %v11309_v39, %v3418_v14  ;;  %3456 = vmatmul.bf16.gmra.mxu0 %v3332_v53  ;;  %v11915_v39 = vld [vmem:[%s7666_s20 + $0xb0] sm:$0xff]  ;;  %v11918_v14 = vld [vmem:[%s7666_s20 + $0xb8] sm:$0xff]  ;;  %v11924_v53 = vld [vmem:[%s7666_s20 + $0xc8] sm:$0xff]  ;;  %14851 = vst [vmem:[#allocation78_spill] sm:$0xff] %v11927_v61 }
 0x42a   : > { %14849 = vst [vmem:[#allocation107_spill] sm:$0xff] %v11900_v0 }
 0x42b   : > { %14850 = vst [vmem:[#allocation18_spill] sm:$0xff] %v11924_v53  ;;  %v3561_v1 = vmax.f32 %v3529_v33, 0.0  ;;  %v2837_v51 = vpop.f32.mrf.mxu2  ;;  %v2926_v0 = vpop.f32.mrf.mxu3  ;;  %v11946_v33 = vadd.f32 %v2467_v59, %v11288_v20 }
 0x42c   : > { %v2927_v29 = vadd.f32 %v2926_v0, %v2837_v51 }
 0x42d   : > { %v3593_v35 = vadd.f32 %v3561_v1, %v11613_v22  ;;  %14857 = vst [vmem:[#allocation79_spill] sm:$0xff] %v11946_v33 }
 0x42e   : > { %v3419_v3 = vpop.f32.mrf.mxu0  ;;  %v3016_v30 = vadd.f32 %v11817_v25, %v2927_v29  ;;  %v3333_v29 = vpack.c.bf16 %v11906_v24, %v11903_v10 }
 0x42f   : > { %v3657_v26 = vmul.f32 0.5, %v3593_v35  ;;  %v3420_v63 = vadd.f32 %v11881_v11, %v3419_v3  ;;  %3625 = vst [vmem:[%s7671_s14] sm:$0xff] %v3593_v35 }
 0x430   : > { %v11953_v49 = vadd.f32 %v3016_v30, %v14858_v5  ;;  %v3034_v51 = vpop.f32.mrf.mxu1  ;;  %v14862_v30 = vld [vmem:[#allocation87_spill] sm:$0xff] }
 0x431   : > { %7448 = vtanh.f32 %v3657_v26  ;;  %v3530_v27 = vadd.f32 %v11329_v21, %v3420_v63  ;;  %v14860_v63 = vld [vmem:[#allocation91_spill] sm:$0xff]  ;;  %vm14863_vm3 = vnez %v14862_v30 }
 0x432   : > { %14859 = vst [vmem:[#allocation102_spill] sm:$0xff] %v11953_v49  ;;  %6806 = vmatmul.msk.bf16.gmra.mxu1 %vm14698_vm6, %v14054_v31  ;;  %vm14861_vm13 = vnez %v14860_v63 }
 0x433   : > { %v3562_v22 = vmax.f32 %v3530_v27, 0.0  ;;  %v2839_v0 = vpop.f32.mrf.mxu2  ;;  %v2928_v1 = vpop.f32.mrf.mxu3  ;;  %v14864_v27 = vld [vmem:[#allocation49_spill] sm:$0xff] }
 0x434   : > { %v2929_v59 = vadd.f32 %v2928_v1, %v2839_v0 }
 0x435   : > { %v3594_v20 = vadd.f32 %v3562_v22, %v11616_v16 }
 0x436   : > { %v3422_v25 = vpop.f32.mrf.mxu0  ;;  %v3018_v26 = vadd.f32 %v11834_v50, %v2929_v59 }
 0x437   : > { %v7449_v3 = vpop.eup %7448  ;;  %v3658_v35 = vmul.f32 0.5, %v3594_v20  ;;  %v3423_v21 = vadd.f32 %v11881_v11, %v3422_v25  ;;  %3626 = vst [vmem:[%s7671_s14 + $0x8] sm:$0xff] %v3594_v20  ;;  %v14866_v20 = vld [vmem:[#allocation72_spill] sm:$0xff] }
 0x438   : > { %6836 = vmatmul.msk.bf16.gmra.mxu2 %vm14861_vm13, %v14054_v31  ;;  %v3721_v5 = vmul.f32 0.5, %v7449_v3  ;;  %6868 = vmatmul.msk.bf16.gmra.mxu3 %vm14863_vm3, %v14054_v31  ;;  %v11972_v50 = vadd.f32 %v3018_v26, %v14864_v27 }
 0x439   : > { %7450 = vtanh.f32 %v3658_v35  ;;  %v3531_v16 = vadd.f32 %v11337_v9, %v3423_v21  ;;  %3461 = vmatmul.bf16.gmra.mxu0 %v3333_v29  ;;  %v3036_v9 = vpop.f32.mrf.mxu1 }
 0x43a   : > { %14865 = vst [vmem:[#allocation31_spill] sm:$0xff] %v11972_v50  ;;  %v3753_v22 = vadd.f32 0.5, %v3721_v5 }
 0x43b   : > { %v3563_v23 = vmax.f32 %v3531_v16, 0.0  ;;  %v2842_v0 = vpop.f32.mrf.mxu2  ;;  %v2931_v1 = vpop.f32.mrf.mxu3 }
 0x43c   : > { %v11975_v59 = vmul.f32 %v3753_v22, %v14866_v20  ;;  %v2932_v3 = vadd.f32 %v2931_v1, %v2842_v0  ;;  %v14868_v20 = vld [vmem:[#allocation27_spill] sm:$0xff] }
 0x43d   : > { %v3595_v25 = vadd.f32 %v3563_v23, %v11658_v56 }
 0x43e   : > { %v3424_v35 = vpop.f32.mrf.mxu0  ;;  %v3021_v30 = vadd.f32 %v11850_v19, %v2932_v3 }
 0x43f   : > { %v7451_v21 = vpop.eup %7450  ;;  %v3659_v63 = vmul.f32 0.5, %v3595_v25  ;;  %v3425_v29 = vadd.f32 %v11881_v11, %v3424_v35  ;;  %3627 = vst [vmem:[%s7671_s14 + $0x10] sm:$0xff] %v3595_v25 }
 0x440   : > { %v3722_v26 = vmul.f32 0.5, %v7451_v21  ;;  %v11983_v16 = vadd.f32 %v3021_v30, %v11278_v44 }
 0x441   : > { %7452 = vtanh.f32 %v3659_v63  ;;  %v3532_v5 = vadd.f32 %v11360_v57, %v3425_v29  ;;  %v11991_v3 = vpop.f32.mrf.mxu1  ;;  %v3334_v57 = vpack.c.bf16 %v11912_v60, %v11909_v37 }
 0x442   : > { %14867 = vst [vmem:[#allocation51_spill] sm:$0xff] %v11983_v16  ;;  %v3754_v27 = vadd.f32 0.5, %v3722_v26  ;;  %6808 = vmatmul.msk.bf16.gmra.mxu1 %vm14707_vm11, %v14054_v31 }
 0x443   : > { %v3564_v56 = vmax.f32 %v3532_v5, 0.0  ;;  %v2844_v23 = vpop.f32.mrf.mxu2  ;;  %v2933_v0 = vpop.f32.mrf.mxu3 }
 0x444   : > { %v11985_v1 = vpack.c.bf16 %v3754_v27, %v3753_v22  ;;  %v11988_v33 = vmul.f32 %v3754_v27, %v14868_v20  ;;  %v2934_v25 = vadd.f32 %v2933_v0, %v2844_v23 }
 0x445   : > { %v3596_v19 = vadd.f32 %v3564_v56, %v11661_v40  ;;  %v14869_v40 = vld [vmem:[#allocation95_spill] sm:$0xff]  ;;  %v14871_v56 = vld [vmem:[#allocation94_spill] sm:$0xff] }
 0x446   : > { %v3427_v44 = vpop.f32.mrf.mxu0  ;;  %v3023_v30 = vadd.f32 %v11867_v15, %v2934_v25  ;;  %vm14870_vm6 = vnez %v14869_v40  ;;  %vm14872_vm14 = vnez %v14871_v56  ;;  %v14873_v15 = vld [vmem:[#allocation26_spill] sm:$0xff] }
 0x447   : > { %v7453_v21 = vpop.eup %7452  ;;  %v3660_v63 = vmul.f32 0.5, %v3596_v19  ;;  %v3428_v29 = vadd.f32 %v11881_v11, %v3427_v44  ;;  %3628 = vst [vmem:[%s7671_s14 + $0x18] sm:$0xff] %v3596_v19  ;;  %v14875_v44 = vld [vmem:[#allocation19_spill] sm:$0xff] }
 0x448   : > { %6838 = vmatmul.msk.bf16.gmra.mxu2 %vm14870_vm6, %v14054_v31  ;;  %v3723_v26 = vmul.f32 0.5, %v7453_v21  ;;  %6870 = vmatmul.msk.bf16.gmra.mxu3 %vm14872_vm14, %v14054_v31  ;;  %v12011_v23 = vadd.f32 %v3023_v30, %v14873_v15 }
 0x449   : > { %7454 = vtanh.f32 %v3660_v63  ;;  %v3533_v5 = vadd.f32 %v11374_v7, %v3428_v29  ;;  %3466 = vmatmul.bf16.gmra.mxu0 %v3334_v57  ;;  %v3041_v7 = vpop.f32.mrf.mxu1 }
 0x44a   : > { %14874 = vst [vmem:[#allocation46_spill] sm:$0xff] %v12011_v23  ;;  %v3755_v0 = vadd.f32 0.5, %v3723_v26 }
 0x44b   : > { %v3565_v62 = vmax.f32 %v3533_v5, 0.0  ;;  %v3123_v20 = vpop.f32.mrf.mxu2  ;;  %v3212_v25 = vpop.f32.mrf.mxu3 }
 0x44c   : > { %v3124_v19 = vadd.f32 %v3123_v20, %v3034_v51  ;;  %v12014_v40 = vmul.f32 %v3755_v0, %v14875_v44 }
 0x44d   : > { %v3597_v21 = vadd.f32 %v3565_v62, %v11689_v48 }
 0x44e   : > { %v3213_v63 = vadd.f32 %v3212_v25, %v3124_v19  ;;  %v3429_v29 = vpop.f32.mrf.mxu0  ;;  %v14877_v19 = vld [vmem:[#allocation21_spill] sm:$0xff] }
 0x44f   : > { %v7455_v56 = vpop.eup %7454  ;;  %v3661_v35 = vmul.f32 0.5, %v3597_v21  ;;  %v3430_v57 = vadd.f32 %v11881_v11, %v3429_v29  ;;  %3629 = vst [vmem:[%s7671_s14 + $0x20] sm:$0xff] %v3597_v21 }
 0x450   : > { %v12019_v30 = vmul.f32 %v3753_v22, %v3213_v63  ;;  %v3724_v26 = vmul.f32 0.5, %v7455_v56  ;;  %v3335_v22 = vpack.c.bf16 %v11918_v14, %v11915_v39 }
 0x451   : > { %7456 = vtanh.f32 %v3661_v35  ;;  %v3534_v51 = vadd.f32 %v11403_v52, %v3430_v57  ;;  %v12028_v21 = vpop.f32.mrf.mxu1 }
 0x452   : > { %14876 = vst [vmem:[#allocation54_spill] sm:$0xff] %v12019_v30  ;;  %v3756_v5 = vadd.f32 0.5, %v3724_v26  ;;  %6810 = vmatmul.msk.bf16.gmra.mxu1 %vm14718_vm0, %v14054_v31 }
 0x453   : > { %v3566_v15 = vmax.f32 %v3534_v51, 0.0  ;;  %v3125_v20 = vpop.f32.mrf.mxu2  ;;  %v3214_v48 = vpop.f32.mrf.mxu3 }
 0x454   : > { %v3126_v44 = vadd.f32 %v3125_v20, %v3036_v9  ;;  %v12022_v62 = vpack.c.bf16 %v3756_v5, %v3755_v0  ;;  %v12025_v25 = vmul.f32 %v3756_v5, %v14877_v19  ;;  %v14882_v20 = vld [vmem:[#allocation65_spill] sm:$0xff]  ;;  %v14887_v19 = vld [vmem:[#allocation64_spill] sm:$0xff] }
 0x455   : > { %v3598_v29 = vadd.f32 %v3566_v15, %v11692_v13  ;;  %v14880_v13 = vld [vmem:[#allocation100_spill] sm:$0xff] }
 0x456   : > { %v3215_v35 = vadd.f32 %v3214_v48, %v3126_v44  ;;  %v3432_v52 = vpop.f32.mrf.mxu0  ;;  %vm14881_vm11 = vnez %v14880_v13  ;;  %v14883_v48 = vld [vmem:[#allocation14_spill] sm:$0xff] }
 0x457   : > { %v7457_v56 = vpop.eup %7456  ;;  %v3662_v9 = vmul.f32 0.5, %v3598_v29  ;;  %v3433_v57 = vadd.f32 %v11881_v11, %v3432_v52  ;;  %3630 = vst [vmem:[%s7671_s14 + $0x28] sm:$0xff] %v3598_v29  ;;  %vm14884_vm10 = vnez %v14883_v48  ;;  %v14885_v13 = vld [vmem:[#allocation66_spill] sm:$0xff] }
 0x458   : > { %v12036_v26 = vmul.f32 %v3754_v27, %v3215_v35  ;;  %6840 = vmatmul.msk.bf16.gmra.mxu2 %vm14881_vm11, %v14054_v31  ;;  %v3725_v15 = vmul.f32 0.5, %v7457_v56  ;;  %6872 = vmatmul.msk.bf16.gmra.mxu3 %vm14884_vm10, %v14054_v31 }
 0x459   : > { %7458 = vtanh.f32 %v3662_v9  ;;  %v3535_v44 = vadd.f32 %v14882_v20, %v3433_v57  ;;  %3471 = vmatmul.bf16.gmra.mxu0 %v3335_v22  ;;  %v3046_v57 = vpop.f32.mrf.mxu1 }
 0x45a   : > { %14878 = vst [vmem:[#allocation80_spill] sm:$0xff] %v12036_v26  ;;  %v3757_v27 = vadd.f32 0.5, %v3725_v15 }
 0x45b   : > { %v3567_v29 = vmax.f32 %v3535_v44, 0.0  ;;  %v3128_v35 = vpop.f32.mrf.mxu2  ;;  %v3217_v51 = vpop.f32.mrf.mxu3 }
 0x45c   : > { %v3129_v52 = vadd.f32 %v3128_v35, %v11991_v3  ;;  %v12052_v56 = vmul.f32 %v3757_v27, %v14885_v13 }
 0x45d   : > { %v3599_v9 = vadd.f32 %v3567_v29, %v11720_v18 }
 0x45e   : > { %v3218_v20 = vadd.f32 %v3217_v51, %v3129_v52  ;;  %v3434_v48 = vpop.f32.mrf.mxu0  ;;  %v14888_v52 = vld [vmem:[#allocation42_spill] sm:$0xff] }
 0x45f   : > { %v7459_v63 = vpop.eup %7458  ;;  %v3663_v23 = vmul.f32 0.5, %v3599_v9  ;;  %v3435_v22 = vadd.f32 %v11881_v11, %v3434_v48  ;;  %3631 = vst [vmem:[%s7671_s14 + $0x30] sm:$0xff] %v3599_v9 }
 0x460   : > { %v12057_v15 = vmul.f32 %v3755_v0, %v3218_v20  ;;  %v3726_v44 = vmul.f32 0.5, %v7459_v63 }
 0x461   : > { %7460 = vtanh.f32 %v3663_v23  ;;  %v3536_v3 = vadd.f32 %v14887_v19, %v3435_v22  ;;  %v12066_v9 = vpop.f32.mrf.mxu1  ;;  %v3336_v23 = vpack.c.bf16 %v11924_v53, %v11921_v54  ;;  %v14917_v53 = vld [vmem:[#allocation76_spill] sm:$0xff] }
 0x462   : > { %14886 = vst [vmem:[#allocation82_spill] sm:$0xff] %v12057_v15  ;;  %v3758_v35 = vadd.f32 0.5, %v3726_v44  ;;  %6812 = vmatmul.msk.bf16.gmra.mxu1 %vm14729_vm4, %v14054_v31  ;;  %v14894_v44 = vld [vmem:[#allocation48_spill] sm:$0xff] }
 0x463   : > { %v3568_v13 = vmax.f32 %v3536_v3, 0.0  ;;  %v3130_v16 = vpop.f32.mrf.mxu2  ;;  %v3219_v18 = vpop.f32.mrf.mxu3 }
 0x464   : > { %v3131_v50 = vadd.f32 %v3130_v16, %v3041_v7  ;;  %v12060_v29 = vpack.c.bf16 %v3758_v35, %v3757_v27  ;;  %v12063_v51 = vmul.f32 %v3758_v35, %v14888_v52 }
 0x465   : > { %v3600_v48 = vadd.f32 %v3568_v13, %v11723_v17  ;;  %v14890_v17 = vld [vmem:[#allocation101_spill] sm:$0xff]  ;;  %v14892_v13 = vld [vmem:[#allocation15_spill] sm:$0xff] }
 0x466   : > { %v3220_v0 = vadd.f32 %v3219_v18, %v3131_v50  ;;  %v3437_v63 = vpop.f32.mrf.mxu0  ;;  %vm14891_vm0 = vnez %v14890_v17  ;;  %vm14893_vm2 = vnez %v14892_v13 }
 0x467   : > { %v7461_v20 = vpop.eup %7460  ;;  %v3664_v16 = vmul.f32 0.5, %v3600_v48  ;;  %v3438_v7 = vadd.f32 %v11881_v11, %v3437_v63  ;;  %3632 = vst [vmem:[%s7671_s14 + $0x38] sm:$0xff] %v3600_v48 }
 0x468   : > { %v12074_v22 = vmul.f32 %v3756_v5, %v3220_v0  ;;  %6842 = vmatmul.msk.bf16.gmra.mxu2 %vm14891_vm0, %v14054_v31  ;;  %v3727_v50 = vmul.f32 0.5, %v7461_v20  ;;  %6874 = vmatmul.msk.bf16.gmra.mxu3 %vm14893_vm2, %v14054_v31 }
 0x469   : > { %7462 = vtanh.f32 %v3664_v16  ;;  %v3537_v3 = vadd.f32 %v11526_v38, %v3438_v7  ;;  %3476 = vmatmul.bf16.gmra.mxu0 %v3336_v23  ;;  %v3051_v16 = vpop.f32.mrf.mxu1 }
 0x46a   : > { %v3759_v5 = vadd.f32 0.5, %v3727_v50 }
 0x46b   : > { %v3569_v52 = vmax.f32 %v3537_v3, 0.0  ;;  %v3133_v48 = vpop.f32.mrf.mxu2  ;;  %v3222_v63 = vpop.f32.mrf.mxu3 }
 0x46c   : > { %v3134_v0 = vadd.f32 %v3133_v48, %v12028_v21  ;;  %v12090_v20 = vmul.f32 %v3759_v5, %v14894_v44 }
 0x46d   : > { %v3601_v38 = vadd.f32 %v3569_v52, %v11749_v2 }
 0x46e   : > { %v3223_v7 = vadd.f32 %v3222_v63, %v3134_v0  ;;  %v3439_v17 = vpop.f32.mrf.mxu0  ;;  %v14895_v0 = vld [vmem:[#allocation39_spill] sm:$0xff] }
 0x46f   : > { %v7463_v13 = vpop.eup %7462  ;;  %v3665_v19 = vmul.f32 0.5, %v3601_v38  ;;  %v3440_v23 = vadd.f32 %v11881_v11, %v3439_v17  ;;  %3633 = vst [vmem:[%s7671_s14 + $0x40] sm:$0xff] %v3601_v38 }
 0x470   : > { %v12095_v50 = vmul.f32 %v3757_v27, %v3223_v7  ;;  %v3728_v3 = vmul.f32 0.5, %v7463_v13  ;;  %v3337_v27 = vpack.c.bf16 %v11930_v36, %v11927_v61 }
 0x471   : > { %7464 = vtanh.f32 %v3665_v19  ;;  %v3538_v21 = vadd.f32 %v11574_v28, %v3440_v23  ;;  %v12104_v38 = vpop.f32.mrf.mxu1 }
 0x472   : > { %v3760_v48 = vadd.f32 0.5, %v3728_v3  ;;  %6814 = vmatmul.msk.bf16.gmra.mxu1 %vm14740_vm7, %v14054_v31  ;;  %v14901_v3 = vld [vmem:[#allocation43_spill] sm:$0xff] }
 0x473   : > { %v3570_v44 = vmax.f32 %v3538_v21, 0.0  ;;  %v3135_v18 = vpop.f32.mrf.mxu2  ;;  %v3224_v2 = vpop.f32.mrf.mxu3 }
 0x474   : > { %v3136_v49 = vadd.f32 %v3135_v18, %v3046_v57  ;;  %v12098_v52 = vpack.c.bf16 %v3760_v48, %v3759_v5  ;;  %v12101_v63 = vmul.f32 %v3760_v48, %v14895_v0 }
 0x475   : > { %v3602_v17 = vadd.f32 %v3570_v44, %v11752_v6  ;;  %v14897_v6 = vld [vmem:[#allocation105_spill] sm:$0xff] }
 0x476   : > { %v3225_v19 = vadd.f32 %v3224_v2, %v3136_v49  ;;  %v3442_v28 = vpop.f32.mrf.mxu0  ;;  %vm14898_vm4 = vnez %v14897_v6  ;;  %v14899_v44 = vld [vmem:[#allocation13_spill] sm:$0xff] }
 0x477   : > { %v7465_v13 = vpop.eup %7464  ;;  %v3666_v57 = vmul.f32 0.5, %v3602_v17  ;;  %v3443_v18 = vadd.f32 %v11881_v11, %v3442_v28  ;;  %3634 = vst [vmem:[%s7671_s14 + $0x48] sm:$0xff] %v3602_v17  ;;  %vm14900_vm15 = vnez %v14899_v44 }
 0x478   : > { %v12112_v23 = vmul.f32 %v3758_v35, %v3225_v19  ;;  %6844 = vmatmul.msk.bf16.gmra.mxu2 %vm14898_vm4, %v14054_v31  ;;  %v3729_v49 = vmul.f32 0.5, %v7465_v13  ;;  %6876 = vmatmul.msk.bf16.gmra.mxu3 %vm14900_vm15, %v14054_v31 }
 0x479   : > { %7466 = vtanh.f32 %v3666_v57  ;;  %v3539_v21 = vadd.f32 %v11610_v45, %v3443_v18  ;;  %3481 = vmatmul.bf16.gmra.mxu0 %v3337_v27  ;;  %v3056_v57 = vpop.f32.mrf.mxu1 }
 0x47a   : > { %v3761_v35 = vadd.f32 0.5, %v3729_v49 }
 0x47b   : > { %v3571_v0 = vmax.f32 %v3539_v21, 0.0  ;;  %v3138_v17 = vpop.f32.mrf.mxu2  ;;  %v3227_v28 = vpop.f32.mrf.mxu3 }
 0x47c   : > { %v3139_v19 = vadd.f32 %v3138_v17, %v12066_v9  ;;  %v12128_v13 = vmul.f32 %v3761_v35, %v14901_v3 }
 0x47d   : > { %v3603_v45 = vadd.f32 %v3571_v0, %v11778_v46 }
 0x47e   : > { %v3228_v18 = vadd.f32 %v3227_v28, %v3139_v19  ;;  %v3444_v6 = vpop.f32.mrf.mxu0  ;;  %v14902_v19 = vld [vmem:[#allocation73_spill] sm:$0xff] }
 0x47f   : > { %v7467_v44 = vpop.eup %7466  ;;  %v3667_v7 = vmul.f32 0.5, %v3603_v45  ;;  %v3445_v27 = vadd.f32 %v11881_v11, %v3444_v6  ;;  %3635 = vst [vmem:[%s7671_s14 + $0x50] sm:$0xff] %v3603_v45 }
 0x480   : > { %v12133_v49 = vmul.f32 %v3759_v5, %v3228_v18  ;;  %v3730_v21 = vmul.f32 0.5, %v7467_v44  ;;  %v3338_v5 = vpack.c.bf16 %v11936_v34, %v11933_v55 }
 0x481   : > { %7468 = vtanh.f32 %v3667_v7  ;;  %v3540_v9 = vadd.f32 %v11648_v43, %v3445_v27  ;;  %v12142_v45 = vpop.f32.mrf.mxu1 }
 0x482   : > { %v3762_v17 = vadd.f32 0.5, %v3730_v21  ;;  %6816 = vmatmul.msk.bf16.gmra.mxu1 %vm14751_vm9, %v14054_v31 }
 0x483   : > { %v3572_v3 = vmax.f32 %v3540_v9, 0.0  ;;  %v3140_v2 = vpop.f32.mrf.mxu2  ;;  %v3229_v46 = vpop.f32.mrf.mxu3  ;;  %v14905_v9 = vld [vmem:[#allocation114_spill] sm:$0xff] }
 0x484   : > { %v3141_v36 = vadd.f32 %v3140_v2, %v3051_v16  ;;  %v12136_v0 = vpack.c.bf16 %v3762_v17, %v3761_v35  ;;  %v12139_v28 = vmul.f32 %v3762_v17, %v14902_v19  ;;  %vm14906_vm13 = vnez %v14905_v9 }
 0x485   : > { %v3604_v6 = vadd.f32 %v3572_v3, %v11781_v47  ;;  %v14903_v47 = vld [vmem:[#allocation106_spill] sm:$0xff] }
 0x486   : > { %v3230_v7 = vadd.f32 %v3229_v46, %v3141_v36  ;;  %v3447_v43 = vpop.f32.mrf.mxu0  ;;  %vm14904_vm7 = vnez %v14903_v47 }
 0x487   : > { %v7469_v44 = vpop.eup %7468  ;;  %v3668_v16 = vmul.f32 0.5, %v3604_v6  ;;  %v3448_v2 = vadd.f32 %v11881_v11, %v3447_v43  ;;  %3636 = vst [vmem:[%s7671_s14 + $0x58] sm:$0xff] %v3604_v6 }
 0x488   : > { %v12150_v27 = vmul.f32 %v3760_v48, %v3230_v7  ;;  %6846 = vmatmul.msk.bf16.gmra.mxu2 %vm14904_vm7, %v14054_v31  ;;  %v3731_v36 = vmul.f32 0.5, %v7469_v44  ;;  %6878 = vmatmul.msk.bf16.gmra.mxu3 %vm14906_vm13, %v14054_v31  ;;  %v14907_v7 = vld [vmem:[#allocation59_spill] sm:$0xff] }
 0x489   : > { %7470 = vtanh.f32 %v3668_v16  ;;  %v3541_v21 = vadd.f32 %v11655_v41, %v3448_v2  ;;  %3486 = vmatmul.bf16.gmra.mxu0 %v3338_v5  ;;  %v3061_v44 = vpop.f32.mrf.mxu1 }
 0x48a   : > { %v12162_v48 = vadd.f32 0.5, %v3731_v36 }
 0x48b   : > { %v3573_v3 = vmax.f32 %v3541_v21, 0.0  ;;  %v3143_v46 = vpop.f32.mrf.mxu2  ;;  %v3232_v6 = vpop.f32.mrf.mxu3 }
 0x48c   : > { %v3144_v19 = vadd.f32 %v3143_v46, %v12104_v38  ;;  %v12169_v43 = vmul.f32 %v12162_v48, %v14907_v7 }
 0x48d   : > { %v3605_v41 = vadd.f32 %v3573_v3, %v11807_v32 }
 0x48e   : > { %v3233_v16 = vadd.f32 %v3232_v6, %v3144_v19  ;;  %v3449_v2 = vpop.f32.mrf.mxu0  ;;  %v14908_v19 = vld [vmem:[#allocation58_spill] sm:$0xff] }
 0x48f   : > { %v7471_v5 = vpop.eup %7470  ;;  %v3669_v47 = vmul.f32 0.5, %v3605_v41  ;;  %v3450_v36 = vadd.f32 %v11881_v11, %v3449_v2  ;;  %3637 = vst [vmem:[%s7671_s14 + $0x60] sm:$0xff] %v3605_v41 }
 0x490   : > { %v12174_v9 = vmul.f32 %v3761_v35, %v3233_v16  ;;  %v3732_v21 = vmul.f32 0.5, %v7471_v5  ;;  %v3339_v16 = vpack.c.bf16 %v11942_v8, %v11939_v12 }
 0x491   : > { %7472 = vtanh.f32 %v3669_v47  ;;  %v3542_v38 = vadd.f32 %v11679_v58, %v3450_v36  ;;  %v12184_v35 = vpop.f32.mrf.mxu1 }
 0x492   : > { %v3764_v46 = vadd.f32 0.5, %v3732_v21  ;;  %6818 = vmatmul.msk.bf16.gmra.mxu1 %vm14759_vm1, %v14054_v31  ;;  %v14914_v21 = vld [vmem:[#allocation75_spill] sm:$0xff] }
 0x493   : > { %v3574_v7 = vmax.f32 %v3542_v38, 0.0  ;;  %v3145_v42 = vpop.f32.mrf.mxu2  ;;  %v3234_v32 = vpop.f32.mrf.mxu3  ;;  %v14911_v38 = vld [vmem:[#allocation69_spill] sm:$0xff] }
 0x494   : > { %v3146_v18 = vadd.f32 %v3145_v42, %v3056_v57  ;;  %v12178_v3 = vpack.c.bf16 %v3764_v46, %v12162_v48  ;;  %v12181_v6 = vmul.f32 %v3764_v46, %v14908_v19 }
 0x495   : > { %v3606_v41 = vadd.f32 %v3574_v7, %v11810_v4 }
 0x496   : > { %v3235_v58 = vadd.f32 %v3234_v32, %v3146_v18  ;;  %v3452_v2 = vpop.f32.mrf.mxu0  ;;  %v14912_v32 = vld [vmem:[#allocation113_spill] sm:$0xff] }
 0x497   : > { %v7473_v57 = vpop.eup %7472  ;;  %v3670_v42 = vmul.f32 0.5, %v3606_v41  ;;  %v3453_v47 = vadd.f32 %v11881_v11, %v3452_v2  ;;  %3638 = vst [vmem:[%s7671_s14 + $0x68] sm:$0xff] %v3606_v41  ;;  %vm14913_vm9 = vnez %v14912_v32 }
 0x498   : > { %v12192_v36 = vmul.f32 %v3762_v17, %v3235_v58  ;;  %6848 = vmatmul.msk.bf16.gmra.mxu2 %vm14753_vm5, %v14054_v31  ;;  %v3733_v18 = vmul.f32 0.5, %v7473_v57  ;;  %6880 = vmatmul.msk.bf16.gmra.mxu3 %vm14913_vm9, %v14054_v31 }
 0x499   : > { %7474 = vtanh.f32 %v3670_v42  ;;  %v3543_v7 = vadd.f32 %v14911_v38, %v3453_v47  ;;  %3491 = vmatmul.bf16.gmra.mxu0 %v3339_v16  ;;  %v14915_v42 = vld [vmem:[#allocation57_spill] sm:$0xff]  ;;  %v3066_v47 = vpop.f32.mrf.mxu1 }
 0x49a   : > { %v12204_v17 = vadd.f32 0.5, %v3733_v18 }
 0x49b   : > { %v3575_v41 = vmax.f32 %v3543_v7, 0.0  ;;  %v3148_v58 = vpop.f32.mrf.mxu2  ;;  %v3237_v2 = vpop.f32.mrf.mxu3  ;;  %v14916_v7 = vld [vmem:[#allocation74_spill] sm:$0xff] }
 0x49c   : > { %v12210_v57 = vmul.f32 %v12204_v17, %v14914_v21  ;;  %v3149_v18 = vadd.f32 %v3148_v58, %v12142_v45 }
 0x49d   : > { %v3607_v4 = vadd.f32 %v3575_v41, %v14915_v42 }
 0x49e   : > { %v3454_v38 = vpop.f32.mrf.mxu0  ;;  %v3238_v55 = vadd.f32 %v3237_v2, %v3149_v18  ;;  %v14923_v18 = vld [vmem:[#allocation112_spill] sm:$0xff] }
 0x49f   : > { %v7475_v5 = vpop.eup %7474  ;;  %v3671_v32 = vmul.f32 0.5, %v3607_v4  ;;  %3639 = vst [vmem:[%s7671_s14 + $0x70] sm:$0xff] %v3607_v4  ;;  %v3455_v16 = vadd.f32 %v11881_v11, %v3454_v38  ;;  %v14918_v38 = vld [vmem:[#allocation63_spill] sm:$0xff]  ;;  %vm14924_vm1 = vnez %v14923_v18 }
 0x4a0   : > { %v3734_v8 = vmul.f32 0.5, %v7475_v5 }
 0x4a1   : > { %7476 = vtanh.f32 %v3671_v32  ;;  %v3544_v19 = vadd.f32 %v14916_v7, %v3455_v16  ;;  %v12224_v45 = vpop.f32.mrf.mxu1  ;;  %v12231_v32 = vmul.f32 %v12162_v48, %v3238_v55 }
 0x4a2   : > { %v3766_v12 = vadd.f32 0.5, %v3734_v8  ;;  %6820 = vmatmul.msk.bf16.gmra.mxu1 %vm14765_vm8, %v14054_v31 }
 0x4a3   : > { %v3576_v34 = vmax.f32 %v3544_v19, 0.0  ;;  %v3150_v21 = vpop.f32.mrf.mxu2  ;;  %v3239_v41 = vpop.f32.mrf.mxu3 }
 0x4a4   : > { %v3151_v61 = vadd.f32 %v3150_v21, %v3061_v44  ;;  %v12218_v42 = vpack.c.bf16 %v3766_v12, %v12204_v17  ;;  %v12221_v4 = vmul.f32 %v3766_v12, %v14917_v53 }
 0x4a5   : > { %v3608_v30 = vadd.f32 %v3576_v34, %v14918_v38  ;;  %v14920_v34 = vld [vmem:[#allocation110_spill] sm:$0xff]  ;;  %v14926_v38 = vld [vmem:[#allocation25_spill] sm:$0xff] }
 0x4a6   : > { %v3240_v5 = vadd.f32 %v3239_v41, %v3151_v61  ;;  %v3457_v58 = vpop.f32.mrf.mxu0  ;;  %v3839_v8 = vpack.c.bf16 %v12221_v4, %v12210_v57  ;;  %vm14921_vm5 = vnez %v14920_v34  ;;  %v14922_v57 = vld [vmem:[#allocation10_spill] sm:$0xff]  ;;  %v14925_v41 = vld [vmem:[#allocation8_spill] sm:$0xff] }
 0x4a7   : > { %v7477_v19 = vpop.eup %7476  ;;  %3640 = vst [vmem:[%s7671_s14 + $0x78] sm:$0xff] %v3608_v30  ;;  %v3672_v2 = vmul.f32 0.5, %v3608_v30  ;;  %v3458_v44 = vadd.f32 %v11881_v11, %v3457_v58 }
 0x4a8   : > { %v12233_v16 = vmul.f32 %v3764_v46, %v3240_v5  ;;  %6850 = vmatmul.msk.bf16.gmra.mxu2 %vm14921_vm5, %v14054_v31  ;;  %v3735_v61 = vmul.f32 0.5, %v7477_v19  ;;  %6882 = vmatmul.msk.bf16.gmra.mxu3 %vm14924_vm1, %v14054_v31 }
 0x4a9   : > { %7478 = vtanh.f32 %v3672_v2  ;;  %v3545_v30 = vadd.f32 %v14922_v57, %v3458_v44  ;;  %v12252_v58 = vpop.f32.mrf.mxu1  ;;  %v14927_v57 = vld [vmem:[#allocation12_spill] sm:$0xff] }
 0x4aa   : > { %v12245_v55 = vadd.f32 0.5, %v3735_v61 }
 0x4ab   : > { %v3577_v46 = vmax.f32 %v3545_v30, 0.0  ;;  %v3153_v7 = vpop.f32.mrf.mxu2  ;;  %v3242_v21 = vpop.f32.mrf.mxu3 }
 0x4ac   : > { %v3815_v4 = vmul.f32 %v12245_v55, %v14925_v41  ;;  %v3154_v34 = vadd.f32 %v3153_v7, %v12184_v35  ;;  %v14929_v35 = vld [vmem:[#allocation47_spill] sm:$0xff] }
 0x4ad   : > { %v3609_v5 = vadd.f32 %v3577_v46, %v14926_v38 }
 0x4ae   : > { %v3459_v19 = vpop.f32.mrf.mxu0  ;;  %v3243_v46 = vadd.f32 %v3242_v21, %v3154_v34  ;;  %v12272_v21 = vpop.trf.xlu1 }
 0x4af   : > { %v7479_v2 = vpop.eup %7478  ;;  %3641 = vst [vmem:[%s7671_s14 + $0x80] sm:$0xff] %v3609_v5  ;;  %v3673_v44 = vmul.f32 0.5, %v3609_v5  ;;  %v3460_v53 = vadd.f32 %v11881_v11, %v3459_v19  ;;  %v14928_v5 = vld [vmem:[#allocation71_spill] sm:$0xff] }
 0x4b0   : > { %v3736_v61 = vmul.f32 0.5, %v7479_v2  ;;  %v12275_v34 = vmul.f32 %v12204_v17, %v3243_v46 }
 0x4b1   : > { %7480 = vtanh.f32 %v3673_v44  ;;  %v3546_v30 = vadd.f32 %v14927_v57, %v3460_v53  ;;  %v12267_v2 = vpop.f32.mrf.mxu1 }
 0x4b2   : > { %v12258_v18 = vadd.f32 0.5, %v3736_v61 }
 0x4b3   : > { %v3578_v41 = vmax.f32 %v3546_v30, 0.0  ;;  %v3155_v48 = vpop.f32.mrf.mxu2  ;;  %v3244_v26 = vpop.f32.mrf.mxu3 }
 0x4b4   : > { %v3156_v38 = vadd.f32 %v3155_v48, %v3066_v47  ;;  %v12262_v15 = vpack.c.bf16 %v12258_v18, %v12245_v55  ;;  %v3816_v19 = vmul.f32 %v12258_v18, %v14928_v5  ;;  %v14932_v5 = vld [vmem:[#allocation111_spill] sm:$0xff] }
 0x4b5   : > { %v3610_v7 = vadd.f32 %v3578_v41, %v14929_v35  ;;  %vm14933_vm8 = vnez %v14932_v5 }
 0x4b6   : > { %v3245_v44 = vadd.f32 %v3244_v26, %v3156_v38  ;;  %v3462_v53 = vpop.f32.mrf.mxu0  ;;  %4427 = vmatpush.bf16.msra.mxu3 %v12262_v15  ;;  %v3840_v61 = vpack.c.bf16 %v3816_v19, %v3815_v4  ;;  %v14931_v4 = vld [vmem:[#allocation20_spill] sm:$0xff] }
 0x4b7   : > { %v7481_v57 = vpop.eup %7480  ;;  %3642 = vst [vmem:[%s7671_s14 + $0x88] sm:$0xff] %v3610_v7  ;;  %v3674_v47 = vmul.f32 0.5, %v3610_v7  ;;  %v3463_v48 = vadd.f32 %v11881_v11, %v3462_v53  ;;  %v14934_v7 = vld [vmem:[#allocation70_spill] sm:$0xff] }
 0x4b8   : > { %v12277_v30 = vmul.f32 %v3766_v12, %v3245_v44  ;;  %4025 = vmatpush.bf16.msra.mxu1 %v3840_v61  ;;  %6852 = vmatmul.msk.bf16.gmra.mxu2 %vm14767_vm12, %v14054_v31  ;;  %v3737_v26 = vmul.f32 0.5, %v7481_v57 }
 0x4b9   : > { %7482 = vtanh.f32 %v3674_v47  ;;  %v3547_v38 = vadd.f32 %v14931_v4, %v3463_v48  ;;  %6884 = vmatmul.msk.bf16.gmra.mxu3 %vm14933_vm8, %v14054_v31  ;;  %v12296_v61 = vpop.f32.mrf.mxu1  ;;  %v12305_v4 = vpop.trf.xlu1 }
 0x4ba   : > { %4428 = vmatpush.bf16.msra.mxu3 %v12218_v42  ;;  %v12287_v17 = vadd.f32 0.5, %v3737_v26  ;;  %v3887_v12 = vpack.c.bf16 %v12277_v30, %v12275_v34  ;;  %v12417_v34 = vld [vmem:[%s13610_s5] ss:$0 sm:$0xff] }
 0x4bb   : > { %v3579_v46 = vmax.f32 %v3547_v38, 0.0  ;;  %v3158_v19 = vpop.f32.mrf.mxu2  ;;  %v3247_v35 = vpop.f32.mrf.mxu3 }
 0x4bc   : > { %4026 = vmatpush.bf16.msra.mxu1 %v3839_v8  ;;  %v12293_v44 = vmul.f32 %v12287_v17, %v14934_v7  ;;  %v3159_v41 = vadd.f32 %v3158_v19, %v12224_v45  ;;  %v14935_v8 = vpack.c.bf16 %v12181_v6, %v12169_v43  ;;  %v14937_v43 = vpack.c.bf16 %v12139_v28, %v12128_v13 }
 0x4bd   : > { %v3611_v53 = vadd.f32 %v3579_v46, %v11903_v10  ;;  %v14936_v10 = vld [vmem:[#allocation37_spill] sm:$0xff] }
 0x4be   : > { %v3464_v31 = vpop.f32.mrf.mxu0  ;;  %4429 = vmatpush.bf16.msra.mxu3 %v12178_v3 }
 0x4bf   : > { %v7483_v57 = vpop.eup %7482  ;;  %3643 = vst [vmem:[%s7671_s14 + $0x90] sm:$0xff] %v3611_v53  ;;  %v3675_v47 = vmul.f32 0.5, %v3611_v53  ;;  %v3465_v48 = vadd.f32 %v11881_v11, %v3464_v31  ;;  %v3248_v53 = vadd.f32 %v3247_v35, %v3159_v41  ;;  %v14938_v31 = vld [vmem:[#allocation68_spill] sm:$0xff] }
 0x4c0   : > { %4027 = vmatpush.bf16.msra.mxu1 %v14935_v8  ;;  %v3738_v26 = vmul.f32 0.5, %v7483_v57 }
 0x4c1   : > { %7484 = vtanh.f32 %v3675_v47  ;;  %v3548_v38 = vadd.f32 %v14936_v10, %v3465_v48  ;;  %v12324_v48 = vpop.f32.mrf.mxu1 }
 0x4c2   : > { %4430 = vmatpush.bf16.msra.mxu3 %v12136_v0  ;;  %v12309_v5 = vadd.f32 0.5, %v3738_v26  ;;  %v3863_v26 = vmul.f32 %v12245_v55, %v3248_v53 }
 0x4c3   : > { %v3580_v46 = vmax.f32 %v3548_v38, 0.0  ;;  %v3160_v7 = vpop.f32.mrf.mxu2  ;;  %v3249_v19 = vpop.f32.mrf.mxu3 }
 0x4c4   : > { %v3161_v45 = vadd.f32 %v3160_v7, %v12252_v58  ;;  %4028 = vmatpush.bf16.msra.mxu1 %v14937_v43  ;;  %v12317_v6 = vpack.c.bf16 %v12309_v5, %v12287_v17  ;;  %v12321_v57 = vmul.f32 %v12309_v5, %v14938_v31  ;;  %v12340_v43 = vpop.trf.xlu1 }
 0x4c5   : > { %v3612_v47 = vadd.f32 %v3580_v46, %v11906_v24  ;;  %v14939_v24 = vpack.c.bf16 %v12101_v63, %v12090_v20  ;;  %v14940_v46 = vld [vmem:[#allocation40_spill] sm:$0xff]  ;;  %v14941_v20 = vpack.c.bf16 %v12063_v51, %v12052_v56  ;;  %v14943_v51 = vpack.c.bf16 %v12025_v25, %v12014_v40  ;;  %v14946_v25 = vld [vmem:[#allocation5_spill] sm:$0xff] }
 0x4c6   : > { %v3250_v35 = vadd.f32 %v3249_v19, %v3161_v45  ;;  %v3467_v41 = vpop.f32.mrf.mxu0  ;;  %4431 = vmatpush.bf16.msra.mxu3 %v12098_v52  ;;  %v14942_v63 = vld [vmem:[#allocation4_spill] sm:$0xff] }
 0x4c7   : > { %v7485_v28 = vpop.eup %7484  ;;  %3644 = vst [vmem:[%s7671_s14 + $0x98] sm:$0xff] %v3612_v47  ;;  %v3676_v58 = vmul.f32 0.5, %v3612_v47  ;;  %v3468_v8 = vadd.f32 %v11881_v11, %v3467_v41 }
 0x4c8   : > { %v3864_v10 = vmul.f32 %v12258_v18, %v3250_v35  ;;  %4029 = vmatpush.bf16.msra.mxu1 %v14939_v24  ;;  %v3739_v38 = vmul.f32 0.5, %v7485_v28 }
 0x4c9   : > { %7486 = vtanh.f32 %v3676_v58  ;;  %v3549_v7 = vadd.f32 %v14940_v46, %v3468_v8  ;;  %v12351_v41 = vpop.f32.mrf.mxu1 }
 0x4ca   : > { %4432 = vmatpush.bf16.msra.mxu3 %v12060_v29  ;;  %v3888_v45 = vpack.c.bf16 %v3864_v10, %v3863_v26  ;;  %v12338_v19 = vadd.f32 0.5, %v3739_v38 }
 0x4cb   : > { %v3581_v31 = vmax.f32 %v3549_v7, 0.0  ;;  %v3163_v55 = vpop.f32.mrf.mxu2  ;;  %v3252_v53 = vpop.f32.mrf.mxu3 }
 0x4cc   : > { %v3164_v18 = vadd.f32 %v3163_v55, %v12267_v2  ;;  %4030 = vmatpush.bf16.msra.mxu1 %v14941_v20  ;;  %v12348_v47 = vmul.f32 %v12338_v19, %v14942_v63 }
 0x4cd   : > { %v3613_v35 = vadd.f32 %v3581_v31, %v11909_v37  ;;  %v14944_v37 = vld [vmem:[#allocation86_spill] sm:$0xff] }
 0x4ce   : > { %v3253_v28 = vadd.f32 %v3252_v53, %v3164_v18  ;;  %v3469_v58 = vpop.f32.mrf.mxu0  ;;  %4433 = vmatpush.bf16.msra.mxu3 %v12022_v62  ;;  %v12378_v53 = vpop.trf.xlu1 }
 0x4cf   : > { %v7487_v8 = vpop.eup %7486  ;;  %3645 = vst [vmem:[%s7671_s14 + $0xa0] sm:$0xff] %v3613_v35  ;;  %v3677_v2 = vmul.f32 0.5, %v3613_v35  ;;  %v3470_v26 = vadd.f32 %v11881_v11, %v3469_v58 }
 0x4d0   : > { %v12357_v56 = vmul.f32 %v12287_v17, %v3253_v28  ;;  %4031 = vmatpush.bf16.msra.mxu1 %v14943_v51  ;;  %v3740_v10 = vmul.f32 0.5, %v7487_v8  ;;  %v14945_v17 = vpack.c.bf16 %v11988_v33, %v11975_v59  ;;  %v14978_v51 = vld [vmem:[#allocation44_spill] sm:$0xff] }
 0x4d1   : > { %7488 = vtanh.f32 %v3677_v2  ;;  %v3550_v24 = vadd.f32 %v14944_v37, %v3470_v26  ;;  %v12381_v63 = vpop.f32.mrf.mxu1  ;;  %v14947_v2 = vld [vmem:[#allocation36_spill] sm:$0xff] }
 0x4d2   : > { %4434 = vmatpush.bf16.msra.mxu3 %v11985_v1  ;;  %v12364_v38 = vadd.f32 0.5, %v3740_v10 }
 0x4d3   : > { %v3582_v46 = vmax.f32 %v3550_v24, 0.0  ;;  %v3165_v7 = vpop.f32.mrf.mxu2  ;;  %v3254_v55 = vpop.f32.mrf.mxu3 }
 0x4d4   : > { %v3166_v31 = vadd.f32 %v3165_v7, %v12296_v61  ;;  %4032 = vmatpush.bf16.msra.mxu1 %v14945_v17  ;;  %v12372_v40 = vpack.c.bf16 %v12364_v38, %v12338_v19  ;;  %v12376_v18 = vmul.f32 %v12364_v38, %v14946_v25  ;;  %v14950_v17 = vld [vmem:[#allocation35_spill] sm:$0xff] }
 0x4d5   : > { %v3614_v20 = vadd.f32 %v3582_v46, %v11912_v60  ;;  %4435 = vmatmul.bf16.vlgmr.msra.gmra.mxu3 %v12272_v21 }
 0x4d6   : > { %v3255_v61 = vadd.f32 %v3254_v55, %v3166_v31  ;;  %v3472_v35 = vpop.f32.mrf.mxu0  ;;  %5311 = vmatpush.bf16.msra.mxu3 %v12262_v15  ;;  %v12409_v7 = vpop.trf.xlu1 }
 0x4d7   : > { %v7489_v59 = vpop.eup %7488  ;;  %3646 = vst [vmem:[%s7671_s14 + $0xa8] sm:$0xff] %v3614_v20  ;;  %v3678_v28 = vmul.f32 0.5, %v3614_v20  ;;  %v3473_v58 = vadd.f32 %v11881_v11, %v3472_v35  ;;  %4033 = vmatmul.bf16.vlgmr.msra.gmra.mxu1 %v12272_v21 }
 0x4d8   : > { %v12391_v60 = vmul.f32 %v12309_v5, %v3255_v61  ;;  %4909 = vmatpush.bf16.msra.mxu1 %v3888_v45  ;;  %v3741_v8 = vmul.f32 0.5, %v7489_v59  ;;  %v14948_v5 = vld [vmem:[#allocation16_spill] sm:$0xff] }
 0x4d9   : > { %7490 = vtanh.f32 %v3678_v28  ;;  %v3551_v26 = vadd.f32 %v14947_v2, %v3473_v58  ;;  %v12412_v55 = vpop.f32.mrf.mxu1 }
 0x4da   : > { %5312 = vmatpush.bf16.msra.mxu3 %v12218_v42  ;;  %v12395_v15 = vadd.f32 0.5, %v3741_v8 }
 0x4db   : > { %v3583_v10 = vmax.f32 %v3551_v26, 0.0  ;;  %v3168_v11 = vpop.f32.mrf.mxu2  ;;  %v3257_v37 = vpop.f32.mrf.mxu3 }
 0x4dc   : > { %v3169_v21 = vadd.f32 %v3168_v11, %v12324_v48  ;;  %4910 = vmatpush.bf16.msra.mxu1 %v3887_v12  ;;  %v12405_v45 = vmul.f32 %v12395_v15, %v14948_v5 }
 0x4dd   : > { %v3615_v42 = vadd.f32 %v3583_v10, %v11915_v39 }
 0x4de   : > { %v3258_v24 = vadd.f32 %v3257_v37, %v3169_v21  ;;  %v3474_v46 = vpop.f32.mrf.mxu0  ;;  %5313 = vmatpush.bf16.msra.mxu3 %v12178_v3  ;;  %v14949_v3 = vpack.c.bf16 %v12233_v16, %v12231_v32  ;;  %v14952_v16 = vld [vmem:[#allocation11_spill] sm:$0xff]  ;;  %v12456_v21 = vpop.trf.xlu1 }
 0x4df   : > { %v7491_v31 = vpop.eup %7490  ;;  %3647 = vst [vmem:[%s7671_s14 + $0xb0] sm:$0xff] %v3615_v42  ;;  %v3679_v48 = vmul.f32 0.5, %v3615_v42  ;;  %v3475_v30 = vadd.f32 %v12417_v34, %v3474_v46  ;;  %v14954_v37 = vld [vmem:[#allocation23_spill] sm:$0xff] }
 0x4e0   : > { %v12421_v39 = vmul.f32 %v12338_v19, %v3258_v24  ;;  %4911 = vmatpush.bf16.msra.mxu1 %v14949_v3  ;;  %v3742_v12 = vmul.f32 0.5, %v7491_v31  ;;  %v14951_v19 = vpack.c.bf16 %v12192_v36, %v12174_v9  ;;  %v14956_v31 = vld [vmem:[#allocation33_spill] sm:$0xff] }
 0x4e1   : > { %7492 = vtanh.f32 %v3679_v48  ;;  %v3552_v25 = vadd.f32 %v14950_v17, %v3475_v30 }
 0x4e2   : > { %5314 = vmatpush.bf16.msra.mxu3 %v12136_v0  ;;  %v12428_v20 = vadd.f32 0.5, %v3742_v12 }
 0x4e3   : > { %v3584_v61 = vmax.f32 %v3552_v25, 0.0  ;;  %v3170_v35 = vpop.f32.mrf.mxu2  ;;  %v3259_v28 = vpop.f32.mrf.mxu3 }
 0x4e4   : > { %v3171_v59 = vadd.f32 %v3170_v35, %v12351_v41  ;;  %4912 = vmatpush.bf16.msra.mxu1 %v14951_v19  ;;  %v12436_v32 = vpack.c.bf16 %v12428_v20, %v12395_v15  ;;  %v12440_v58 = vmul.f32 %v12428_v20, %v14952_v16  ;;  %v14959_v35 = vld [vmem:[#allocation55_spill] sm:$0xff] }
 0x4e5   : > { %v3616_v0 = vadd.f32 %v3584_v61, %v11918_v14  ;;  %4440 = vmatmul.bf16.gmra.mxu3 %v12340_v43  ;;  %v14953_v14 = vpack.c.bf16 %v12150_v27, %v12133_v49  ;;  %v14955_v27 = vpack.c.bf16 %v12112_v23, %v12095_v50  ;;  %v14957_v50 = vld [vmem:[#allocation82_spill] sm:$0xff] }
 0x4e6   : > { %v3260_v8 = vadd.f32 %v3259_v28, %v3171_v59  ;;  %v3477_v2 = vpop.f32.mrf.mxu0  ;;  %5315 = vmatpush.bf16.msra.mxu3 %v12098_v52  ;;  %v3089_v52 = vpop.f32.mrf.mxu1  ;;  %v14958_v23 = vpack.c.bf16 %v12074_v22, %v14957_v50  ;;  %v14966_v50 = vld [vmem:[#allocation30_spill] sm:$0xff] }
 0x4e7   : > { %v7493_v36 = vpop.eup %7492  ;;  %3648 = vst [vmem:[%s7671_s14 + $0xb8] sm:$0xff] %v3616_v0  ;;  %v3680_v41 = vmul.f32 0.5, %v3616_v0  ;;  %v3478_v26 = vadd.f32 %v12417_v34, %v3477_v2  ;;  %4038 = vmatmul.bf16.gmra.mxu1 %v12340_v43  ;;  %v14961_v2 = vld [vmem:[#allocation54_spill] sm:$0xff] }
 0x4e8   : > { %v12451_v10 = vmul.f32 %v12364_v38, %v3260_v8  ;;  %4913 = vmatpush.bf16.msra.mxu1 %v14953_v14  ;;  %v3743_v11 = vmul.f32 0.5, %v7493_v36  ;;  %v14960_v8 = vld [vmem:[#allocation80_spill] sm:$0xff]  ;;  %v14980_v43 = vld [vmem:[#allocation46_spill] sm:$0xff] }
 0x4e9   : > { %7494 = vtanh.f32 %v3680_v41  ;;  %v3553_v5 = vadd.f32 %v14954_v37, %v3478_v26  ;;  %v14962_v22 = vpack.c.bf16 %v14960_v8, %v14961_v2  ;;  %v14963_v41 = vld [vmem:[#allocation34_spill] sm:$0xff] }
 0x4ea   : > { %5316 = vmatpush.bf16.msra.mxu3 %v12060_v29  ;;  %v3775_v42 = vadd.f32 0.5, %v3743_v11  ;;  %v14964_v26 = vld [vmem:[#allocation18_spill] sm:$0xff] }
 0x4eb   : > { %v3585_v38 = vmax.f32 %v3553_v5, 0.0  ;;  %v3173_v24 = vpop.f32.mrf.mxu2  ;;  %v3262_v49 = vpop.f32.mrf.mxu3 }
 0x4ec   : > { %v3174_v46 = vadd.f32 %v3173_v24, %v12381_v63  ;;  %4914 = vmatpush.bf16.msra.mxu1 %v14955_v27  ;;  %v12467_v48 = vmul.f32 %v3775_v42, %v14956_v31  ;;  %v14965_v27 = vld [vmem:[#allocation50_spill] sm:$0xff] }
 0x4ed   : > { %v3617_v30 = vadd.f32 %v3585_v38, %v11921_v54 }
 0x4ee   : > { %v3263_v3 = vadd.f32 %v3262_v49, %v3174_v46  ;;  %v3479_v29 = vpop.f32.mrf.mxu0  ;;  %5317 = vmatpush.bf16.msra.mxu3 %v12022_v62  ;;  %v3959_v62 = vpop.trf.xlu1 }
 0x4ef   : > { %v7495_v12 = vpop.eup %7494  ;;  %3649 = vst [vmem:[%s7671_s14 + $0xc0] sm:$0xff] %v3617_v30  ;;  %v3681_v17 = vmul.f32 0.5, %v3617_v30  ;;  %v3480_v25 = vadd.f32 %v12417_v34, %v3479_v29  ;;  %v3091_v28 = vpop.f32.mrf.mxu1 }
 0x4f0   : > { %v12474_v63 = vmul.f32 %v12395_v15, %v3263_v3  ;;  %4915 = vmatpush.bf16.msra.mxu1 %v14958_v23  ;;  %v3744_v61 = vmul.f32 0.5, %v7495_v12 }
 0x4f1   : > { %7496 = vtanh.f32 %v3681_v17  ;;  %v3554_v54 = vadd.f32 %v14959_v35, %v3480_v25 }
 0x4f2   : > { %5318 = vmatpush.bf16.msra.mxu3 %v11985_v1  ;;  %v12481_v59 = vadd.f32 0.5, %v3744_v61  ;;  %v14967_v61 = vld [vmem:[#allocation78_spill] sm:$0xff] }
 0x4f3   : > { %v3586_v19 = vmax.f32 %v3554_v54, 0.0  ;;  %v3175_v16 = vpop.f32.mrf.mxu2  ;;  %v3264_v0 = vpop.f32.mrf.mxu3 }
 0x4f4   : > { %v3176_v15 = vadd.f32 %v3175_v16, %v12412_v55  ;;  %4916 = vmatpush.bf16.msra.mxu1 %v14962_v22  ;;  %v12488_v36 = vpack.c.bf16 %v12481_v59, %v3775_v42  ;;  %v12492_v1 = vmul.f32 %v12481_v59, %v14963_v41  ;;  %v3993_v55 = vpop.trf.xlu2 }
 0x4f5   : > { %v3618_v14 = vadd.f32 %v3586_v19, %v14964_v26  ;;  %4445 = vmatmul.bf16.gmra.mxu3 %v12409_v7 }
 0x4f6   : > { %v3265_v11 = vadd.f32 %v3264_v0, %v3176_v15  ;;  %v3482_v37 = vpop.f32.mrf.mxu0 }
 0x4f7   : > { %v7497_v5 = vpop.eup %7496  ;;  %3650 = vst [vmem:[%s7671_s14 + $0xc8] sm:$0xff] %v3618_v14  ;;  %v3682_v38 = vmul.f32 0.5, %v3618_v14  ;;  %v3483_v24 = vadd.f32 %v12417_v34, %v3482_v37  ;;  %4043 = vmatmul.bf16.gmra.mxu1 %v12409_v7  ;;  %v12510_v7 = vpop.trf.xlu1 }
 0x4f8   : > { %v12502_v46 = vmul.f32 %v12428_v20, %v3265_v11  ;;  %v3745_v49 = vmul.f32 0.5, %v7497_v5  ;;  %v3094_v20 = vpop.f32.mrf.mxu1 }
 0x4f9   : > { %7498 = vtanh.f32 %v3682_v38  ;;  %v3555_v31 = vadd.f32 %v14965_v27, %v3483_v24  ;;  %v14969_v38 = vld [vmem:[#allocation32_spill] sm:$0xff] }
 0x4fa   : > { %v3777_v30 = vadd.f32 0.5, %v3745_v49  ;;  %v14970_v49 = vld [vmem:[#allocation77_spill] sm:$0xff] }
 0x4fb   : > { %v3587_v29 = vmax.f32 %v3555_v31, 0.0  ;;  %v3178_v12 = vpop.f32.mrf.mxu2  ;;  %v3267_v25 = vpop.f32.mrf.mxu3 }
 0x4fc   : > { %v3179_v17 = vadd.f32 %v3178_v12, %v3089_v52  ;;  %v12508_v23 = vmul.f32 %v3777_v30, %v14966_v50  ;;  %v14968_v52 = vld [vmem:[#allocation107_spill] sm:$0xff] }
 0x4fd   : > { %v3619_v35 = vadd.f32 %v3587_v29, %v14967_v61 }
 0x4fe   : > { %v3268_v54 = vadd.f32 %v3267_v25, %v3179_v17  ;;  %v3484_v19 = vpop.f32.mrf.mxu0 }
 0x4ff   : > { %v7499_v16 = vpop.eup %7498  ;;  %3651 = vst [vmem:[%s7671_s14 + $0xd0] sm:$0xff] %v3619_v35  ;;  %v3683_v15 = vmul.f32 0.5, %v3619_v35  ;;  %v3485_v0 = vadd.f32 %v12417_v34, %v3484_v19  ;;  %v3961_v12 = vpop.trf.xlu1 }
 0x500   : > { %v12515_v8 = vmul.f32 %v3775_v42, %v3268_v54  ;;  %v3746_v2 = vmul.f32 0.5, %v7499_v16  ;;  %v3096_v25 = vpop.f32.mrf.mxu1  ;;  %v14971_v54 = vld [vmem:[#allocation102_spill] sm:$0xff] }
 0x501   : > { %7500 = vtanh.f32 %v3683_v15  ;;  %v3556_v22 = vadd.f32 %v14968_v52, %v3485_v0 }
 0x502   : > { %v3778_v41 = vadd.f32 0.5, %v3746_v2 }
 0x503   : > { %v3588_v26 = vmax.f32 %v3556_v22, 0.0  ;;  %v3180_v14 = vpop.f32.mrf.mxu2  ;;  %v3269_v37 = vpop.f32.mrf.mxu3 }
 0x504   : > { %v3181_v11 = vadd.f32 %v3180_v14, %v3091_v28  ;;  %v12518_v5 = vpack.c.bf16 %v3778_v41, %v3777_v30  ;;  %v12521_v24 = vmul.f32 %v3778_v41, %v14969_v38  ;;  %v14973_v14 = vld [vmem:[#allocation104_spill] sm:$0xff] }
 0x505   : > { %v3620_v27 = vadd.f32 %v3588_v26, %v14970_v49  ;;  %4450 = vmatmul.bf16.gmra.mxu3 %v3959_v62  ;;  %v14972_v26 = vld [vmem:[#allocation93_spill] sm:$0xff] }
 0x506   : > { %v3270_v42 = vadd.f32 %v3269_v37, %v3181_v11  ;;  %v3487_v31 = vpop.f32.mrf.mxu0 }
 0x507   : > { %v7501_v17 = vpop.eup %7500  ;;  %3652 = vst [vmem:[%s7671_s14 + $0xd8] sm:$0xff] %v3620_v27  ;;  %v3684_v50 = vmul.f32 0.5, %v3620_v27  ;;  %v3488_v28 = vadd.f32 %v12417_v34, %v3487_v31  ;;  %4048 = vmatmul.bf16.gmra.mxu1 %v3959_v62 }
 0x508   : > { %v12529_v61 = vmul.f32 %v12481_v59, %v3270_v42  ;;  %v3747_v35 = vmul.f32 0.5, %v7501_v17  ;;  %v12545_v17 = vpop.trf.xlu1 }
 0x509   : > { %7502 = vtanh.f32 %v3684_v50  ;;  %v3557_v19 = vadd.f32 %v14971_v54, %v3488_v28  ;;  %v14974_v50 = vld [vmem:[#allocation31_spill] sm:$0xff] }
 0x50a   : > { %v12532_v16 = vadd.f32 0.5, %v3747_v35 }
 0x50b   : > { %v3589_v0 = vmax.f32 %v3557_v19, 0.0  ;;  %v3183_v2 = vpop.f32.mrf.mxu2  ;;  %v3272_v22 = vpop.f32.mrf.mxu3 }
 0x50c   : > { %v3184_v52 = vadd.f32 %v3183_v2, %v3094_v20  ;;  %v12538_v62 = vmul.f32 %v12532_v16, %v14972_v26  ;;  %v3099_v20 = vpop.f32.mrf.mxu1 }
 0x50d   : > { %v3621_v59 = vadd.f32 %v3589_v0, %v14973_v14 }
 0x50e   : > { %v3273_v11 = vadd.f32 %v3272_v22, %v3184_v52  ;;  %v3489_v37 = vpop.f32.mrf.mxu0  ;;  %v14975_v22 = vld [vmem:[#allocation98_spill] sm:$0xff] }
 0x50f   : > { %v7503_v38 = vpop.eup %7502  ;;  %3653 = vst [vmem:[%s7671_s14 + $0xe0] sm:$0xff] %v3621_v59  ;;  %v3685_v49 = vmul.f32 0.5, %v3621_v59  ;;  %v3490_v27 = vadd.f32 %v12417_v34, %v3489_v37 }
 0x510   : > { %v12543_v42 = vmul.f32 %v3777_v30, %v3273_v11  ;;  %v3748_v31 = vmul.f32 0.5, %v7503_v38  ;;  %v14976_v30 = vld [vmem:[#allocation22_spill] sm:$0xff] }
 0x511   : > { %7504 = vtanh.f32 %v3685_v49  ;;  %v3558_v28 = vadd.f32 %v14974_v50, %v3490_v27  ;;  %v14977_v50 = vld [vmem:[#allocation51_spill] sm:$0xff] }
 0x512   : > { %v3780_v35 = vadd.f32 0.5, %v3748_v31 }
 0x513   : > { %v3590_v54 = vmax.f32 %v3558_v28, 0.0  ;;  %v3185_v19 = vpop.f32.mrf.mxu2  ;;  %v3274_v2 = vpop.f32.mrf.mxu3 }
 0x514   : > { %v3186_v0 = vadd.f32 %v3185_v19, %v3096_v25  ;;  %v12549_v52 = vpack.c.bf16 %v3780_v35, %v12532_v16  ;;  %v12552_v26 = vmul.f32 %v3780_v35, %v14975_v22 }
 0x515   : > { %v3622_v14 = vadd.f32 %v3590_v54, %v14976_v30  ;;  %4455 = vmatmul.bf16.gmra.mxu3 %v3961_v12 }
 0x516   : > { %v3275_v59 = vadd.f32 %v3274_v2, %v3186_v0  ;;  %v3492_v11 = vpop.f32.mrf.mxu0  ;;  %v3846_v37 = vpack.c.bf16 %v12552_v26, %v12538_v62  ;;  %v3963_v0 = vpop.trf.xlu1 }
 0x517   : > { %v7505_v38 = vpop.eup %7504  ;;  %3654 = vst [vmem:[%s7671_s14 + $0xe8] sm:$0xff] %v3622_v14  ;;  %v3686_v49 = vmul.f32 0.5, %v3622_v14  ;;  %v3493_v25 = vadd.f32 %v12417_v34, %v3492_v11  ;;  %4053 = vmatmul.bf16.gmra.mxu1 %v3961_v12  ;;  %v3101_v2 = vpop.f32.mrf.mxu1 }
 0x518   : > { %v12559_v27 = vmul.f32 %v3778_v41, %v3275_v59  ;;  %v3749_v31 = vmul.f32 0.5, %v7505_v38  ;;  %v14979_v41 = vld [vmem:[#allocation17_spill] sm:$0xff] }
 0x519   : > { %7506 = vtanh.f32 %v3686_v49  ;;  %v3559_v28 = vadd.f32 %v14977_v50, %v3493_v25 }
 0x51a   : > { %v12562_v54 = vadd.f32 0.5, %v3749_v31 }
 0x51b   : > { %v3591_v22 = vmax.f32 %v3559_v28, 0.0  ;;  %v3188_v30 = vpop.f32.mrf.mxu2  ;;  %v3277_v14 = vpop.f32.mrf.mxu3 }
 0x51c   : > { %v12568_v12 = vmul.f32 %v12562_v54, %v14978_v51  ;;  %v3189_v31 = vadd.f32 %v3188_v30, %v3099_v20  ;;  %v14982_v20 = vld [vmem:[#allocation81_spill] sm:$0xff] }
 0x51d   : > { %v3623_v59 = vadd.f32 %v3591_v22, %v14979_v41  ;;  %v14981_v41 = vld [vmem:[#allocation29_spill] sm:$0xff] }
 0x51e   : > { %v3494_v11 = vpop.f32.mrf.mxu0  ;;  %v3278_v13 = vadd.f32 %v3277_v14, %v3189_v31 }
 0x51f   : > { %v7507_v38 = vpop.eup %7506  ;;  %3655 = vst [vmem:[%s7671_s14 + $0xf0] sm:$0xff] %v3623_v59  ;;  %v3687_v49 = vmul.f32 0.5, %v3623_v59  ;;  %v3495_v25 = vadd.f32 %v12417_v34, %v3494_v11  ;;  %v12578_v59 = vpop.trf.xlu1 }
 0x520   : > { %v3750_v50 = vmul.f32 0.5, %v7507_v38  ;;  %v3104_v34 = vpop.f32.mrf.mxu1 }
 0x521   : > { %7508 = vtanh.f32 %v3687_v49  ;;  %v3560_v3 = vadd.f32 %v14980_v43, %v3495_v25 }
 0x522   : > { %v3782_v28 = vadd.f32 0.5, %v3750_v50 }
 0x523   : > { %v3592_v15 = vmax.f32 %v3560_v3, 0.0  ;;  %v3190_v19 = vpop.f32.mrf.mxu2  ;;  %v3279_v33 = vpop.f32.mrf.mxu3 }
 0x524   : > { %v3191_v51 = vadd.f32 %v3190_v19, %v3101_v2  ;;  %v12575_v22 = vpack.c.bf16 %v3782_v28, %v12562_v54  ;;  %v3830_v9 = vmul.f32 %v3782_v28, %v14981_v41  ;;  %v12584_v19 = vmul.f32 %v12532_v16, %v3278_v13 }
 0x525   : > { %v3624_v30 = vadd.f32 %v3592_v15, %v14982_v20  ;;  %4460 = vmatmul.bf16.gmra.mxu3 %v3963_v0 }
 0x526   : > { %v3280_v11 = vadd.f32 %v3279_v33, %v3191_v51  ;;  %v3847_v43 = vpack.c.bf16 %v3830_v9, %v12568_v12  ;;  %v14983_v33 = vld [vmem:[#allocation24_spill] sm:$0xff] }
 0x527   : > { %v7509_v38 = vpop.eup %7508  ;;  %3656 = vst [vmem:[%s7671_s14 + $0xf8] sm:$0xff] %v3624_v30  ;;  %v3688_v3 = vmul.f32 0.5, %v3624_v30  ;;  %4058 = vmatmul.bf16.gmra.mxu1 %v3963_v0  ;;  %v3965_v9 = vpop.trf.xlu1 }
 0x528   : > { %v12586_v2 = vmul.f32 %v3780_v35, %v3280_v11  ;;  %v3751_v14 = vmul.f32 0.5, %v7509_v38  ;;  %v3106_v51 = vpop.f32.mrf.mxu1  ;;  %v14984_v38 = vld [vmem:[#allocation79_spill] sm:$0xff] }
 0x529   : > { %7510 = vtanh.f32 %v3688_v3 }
 0x52a   : > { %v3783_v49 = vadd.f32 0.5, %v3751_v14 }
 0x52b   : > { %v3193_v15 = vpop.f32.mrf.mxu2  ;;  %v3282_v31 = vpop.f32.mrf.mxu3 }
 0x52c   : > { %v3831_v50 = vmul.f32 %v3783_v49, %v14983_v33  ;;  %v3194_v41 = vadd.f32 %v3193_v15, %v3104_v34 }
 0x52e   : > { %v3283_v16 = vadd.f32 %v3282_v31, %v3194_v41 }
 0x52f   : > { %v7511_v12 = vpop.eup %7510  ;;  %v12593_v34 = vpop.trf.xlu1 }
 0x530   : > { %v3752_v0 = vmul.f32 0.5, %v7511_v12  ;;  %v3877_v33 = vmul.f32 %v12562_v54, %v3283_v16  ;;  %v3109_v15 = vpop.f32.mrf.mxu1 }
 0x532   : > { %v3784_v20 = vadd.f32 0.5, %v3752_v0 }
 0x533   : > { %v3195_v13 = vpop.f32.mrf.mxu2  ;;  %v3284_v30 = vpop.f32.mrf.mxu3 }
 0x534   : > { %v3196_v35 = vadd.f32 %v3195_v13, %v3106_v51  ;;  %v3800_v11 = vpack.c.bf16 %v3784_v20, %v3783_v49  ;;  %v3832_v3 = vmul.f32 %v3784_v20, %v14984_v38 }
 0x535   : > { %4465 = vmatmul.bf16.gmra.mxu3 %v3965_v9 }
 0x536   : > { %v3285_v14 = vadd.f32 %v3284_v30, %v3196_v35  ;;  %4556 = vmatpush.bf16.msra.mxu0 %v3800_v11  ;;  %v3848_v25 = vpack.c.bf16 %v3832_v3, %v3831_v50  ;;  %v12600_v50 = vpop.trf.xlu2 }
 0x537   : > { %4063 = vmatmul.bf16.gmra.mxu1 %v3965_v9  ;;  %v3967_v54 = vpop.trf.xlu1 }
 0x538   : > { %v3878_v29 = vmul.f32 %v3782_v28, %v3285_v14  ;;  %4154 = vmatpush.bf16.msra.mxu2 %v3848_v25  ;;  %v3111_v28 = vpop.f32.mrf.mxu1 }
 0x53a   : > { %4557 = vmatpush.bf16.msra.mxu0 %v12575_v22  ;;  %v3895_v31 = vpack.c.bf16 %v3878_v29, %v3877_v33  ;;  %v14985_v29 = vpack.c.bf16 %v12521_v24, %v12508_v23  ;;  %v14987_v23 = vpack.c.bf16 %v12440_v58, %v12405_v45  ;;  %v14988_v24 = vpack.c.bf16 %v12376_v18, %v12348_v47 }
 0x53b   : > { %v3198_v12 = vpop.f32.mrf.mxu2 }
 0x53c   : > { %v3287_v51 = vpop.f32.mrf.mxu3  ;;  %4155 = vmatpush.bf16.msra.mxu2 %v3847_v43  ;;  %v3199_v41 = vadd.f32 %v3198_v12, %v3109_v15 }
 0x53e   : > { %4558 = vmatpush.bf16.msra.mxu0 %v12549_v52  ;;  %v3288_v9 = vadd.f32 %v3287_v51, %v3199_v41  ;;  %v3995_v35 = vpop.trf.xlu2 }
 0x540   : > { %4156 = vmatpush.bf16.msra.mxu2 %v3846_v37  ;;  %v3879_v62 = vmul.f32 %v3783_v49, %v3288_v9  ;;  %v14986_v37 = vpack.c.bf16 %v12492_v1, %v12467_v48  ;;  %v14989_v48 = vpack.c.bf16 %v12321_v57, %v12293_v44  ;;  %v14990_v57 = vpack.c.bf16 %v12586_v2, %v12584_v19 }
 0x542   : > { %4559 = vmatpush.bf16.msra.mxu0 %v12518_v5 }
 0x543   : > { %v3200_v25 = vpop.f32.mrf.mxu2 }
 0x544   : > { %v3201_v0 = vadd.f32 %v3200_v25, %v3111_v28  ;;  %4157 = vmatpush.bf16.msra.mxu2 %v14985_v29  ;;  %v3289_v43 = vpop.f32.mrf.mxu3 }
 0x545   : > { %4470 = vmatmul.bf16.gmra.mxu3 %v3967_v54 }
 0x546   : > { %v3290_v13 = vadd.f32 %v3289_v43, %v3201_v0  ;;  %4560 = vmatpush.bf16.msra.mxu0 %v12488_v36  ;;  %v12622_v1 = vpop.trf.xlu2  ;;  %v4379_v0 = vld [vmem:[%s7681_s28] sm:$0xff] }
 0x547   : > { %4068 = vmatmul.bf16.gmra.mxu1 %v3967_v54  ;;  %v3968_v54 = vpop.trf.xlu1 }
 0x548   : > { %v3880_v26 = vmul.f32 %v3784_v20, %v3290_v13  ;;  %4158 = vmatpush.bf16.msra.mxu2 %v14986_v37  ;;  %v3897_v37 = vld [vmem:[%s7676_s25] sm:$0xff] }
 0x54a   : > { %4561 = vmatpush.bf16.msra.mxu0 %v12436_v32  ;;  %v3896_v16 = vpack.c.bf16 %v3880_v26, %v3879_v62 }
 0x54c   : > { %4159 = vmatpush.bf16.msra.mxu2 %v14987_v23 }
 0x54e   : > { %4562 = vmatpush.bf16.msra.mxu0 %v12372_v40  ;;  %v3997_v44 = vpop.trf.xlu2 }
 0x550   : > { %4160 = vmatpush.bf16.msra.mxu2 %v14988_v24 }
 0x552   : > { %4563 = vmatpush.bf16.msra.mxu0 %v12317_v6 }
 0x554   : > { %4161 = vmatpush.bf16.msra.mxu2 %v14989_v48  ;;  %v12624_v49 = vpop.f32.mrf.mxu1 }
 0x555   : > { %4564 = vmatmul.bf16.vlgmr.msra.gmra.mxu0 %v3993_v55  ;;  %4475 = vmatmul.bf16.gmra.mxu3 %v12305_v4 }
 0x556   : > { %5440 = vmatpush.bf16.msra.mxu0 %v3800_v11 }
 0x557   : > { %4162 = vmatmul.bf16.vlgmr.msra.gmra.mxu2 %v3993_v55  ;;  %4073 = vmatmul.bf16.gmra.mxu1 %v12305_v4  ;;  %v14991_v4 = vpack.c.bf16 %v12559_v27, %v12543_v42  ;;  %v14992_v55 = vpack.c.bf16 %v12529_v61, %v12515_v8  ;;  %v14993_v42 = vpack.c.bf16 %v12502_v46, %v12474_v63 }
 0x558   : > { %5038 = vmatpush.bf16.msra.mxu2 %v3896_v16  ;;  %v12628_v47 = vpop.f32.mrf.mxu3 }
 0x55a   : > { %5441 = vmatpush.bf16.msra.mxu0 %v12575_v22 }
 0x55c   : > { %5039 = vmatpush.bf16.msra.mxu2 %v3895_v31  ;;  %v12631_v18 = vpop.f32.mrf.mxu1 }
 0x55e   : > { %5442 = vmatpush.bf16.msra.mxu0 %v12549_v52  ;;  %v12651_v52 = vpop.trf.xlu2 }
 0x560   : > { %5040 = vmatpush.bf16.msra.mxu2 %v14990_v57  ;;  %v12637_v45 = vpop.f32.mrf.mxu3 }
 0x562   : > { %5443 = vmatpush.bf16.msra.mxu0 %v12518_v5 }
 0x564   : > { %5041 = vmatpush.bf16.msra.mxu2 %v14991_v4  ;;  %v12643_v58 = vpop.f32.mrf.mxu1  ;;  %v3898_v4 = vld [vmem:[%s7676_s25 + $0x8] sm:$0xff] }
 0x565   : > { %4569 = vmatmul.bf16.gmra.mxu0 %v3995_v35  ;;  %4480 = vmatmul.bf16.gmra.mxu3 %v12378_v53 }
 0x566   : > { %5444 = vmatpush.bf16.msra.mxu0 %v12488_v36  ;;  %v3999_v8 = vpop.trf.xlu2 }
 0x567   : > { %4167 = vmatmul.bf16.gmra.mxu2 %v3995_v35  ;;  %4078 = vmatmul.bf16.gmra.mxu1 %v12378_v53  ;;  %v14994_v53 = vpack.c.bf16 %v12451_v10, %v12421_v39  ;;  %v4380_v35 = vld [vmem:[%s7681_s28 + $0x8] sm:$0xff] }
 0x568   : > { %5042 = vmatpush.bf16.msra.mxu2 %v14992_v55  ;;  %v12653_v5 = vpop.f32.mrf.mxu3 }
 0x56a   : > { %5445 = vmatpush.bf16.msra.mxu0 %v12436_v32  ;;  %v14995_v32 = vpack.c.bf16 %v12391_v60, %v12357_v56 }
 0x56c   : > { %5043 = vmatpush.bf16.msra.mxu2 %v14993_v42  ;;  %v12659_v27 = vpop.f32.mrf.mxu1  ;;  %v4381_v42 = vld [vmem:[%s7681_s28 + $0x10] sm:$0xff] }
 0x56e   : > { %5446 = vmatpush.bf16.msra.mxu0 %v12372_v40  ;;  %v12677_v39 = vpop.trf.xlu2 }
 0x570   : > { %5044 = vmatpush.bf16.msra.mxu2 %v14994_v53  ;;  %v12665_v36 = vpop.f32.mrf.mxu3 }
 0x572   : > { %5447 = vmatpush.bf16.msra.mxu0 %v12317_v6 }
 0x574   : > { %5045 = vmatpush.bf16.msra.mxu2 %v14995_v32  ;;  %v12671_v61 = vpop.f32.mrf.mxu1 }
 0x575   : > { %4574 = vmatmul.bf16.gmra.mxu0 %v3997_v44  ;;  %4485 = vmatmul.bf16.gmra.mxu3 %v12456_v21 }
 0x576   : > { %v4001_v56 = vpop.trf.xlu2 }
 0x577   : > { %4172 = vmatmul.bf16.gmra.mxu2 %v3997_v44  ;;  %4083 = vmatmul.bf16.gmra.mxu1 %v12456_v21 }
 0x578   : > { %v12675_v40 = vpop.f32.mrf.mxu3 }
 0x57c   : > { %v12679_v10 = vpop.f32.mrf.mxu1 }
 0x57e   : > { %v12691_v46 = vpop.trf.xlu2 }
 0x580   : > { %v12681_v6 = vpop.f32.mrf.mxu3 }
 0x584   : > { %v12683_v63 = vpop.f32.mrf.mxu1 }
 0x585   : > { %4579 = vmatmul.bf16.gmra.mxu0 %v3999_v8  ;;  %4490 = vmatmul.bf16.gmra.mxu3 %v12510_v7 }
 0x586   : > { %v4003_v20 = vpop.trf.xlu2 }
 0x587   : > { %4177 = vmatmul.bf16.gmra.mxu2 %v3999_v8  ;;  %4088 = vmatmul.bf16.gmra.mxu1 %v12510_v7 }
 0x588   : > { %v12687_v60 = vpop.f32.mrf.mxu3 }
 0x58c   : > { %v12689_v21 = vpop.f32.mrf.mxu1 }
 0x58e   : > { %v12705_v11 = vpop.trf.xlu2 }
 0x590   : > { %v12693_v22 = vpop.f32.mrf.mxu3 }
 0x594   : > { %v12695_v19 = vpop.f32.mrf.mxu1 }
 0x595   : > { %4584 = vmatmul.bf16.gmra.mxu0 %v4001_v56  ;;  %4495 = vmatmul.bf16.gmra.mxu3 %v12545_v17 }
 0x596   : > { %v4005_v14 = vpop.trf.xlu2 }
 0x597   : > { %4182 = vmatmul.bf16.gmra.mxu2 %v4001_v56  ;;  %4093 = vmatmul.bf16.gmra.mxu1 %v12545_v17 }
 0x598   : > { %v12699_v2 = vpop.f32.mrf.mxu3 }
 0x59c   : > { %v12701_v7 = vpop.f32.mrf.mxu1 }
 0x59e   : > { %v12721_v31 = vpop.trf.xlu2 }
 0x5a0   : > { %v12703_v30 = vpop.f32.mrf.mxu3 }
 0x5a4   : > { %v12707_v38 = vpop.f32.mrf.mxu1 }
 0x5a5   : > { %4589 = vmatmul.bf16.gmra.mxu0 %v4003_v20  ;;  %4500 = vmatmul.bf16.gmra.mxu3 %v12578_v59 }
 0x5a6   : > { %v4007_v41 = vpop.trf.xlu2 }
 0x5a7   : > { %4187 = vmatmul.bf16.gmra.mxu2 %v4003_v20  ;;  %4098 = vmatmul.bf16.gmra.mxu1 %v12578_v59 }
 0x5a8   : > { %v12711_v3 = vpop.f32.mrf.mxu3 }
 0x5ac   : > { %v12713_v17 = vpop.f32.mrf.mxu1 }
 0x5b0   : > { %v12715_v33 = vpop.f32.mrf.mxu3 }
 0x5b4   : > { %v12717_v15 = vpop.f32.mrf.mxu1 }
 0x5b5   : > { %4594 = vmatmul.bf16.gmra.mxu0 %v4005_v14  ;;  %4505 = vmatmul.bf16.gmra.mxu3 %v12593_v34 }
 0x5b7   : > { %4192 = vmatmul.bf16.gmra.mxu2 %v4005_v14  ;;  %4103 = vmatmul.bf16.gmra.mxu1 %v12593_v34  ;;  %v4382_v14 = vld [vmem:[%s7681_s28 + $0x18] sm:$0xff] }
 0x5b8   : > { %v12723_v12 = vpop.f32.mrf.mxu3 }
 0x5bc   : > { %v12725_v59 = vpop.f32.mrf.mxu1 }
 0x5c0   : > { %v12727_v51 = vpop.f32.mrf.mxu3 }
 0x5c4   : > { %v12729_v28 = vpop.f32.mrf.mxu1 }
 0x5c5   : > { %4599 = vmatmul.bf16.gmra.mxu0 %v4007_v41  ;;  %4510 = vmatmul.bf16.gmra.mxu3 %v3968_v54 }
 0x5c7   : > { %4197 = vmatmul.bf16.gmra.mxu2 %v4007_v41  ;;  %4108 = vmatmul.bf16.gmra.mxu1 %v3968_v54 }
 0x5c8   : > { %v12731_v25 = vpop.f32.mrf.mxu3 }
 0x5cc   : > { %v12733_v34 = vpop.f32.mrf.mxu1 }
 0x5d0   : > { %v12735_v9 = vpop.f32.mrf.mxu3 }
 0x5d2   : > { %v4565_v29 = vpop.f32.mrf.mxu0 }
 0x5d3   : > { %v4566_v43 = vadd.f32 %v4565_v29, %v12628_v47 }
 0x5d4   : > { %v12739_v13 = vpop.f32.mrf.mxu1 }
 0x5d5   : > { %v4685_v62 = vadd.f32 %v4566_v43, %v4379_v0  ;;  %4604 = vmatmul.bf16.gmra.mxu0 %v12600_v50  ;;  %7230 = vmatmul.lmr.bf16.gmra.16.mxu3 }
 0x5d7   : > { %4202 = vmatmul.bf16.gmra.mxu2 %v12600_v50  ;;  %4733 = vst [vmem:[%s7681_s28] sm:$0xff] %v4685_v62  ;;  %7118 = vmatmul.lmr.bf16.gmra.16.mxu1 }
 0x5d8   : > { %v12744_v26 = vpop.f32.mrf.mxu3 }
 0x5da   : > { %v4163_v16 = vpop.f32.mrf.mxu2  ;;  %v4567_v23 = vpop.f32.mrf.mxu0 }
 0x5db   : > { %v4164_v24 = vadd.f32 %v4163_v16, %v12624_v49  ;;  %v4568_v48 = vadd.f32 %v4567_v23, %v12637_v45 }
 0x5dc   : > { %v12750_v47 = vpop.f32.mrf.mxu1 }
 0x5dd   : > { %v4283_v44 = vadd.f32 %v4164_v24, %v3897_v37  ;;  %v4686_v57 = vadd.f32 %v4568_v48, %v4380_v35  ;;  %7231 = vmatmul.lmr.bf16.gmra.16.mxu3  ;;  %v3900_v37 = vld [vmem:[%s7676_s25 + $0x18] sm:$0xff]  ;;  %v4383_v35 = vld [vmem:[%s7681_s28 + $0x20] sm:$0xff] }
 0x5df   : > { %4331 = vst [vmem:[%s7676_s25] sm:$0xff] %v4283_v44  ;;  %7119 = vmatmul.lmr.bf16.gmra.16.mxu1 }
 0x5e0   : > { %4734 = vst [vmem:[%s7681_s28 + $0x8] sm:$0xff] %v4686_v57  ;;  %v12754_v50 = vpop.f32.mrf.mxu3 }
 0x5e2   : > { %v4165_v55 = vpop.f32.mrf.mxu2  ;;  %v4570_v49 = vpop.f32.mrf.mxu0 }
 0x5e3   : > { %v4166_v45 = vadd.f32 %v4165_v55, %v12631_v18  ;;  %v4571_v53 = vadd.f32 %v4570_v49, %v12653_v5  ;;  %v3899_v18 = vld [vmem:[%s7676_s25 + $0x10] sm:$0xff] }
 0x5e4   : > { %v12760_v8 = vpop.f32.mrf.mxu1 }
 0x5e5   : > { %v4284_v32 = vadd.f32 %v4166_v45, %v3898_v4  ;;  %v4687_v56 = vadd.f32 %v4571_v53, %v4381_v42  ;;  %4609 = vmatmul.bf16.gmra.mxu0 %v12622_v1  ;;  %7232 = vmatmul.lmr.bf16.gmra.16.mxu3  ;;  %v4384_v4 = vld [vmem:[%s7681_s28 + $0x28] sm:$0xff] }
 0x5e7   : > { %4332 = vst [vmem:[%s7676_s25 + $0x8] sm:$0xff] %v4284_v32  ;;  %4207 = vmatmul.bf16.gmra.mxu2 %v12622_v1  ;;  %7120 = vmatmul.lmr.bf16.gmra.16.mxu1 }
 0x5e8   : > { %4735 = vst [vmem:[%s7681_s28 + $0x10] sm:$0xff] %v4687_v56  ;;  %v12766_v20 = vpop.f32.mrf.mxu3  ;;  %v3902_v56 = vld [vmem:[%s7676_s25 + $0x28] sm:$0xff] }
 0x5ea   : > { %v4168_v5 = vpop.f32.mrf.mxu2  ;;  %v4572_v41 = vpop.f32.mrf.mxu0 }
 0x5eb   : > { %v4169_v54 = vadd.f32 %v4168_v5, %v12643_v58  ;;  %v4573_v0 = vadd.f32 %v4572_v41, %v12665_v36  ;;  %v4385_v5 = vld [vmem:[%s7681_s28 + $0x30] sm:$0xff] }
 0x5ec   : > { %v12772_v29 = vpop.f32.mrf.mxu1 }
 0x5ed   : > { %v4285_v43 = vadd.f32 %v4169_v54, %v3899_v18  ;;  %v4688_v62 = vadd.f32 %v4573_v0, %v4382_v14  ;;  %7233 = vmatmul.lmr.bf16.gmra.16.mxu3 }
 0x5ef   : > { %4333 = vst [vmem:[%s7676_s25 + $0x10] sm:$0xff] %v4285_v43  ;;  %7121 = vmatmul.lmr.bf16.gmra.16.mxu1 }
 0x5f0   : > { %4736 = vst [vmem:[%s7681_s28 + $0x18] sm:$0xff] %v4688_v62  ;;  %v12776_v1 = vpop.f32.mrf.mxu3  ;;  %v4386_v62 = vld [vmem:[%s7681_s28 + $0x38] sm:$0xff] }
 0x5f2   : > { %v4170_v16 = vpop.f32.mrf.mxu2  ;;  %v4575_v58 = vpop.f32.mrf.mxu0 }
 0x5f3   : > { %v4171_v36 = vadd.f32 %v4170_v16, %v12659_v27  ;;  %v4576_v23 = vadd.f32 %v4575_v58, %v12675_v40  ;;  %v3901_v27 = vld [vmem:[%s7676_s25 + $0x20] sm:$0xff] }
 0x5f4   : > { %v12782_v24 = vpop.f32.mrf.mxu1 }
 0x5f5   : > { %v4286_v48 = vadd.f32 %v4171_v36, %v3900_v37  ;;  %v4689_v44 = vadd.f32 %v4576_v23, %v4383_v35  ;;  %4614 = vmatmul.bf16.gmra.mxu0 %v12651_v52  ;;  %7234 = vmatmul.lmr.bf16.gmra.16.mxu3 }
 0x5f7   : > { %4334 = vst [vmem:[%s7676_s25 + $0x18] sm:$0xff] %v4286_v48  ;;  %4212 = vmatmul.bf16.gmra.mxu2 %v12651_v52  ;;  %7122 = vmatmul.lmr.bf16.gmra.16.mxu1  ;;  %v3904_v48 = vld [vmem:[%s7676_s25 + $0x38] sm:$0xff] }
 0x5f8   : > { %4737 = vst [vmem:[%s7681_s28 + $0x20] sm:$0xff] %v4689_v44  ;;  %v12788_v57 = vpop.f32.mrf.mxu3 }
 0x5fa   : > { %v4173_v40 = vpop.f32.mrf.mxu2  ;;  %v4577_v55 = vpop.f32.mrf.mxu0 }
 0x5fb   : > { %v4174_v42 = vadd.f32 %v4173_v40, %v12671_v61  ;;  %v4578_v49 = vadd.f32 %v4577_v55, %v12681_v6 }
 0x5fc   : > { %v12794_v45 = vpop.f32.mrf.mxu1 }
 0x5fd   : > { %v4287_v53 = vadd.f32 %v4174_v42, %v3901_v27  ;;  %v4690_v32 = vadd.f32 %v4578_v49, %v4384_v4  ;;  %7235 = vmatmul.lmr.bf16.gmra.16.mxu3  ;;  %v4387_v27 = vld [vmem:[%s7681_s28 + $0x40] sm:$0xff] }
 0x5ff   : > { %4335 = vst [vmem:[%s7676_s25 + $0x20] sm:$0xff] %v4287_v53  ;;  %7123 = vmatmul.lmr.bf16.gmra.16.mxu1  ;;  %v4388_v53 = vld [vmem:[%s7681_s28 + $0x48] sm:$0xff] }
 0x600   : > { %4738 = vst [vmem:[%s7681_s28 + $0x28] sm:$0xff] %v4690_v32  ;;  %v12798_v52 = vpop.f32.mrf.mxu3 }
 0x602   : > { %v4175_v18 = vpop.f32.mrf.mxu2  ;;  %v4580_v61 = vpop.f32.mrf.mxu0 }
 0x603   : > { %v4176_v6 = vadd.f32 %v4175_v18, %v12679_v10  ;;  %v4581_v14 = vadd.f32 %v4580_v61, %v12687_v60  ;;  %v3903_v10 = vld [vmem:[%s7676_s25 + $0x30] sm:$0xff] }
 0x604   : > { %v12804_v41 = vpop.f32.mrf.mxu1 }
 0x605   : > { %v4288_v54 = vadd.f32 %v4176_v6, %v3902_v56  ;;  %v4691_v0 = vadd.f32 %v4581_v14, %v4385_v5  ;;  %4619 = vmatmul.bf16.gmra.mxu0 %v12677_v39  ;;  %7236 = vmatmul.lmr.bf16.gmra.16.mxu3  ;;  %v3906_v14 = vld [vmem:[%s7676_s25 + $0x48] sm:$0xff] }
 0x607   : > { %4336 = vst [vmem:[%s7676_s25 + $0x28] sm:$0xff] %v4288_v54  ;;  %4217 = vmatmul.bf16.gmra.mxu2 %v12677_v39  ;;  %7124 = vmatmul.lmr.bf16.gmra.16.mxu1 }
 0x608   : > { %4739 = vst [vmem:[%s7681_s28 + $0x30] sm:$0xff] %v4691_v0  ;;  %v12810_v43 = vpop.f32.mrf.mxu3  ;;  %v4389_v0 = vld [vmem:[%s7681_s28 + $0x50] sm:$0xff] }
 0x60a   : > { %v4178_v60 = vpop.f32.mrf.mxu2  ;;  %v4582_v37 = vpop.f32.mrf.mxu0 }
 0x60b   : > { %v4179_v16 = vadd.f32 %v4178_v60, %v12683_v63  ;;  %v4583_v35 = vadd.f32 %v4582_v37, %v12693_v22 }
 0x60c   : > { %v12816_v58 = vpop.f32.mrf.mxu1 }
 0x60d   : > { %v4289_v36 = vadd.f32 %v4179_v16, %v3903_v10  ;;  %v4692_v23 = vadd.f32 %v4583_v35, %v4386_v62  ;;  %7237 = vmatmul.lmr.bf16.gmra.16.mxu3  ;;  %v4390_v35 = vld [vmem:[%s7681_s28 + $0x58] sm:$0xff] }
 0x60f   : > { %4337 = vst [vmem:[%s7676_s25 + $0x30] sm:$0xff] %v4289_v36  ;;  %7125 = vmatmul.lmr.bf16.gmra.16.mxu1 }
 0x610   : > { %4740 = vst [vmem:[%s7681_s28 + $0x38] sm:$0xff] %v4692_v23  ;;  %v12820_v39 = vpop.f32.mrf.mxu3 }
 0x612   : > { %v4180_v44 = vpop.f32.mrf.mxu2  ;;  %v4585_v63 = vpop.f32.mrf.mxu0 }
 0x613   : > { %v4181_v22 = vadd.f32 %v4180_v44, %v12689_v21  ;;  %v4586_v40 = vadd.f32 %v4585_v63, %v12699_v2  ;;  %v3905_v21 = vld [vmem:[%s7676_s25 + $0x40] sm:$0xff] }
 0x614   : > { %v12826_v4 = vpop.f32.mrf.mxu1 }
 0x615   : > { %v4290_v55 = vadd.f32 %v4181_v22, %v3904_v48  ;;  %v4693_v42 = vadd.f32 %v4586_v40, %v4387_v27  ;;  %4624 = vmatmul.bf16.gmra.mxu0 %v12691_v46  ;;  %7238 = vmatmul.lmr.bf16.gmra.16.mxu3  ;;  %v3908_v22 = vld [vmem:[%s7676_s25 + $0x58] sm:$0xff] }
 0x617   : > { %4338 = vst [vmem:[%s7676_s25 + $0x38] sm:$0xff] %v4290_v55  ;;  %4222 = vmatmul.bf16.gmra.mxu2 %v12691_v46  ;;  %7126 = vmatmul.lmr.bf16.gmra.16.mxu1  ;;  %v4391_v55 = vld [vmem:[%s7681_s28 + $0x60] sm:$0xff] }
 0x618   : > { %4741 = vst [vmem:[%s7681_s28 + $0x40] sm:$0xff] %v4693_v42  ;;  %v12832_v49 = vpop.f32.mrf.mxu3 }
 0x61a   : > { %v4183_v2 = vpop.f32.mrf.mxu2  ;;  %v4587_v32 = vpop.f32.mrf.mxu0 }
 0x61b   : > { %v4184_v56 = vadd.f32 %v4183_v2, %v12695_v19  ;;  %v4588_v18 = vadd.f32 %v4587_v32, %v12703_v30 }
 0x61c   : > { %v12838_v5 = vpop.f32.mrf.mxu1 }
 0x61d   : > { %v4291_v61 = vadd.f32 %v4184_v56, %v3905_v21  ;;  %v4694_v6 = vadd.f32 %v4588_v18, %v4388_v53  ;;  %7239 = vmatmul.lmr.bf16.gmra.16.mxu3  ;;  %v4837_v56 = vpop.trf.xlu0  ;;  %v4392_v18 = vld [vmem:[%s7681_s28 + $0x68] sm:$0xff] }
 0x61f   : > { %4339 = vst [vmem:[%s7676_s25 + $0x40] sm:$0xff] %v4291_v61  ;;  %7127 = vmatmul.lmr.bf16.gmra.16.mxu1 }
 0x620   : > { %4742 = vst [vmem:[%s7681_s28 + $0x48] sm:$0xff] %v4694_v6  ;;  %v12842_v46 = vpop.f32.mrf.mxu3 }
 0x622   : > { %v4185_v54 = vpop.f32.mrf.mxu2  ;;  %v4590_v19 = vpop.f32.mrf.mxu0 }
 0x623   : > { %v4186_v30 = vadd.f32 %v4185_v54, %v12701_v7  ;;  %v4591_v10 = vadd.f32 %v4590_v19, %v12711_v3  ;;  %v3907_v7 = vld [vmem:[%s7676_s25 + $0x50] sm:$0xff] }
 0x624   : > { %v12848_v60 = vpop.f32.mrf.mxu1 }
 0x625   : > { %v4292_v62 = vadd.f32 %v4186_v30, %v3906_v14  ;;  %v4695_v37 = vadd.f32 %v4591_v10, %v4389_v0  ;;  %4629 = vmatmul.bf16.gmra.mxu0 %v12705_v11  ;;  %7240 = vmatmul.lmr.bf16.gmra.16.mxu3  ;;  %v12886_v19 = vpop.trf.xlu0  ;;  %v4008_v30 = vpop.trf.xlu2 }
 0x627   : > { %4340 = vst [vmem:[%s7676_s25 + $0x48] sm:$0xff] %v4292_v62  ;;  %4227 = vmatmul.bf16.gmra.mxu2 %v12705_v11  ;;  %7128 = vmatmul.lmr.bf16.gmra.16.mxu1  ;;  %v3910_v62 = vld [vmem:[%s7676_s25 + $0x68] sm:$0xff] }
 0x628   : > { %4743 = vst [vmem:[%s7681_s28 + $0x50] sm:$0xff] %v4695_v37  ;;  %v12854_v16 = vpop.f32.mrf.mxu3  ;;  %v4393_v37 = vld [vmem:[%s7681_s28 + $0x70] sm:$0xff] }
 0x62a   : > { %v4188_v3 = vpop.f32.mrf.mxu2  ;;  %v4592_v36 = vpop.f32.mrf.mxu0 }
 0x62b   : > { %v4189_v23 = vadd.f32 %v4188_v3, %v12707_v38  ;;  %v4593_v48 = vadd.f32 %v4592_v36, %v12715_v33 }
 0x62c   : > { %v12860_v44 = vpop.f32.mrf.mxu1 }
 0x62d   : > { %v4293_v27 = vadd.f32 %v4189_v23, %v3907_v7  ;;  %v4696_v63 = vadd.f32 %v4593_v48, %v4390_v35  ;;  %7241 = vmatmul.lmr.bf16.gmra.16.mxu3  ;;  %v4839_v48 = vpop.trf.xlu0 }
 0x62f   : > { %4341 = vst [vmem:[%s7676_s25 + $0x50] sm:$0xff] %v4293_v27  ;;  %7129 = vmatmul.lmr.bf16.gmra.16.mxu1  ;;  %v3911_v27 = vld [vmem:[%s7676_s25 + $0x70] sm:$0xff] }
 0x630   : > { %4744 = vst [vmem:[%s7681_s28 + $0x58] sm:$0xff] %v4696_v63  ;;  %v12864_v11 = vpop.f32.mrf.mxu3 }
 0x632   : > { %v4190_v40 = vpop.f32.mrf.mxu2  ;;  %v4595_v42 = vpop.f32.mrf.mxu0 }
 0x633   : > { %v4191_v38 = vadd.f32 %v4190_v40, %v12713_v17  ;;  %v4596_v33 = vadd.f32 %v4595_v42, %v12723_v12  ;;  %v3909_v17 = vld [vmem:[%s7676_s25 + $0x60] sm:$0xff] }
 0x634   : > { %v12871_v53 = vpop.f32.mrf.mxu1 }
 0x635   : > { %v4294_v21 = vadd.f32 %v4191_v38, %v3908_v22  ;;  %v4697_v2 = vadd.f32 %v4596_v33, %v4391_v55  ;;  %4634 = vmatmul.bf16.gmra.mxu0 %v12721_v31  ;;  %7242 = vmatmul.lmr.bf16.gmra.16.mxu3  ;;  %v3912_v33 = vld [vmem:[%s7676_s25 + $0x78] sm:$0xff] }
 0x637   : > { %4342 = vst [vmem:[%s7676_s25 + $0x58] sm:$0xff] %v4294_v21  ;;  %4232 = vmatmul.bf16.gmra.mxu2 %v12721_v31  ;;  %7130 = vmatmul.lmr.bf16.gmra.16.mxu1 }
 0x638   : > { %4745 = vst [vmem:[%s7681_s28 + $0x60] sm:$0xff] %v4697_v2  ;;  %v12876_v32 = vpop.f32.mrf.mxu3  ;;  %v4395_v2 = vld [vmem:[%s7681_s28 + $0x80] sm:$0xff] }
 0x63a   : > { %v4193_v12 = vpop.f32.mrf.mxu2  ;;  %v4597_v61 = vpop.f32.mrf.mxu0 }
 0x63b   : > { %v4194_v6 = vadd.f32 %v4193_v12, %v12717_v15  ;;  %v4598_v14 = vadd.f32 %v4597_v61, %v12727_v51 }
 0x63c   : > { %v12883_v31 = vpop.f32.mrf.mxu1 }
 0x63d   : > { %v4295_v54 = vadd.f32 %v4194_v6, %v3909_v17  ;;  %v4698_v0 = vadd.f32 %v4598_v14, %v4392_v18  ;;  %7243 = vmatmul.lmr.bf16.gmra.16.mxu3  ;;  %v12912_v18 = vpop.trf.xlu0 }
 0x63f   : > { %4343 = vst [vmem:[%s7676_s25 + $0x60] sm:$0xff] %v4295_v54  ;;  %7131 = vmatmul.lmr.bf16.gmra.16.mxu1  ;;  %v4396_v54 = vld [vmem:[%s7681_s28 + $0x88] sm:$0xff] }
 0x640   : > { %4746 = vst [vmem:[%s7681_s28 + $0x68] sm:$0xff] %v4698_v0  ;;  %v12888_v10 = vpop.f32.mrf.mxu3 }
 0x642   : > { %v4195_v15 = vpop.f32.mrf.mxu2  ;;  %v4600_v51 = vpop.f32.mrf.mxu0 }
 0x643   : > { %v4196_v7 = vadd.f32 %v4195_v15, %v12725_v59  ;;  %v4601_v3 = vadd.f32 %v4600_v51, %v12731_v25  ;;  %v4394_v59 = vld [vmem:[%s7681_s28 + $0x78] sm:$0xff] }
 0x644   : > { %v12896_v23 = vpop.f32.mrf.mxu1 }
 0x645   : > { %v4296_v35 = vadd.f32 %v4196_v7, %v3910_v62  ;;  %v4699_v36 = vadd.f32 %v4601_v3, %v4393_v37  ;;  %4639 = vmatmul.bf16.gmra.mxu0 %v4008_v30  ;;  %7244 = vmatmul.lmr.bf16.gmra.16.mxu3  ;;  %v4841_v7 = vpop.trf.xlu0  ;;  %v3914_v3 = vld [vmem:[%s7676_s25 + $0x88] sm:$0xff] }
 0x647   : > { %4344 = vst [vmem:[%s7676_s25 + $0x68] sm:$0xff] %v4296_v35  ;;  %4237 = vmatmul.bf16.gmra.mxu2 %v4008_v30  ;;  %7132 = vmatmul.lmr.bf16.gmra.16.mxu1 }
 0x648   : > { %4747 = vst [vmem:[%s7681_s28 + $0x70] sm:$0xff] %v4699_v36  ;;  %v12902_v55 = vpop.f32.mrf.mxu3  ;;  %v4397_v36 = vld [vmem:[%s7681_s28 + $0x90] sm:$0xff] }
 0x64a   : > { %v4198_v63 = vpop.f32.mrf.mxu2  ;;  %v4602_v22 = vpop.f32.mrf.mxu0 }
 0x64b   : > { %v4199_v25 = vadd.f32 %v4198_v63, %v12729_v28  ;;  %v4603_v40 = vadd.f32 %v4602_v22, %v12735_v9 }
 0x64c   : > { %v12910_v9 = vpop.f32.mrf.mxu1 }
 0x64d   : > { %v4297_v42 = vadd.f32 %v4199_v25, %v3911_v27  ;;  %v4700_v38 = vadd.f32 %v4603_v40, %v4394_v59  ;;  %7245 = vmatmul.lmr.bf16.gmra.16.mxu3  ;;  %v12935_v25 = vpop.trf.xlu0 }
 0x64f   : > { %4345 = vst [vmem:[%s7676_s25 + $0x70] sm:$0xff] %v4297_v42  ;;  %7133 = vmatmul.lmr.bf16.gmra.16.mxu1  ;;  %v4398_v42 = vld [vmem:[%s7681_s28 + $0x98] sm:$0xff] }
 0x650   : > { %4748 = vst [vmem:[%s7681_s28 + $0x78] sm:$0xff] %v4700_v38  ;;  %v12914_v14 = vpop.f32.mrf.mxu3 }
 0x652   : > { %v4200_v21 = vpop.f32.mrf.mxu2  ;;  %v4605_v17 = vpop.f32.mrf.mxu0 }
 0x653   : > { %v4201_v12 = vadd.f32 %v4200_v21, %v12733_v34  ;;  %v4606_v28 = vadd.f32 %v4605_v17, %v12744_v26  ;;  %v3913_v34 = vld [vmem:[%s7676_s25 + $0x80] sm:$0xff] }
 0x654   : > { %7254 = vllmr.16.mxu3  ;;  %v12922_v51 = vpop.f32.mrf.mxu1 }
 0x655   : > { %v4298_v61 = vadd.f32 %v4201_v12, %v3912_v33  ;;  %v4701_v6 = vadd.f32 %v4606_v28, %v4395_v2  ;;  %7062 = vmatmul.lmr.bf16.gmra.16.mxu0  ;;  %5319 = vmatmul.bf16.vlgmr.msra.gmra.mxu3 %v4837_v56  ;;  %v4843_v12 = vpop.trf.xlu0  ;;  %v3916_v28 = vld [vmem:[%s7676_s25 + $0x98] sm:$0xff] }
 0x656   : > { %7142 = vllmr.16.mxu1 }
 0x657   : > { %4346 = vst [vmem:[%s7676_s25 + $0x78] sm:$0xff] %v4298_v61  ;;  %7174 = vmatmul.lmr.bf16.gmra.16.mxu2  ;;  %4917 = vmatmul.bf16.vlgmr.msra.gmra.mxu1 %v4837_v56 }
 0x658   : > { %4749 = vst [vmem:[%s7681_s28 + $0x80] sm:$0xff] %v4701_v6  ;;  %v12925_v56 = vpop.f32.mrf.mxu3  ;;  %v4399_v6 = vld [vmem:[%s7681_s28 + $0xa0] sm:$0xff] }
 0x65a   : > { %v4203_v26 = vpop.f32.mrf.mxu2  ;;  %v4607_v0 = vpop.f32.mrf.mxu0 }
 0x65b   : > { %v4204_v30 = vadd.f32 %v4203_v26, %v12739_v13  ;;  %v4608_v62 = vadd.f32 %v4607_v0, %v12754_v50 }
 0x65c   : > { %v12933_v22 = vpop.f32.mrf.mxu1 }
 0x65d   : > { %v4299_v15 = vadd.f32 %v4204_v30, %v3913_v34  ;;  %v4702_v37 = vadd.f32 %v4608_v62, %v4396_v54  ;;  %7063 = vmatmul.lmr.bf16.gmra.16.mxu0  ;;  %v3917_v30 = vld [vmem:[%s7676_s25 + $0xa0] sm:$0xff] }
 0x65f   : > { %4347 = vst [vmem:[%s7676_s25 + $0x80] sm:$0xff] %v4299_v15  ;;  %7175 = vmatmul.lmr.bf16.gmra.16.mxu2  ;;  %v4400_v15 = vld [vmem:[%s7681_s28 + $0xa8] sm:$0xff] }
 0x660   : > { %4750 = vst [vmem:[%s7681_s28 + $0x88] sm:$0xff] %v4702_v37  ;;  %v12938_v40 = vpop.f32.mrf.mxu3 }
 0x662   : > { %v4205_v35 = vpop.f32.mrf.mxu2  ;;  %v4610_v13 = vpop.f32.mrf.mxu0 }
 0x663   : > { %v4206_v50 = vadd.f32 %v4205_v35, %v12750_v47  ;;  %v4611_v27 = vadd.f32 %v4610_v13, %v12766_v20  ;;  %v3915_v47 = vld [vmem:[%s7676_s25 + $0x90] sm:$0xff]  ;;  %v12962_v35 = vpop.trf.xlu0 }
 0x665   : > { %v4300_v63 = vadd.f32 %v4206_v50, %v3914_v3  ;;  %v4703_v59 = vadd.f32 %v4611_v27, %v4397_v36  ;;  %7064 = vmatmul.lmr.bf16.gmra.16.mxu0  ;;  %5324 = vmatmul.bf16.gmra.mxu3 %v4839_v48  ;;  %v3918_v50 = vld [vmem:[%s7676_s25 + $0xa8] sm:$0xff] }
 0x667   : > { %4348 = vst [vmem:[%s7676_s25 + $0x88] sm:$0xff] %v4300_v63  ;;  %7176 = vmatmul.lmr.bf16.gmra.16.mxu2  ;;  %4922 = vmatmul.bf16.gmra.mxu1 %v4839_v48  ;;  %v12946_v48 = vpop.f32.mrf.mxu1 }
 0x668   : > { %4751 = vst [vmem:[%s7681_s28 + $0x90] sm:$0xff] %v4703_v59  ;;  %v12952_v26 = vpop.f32.mrf.mxu3 }
 0x66a   : > { %v4208_v20 = vpop.f32.mrf.mxu2  ;;  %v4612_v38 = vpop.f32.mrf.mxu0 }
 0x66b   : > { %v4209_v33 = vadd.f32 %v4208_v20, %v12760_v8  ;;  %v4613_v21 = vadd.f32 %v4612_v38, %v12776_v1  ;;  %v4845_v38 = vpop.trf.xlu0 }
 0x66d   : > { %v4301_v2 = vadd.f32 %v4209_v33, %v3915_v47  ;;  %v4704_v17 = vadd.f32 %v4613_v21, %v4398_v42  ;;  %7065 = vmatmul.lmr.bf16.gmra.16.mxu0  ;;  %v3919_v21 = vld [vmem:[%s7676_s25 + $0xb0] sm:$0xff] }
 0x66f   : > { %4349 = vst [vmem:[%s7676_s25 + $0x90] sm:$0xff] %v4301_v2  ;;  %7177 = vmatmul.lmr.bf16.gmra.16.mxu2  ;;  %v12960_v3 = vpop.f32.mrf.mxu1 }
 0x670   : > { %4752 = vst [vmem:[%s7681_s28 + $0x98] sm:$0xff] %v4704_v17 }
 0x672   : > { %v4210_v61 = vpop.f32.mrf.mxu2  ;;  %v4615_v34 = vpop.f32.mrf.mxu0 }
 0x673   : > { %v4211_v8 = vadd.f32 %v4210_v61, %v12772_v29  ;;  %v4616_v1 = vadd.f32 %v4615_v34, %v12788_v57 }
 0x675   : > { %v4302_v54 = vadd.f32 %v4211_v8, %v3916_v28  ;;  %v4705_v0 = vadd.f32 %v4616_v1, %v4399_v6  ;;  %7066 = vmatmul.lmr.bf16.gmra.16.mxu0  ;;  %5329 = vmatmul.bf16.gmra.mxu3 %v4841_v7  ;;  %v3920_v1 = vld [vmem:[%s7676_s25 + $0xb8] sm:$0xff] }
 0x677   : > { %4350 = vst [vmem:[%s7676_s25 + $0x98] sm:$0xff] %v4302_v54  ;;  %7178 = vmatmul.lmr.bf16.gmra.16.mxu2  ;;  %4927 = vmatmul.bf16.gmra.mxu1 %v4841_v7  ;;  %v12964_v7 = vpop.f32.mrf.mxu3  ;;  %v12972_v42 = vpop.f32.mrf.mxu1 }
 0x678   : > { %4753 = vst [vmem:[%s7681_s28 + $0xa0] sm:$0xff] %v4705_v0 }
 0x67a   : > { %v4213_v62 = vpop.f32.mrf.mxu2  ;;  %v4617_v29 = vpop.f32.mrf.mxu0 }
 0x67b   : > { %v4214_v57 = vadd.f32 %v4213_v62, %v12782_v24  ;;  %v4618_v37 = vadd.f32 %v4617_v29, %v12798_v52  ;;  %v4401_v24 = vld [vmem:[%s7681_s28 + $0xb0] sm:$0xff] }
 0x67d   : > { %v4303_v36 = vadd.f32 %v4214_v57, %v3917_v30  ;;  %v4706_v13 = vadd.f32 %v4618_v37, %v4400_v15  ;;  %7067 = vmatmul.lmr.bf16.gmra.16.mxu0  ;;  %v3921_v37 = vld [vmem:[%s7676_s25 + $0xc0] sm:$0xff] }
 0x67f   : > { %4351 = vst [vmem:[%s7676_s25 + $0xa0] sm:$0xff] %v4303_v36  ;;  %7179 = vmatmul.lmr.bf16.gmra.16.mxu2  ;;  %v12975_v33 = vpop.f32.mrf.mxu3  ;;  %v12983_v34 = vpop.f32.mrf.mxu1 }
 0x680   : > { %4754 = vst [vmem:[%s7681_s28 + $0xa8] sm:$0xff] %v4706_v13 }
 0x682   : > { %v4215_v27 = vpop.f32.mrf.mxu2  ;;  %v4620_v63 = vpop.f32.mrf.mxu0 }
 0x683   : > { %v4216_v52 = vadd.f32 %v4215_v27, %v12794_v45  ;;  %v4621_v59 = vadd.f32 %v4620_v63, %v12810_v43  ;;  %v4402_v43 = vld [vmem:[%s7681_s28 + $0xb8] sm:$0xff] }
 0x685   : > { %v4304_v47 = vadd.f32 %v4216_v52, %v3918_v50  ;;  %v4707_v20 = vadd.f32 %v4621_v59, %v4401_v24  ;;  %7068 = vmatmul.lmr.bf16.gmra.16.mxu0  ;;  %5334 = vmatmul.bf16.gmra.mxu3 %v4843_v12  ;;  %v3922_v52 = vld [vmem:[%s7676_s25 + $0xc8] sm:$0xff] }
 0x687   : > { %4352 = vst [vmem:[%s7676_s25 + $0xa8] sm:$0xff] %v4304_v47  ;;  %7180 = vmatmul.lmr.bf16.gmra.16.mxu2  ;;  %4932 = vmatmul.bf16.gmra.mxu1 %v4843_v12  ;;  %v12985_v12 = vpop.trf.xlu0  ;;  %v12988_v8 = vpop.f32.mrf.mxu3  ;;  %v4405_v47 = vld [vmem:[%s7681_s28 + $0xd0] sm:$0xff] }
 0x688   : > { %4755 = vst [vmem:[%s7681_s28 + $0xb0] sm:$0xff] %v4707_v20  ;;  %v12996_v29 = vpop.f32.mrf.mxu1 }
 0x68a   : > { %v4218_v45 = vpop.f32.mrf.mxu2  ;;  %v4622_v2 = vpop.f32.mrf.mxu0 }
 0x68b   : > { %v4219_v17 = vadd.f32 %v4218_v45, %v12804_v41  ;;  %v4623_v28 = vadd.f32 %v4622_v2, %v12820_v39  ;;  %v4403_v41 = vld [vmem:[%s7681_s28 + $0xc0] sm:$0xff] }
 0x68d   : > { %v4305_v61 = vadd.f32 %v4219_v17, %v3919_v21  ;;  %v4708_v6 = vadd.f32 %v4623_v28, %v4402_v43  ;;  %7069 = vmatmul.lmr.bf16.gmra.16.mxu0 }
 0x68f   : > { %4353 = vst [vmem:[%s7676_s25 + $0xb0] sm:$0xff] %v4305_v61  ;;  %7181 = vmatmul.lmr.bf16.gmra.16.mxu2  ;;  %v4847_v57 = vpop.trf.xlu0  ;;  %v13002_v27 = vpop.f32.mrf.mxu3 }
 0x690   : > { %4756 = vst [vmem:[%s7681_s28 + $0xb8] sm:$0xff] %v4708_v6 }
 0x692   : > { %v4220_v54 = vpop.f32.mrf.mxu2  ;;  %v4625_v39 = vpop.f32.mrf.mxu0 }
 0x693   : > { %v4221_v0 = vadd.f32 %v4220_v54, %v12816_v58  ;;  %v4626_v30 = vadd.f32 %v4625_v39, %v12832_v49  ;;  %v4404_v58 = vld [vmem:[%s7681_s28 + $0xc8] sm:$0xff] }
 0x695   : > { %v4306_v62 = vadd.f32 %v4221_v0, %v3920_v1  ;;  %v4709_v15 = vadd.f32 %v4626_v30, %v4403_v41  ;;  %7070 = vmatmul.lmr.bf16.gmra.16.mxu0  ;;  %5339 = vmatmul.bf16.gmra.mxu3 %v4845_v38  ;;  %v3924_v30 = vld [vmem:[%s7676_s25 + $0xd8] sm:$0xff] }
 0x697   : > { %4354 = vst [vmem:[%s7676_s25 + $0xb8] sm:$0xff] %v4306_v62  ;;  %7182 = vmatmul.lmr.bf16.gmra.16.mxu2  ;;  %4937 = vmatmul.bf16.gmra.mxu1 %v4845_v38  ;;  %v13010_v38 = vpop.f32.mrf.mxu1  ;;  %v13012_v21 = vpop.trf.xlu0 }
 0x698   : > { %4757 = vst [vmem:[%s7681_s28 + $0xc0] sm:$0xff] %v4709_v15  ;;  %v13014_v2 = vpop.f32.mrf.mxu3  ;;  %v4407_v15 = vld [vmem:[%s7681_s28 + $0xe0] sm:$0xff] }
 0x69a   : > { %v4223_v36 = vpop.f32.mrf.mxu2  ;;  %v4627_v13 = vpop.f32.mrf.mxu0 }
 0x69b   : > { %v4224_v49 = vadd.f32 %v4223_v36, %v12826_v4  ;;  %v4628_v50 = vadd.f32 %v4627_v13, %v12842_v46 }
 0x69d   : > { %v4307_v24 = vadd.f32 %v4224_v49, %v3921_v37  ;;  %v4710_v63 = vadd.f32 %v4628_v50, %v4404_v58  ;;  %7071 = vmatmul.lmr.bf16.gmra.16.mxu0  ;;  %v13032_v58 = vpop.trf.xlu2 }
 0x69f   : > { %4355 = vst [vmem:[%s7676_s25 + $0xc0] sm:$0xff] %v4307_v24  ;;  %7183 = vmatmul.lmr.bf16.gmra.16.mxu2  ;;  %v13022_v41 = vpop.f32.mrf.mxu1  ;;  %v4849_v39 = vpop.trf.xlu0  ;;  %v4408_v24 = vld [vmem:[%s7681_s28 + $0xe8] sm:$0xff] }
 0x6a0   : > { %4758 = vst [vmem:[%s7681_s28 + $0xc8] sm:$0xff] %v4710_v63  ;;  %v13025_v0 = vpop.f32.mrf.mxu3 }
 0x6a2   : > { %v4225_v59 = vpop.f32.mrf.mxu2  ;;  %v4630_v20 = vpop.f32.mrf.mxu0 }
 0x6a3   : > { %v4226_v4 = vadd.f32 %v4225_v59, %v12838_v5  ;;  %v4631_v46 = vadd.f32 %v4630_v20, %v12854_v16  ;;  %v3923_v5 = vld [vmem:[%s7676_s25 + $0xd0] sm:$0xff]  ;;  %v4406_v16 = vld [vmem:[%s7681_s28 + $0xd8] sm:$0xff] }
 0x6a5   : > { %v4308_v45 = vadd.f32 %v4226_v4, %v3922_v52  ;;  %v4711_v43 = vadd.f32 %v4631_v46, %v4405_v47  ;;  %7072 = vmatmul.lmr.bf16.gmra.16.mxu0  ;;  %5344 = vmatmul.bf16.gmra.mxu3 %v4847_v57  ;;  %v13047_v4 = vpop.trf.xlu2 }
 0x6a7   : > { %4356 = vst [vmem:[%s7676_s25 + $0xc8] sm:$0xff] %v4308_v45  ;;  %7184 = vmatmul.lmr.bf16.gmra.16.mxu2  ;;  %4942 = vmatmul.bf16.gmra.mxu1 %v4847_v57  ;;  %v13035_v13 = vpop.f32.mrf.mxu1  ;;  %v13037_v49 = vpop.trf.xlu0 }
 0x6a8   : > { %4759 = vst [vmem:[%s7681_s28 + $0xd0] sm:$0xff] %v4711_v43  ;;  %v3926_v43 = vld [vmem:[%s7676_s25 + $0xe8] sm:$0xff] }
 0x6aa   : > { %v4228_v17 = vpop.f32.mrf.mxu2  ;;  %v4632_v28 = vpop.f32.mrf.mxu0 }
 0x6ab   : > { %v4229_v61 = vadd.f32 %v4228_v17, %v12848_v60  ;;  %v4633_v6 = vadd.f32 %v4632_v28, %v12864_v11  ;;  %v4409_v17 = vld [vmem:[%s7681_s28 + $0xf0] sm:$0xff] }
 0x6ad   : > { %v4309_v1 = vadd.f32 %v4229_v61, %v3923_v5  ;;  %v4712_v54 = vadd.f32 %v4633_v6, %v4406_v16  ;;  %7073 = vmatmul.lmr.bf16.gmra.16.mxu0 }
 0x6af   : > { %4357 = vst [vmem:[%s7676_s25 + $0xd0] sm:$0xff] %v4309_v1  ;;  %7185 = vmatmul.lmr.bf16.gmra.16.mxu2  ;;  %v13050_v46 = vpop.f32.mrf.mxu1  ;;  %v4851_v45 = vpop.trf.xlu0 }
 0x6b0   : > { %4760 = vst [vmem:[%s7681_s28 + $0xd8] sm:$0xff] %v4712_v54  ;;  %v4879_v1 = vpop.trf.xlu2  ;;  %v3927_v54 = vld [vmem:[%s7676_s25 + $0xf0] sm:$0xff] }
 0x6b2   : > { %v4230_v62 = vpop.f32.mrf.mxu2  ;;  %v4635_v60 = vpop.f32.mrf.mxu0 }
 0x6b3   : > { %v4231_v11 = vadd.f32 %v4230_v62, %v12860_v44  ;;  %v4636_v57 = vadd.f32 %v4635_v60, %v12876_v32  ;;  %v13040_v44 = vpop.f32.mrf.mxu3  ;;  %v3925_v32 = vld [vmem:[%s7676_s25 + $0xe0] sm:$0xff] }
 0x6b5   : > { %v4310_v37 = vadd.f32 %v4231_v11, %v3924_v30  ;;  %v4713_v36 = vadd.f32 %v4636_v57, %v4407_v15  ;;  %7074 = vmatmul.lmr.bf16.gmra.16.mxu0  ;;  %5349 = vmatmul.bf16.gmra.mxu3 %v4849_v39 }
 0x6b7   : > { %4358 = vst [vmem:[%s7676_s25 + $0xd8] sm:$0xff] %v4310_v37  ;;  %7186 = vmatmul.lmr.bf16.gmra.16.mxu2  ;;  %4947 = vmatmul.bf16.gmra.mxu1 %v4849_v39  ;;  %v13064_v15 = vpop.f32.mrf.mxu1  ;;  %v3928_v37 = vld [vmem:[%s7676_s25 + $0xf8] sm:$0xff] }
 0x6b8   : > { %4761 = vst [vmem:[%s7681_s28 + $0xe0] sm:$0xff] %v4713_v36 }
 0x6ba   : > { %v4233_v50 = vpop.f32.mrf.mxu2  ;;  %v4637_v63 = vpop.f32.mrf.mxu0 }
 0x6bb   : > { %v4234_v52 = vadd.f32 %v4233_v50, %v12871_v53  ;;  %v4638_v59 = vadd.f32 %v4637_v63, %v12888_v10  ;;  %v13056_v28 = vpop.f32.mrf.mxu3 }
 0x6bd   : > { %v4311_v47 = vadd.f32 %v4234_v52, %v3925_v32  ;;  %v4714_v20 = vadd.f32 %v4638_v59, %v4408_v24  ;;  %7075 = vmatmul.lmr.bf16.gmra.16.mxu0  ;;  %v4411_v32 = vld [vmem:[%s7681_s28 + $0x100] sm:$0xff]  ;;  %v13074_v24 = vpop.trf.xlu2 }
 0x6bf   : > { %4359 = vst [vmem:[%s7676_s25 + $0xe0] sm:$0xff] %v4311_v47  ;;  %7187 = vmatmul.lmr.bf16.gmra.16.mxu2  ;;  %v13077_v59 = vpop.f32.mrf.mxu1 }
 0x6c0   : > { %4762 = vst [vmem:[%s7681_s28 + $0xe8] sm:$0xff] %v4714_v20  ;;  %v4412_v20 = vld [vmem:[%s7681_s28 + $0x108] sm:$0xff] }
 0x6c2   : > { %v4235_v5 = vpop.f32.mrf.mxu2  ;;  %v4640_v53 = vpop.f32.mrf.mxu0 }
 0x6c3   : > { %v4236_v10 = vadd.f32 %v4235_v5, %v12883_v31  ;;  %v4641_v16 = vadd.f32 %v4640_v53, %v12902_v55  ;;  %v4410_v31 = vld [vmem:[%s7681_s28 + $0xf8] sm:$0xff]  ;;  %v13066_v57 = vpop.f32.mrf.mxu3 }
 0x6c5   : > { %v4312_v61 = vadd.f32 %v4236_v10, %v3926_v43  ;;  %v4715_v6 = vadd.f32 %v4641_v16, %v4409_v17  ;;  %7076 = vmatmul.lmr.bf16.gmra.16.mxu0  ;;  %5354 = vmatmul.bf16.gmra.mxu3 %v4851_v45  ;;  %v4881_v10 = vpop.trf.xlu2  ;;  %v3930_v16 = vld [vmem:[%s7676_s25 + $0x108] sm:$0xff] }
 0x6c7   : > { %4360 = vst [vmem:[%s7676_s25 + $0xe8] sm:$0xff] %v4312_v61  ;;  %7188 = vmatmul.lmr.bf16.gmra.16.mxu2  ;;  %4952 = vmatmul.bf16.gmra.mxu1 %v4851_v45 }
 0x6c8   : > { %4763 = vst [vmem:[%s7681_s28 + $0xf0] sm:$0xff] %v4715_v6  ;;  %v4413_v6 = vld [vmem:[%s7681_s28 + $0x110] sm:$0xff] }
 0x6ca   : > { %v4238_v39 = vpop.f32.mrf.mxu2  ;;  %v4642_v30 = vpop.f32.mrf.mxu0 }
 0x6cb   : > { %v4239_v55 = vadd.f32 %v4238_v39, %v12896_v23  ;;  %v4643_v62 = vadd.f32 %v4642_v30, %v12914_v14 }
 0x6cd   : > { %v4313_v60 = vadd.f32 %v4239_v55, %v3927_v54  ;;  %v4716_v11 = vadd.f32 %v4643_v62, %v4410_v31  ;;  %7077 = vmatmul.lmr.bf16.gmra.16.mxu0  ;;  %v13102_v30 = vpop.trf.xlu2  ;;  %v4414_v62 = vld [vmem:[%s7681_s28 + $0x118] sm:$0xff] }
 0x6cf   : > { %4361 = vst [vmem:[%s7676_s25 + $0xf0] sm:$0xff] %v4313_v60  ;;  %7189 = vmatmul.lmr.bf16.gmra.16.mxu2 }
 0x6d0   : > { %4764 = vst [vmem:[%s7681_s28 + $0xf8] sm:$0xff] %v4716_v11 }
 0x6d2   : > { %v4240_v36 = vpop.f32.mrf.mxu2  ;;  %v4645_v50 = vpop.f32.mrf.mxu0 }
 0x6d3   : > { %v4241_v23 = vadd.f32 %v4240_v36, %v12910_v9  ;;  %v4646_v14 = vadd.f32 %v4645_v50, %v12925_v56  ;;  %v13082_v9 = vpop.f32.mrf.mxu3  ;;  %v3929_v56 = vld [vmem:[%s7676_s25 + $0x100] sm:$0xff]  ;;  %v3932_v50 = vld [vmem:[%s7676_s25 + $0x118] sm:$0xff] }
 0x6d4   : > { %7086 = vllmr.16.mxu0 }
 0x6d5   : > { %v4314_v63 = vadd.f32 %v4241_v23, %v3928_v37  ;;  %v4717_v52 = vadd.f32 %v4646_v14, %v4411_v32  ;;  %5448 = vmatmul.bf16.vlgmr.msra.gmra.mxu0 %v13032_v58  ;;  %5359 = vmatmul.bf16.gmra.mxu3 %v12886_v19  ;;  %v4415_v14 = vld [vmem:[%s7681_s28 + $0x120] sm:$0xff] }
 0x6d6   : > { %7198 = vllmr.16.mxu2 }
 0x6d7   : > { %4362 = vst [vmem:[%s7676_s25 + $0xf8] sm:$0xff] %v4314_v63  ;;  %5046 = vmatmul.bf16.vlgmr.msra.gmra.mxu2 %v13032_v58  ;;  %4957 = vmatmul.bf16.gmra.mxu1 %v12886_v19  ;;  %v13091_v58 = vpop.f32.mrf.mxu1 }
 0x6d8   : > { %4765 = vst [vmem:[%s7681_s28 + $0x100] sm:$0xff] %v4717_v52 }
 0x6da   : > { %v4243_v47 = vpop.f32.mrf.mxu2  ;;  %v4647_v45 = vpop.f32.mrf.mxu0 }
 0x6db   : > { %v4244_v43 = vadd.f32 %v4243_v47, %v12922_v51  ;;  %v4648_v5 = vadd.f32 %v4647_v45, %v12938_v40  ;;  %v13094_v19 = vpop.f32.mrf.mxu3  ;;  %v4416_v45 = vld [vmem:[%s7681_s28 + $0x128] sm:$0xff] }
 0x6dd   : > { %v4315_v17 = vadd.f32 %v4244_v43, %v3929_v56  ;;  %v4718_v53 = vadd.f32 %v4648_v5, %v4412_v20 }
 0x6df   : > { %4363 = vst [vmem:[%s7676_s25 + $0x100] sm:$0xff] %v4315_v17  ;;  %v13106_v55 = vpop.f32.mrf.mxu1 }
 0x6e0   : > { %4766 = vst [vmem:[%s7681_s28 + $0x108] sm:$0xff] %v4718_v53 }
 0x6e2   : > { %v4245_v61 = vpop.f32.mrf.mxu2  ;;  %v4650_v54 = vpop.f32.mrf.mxu0 }
 0x6e3   : > { %v4246_v51 = vadd.f32 %v4245_v61, %v12933_v22  ;;  %v4651_v40 = vadd.f32 %v4650_v54, %v12952_v26  ;;  %v3931_v22 = vld [vmem:[%s7676_s25 + $0x110] sm:$0xff]  ;;  %v13112_v36 = vpop.f32.mrf.mxu3 }
 0x6e5   : > { %v4316_v39 = vadd.f32 %v4246_v51, %v3930_v16  ;;  %v4719_v31 = vadd.f32 %v4651_v40, %v4413_v6  ;;  %5453 = vmatmul.bf16.gmra.mxu0 %v4879_v1  ;;  %5364 = vmatmul.bf16.gmra.mxu3 %v12912_v18  ;;  %v4417_v51 = vld [vmem:[%s7681_s28 + $0x130] sm:$0xff] }
 0x6e7   : > { %4364 = vst [vmem:[%s7676_s25 + $0x108] sm:$0xff] %v4316_v39  ;;  %5051 = vmatmul.bf16.gmra.mxu2 %v4879_v1  ;;  %4962 = vmatmul.bf16.gmra.mxu1 %v12912_v18  ;;  %v4883_v18 = vpop.trf.xlu2 }
 0x6e8   : > { %4767 = vst [vmem:[%s7681_s28 + $0x110] sm:$0xff] %v4719_v31 }
 0x6ea   : > { %v4248_v26 = vpop.f32.mrf.mxu2  ;;  %v4652_v60 = vpop.f32.mrf.mxu0 }
 0x6eb   : > { %v4249_v11 = vadd.f32 %v4248_v26, %v12946_v48  ;;  %v4653_v37 = vadd.f32 %v4652_v60, %v12964_v7  ;;  %v13120_v7 = vpop.f32.mrf.mxu1  ;;  %v13122_v20 = vpop.f32.mrf.mxu3  ;;  %v4418_v60 = vld [vmem:[%s7681_s28 + $0x138] sm:$0xff] }
 0x6ed   : > { %v4317_v1 = vadd.f32 %v4249_v11, %v3931_v22  ;;  %v4720_v32 = vadd.f32 %v4653_v37, %v4414_v62 }
 0x6ef   : > { %4365 = vst [vmem:[%s7676_s25 + $0x110] sm:$0xff] %v4317_v1  ;;  %v13132_v53 = vpop.trf.xlu2 }
 0x6f0   : > { %4768 = vst [vmem:[%s7681_s28 + $0x118] sm:$0xff] %v4720_v32 }
 0x6f2   : > { %v4250_v23 = vpop.f32.mrf.mxu2  ;;  %v4655_v63 = vpop.f32.mrf.mxu0 }
 0x6f3   : > { %v4251_v52 = vadd.f32 %v4250_v23, %v12960_v3  ;;  %v4656_v48 = vadd.f32 %v4655_v63, %v12975_v33  ;;  %v3933_v3 = vld [vmem:[%s7676_s25 + $0x120] sm:$0xff]  ;;  %v13134_v6 = vpop.f32.mrf.mxu1  ;;  %v3936_v23 = vld [vmem:[%s7676_s25 + $0x138] sm:$0xff] }
 0x6f4   : > { %v4419_v63 = vld [vmem:[%s7681_s28 + $0x140] sm:$0xff] }
 0x6f5   : > { %v4318_v56 = vadd.f32 %v4251_v52, %v3932_v50  ;;  %v4721_v47 = vadd.f32 %v4656_v48, %v4415_v14  ;;  %5458 = vmatmul.bf16.gmra.mxu0 %v4881_v10  ;;  %5369 = vmatmul.bf16.gmra.mxu3 %v12935_v25 }
 0x6f7   : > { %4366 = vst [vmem:[%s7676_s25 + $0x118] sm:$0xff] %v4318_v56  ;;  %5056 = vmatmul.bf16.gmra.mxu2 %v4881_v10  ;;  %4967 = vmatmul.bf16.gmra.mxu1 %v12935_v25  ;;  %v13137_v10 = vpop.f32.mrf.mxu3  ;;  %v3934_v25 = vld [vmem:[%s7676_s25 + $0x128] sm:$0xff]  ;;  %v4885_v22 = vpop.trf.xlu2 }
 0x6f8   : > { %4769 = vst [vmem:[%s7681_s28 + $0x120] sm:$0xff] %v4721_v47 }
 0x6fa   : > { %v4253_v33 = vpop.f32.mrf.mxu2  ;;  %v4657_v43 = vpop.f32.mrf.mxu0 }
 0x6fb   : > { %v4254_v5 = vadd.f32 %v4253_v33, %v12972_v42  ;;  %v4658_v17 = vadd.f32 %v4657_v43, %v12988_v8  ;;  %v13146_v26 = vpop.f32.mrf.mxu1 }
 0x6fd   : > { %v4319_v16 = vadd.f32 %v4254_v5, %v3933_v3  ;;  %v4722_v61 = vadd.f32 %v4658_v17, %v4416_v45 }
 0x6ff   : > { %4367 = vst [vmem:[%s7676_s25 + $0x120] sm:$0xff] %v4319_v16 }
 0x700   : > { %4770 = vst [vmem:[%s7681_s28 + $0x128] sm:$0xff] %v4722_v61 }
 0x702   : > { %v4255_v54 = vpop.f32.mrf.mxu2  ;;  %v4660_v40 = vpop.f32.mrf.mxu0 }
 0x703   : > { %v4256_v42 = vadd.f32 %v4255_v54, %v12983_v34  ;;  %v4661_v8 = vadd.f32 %v4660_v40, %v13002_v27  ;;  %v13150_v34 = vpop.f32.mrf.mxu3  ;;  %v3935_v27 = vld [vmem:[%s7676_s25 + $0x130] sm:$0xff] }
 0x705   : > { %v4320_v39 = vadd.f32 %v4256_v42, %v3934_v25  ;;  %v4723_v31 = vadd.f32 %v4661_v8, %v4417_v51  ;;  %5463 = vmatmul.bf16.gmra.mxu0 %v4883_v18  ;;  %5374 = vmatmul.bf16.gmra.mxu3 %v12962_v35  ;;  %v4421_v51 = vld [vmem:[%s7681_s28 + $0x150] sm:$0xff] }
 0x707   : > { %4368 = vst [vmem:[%s7676_s25 + $0x128] sm:$0xff] %v4320_v39  ;;  %5061 = vmatmul.bf16.gmra.mxu2 %v4883_v18  ;;  %4972 = vmatmul.bf16.gmra.mxu1 %v12962_v35  ;;  %v13157_v18 = vpop.trf.xlu2  ;;  %v13160_v35 = vpop.f32.mrf.mxu1 }
 0x708   : > { %4771 = vst [vmem:[%s7681_s28 + $0x130] sm:$0xff] %v4723_v31 }
 0x70a   : > { %v4258_v62 = vpop.f32.mrf.mxu2  ;;  %v4662_v11 = vpop.f32.mrf.mxu0 }
 0x70b   : > { %v4259_v37 = vadd.f32 %v4258_v62, %v12996_v29  ;;  %v4663_v1 = vadd.f32 %v4662_v11, %v13014_v2  ;;  %v13166_v48 = vpop.f32.mrf.mxu3 }
 0x70d   : > { %v4321_v32 = vadd.f32 %v4259_v37, %v3935_v27  ;;  %v4724_v50 = vadd.f32 %v4663_v1, %v4418_v60  ;;  %v4422_v27 = vld [vmem:[%s7681_s28 + $0x158] sm:$0xff] }
 0x70f   : > { %4369 = vst [vmem:[%s7676_s25 + $0x130] sm:$0xff] %v4321_v32  ;;  %v4887_v3 = vpop.trf.xlu2  ;;  %v13176_v17 = vpop.f32.mrf.mxu1 }
 0x710   : > { %4772 = vst [vmem:[%s7681_s28 + $0x138] sm:$0xff] %v4724_v50 }
 0x712   : > { %v4260_v14 = vpop.f32.mrf.mxu2  ;;  %v4665_v52 = vpop.f32.mrf.mxu0 }
 0x713   : > { %v4261_v29 = vadd.f32 %v4260_v14, %v13010_v38  ;;  %v4666_v2 = vadd.f32 %v4665_v52, %v13025_v0  ;;  %v3937_v38 = vld [vmem:[%s7676_s25 + $0x140] sm:$0xff]  ;;  %v4420_v0 = vld [vmem:[%s7681_s28 + $0x148] sm:$0xff]  ;;  %v13178_v25 = vpop.f32.mrf.mxu3 }
 0x715   : > { %v4322_v56 = vadd.f32 %v4261_v29, %v3936_v23  ;;  %v4725_v47 = vadd.f32 %v4666_v2, %v4419_v63  ;;  %5468 = vmatmul.bf16.gmra.mxu0 %v4885_v22  ;;  %5379 = vmatmul.bf16.gmra.mxu3 %v12985_v12  ;;  %v3940_v23 = vld [vmem:[%s7676_s25 + $0x158] sm:$0xff]  ;;  %v4423_v63 = vld [vmem:[%s7681_s28 + $0x160] sm:$0xff] }
 0x717   : > { %4370 = vst [vmem:[%s7676_s25 + $0x138] sm:$0xff] %v4322_v56  ;;  %5066 = vmatmul.bf16.gmra.mxu2 %v4885_v22  ;;  %4977 = vmatmul.bf16.gmra.mxu1 %v12985_v12  ;;  %v3938_v12 = vld [vmem:[%s7676_s25 + $0x148] sm:$0xff]  ;;  %v13186_v42 = vpop.trf.xlu2  ;;  %v13188_v31 = vpop.f32.mrf.mxu1 }
 0x718   : > { %4773 = vst [vmem:[%s7681_s28 + $0x140] sm:$0xff] %v4725_v47 }
 0x71a   : > { %v4263_v33 = vpop.f32.mrf.mxu2  ;;  %v4667_v45 = vpop.f32.mrf.mxu0 }
 0x71b   : > { %v4264_v43 = vadd.f32 %v4263_v33, %v13022_v41  ;;  %v4668_v5 = vadd.f32 %v4667_v45, %v13040_v44  ;;  %v13192_v22 = vpop.f32.mrf.mxu3 }
 0x71d   : > { %v4323_v16 = vadd.f32 %v4264_v43, %v3937_v38  ;;  %v4726_v61 = vadd.f32 %v4668_v5, %v4420_v0 }
 0x71f   : > { %4371 = vst [vmem:[%s7676_s25 + $0x140] sm:$0xff] %v4323_v16  ;;  %v4889_v32 = vpop.trf.xlu2  ;;  %v13201_v50 = vpop.f32.mrf.mxu1  ;;  %v3942_v16 = vld [vmem:[%s7676_s25 + $0x168] sm:$0xff] }
 0x720   : > { %4774 = vst [vmem:[%s7681_s28 + $0x148] sm:$0xff] %v4726_v61 }
 0x722   : > { %v4265_v54 = vpop.f32.mrf.mxu2  ;;  %v4670_v40 = vpop.f32.mrf.mxu0 }
 0x723   : > { %v4266_v41 = vadd.f32 %v4265_v54, %v13035_v13  ;;  %v4671_v44 = vadd.f32 %v4670_v40, %v13056_v28  ;;  %v3939_v13 = vld [vmem:[%s7676_s25 + $0x150] sm:$0xff] }
 0x725   : > { %v4324_v8 = vadd.f32 %v4266_v41, %v3938_v12  ;;  %v4727_v39 = vadd.f32 %v4671_v44, %v4421_v51  ;;  %5473 = vmatmul.bf16.gmra.mxu0 %v4887_v3  ;;  %5384 = vmatmul.bf16.gmra.mxu3 %v13012_v21  ;;  %v4425_v12 = vld [vmem:[%s7681_s28 + $0x170] sm:$0xff] }
 0x727   : > { %4372 = vst [vmem:[%s7676_s25 + $0x148] sm:$0xff] %v4324_v8  ;;  %5071 = vmatmul.bf16.gmra.mxu2 %v4887_v3  ;;  %4982 = vmatmul.bf16.gmra.mxu1 %v13012_v21  ;;  %v13204_v21 = vpop.f32.mrf.mxu3  ;;  %v13212_v56 = vpop.trf.xlu2  ;;  %v4424_v3 = vld [vmem:[%s7681_s28 + $0x168] sm:$0xff]  ;;  %v3943_v8 = vld [vmem:[%s7676_s25 + $0x170] sm:$0xff] }
 0x728   : > { %4775 = vst [vmem:[%s7681_s28 + $0x150] sm:$0xff] %v4727_v39  ;;  %v13216_v47 = vpop.f32.mrf.mxu1 }
 0x72a   : > { %v4268_v28 = vpop.f32.mrf.mxu2  ;;  %v4672_v62 = vpop.f32.mrf.mxu0 }
 0x72b   : > { %v4269_v60 = vadd.f32 %v4268_v28, %v13050_v46  ;;  %v4673_v11 = vadd.f32 %v4672_v62, %v13066_v57 }
 0x72d   : > { %v4325_v37 = vadd.f32 %v4269_v60, %v3939_v13  ;;  %v4728_v1 = vadd.f32 %v4673_v11, %v4422_v27  ;;  %v4426_v13 = vld [vmem:[%s7681_s28 + $0x178] sm:$0xff] }
 0x72f   : > { %4373 = vst [vmem:[%s7676_s25 + $0x150] sm:$0xff] %v4325_v37  ;;  %v13222_v45 = vpop.f32.mrf.mxu3  ;;  %v3944_v37 = vld [vmem:[%s7676_s25 + $0x178] sm:$0xff] }
 0x730   : > { %4776 = vst [vmem:[%s7681_s28 + $0x158] sm:$0xff] %v4728_v1 }
 0x732   : > { %v4270_v14 = vpop.f32.mrf.mxu2  ;;  %v4675_v52 = vpop.f32.mrf.mxu0 }
 0x733   : > { %v4271_v46 = vadd.f32 %v4270_v14, %v13064_v15  ;;  %v4676_v57 = vadd.f32 %v4675_v52, %v13082_v9  ;;  %v3941_v15 = vld [vmem:[%s7676_s25 + $0x160] sm:$0xff] }
 0x735   : > { %v4326_v29 = vadd.f32 %v4271_v46, %v3940_v23  ;;  %v4729_v2 = vadd.f32 %v4676_v57, %v4423_v63  ;;  %5478 = vmatmul.bf16.gmra.mxu0 %v4889_v32  ;;  %5389 = vmatmul.bf16.gmra.mxu3 %v13037_v49  ;;  %v4781_v57 = vld [vmem:[%s7686_s11] sm:$0xff] }
 0x737   : > { %4374 = vst [vmem:[%s7676_s25 + $0x158] sm:$0xff] %v4326_v29  ;;  %5076 = vmatmul.bf16.gmra.mxu2 %v4889_v32  ;;  %4987 = vmatmul.bf16.gmra.mxu1 %v13037_v49  ;;  %v4891_v49 = vpop.trf.xlu2  ;;  %v13232_v44 = vpop.f32.mrf.mxu3  ;;  %v5263_v32 = vld [vmem:[%s7691_s19] sm:$0xff]  ;;  %v5264_v29 = vld [vmem:[%s7691_s19 + $0x8] sm:$0xff] }
 0x738   : > { %4777 = vst [vmem:[%s7681_s28 + $0x160] sm:$0xff] %v4729_v2 }
 0x73a   : > { %v4273_v9 = vpop.f32.mrf.mxu2  ;;  %v4677_v38 = vpop.f32.mrf.mxu0 }
 0x73b   : > { %v4274_v33 = vadd.f32 %v4273_v9, %v13077_v59  ;;  %v4678_v0 = vadd.f32 %v4677_v38, %v13094_v19  ;;  %v13230_v19 = vpop.f32.mrf.mxu1  ;;  %v4782_v38 = vld [vmem:[%s7686_s11 + $0x8] sm:$0xff] }
 0x73d   : > { %v4327_v43 = vadd.f32 %v4274_v33, %v3941_v15  ;;  %v4730_v5 = vadd.f32 %v4678_v0, %v4424_v3  ;;  %v5265_v0 = vld [vmem:[%s7691_s19 + $0x10] sm:$0xff] }
 0x73f   : > { %4375 = vst [vmem:[%s7676_s25 + $0x160] sm:$0xff] %v4327_v43  ;;  %v13243_v11 = vpop.f32.mrf.mxu3 }
 0x740   : > { %4778 = vst [vmem:[%s7681_s28 + $0x168] sm:$0xff] %v4730_v5 }
 0x742   : > { %v4275_v61 = vpop.f32.mrf.mxu2  ;;  %v4680_v54 = vpop.f32.mrf.mxu0 }
 0x743   : > { %v4276_v51 = vadd.f32 %v4275_v61, %v13091_v58  ;;  %v4681_v59 = vadd.f32 %v4680_v54, %v13112_v36  ;;  %v13240_v60 = vpop.f32.mrf.mxu1  ;;  %v4783_v61 = vld [vmem:[%s7686_s11 + $0x10] sm:$0xff]  ;;  %v5266_v54 = vld [vmem:[%s7691_s19 + $0x18] sm:$0xff] }
 0x745   : > { %v4328_v40 = vadd.f32 %v4276_v51, %v3942_v16  ;;  %v4731_v41 = vadd.f32 %v4681_v59, %v4425_v12  ;;  %5483 = vmatmul.bf16.gmra.mxu0 %v4891_v49 }
 0x747   : > { %4376 = vst [vmem:[%s7676_s25 + $0x168] sm:$0xff] %v4328_v40  ;;  %5081 = vmatmul.bf16.gmra.mxu2 %v4891_v49  ;;  %v13256_v46 = vpop.f32.mrf.mxu3 }
 0x748   : > { %4779 = vst [vmem:[%s7681_s28 + $0x170] sm:$0xff] %v4731_v41 }
 0x74a   : > { %v4278_v39 = vpop.f32.mrf.mxu2  ;;  %v4682_v58 = vpop.f32.mrf.mxu0 }
 0x74b   : > { %v4279_v36 = vadd.f32 %v4278_v39, %v13106_v55  ;;  %v4683_v28 = vadd.f32 %v4682_v58, %v13122_v20  ;;  %v13253_v52 = vpop.f32.mrf.mxu1 }
 0x74d   : > { %v4329_v27 = vadd.f32 %v4279_v36, %v3943_v8  ;;  %v4732_v62 = vadd.f32 %v4683_v28, %v4426_v13  ;;  %v5267_v13 = vld [vmem:[%s7691_s19 + $0x20] sm:$0xff] }
 0x74f   : > { %4377 = vst [vmem:[%s7676_s25 + $0x170] sm:$0xff] %v4329_v27  ;;  %v13270_v49 = vpop.f32.mrf.mxu3 }
 0x750   : > { %4780 = vst [vmem:[%s7681_s28 + $0x178] sm:$0xff] %v4732_v62 }
 0x752   : > { %v4280_v1 = vpop.f32.mrf.mxu2  ;;  %v5449_v23 = vpop.f32.mrf.mxu0 }
 0x753   : > { %v4281_v55 = vadd.f32 %v4280_v1, %v13120_v7  ;;  %v5450_v20 = vadd.f32 %v5449_v23, %v13137_v10  ;;  %v5268_v1 = vld [vmem:[%s7691_s19 + $0x28] sm:$0xff] }
 0x755   : > { %v4330_v14 = vadd.f32 %v4281_v55, %v3944_v37  ;;  %v5569_v63 = vadd.f32 %v5450_v20, %v5263_v32  ;;  %5488 = vmatmul.bf16.gmra.mxu0 %v13047_v4  ;;  %v4785_v37 = vld [vmem:[%s7686_s11 + $0x20] sm:$0xff] }
 0x757   : > { %4378 = vst [vmem:[%s7676_s25 + $0x178] sm:$0xff] %v4330_v14  ;;  %5086 = vmatmul.bf16.gmra.mxu2 %v13047_v4  ;;  %v13264_v4 = vpop.f32.mrf.mxu1  ;;  %v13282_v8 = vpop.f32.mrf.mxu3 }
 0x758   : > { %5617 = vst [vmem:[%s7691_s19] sm:$0xff] %v5569_v63  ;;  %v4786_v63 = vld [vmem:[%s7686_s11 + $0x28] sm:$0xff] }
 0x75a   : > { %v5047_v7 = vpop.f32.mrf.mxu2  ;;  %v5451_v10 = vpop.f32.mrf.mxu0 }
 0x75b   : > { %v5048_v2 = vadd.f32 %v5047_v7, %v13134_v6  ;;  %v5452_v15 = vadd.f32 %v5451_v10, %v13150_v34  ;;  %v5269_v7 = vld [vmem:[%s7691_s19 + $0x30] sm:$0xff] }
 0x75d   : > { %v5167_v9 = vadd.f32 %v5048_v2, %v4781_v57  ;;  %v5570_v3 = vadd.f32 %v5452_v15, %v5264_v29 }
 0x75f   : > { %5215 = vst [vmem:[%s7686_s11] sm:$0xff] %v5167_v9  ;;  %v13280_v59 = vpop.f32.mrf.mxu1  ;;  %v13295_v62 = vpop.f32.mrf.mxu3  ;;  %v4787_v9 = vld [vmem:[%s7686_s11 + $0x30] sm:$0xff] }
 0x760   : > { %5618 = vst [vmem:[%s7691_s19 + $0x8] sm:$0xff] %v5570_v3 }
 0x762   : > { %v5049_v33 = vpop.f32.mrf.mxu2  ;;  %v5454_v43 = vpop.f32.mrf.mxu0 }
 0x763   : > { %v5050_v5 = vadd.f32 %v5049_v33, %v13146_v26  ;;  %v5455_v6 = vadd.f32 %v5454_v43, %v13166_v48 }
 0x765   : > { %v5168_v34 = vadd.f32 %v5050_v5, %v4782_v38  ;;  %v5571_v16 = vadd.f32 %v5455_v6, %v5265_v0  ;;  %5493 = vmatmul.bf16.gmra.mxu0 %v13074_v24  ;;  %v5270_v38 = vld [vmem:[%s7691_s19 + $0x38] sm:$0xff] }
 0x767   : > { %5216 = vst [vmem:[%s7686_s11 + $0x8] sm:$0xff] %v5168_v34  ;;  %5091 = vmatmul.bf16.gmra.mxu2 %v13074_v24  ;;  %v4784_v24 = vld [vmem:[%s7686_s11 + $0x18] sm:$0xff]  ;;  %v13291_v27 = vpop.f32.mrf.mxu1  ;;  %v5271_v34 = vld [vmem:[%s7691_s19 + $0x40] sm:$0xff] }
 0x768   : > { %5619 = vst [vmem:[%s7691_s19 + $0x10] sm:$0xff] %v5571_v16 }
 0x76a   : > { %v5052_v12 = vpop.f32.mrf.mxu2  ;;  %v5456_v26 = vpop.f32.mrf.mxu0 }
 0x76b   : > { %v5053_v48 = vadd.f32 %v5052_v12, %v13160_v35  ;;  %v5457_v51 = vadd.f32 %v5456_v26, %v13178_v25 }
 0x76d   : > { %v5169_v40 = vadd.f32 %v5053_v48, %v4783_v61  ;;  %v5572_v41 = vadd.f32 %v5457_v51, %v5266_v54  ;;  %v4789_v48 = vld [vmem:[%s7686_s11 + $0x40] sm:$0xff] }
 0x76f   : > { %5217 = vst [vmem:[%s7686_s11 + $0x10] sm:$0xff] %v5169_v40  ;;  %v13303_v14 = vpop.f32.mrf.mxu1 }
 0x770   : > { %5620 = vst [vmem:[%s7691_s19 + $0x18] sm:$0xff] %v5572_v41 }
 0x772   : > { %v5054_v39 = vpop.f32.mrf.mxu2  ;;  %v5459_v58 = vpop.f32.mrf.mxu0 }
 0x773   : > { %v5055_v35 = vadd.f32 %v5054_v39, %v13176_v17  ;;  %v5460_v25 = vadd.f32 %v5459_v58, %v13192_v22 }
 0x775   : > { %v5170_v36 = vadd.f32 %v5055_v35, %v4784_v24  ;;  %v5573_v28 = vadd.f32 %v5460_v25, %v5267_v13  ;;  %5498 = vmatmul.bf16.gmra.mxu0 %v13102_v30  ;;  %v4790_v35 = vld [vmem:[%s7686_s11 + $0x48] sm:$0xff] }
 0x777   : > { %5218 = vst [vmem:[%s7686_s11 + $0x18] sm:$0xff] %v5170_v36  ;;  %5096 = vmatmul.bf16.gmra.mxu2 %v13102_v30  ;;  %v13306_v30 = vpop.f32.mrf.mxu3  ;;  %v13316_v15 = vpop.f32.mrf.mxu1 }
 0x778   : > { %5621 = vst [vmem:[%s7691_s19 + $0x20] sm:$0xff] %v5573_v28 }
 0x77a   : > { %v5057_v17 = vpop.f32.mrf.mxu2  ;;  %v5461_v22 = vpop.f32.mrf.mxu0 }
 0x77b   : > { %v5058_v32 = vadd.f32 %v5057_v17, %v13188_v31  ;;  %v5462_v23 = vadd.f32 %v5461_v22, %v13204_v21 }
 0x77d   : > { %v5171_v55 = vadd.f32 %v5058_v32, %v4785_v37  ;;  %v5574_v20 = vadd.f32 %v5462_v23, %v5268_v1  ;;  %v4791_v32 = vld [vmem:[%s7686_s11 + $0x50] sm:$0xff]  ;;  %v5274_v23 = vld [vmem:[%s7691_s19 + $0x58] sm:$0xff] }
 0x77f   : > { %5219 = vst [vmem:[%s7686_s11 + $0x20] sm:$0xff] %v5171_v55  ;;  %v13322_v0 = vpop.f32.mrf.mxu3  ;;  %v13330_v12 = vpop.f32.mrf.mxu1 }
 0x780   : > { %5622 = vst [vmem:[%s7691_s19 + $0x28] sm:$0xff] %v5574_v20 }
 0x782   : > { %v5059_v57 = vpop.f32.mrf.mxu2  ;;  %v5464_v29 = vpop.f32.mrf.mxu0 }
 0x783   : > { %v5060_v31 = vadd.f32 %v5059_v57, %v13201_v50  ;;  %v5465_v21 = vadd.f32 %v5464_v29, %v13222_v45 }
 0x785   : > { %v5172_v10 = vadd.f32 %v5060_v31, %v4786_v63  ;;  %v5575_v2 = vadd.f32 %v5465_v21, %v5269_v7  ;;  %5503 = vmatmul.bf16.gmra.mxu0 %v13132_v53  ;;  %v4792_v7 = vld [vmem:[%s7686_s11 + $0x58] sm:$0xff]  ;;  %v5275_v31 = vld [vmem:[%s7691_s19 + $0x60] sm:$0xff] }
 0x787   : > { %5220 = vst [vmem:[%s7686_s11 + $0x28] sm:$0xff] %v5172_v10  ;;  %5101 = vmatmul.bf16.gmra.mxu2 %v13132_v53  ;;  %v4788_v53 = vld [vmem:[%s7686_s11 + $0x38] sm:$0xff]  ;;  %v13333_v26 = vpop.f32.mrf.mxu3  ;;  %v13342_v13 = vpop.f32.mrf.mxu1 }
 0x788   : > { %5623 = vst [vmem:[%s7691_s19 + $0x30] sm:$0xff] %v5575_v2 }
 0x78a   : > { %v5062_v3 = vpop.f32.mrf.mxu2  ;;  %v5466_v50 = vpop.f32.mrf.mxu0 }
 0x78b   : > { %v5063_v45 = vadd.f32 %v5062_v3, %v13216_v47  ;;  %v5467_v33 = vadd.f32 %v5466_v50, %v13232_v44  ;;  %v4793_v3 = vld [vmem:[%s7686_s11 + $0x60] sm:$0xff] }
 0x78d   : > { %v5173_v43 = vadd.f32 %v5063_v45, %v4787_v9  ;;  %v5576_v5 = vadd.f32 %v5467_v33, %v5270_v38 }
 0x78f   : > { %5221 = vst [vmem:[%s7686_s11 + $0x30] sm:$0xff] %v5173_v43  ;;  %v13345_v58 = vpop.f32.mrf.mxu3  ;;  %v13355_v1 = vpop.f32.mrf.mxu1 }
 0x790   : > { %5624 = vst [vmem:[%s7691_s19 + $0x38] sm:$0xff] %v5576_v5 }
 0x792   : > { %v5064_v6 = vpop.f32.mrf.mxu2  ;;  %v5469_v16 = vpop.f32.mrf.mxu0 }
 0x793   : > { %v5065_v61 = vadd.f32 %v5064_v6, %v13230_v19  ;;  %v5470_v47 = vadd.f32 %v5469_v16, %v13243_v11  ;;  %v5272_v19 = vld [vmem:[%s7691_s19 + $0x48] sm:$0xff]  ;;  %v5277_v16 = vld [vmem:[%s7691_s19 + $0x70] sm:$0xff] }
 0x794   : > { %v4794_v6 = vld [vmem:[%s7686_s11 + $0x68] sm:$0xff] }
 0x795   : > { %v5174_v44 = vadd.f32 %v5065_v61, %v4788_v53  ;;  %v5577_v54 = vadd.f32 %v5470_v47, %v5271_v34  ;;  %5508 = vmatmul.bf16.gmra.mxu0 %v13157_v18 }
 0x797   : > { %5222 = vst [vmem:[%s7686_s11 + $0x38] sm:$0xff] %v5174_v44  ;;  %5106 = vmatmul.bf16.gmra.mxu2 %v13157_v18  ;;  %v4852_v18 = vpop.trf.xlu0  ;;  %v13358_v22 = vpop.f32.mrf.mxu3 }
 0x798   : > { %5625 = vst [vmem:[%s7691_s19 + $0x40] sm:$0xff] %v5577_v54  ;;  %5394 = vmatmul.bf16.gmra.mxu3 %v4852_v18  ;;  %4992 = vmatmul.bf16.gmra.mxu1 %v4852_v18 }
 0x79a   : > { %v5067_v51 = vpop.f32.mrf.mxu2  ;;  %v5471_v11 = vpop.f32.mrf.mxu0 }
 0x79b   : > { %v5068_v40 = vadd.f32 %v5067_v51, %v13240_v60  ;;  %v5472_v41 = vadd.f32 %v5471_v11, %v13256_v46  ;;  %v5273_v60 = vld [vmem:[%s7691_s19 + $0x50] sm:$0xff] }
 0x79c   : > { %v4795_v51 = vld [vmem:[%s7686_s11 + $0x70] sm:$0xff] }
 0x79d   : > { %v5175_v24 = vadd.f32 %v5068_v40, %v4789_v48  ;;  %v5578_v39 = vadd.f32 %v5472_v41, %v5272_v19  ;;  %v5278_v19 = vld [vmem:[%s7691_s19 + $0x78] sm:$0xff] }
 0x79f   : > { %5223 = vst [vmem:[%s7686_s11 + $0x40] sm:$0xff] %v5175_v24  ;;  %v13372_v10 = vpop.f32.mrf.mxu3 }
 0x7a0   : > { %5626 = vst [vmem:[%s7691_s19 + $0x48] sm:$0xff] %v5578_v39 }
 0x7a2   : > { %v5069_v25 = vpop.f32.mrf.mxu2  ;;  %v5474_v36 = vpop.f32.mrf.mxu0 }
 0x7a3   : > { %v5070_v46 = vadd.f32 %v5069_v25, %v13253_v52  ;;  %v5475_v28 = vadd.f32 %v5474_v36, %v13270_v49 }
 0x7a5   : > { %v5176_v37 = vadd.f32 %v5070_v46, %v4790_v35  ;;  %v5579_v17 = vadd.f32 %v5475_v28, %v5273_v60  ;;  %5513 = vmatmul.bf16.gmra.mxu0 %v13186_v42  ;;  %v4796_v35 = vld [vmem:[%s7686_s11 + $0x78] sm:$0xff]  ;;  %v5279_v60 = vld [vmem:[%s7691_s19 + $0x80] sm:$0xff] }
 0x7a7   : > { %5224 = vst [vmem:[%s7686_s11 + $0x48] sm:$0xff] %v5176_v37  ;;  %5111 = vmatmul.bf16.gmra.mxu2 %v13186_v42  ;;  %v13366_v42 = vpop.f32.mrf.mxu1  ;;  %v13384_v53 = vpop.f32.mrf.mxu3 }
 0x7a8   : > { %5627 = vst [vmem:[%s7691_s19 + $0x50] sm:$0xff] %v5579_v17  ;;  %7255 = vmatmul.lmr.bf16.gmra.16.mxu3  ;;  %7143 = vmatmul.lmr.bf16.gmra.16.mxu1  ;;  %v4797_v17 = vld [vmem:[%s7686_s11 + $0x80] sm:$0xff] }
 0x7aa   : > { %v5072_v52 = vpop.f32.mrf.mxu2  ;;  %v5476_v49 = vpop.f32.mrf.mxu0 }
 0x7ab   : > { %v5073_v55 = vadd.f32 %v5072_v52, %v13264_v4  ;;  %v5477_v20 = vadd.f32 %v5476_v49, %v13282_v8  ;;  %v5280_v52 = vld [vmem:[%s7691_s19 + $0x88] sm:$0xff] }
 0x7ad   : > { %v5177_v63 = vadd.f32 %v5073_v55, %v4791_v32  ;;  %v5580_v57 = vadd.f32 %v5477_v20, %v5274_v23 }
 0x7af   : > { %5225 = vst [vmem:[%s7686_s11 + $0x50] sm:$0xff] %v5177_v63  ;;  %v13382_v33 = vpop.f32.mrf.mxu1  ;;  %v13395_v48 = vpop.f32.mrf.mxu3  ;;  %v4798_v63 = vld [vmem:[%s7686_s11 + $0x88] sm:$0xff] }
 0x7b0   : > { %5628 = vst [vmem:[%s7691_s19 + $0x58] sm:$0xff] %v5580_v57  ;;  %7256 = vmatmul.lmr.bf16.gmra.16.mxu3  ;;  %7144 = vmatmul.lmr.bf16.gmra.16.mxu1 }
 0x7b2   : > { %v5074_v29 = vpop.f32.mrf.mxu2  ;;  %v5479_v21 = vpop.f32.mrf.mxu0 }
 0x7b3   : > { %v5075_v4 = vadd.f32 %v5074_v29, %v13280_v59  ;;  %v5480_v8 = vadd.f32 %v5479_v21, %v13295_v62  ;;  %v5276_v59 = vld [vmem:[%s7691_s19 + $0x68] sm:$0xff] }
 0x7b5   : > { %v5178_v2 = vadd.f32 %v5075_v4, %v4792_v7  ;;  %v5581_v9 = vadd.f32 %v5480_v8, %v5275_v31  ;;  %5518 = vmatmul.bf16.gmra.mxu0 %v13212_v56  ;;  %v5281_v7 = vld [vmem:[%s7691_s19 + $0x90] sm:$0xff] }
 0x7b7   : > { %5226 = vst [vmem:[%s7686_s11 + $0x58] sm:$0xff] %v5178_v2  ;;  %5116 = vmatmul.bf16.gmra.mxu2 %v13212_v56  ;;  %v4892_v56 = vpop.trf.xlu2  ;;  %v13392_v54 = vpop.f32.mrf.mxu1  ;;  %v4799_v2 = vld [vmem:[%s7686_s11 + $0x90] sm:$0xff] }
 0x7b8   : > { %5629 = vst [vmem:[%s7691_s19 + $0x60] sm:$0xff] %v5581_v9  ;;  %7257 = vmatmul.lmr.bf16.gmra.16.mxu3  ;;  %7145 = vmatmul.lmr.bf16.gmra.16.mxu1  ;;  %v13406_v18 = vpop.f32.mrf.mxu3 }
 0x7ba   : > { %v5077_v38 = vpop.f32.mrf.mxu2  ;;  %v5481_v62 = vpop.f32.mrf.mxu0 }
 0x7bb   : > { %v5078_v50 = vadd.f32 %v5077_v38, %v13291_v27  ;;  %v5482_v45 = vadd.f32 %v5481_v62, %v13306_v30 }
 0x7bd   : > { %v5179_v43 = vadd.f32 %v5078_v50, %v4793_v3  ;;  %v5582_v5 = vadd.f32 %v5482_v45, %v5276_v59 }
 0x7bf   : > { %5227 = vst [vmem:[%s7686_s11 + $0x60] sm:$0xff] %v5179_v43  ;;  %v13403_v39 = vpop.f32.mrf.mxu1  ;;  %v4800_v43 = vld [vmem:[%s7686_s11 + $0x98] sm:$0xff] }
 0x7c0   : > { %5630 = vst [vmem:[%s7691_s19 + $0x68] sm:$0xff] %v5582_v5  ;;  %7258 = vmatmul.lmr.bf16.gmra.16.mxu3  ;;  %7146 = vmatmul.lmr.bf16.gmra.16.mxu1  ;;  %v13420_v49 = vpop.f32.mrf.mxu3 }
 0x7c2   : > { %v5079_v34 = vpop.f32.mrf.mxu2  ;;  %v5484_v27 = vpop.f32.mrf.mxu0 }
 0x7c3   : > { %v5080_v30 = vadd.f32 %v5079_v34, %v13303_v14  ;;  %v5485_v61 = vadd.f32 %v5484_v27, %v13322_v0 }
 0x7c5   : > { %v5180_v47 = vadd.f32 %v5080_v30, %v4794_v6  ;;  %v5583_v44 = vadd.f32 %v5485_v61, %v5277_v16  ;;  %5523 = vmatmul.bf16.gmra.mxu0 %v4892_v56  ;;  %v4801_v61 = vld [vmem:[%s7686_s11 + $0xa0] sm:$0xff] }
 0x7c7   : > { %5228 = vst [vmem:[%s7686_s11 + $0x68] sm:$0xff] %v5180_v47  ;;  %5121 = vmatmul.bf16.gmra.mxu2 %v4892_v56  ;;  %v13414_v37 = vpop.f32.mrf.mxu1 }
 0x7c8   : > { %5631 = vst [vmem:[%s7691_s19 + $0x70] sm:$0xff] %v5583_v44  ;;  %7259 = vmatmul.lmr.bf16.gmra.16.mxu3  ;;  %7147 = vmatmul.lmr.bf16.gmra.16.mxu1  ;;  %v13430_v8 = vpop.f32.mrf.mxu3 }
 0x7ca   : > { %v5082_v14 = vpop.f32.mrf.mxu2  ;;  %v5486_v0 = vpop.f32.mrf.mxu0 }
 0x7cb   : > { %v5083_v11 = vadd.f32 %v5082_v14, %v13316_v15  ;;  %v5487_v40 = vadd.f32 %v5486_v0, %v13333_v26 }
 0x7cd   : > { %v5181_v41 = vadd.f32 %v5083_v11, %v4795_v51  ;;  %v5584_v24 = vadd.f32 %v5487_v40, %v5278_v19  ;;  %v4802_v11 = vld [vmem:[%s7686_s11 + $0xa8] sm:$0xff] }
 0x7cf   : > { %5229 = vst [vmem:[%s7686_s11 + $0x70] sm:$0xff] %v5181_v41  ;;  %v13428_v31 = vpop.f32.mrf.mxu1  ;;  %v5285_v41 = vld [vmem:[%s7691_s19 + $0xb0] sm:$0xff] }
 0x7d0   : > { %5632 = vst [vmem:[%s7691_s19 + $0x78] sm:$0xff] %v5584_v24  ;;  %7260 = vmatmul.lmr.bf16.gmra.16.mxu3  ;;  %7148 = vmatmul.lmr.bf16.gmra.16.mxu1  ;;  %v13441_v45 = vpop.f32.mrf.mxu3 }
 0x7d2   : > { %v5084_v25 = vpop.f32.mrf.mxu2  ;;  %v5489_v15 = vpop.f32.mrf.mxu0 }
 0x7d3   : > { %v5085_v26 = vadd.f32 %v5084_v25, %v13330_v12  ;;  %v5490_v36 = vadd.f32 %v5489_v15, %v13345_v58  ;;  %v4803_v15 = vld [vmem:[%s7686_s11 + $0xb0] sm:$0xff] }
 0x7d5   : > { %v5182_v46 = vadd.f32 %v5085_v26, %v4796_v35  ;;  %v5585_v28 = vadd.f32 %v5490_v36, %v5279_v60  ;;  %7087 = vmatmul.lmr.bf16.gmra.16.mxu0  ;;  %v5286_v36 = vld [vmem:[%s7691_s19 + $0xb8] sm:$0xff] }
 0x7d7   : > { %5230 = vst [vmem:[%s7686_s11 + $0x78] sm:$0xff] %v5182_v46  ;;  %7199 = vmatmul.lmr.bf16.gmra.16.mxu2  ;;  %v13438_v50 = vpop.f32.mrf.mxu1 }
 0x7d8   : > { %5633 = vst [vmem:[%s7691_s19 + $0x80] sm:$0xff] %v5585_v28  ;;  %7261 = vmatmul.lmr.bf16.gmra.16.mxu3  ;;  %7149 = vmatmul.lmr.bf16.gmra.16.mxu1  ;;  %v13452_v30 = vpop.f32.mrf.mxu3 }
 0x7da   : > { %v5087_v32 = vpop.f32.mrf.mxu2  ;;  %v5491_v12 = vpop.f32.mrf.mxu0 }
 0x7db   : > { %v5088_v58 = vadd.f32 %v5087_v32, %v13342_v13  ;;  %v5492_v23 = vadd.f32 %v5491_v12, %v13358_v22 }
 0x7dd   : > { %v5183_v55 = vadd.f32 %v5088_v58, %v4797_v17  ;;  %v5586_v20 = vadd.f32 %v5492_v23, %v5280_v52  ;;  %7088 = vmatmul.lmr.bf16.gmra.16.mxu0  ;;  %v4804_v58 = vld [vmem:[%s7686_s11 + $0xb8] sm:$0xff] }
 0x7df   : > { %5231 = vst [vmem:[%s7686_s11 + $0x80] sm:$0xff] %v5183_v55  ;;  %7200 = vmatmul.lmr.bf16.gmra.16.mxu2  ;;  %v13449_v27 = vpop.f32.mrf.mxu1 }
 0x7e0   : > { %5634 = vst [vmem:[%s7691_s19 + $0x88] sm:$0xff] %v5586_v20  ;;  %7262 = vmatmul.lmr.bf16.gmra.16.mxu3  ;;  %7150 = vmatmul.lmr.bf16.gmra.16.mxu1  ;;  %v5385_v35 = vpop.f32.mrf.mxu3 }
 0x7e2   : > { %v5089_v57 = vpop.f32.mrf.mxu2  ;;  %v5494_v13 = vpop.f32.mrf.mxu0 }
 0x7e3   : > { %v5090_v22 = vadd.f32 %v5089_v57, %v13355_v1  ;;  %v5495_v29 = vadd.f32 %v5494_v13, %v13372_v10  ;;  %v5282_v1 = vld [vmem:[%s7691_s19 + $0x98] sm:$0xff] }
 0x7e5   : > { %v5184_v21 = vadd.f32 %v5090_v22, %v4798_v63  ;;  %v5587_v4 = vadd.f32 %v5495_v29, %v5281_v7  ;;  %7089 = vmatmul.lmr.bf16.gmra.16.mxu0  ;;  %v4805_v22 = vld [vmem:[%s7686_s11 + $0xc0] sm:$0xff] }
 0x7e7   : > { %5232 = vst [vmem:[%s7686_s11 + $0x88] sm:$0xff] %v5184_v21  ;;  %7201 = vmatmul.lmr.bf16.gmra.16.mxu2  ;;  %v13460_v0 = vpop.f32.mrf.mxu1  ;;  %v5288_v21 = vld [vmem:[%s7691_s19 + $0xc8] sm:$0xff] }
 0x7e8   : > { %5635 = vst [vmem:[%s7691_s19 + $0x90] sm:$0xff] %v5587_v4  ;;  %7263 = vmatmul.lmr.bf16.gmra.16.mxu3  ;;  %7151 = vmatmul.lmr.bf16.gmra.16.mxu1  ;;  %v5387_v12 = vpop.f32.mrf.mxu3 }
 0x7ea   : > { %v5092_v9 = vpop.f32.mrf.mxu2  ;;  %v5496_v10 = vpop.f32.mrf.mxu0 }
 0x7eb   : > { %v5093_v3 = vadd.f32 %v5092_v9, %v13366_v42  ;;  %v5497_v38 = vadd.f32 %v5496_v10, %v13384_v53  ;;  %v5283_v42 = vld [vmem:[%s7691_s19 + $0xa0] sm:$0xff] }
 0x7ed   : > { %v5185_v59 = vadd.f32 %v5093_v3, %v4799_v2  ;;  %v5588_v62 = vadd.f32 %v5497_v38, %v5282_v1  ;;  %7090 = vmatmul.lmr.bf16.gmra.16.mxu0  ;;  %v4806_v3 = vld [vmem:[%s7686_s11 + $0xc8] sm:$0xff] }
 0x7ef   : > { %5233 = vst [vmem:[%s7686_s11 + $0x90] sm:$0xff] %v5185_v59  ;;  %7202 = vmatmul.lmr.bf16.gmra.16.mxu2  ;;  %v13472_v17 = vpop.f32.mrf.mxu1  ;;  %v5289_v59 = vld [vmem:[%s7691_s19 + $0xd0] sm:$0xff] }
 0x7f0   : > { %5636 = vst [vmem:[%s7691_s19 + $0x98] sm:$0xff] %v5588_v62  ;;  %7264 = vmatmul.lmr.bf16.gmra.16.mxu3  ;;  %7152 = vmatmul.lmr.bf16.gmra.16.mxu1  ;;  %v5390_v13 = vpop.f32.mrf.mxu3 }
 0x7f2   : > { %v5094_v5 = vpop.f32.mrf.mxu2  ;;  %v5499_v53 = vpop.f32.mrf.mxu0 }
 0x7f3   : > { %v5095_v56 = vadd.f32 %v5094_v5, %v13382_v33  ;;  %v5500_v6 = vadd.f32 %v5499_v53, %v13395_v48  ;;  %v5284_v33 = vld [vmem:[%s7691_s19 + $0xa8] sm:$0xff] }
 0x7f5   : > { %v5186_v34 = vadd.f32 %v5095_v56, %v4800_v43  ;;  %v5589_v16 = vadd.f32 %v5500_v6, %v5283_v42  ;;  %7091 = vmatmul.lmr.bf16.gmra.16.mxu0  ;;  %v4807_v56 = vld [vmem:[%s7686_s11 + $0xd0] sm:$0xff] }
 0x7f7   : > { %5234 = vst [vmem:[%s7686_s11 + $0x98] sm:$0xff] %v5186_v34  ;;  %7203 = vmatmul.lmr.bf16.gmra.16.mxu2  ;;  %v13480_v7 = vpop.f32.mrf.mxu1  ;;  %v5290_v34 = vld [vmem:[%s7691_s19 + $0xd8] sm:$0xff] }
 0x7f8   : > { %5637 = vst [vmem:[%s7691_s19 + $0xa0] sm:$0xff] %v5589_v16  ;;  %7265 = vmatmul.lmr.bf16.gmra.16.mxu3  ;;  %7153 = vmatmul.lmr.bf16.gmra.16.mxu1  ;;  %v5392_v10 = vpop.f32.mrf.mxu3 }
 0x7fa   : > { %v5097_v47 = vpop.f32.mrf.mxu2  ;;  %v5501_v44 = vpop.f32.mrf.mxu0 }
 0x7fb   : > { %v5098_v48 = vadd.f32 %v5097_v47, %v13392_v54  ;;  %v5502_v51 = vadd.f32 %v5501_v44, %v13406_v18  ;;  %v4808_v44 = vld [vmem:[%s7686_s11 + $0xd8] sm:$0xff] }
 0x7fd   : > { %v5187_v14 = vadd.f32 %v5098_v48, %v4801_v61  ;;  %v5590_v19 = vadd.f32 %v5502_v51, %v5284_v33  ;;  %7092 = vmatmul.lmr.bf16.gmra.16.mxu0  ;;  %v5291_v51 = vld [vmem:[%s7691_s19 + $0xe0] sm:$0xff] }
 0x7ff   : > { %5235 = vst [vmem:[%s7686_s11 + $0xa0] sm:$0xff] %v5187_v14  ;;  %7204 = vmatmul.lmr.bf16.gmra.16.mxu2  ;;  %v13489_v1 = vpop.f32.mrf.mxu1 }
 0x800   : > { %5638 = vst [vmem:[%s7691_s19 + $0xa8] sm:$0xff] %v5590_v19  ;;  %7266 = vmatmul.lmr.bf16.gmra.16.mxu3  ;;  %7154 = vmatmul.lmr.bf16.gmra.16.mxu1 }
 0x802   : > { %v5099_v40 = vpop.f32.mrf.mxu2  ;;  %v5504_v54 = vpop.f32.mrf.mxu0 }
 0x803   : > { %v5100_v24 = vadd.f32 %v5099_v40, %v13403_v39  ;;  %v5505_v18 = vadd.f32 %v5504_v54, %v13420_v49  ;;  %v5287_v49 = vld [vmem:[%s7691_s19 + $0xc0] sm:$0xff] }
 0x805   : > { %v5188_v25 = vadd.f32 %v5100_v24, %v4802_v11  ;;  %v5591_v60 = vadd.f32 %v5505_v18, %v5285_v41  ;;  %7093 = vmatmul.lmr.bf16.gmra.16.mxu0  ;;  %v4809_v24 = vld [vmem:[%s7686_s11 + $0xe0] sm:$0xff] }
 0x807   : > { %5236 = vst [vmem:[%s7686_s11 + $0xa8] sm:$0xff] %v5188_v25  ;;  %7205 = vmatmul.lmr.bf16.gmra.16.mxu2 }
 0x808   : > { %5639 = vst [vmem:[%s7691_s19 + $0xb0] sm:$0xff] %v5591_v60  ;;  %7267 = vmatmul.lmr.bf16.gmra.16.mxu3  ;;  %7155 = vmatmul.lmr.bf16.gmra.16.mxu1 }
 0x80a   : > { %v5102_v26 = vpop.f32.mrf.mxu2  ;;  %v5506_v46 = vpop.f32.mrf.mxu0 }
 0x80b   : > { %v5103_v39 = vadd.f32 %v5102_v26, %v13414_v37  ;;  %v5507_v28 = vadd.f32 %v5506_v46, %v13430_v8 }
 0x80d   : > { %v5189_v32 = vadd.f32 %v5103_v39, %v4803_v15  ;;  %v5592_v52 = vadd.f32 %v5507_v28, %v5286_v36  ;;  %7094 = vmatmul.lmr.bf16.gmra.16.mxu0  ;;  %v4810_v39 = vld [vmem:[%s7686_s11 + $0xe8] sm:$0xff] }
 0x80f   : > { %5237 = vst [vmem:[%s7686_s11 + $0xb0] sm:$0xff] %v5189_v32  ;;  %7206 = vmatmul.lmr.bf16.gmra.16.mxu2 }
 0x810   : > { %5640 = vst [vmem:[%s7691_s19 + $0xb8] sm:$0xff] %v5592_v52  ;;  %7268 = vmatmul.lmr.bf16.gmra.16.mxu3  ;;  %7156 = vmatmul.lmr.bf16.gmra.16.mxu1 }
 0x812   : > { %v5104_v23 = vpop.f32.mrf.mxu2  ;;  %v5509_v37 = vpop.f32.mrf.mxu0 }
 0x813   : > { %v5105_v55 = vadd.f32 %v5104_v23, %v13428_v31  ;;  %v5510_v20 = vadd.f32 %v5509_v37, %v13441_v45 }
 0x815   : > { %v5190_v63 = vadd.f32 %v5105_v55, %v4804_v58  ;;  %v5593_v57 = vadd.f32 %v5510_v20, %v5287_v49  ;;  %7095 = vmatmul.lmr.bf16.gmra.16.mxu0  ;;  %v13496_v42 = vpop.f32.mrf.mxu1  ;;  %v4811_v55 = vld [vmem:[%s7686_s11 + $0xf0] sm:$0xff] }
 0x817   : > { %5238 = vst [vmem:[%s7686_s11 + $0xb8] sm:$0xff] %v5190_v63  ;;  %7207 = vmatmul.lmr.bf16.gmra.16.mxu2  ;;  %v5294_v63 = vld [vmem:[%s7691_s19 + $0xf8] sm:$0xff] }
 0x818   : > { %5641 = vst [vmem:[%s7691_s19 + $0xc0] sm:$0xff] %v5593_v57  ;;  %7269 = vmatmul.lmr.bf16.gmra.16.mxu3  ;;  %7157 = vmatmul.lmr.bf16.gmra.16.mxu1 }
 0x81a   : > { %v5107_v29 = vpop.f32.mrf.mxu2  ;;  %v5511_v31 = vpop.f32.mrf.mxu0 }
 0x81b   : > { %v5108_v4 = vadd.f32 %v5107_v29, %v13438_v50  ;;  %v5512_v8 = vadd.f32 %v5511_v31, %v13452_v30  ;;  %v5395_v53 = vpop.f32.mrf.mxu3 }
 0x81d   : > { %v5191_v2 = vadd.f32 %v5108_v4, %v4805_v22  ;;  %v5594_v9 = vadd.f32 %v5512_v8, %v5288_v21  ;;  %7096 = vmatmul.lmr.bf16.gmra.16.mxu0  ;;  %v4995_v33 = vpop.f32.mrf.mxu1  ;;  %v4812_v4 = vld [vmem:[%s7686_s11 + $0xf8] sm:$0xff] }
 0x81f   : > { %5239 = vst [vmem:[%s7686_s11 + $0xc0] sm:$0xff] %v5191_v2  ;;  %7208 = vmatmul.lmr.bf16.gmra.16.mxu2  ;;  %v5295_v2 = vld [vmem:[%s7691_s19 + $0x100] sm:$0xff] }
 0x820   : > { %5642 = vst [vmem:[%s7691_s19 + $0xc8] sm:$0xff] %v5594_v9  ;;  %7270 = vmatmul.lmr.bf16.gmra.16.mxu3  ;;  %7158 = vmatmul.lmr.bf16.gmra.16.mxu1 }
 0x822   : > { %v5109_v38 = vpop.f32.mrf.mxu2  ;;  %v5514_v62 = vpop.f32.mrf.mxu0 }
 0x823   : > { %v5110_v50 = vadd.f32 %v5109_v38, %v13449_v27  ;;  %v5515_v45 = vadd.f32 %v5514_v62, %v5385_v35  ;;  %v5292_v35 = vld [vmem:[%s7691_s19 + $0xe8] sm:$0xff] }
 0x825   : > { %v5192_v43 = vadd.f32 %v5110_v50, %v4806_v3  ;;  %v5595_v5 = vadd.f32 %v5515_v45, %v5289_v59  ;;  %7097 = vmatmul.lmr.bf16.gmra.16.mxu0  ;;  %v4998_v54 = vpop.f32.mrf.mxu1  ;;  %v4813_v50 = vld [vmem:[%s7686_s11 + $0x100] sm:$0xff] }
 0x827   : > { %5240 = vst [vmem:[%s7686_s11 + $0xc8] sm:$0xff] %v5192_v43  ;;  %7209 = vmatmul.lmr.bf16.gmra.16.mxu2  ;;  %v5296_v43 = vld [vmem:[%s7691_s19 + $0x108] sm:$0xff] }
 0x828   : > { %5643 = vst [vmem:[%s7691_s19 + $0xd0] sm:$0xff] %v5595_v5 }
 0x82a   : > { %v5112_v6 = vpop.f32.mrf.mxu2  ;;  %v5516_v16 = vpop.f32.mrf.mxu0 }
 0x82b   : > { %v5113_v27 = vadd.f32 %v5112_v6, %v13460_v0  ;;  %v5517_v30 = vadd.f32 %v5516_v16, %v5387_v12  ;;  %v5397_v0 = vpop.f32.mrf.mxu3 }
 0x82d   : > { %v5193_v61 = vadd.f32 %v5113_v27, %v4807_v56  ;;  %v5596_v47 = vadd.f32 %v5517_v30, %v5290_v34  ;;  %7098 = vmatmul.lmr.bf16.gmra.16.mxu0  ;;  %v5000_v58 = vpop.f32.mrf.mxu1  ;;  %v4814_v27 = vld [vmem:[%s7686_s11 + $0x108] sm:$0xff] }
 0x82f   : > { %5241 = vst [vmem:[%s7686_s11 + $0xd0] sm:$0xff] %v5193_v61  ;;  %7210 = vmatmul.lmr.bf16.gmra.16.mxu2  ;;  %v5297_v61 = vld [vmem:[%s7691_s19 + $0x110] sm:$0xff] }
 0x830   : > { %5644 = vst [vmem:[%s7691_s19 + $0xd8] sm:$0xff] %v5596_v47 }
 0x832   : > { %v5114_v48 = vpop.f32.mrf.mxu2  ;;  %v5519_v14 = vpop.f32.mrf.mxu0 }
 0x833   : > { %v5115_v19 = vadd.f32 %v5114_v48, %v13472_v17  ;;  %v5520_v11 = vadd.f32 %v5519_v14, %v5390_v13  ;;  %v5400_v26 = vpop.f32.mrf.mxu3  ;;  %v5293_v17 = vld [vmem:[%s7691_s19 + $0xf0] sm:$0xff] }
 0x835   : > { %v5194_v40 = vadd.f32 %v5115_v19, %v4808_v44  ;;  %v5597_v41 = vadd.f32 %v5520_v11, %v5291_v51  ;;  %7099 = vmatmul.lmr.bf16.gmra.16.mxu0  ;;  %v5003_v31 = vpop.f32.mrf.mxu1  ;;  %v4815_v19 = vld [vmem:[%s7686_s11 + $0x110] sm:$0xff] }
 0x837   : > { %5242 = vst [vmem:[%s7686_s11 + $0xd8] sm:$0xff] %v5194_v40  ;;  %7211 = vmatmul.lmr.bf16.gmra.16.mxu2 }
 0x838   : > { %5645 = vst [vmem:[%s7691_s19 + $0xe0] sm:$0xff] %v5597_v41 }
 0x83a   : > { %v5117_v18 = vpop.f32.mrf.mxu2  ;;  %v5521_v25 = vpop.f32.mrf.mxu0 }
 0x83b   : > { %v5118_v60 = vadd.f32 %v5117_v18, %v13480_v7  ;;  %v5522_v15 = vadd.f32 %v5521_v25, %v5392_v10  ;;  %v5402_v23 = vpop.f32.mrf.mxu3 }
 0x83d   : > { %v5195_v36 = vadd.f32 %v5118_v60, %v4809_v24  ;;  %v5598_v46 = vadd.f32 %v5522_v15, %v5292_v35  ;;  %7100 = vmatmul.lmr.bf16.gmra.16.mxu0  ;;  %v5005_v62 = vpop.f32.mrf.mxu1  ;;  %v4816_v60 = vld [vmem:[%s7686_s11 + $0x118] sm:$0xff] }
 0x83f   : > { %5243 = vst [vmem:[%s7686_s11 + $0xe0] sm:$0xff] %v5195_v36  ;;  %7212 = vmatmul.lmr.bf16.gmra.16.mxu2 }
 0x840   : > { %5646 = vst [vmem:[%s7691_s19 + $0xe8] sm:$0xff] %v5598_v46 }
 0x842   : > { %v5119_v28 = vpop.f32.mrf.mxu2  ;;  %v5524_v32 = vpop.f32.mrf.mxu0 }
 0x843   : > { %v5120_v52 = vadd.f32 %v5119_v28, %v13489_v1  ;;  %v5525_v12 = vadd.f32 %v5524_v32, %v5395_v53  ;;  %v5405_v22 = vpop.f32.mrf.mxu3 }
 0x845   : > { %v5196_v49 = vadd.f32 %v5120_v52, %v4810_v39  ;;  %v5599_v37 = vadd.f32 %v5525_v12, %v5293_v17  ;;  %7101 = vmatmul.lmr.bf16.gmra.16.mxu0  ;;  %v5008_v16 = vpop.f32.mrf.mxu1  ;;  %v4817_v12 = vld [vmem:[%s7686_s11 + $0x120] sm:$0xff] }
 0x847   : > { %5244 = vst [vmem:[%s7686_s11 + $0xe8] sm:$0xff] %v5196_v49  ;;  %7213 = vmatmul.lmr.bf16.gmra.16.mxu2 }
 0x848   : > { %5647 = vst [vmem:[%s7691_s19 + $0xf0] sm:$0xff] %v5599_v37 }
 0x84a   : > { %v5122_v20 = vpop.f32.mrf.mxu2  ;;  %v5526_v57 = vpop.f32.mrf.mxu0 }
 0x84b   : > { %v5123_v7 = vadd.f32 %v5122_v20, %v13496_v42  ;;  %v5527_v13 = vadd.f32 %v5526_v57, %v5397_v0  ;;  %v5407_v3 = vpop.f32.mrf.mxu3  ;;  %v5298_v0 = vld [vmem:[%s7691_s19 + $0x118] sm:$0xff] }
 0x84d   : > { %v5197_v29 = vadd.f32 %v5123_v7, %v4811_v55  ;;  %v5600_v21 = vadd.f32 %v5527_v13, %v5294_v63  ;;  %7102 = vmatmul.lmr.bf16.gmra.16.mxu0  ;;  %v5010_v24 = vpop.f32.mrf.mxu1  ;;  %v4818_v13 = vld [vmem:[%s7686_s11 + $0x128] sm:$0xff] }
 0x84f   : > { %5245 = vst [vmem:[%s7686_s11 + $0xf0] sm:$0xff] %v5197_v29  ;;  %7214 = vmatmul.lmr.bf16.gmra.16.mxu2  ;;  %v5301_v29 = vld [vmem:[%s7691_s19 + $0x130] sm:$0xff] }
 0x850   : > { %5648 = vst [vmem:[%s7691_s19 + $0xf8] sm:$0xff] %v5600_v21 }
 0x852   : > { %v5124_v8 = vpop.f32.mrf.mxu2  ;;  %v5529_v9 = vpop.f32.mrf.mxu0 }
 0x853   : > { %v5125_v1 = vadd.f32 %v5124_v8, %v4995_v33  ;;  %v5530_v10 = vadd.f32 %v5529_v9, %v5400_v26  ;;  %v5410_v56 = vpop.f32.mrf.mxu3  ;;  %v5299_v26 = vld [vmem:[%s7691_s19 + $0x120] sm:$0xff] }
 0x855   : > { %v5198_v38 = vadd.f32 %v5125_v1, %v4812_v4  ;;  %v5601_v59 = vadd.f32 %v5530_v10, %v5295_v2  ;;  %v5013_v32 = vpop.f32.mrf.mxu1  ;;  %v4819_v1 = vld [vmem:[%s7686_s11 + $0x130] sm:$0xff] }
 0x857   : > { %5246 = vst [vmem:[%s7686_s11 + $0xf8] sm:$0xff] %v5198_v38 }
 0x858   : > { %5649 = vst [vmem:[%s7691_s19 + $0x100] sm:$0xff] %v5601_v59 }
 0x85a   : > { %v5127_v45 = vpop.f32.mrf.mxu2  ;;  %v5531_v5 = vpop.f32.mrf.mxu0 }
 0x85b   : > { %v5128_v42 = vadd.f32 %v5127_v45, %v4998_v54  ;;  %v5532_v53 = vadd.f32 %v5531_v5, %v5402_v23  ;;  %v5412_v48 = vpop.f32.mrf.mxu3  ;;  %v5300_v23 = vld [vmem:[%s7691_s19 + $0x128] sm:$0xff]  ;;  %v4820_v5 = vld [vmem:[%s7686_s11 + $0x138] sm:$0xff] }
 0x85d   : > { %v5199_v6 = vadd.f32 %v5128_v42, %v4813_v50  ;;  %v5602_v34 = vadd.f32 %v5532_v53, %v5296_v43  ;;  %v5015_v57 = vpop.f32.mrf.mxu1  ;;  %v5303_v53 = vld [vmem:[%s7691_s19 + $0x140] sm:$0xff] }
 0x85f   : > { %5247 = vst [vmem:[%s7686_s11 + $0x100] sm:$0xff] %v5199_v6 }
 0x860   : > { %5650 = vst [vmem:[%s7691_s19 + $0x108] sm:$0xff] %v5602_v34 }
 0x862   : > { %v5129_v30 = vpop.f32.mrf.mxu2  ;;  %v5534_v47 = vpop.f32.mrf.mxu0 }
 0x863   : > { %v5130_v33 = vadd.f32 %v5129_v30, %v5000_v58  ;;  %v5535_v44 = vadd.f32 %v5534_v47, %v5405_v22  ;;  %v5415_v25 = vpop.f32.mrf.mxu3  ;;  %v4821_v47 = vld [vmem:[%s7686_s11 + $0x140] sm:$0xff] }
 0x865   : > { %v5200_v51 = vadd.f32 %v5130_v33, %v4814_v27  ;;  %v5603_v14 = vadd.f32 %v5535_v44, %v5297_v61  ;;  %v5018_v9 = vpop.f32.mrf.mxu1  ;;  %v5304_v44 = vld [vmem:[%s7691_s19 + $0x148] sm:$0xff] }
 0x867   : > { %5248 = vst [vmem:[%s7686_s11 + $0x108] sm:$0xff] %v5200_v51 }
 0x868   : > { %5651 = vst [vmem:[%s7691_s19 + $0x110] sm:$0xff] %v5603_v14 }
 0x86a   : > { %v5132_v11 = vpop.f32.mrf.mxu2  ;;  %v5536_v40 = vpop.f32.mrf.mxu0 }
 0x86b   : > { %v5133_v41 = vadd.f32 %v5132_v11, %v5003_v31  ;;  %v5537_v54 = vadd.f32 %v5536_v40, %v5407_v3  ;;  %v5417_v52 = vpop.f32.mrf.mxu3  ;;  %v5302_v3 = vld [vmem:[%s7691_s19 + $0x138] sm:$0xff] }
 0x86d   : > { %v5201_v18 = vadd.f32 %v5133_v41, %v4815_v19  ;;  %v5604_v35 = vadd.f32 %v5537_v54, %v5298_v0  ;;  %v4822_v41 = vld [vmem:[%s7686_s11 + $0x148] sm:$0xff] }
 0x86f   : > { %5249 = vst [vmem:[%s7686_s11 + $0x110] sm:$0xff] %v5201_v18 }
 0x870   : > { %5652 = vst [vmem:[%s7691_s19 + $0x118] sm:$0xff] %v5604_v35 }
 0x872   : > { %v5134_v15 = vpop.f32.mrf.mxu2  ;;  %v5539_v36 = vpop.f32.mrf.mxu0 }
 0x873   : > { %v5135_v46 = vadd.f32 %v5134_v15, %v5005_v62  ;;  %v5540_v39 = vadd.f32 %v5539_v36, %v5410_v56  ;;  %v5420_v7 = vpop.f32.mrf.mxu3 }
 0x875   : > { %v5202_v28 = vadd.f32 %v5135_v46, %v4816_v60  ;;  %v5605_v17 = vadd.f32 %v5540_v39, %v5299_v26  ;;  %v4823_v46 = vld [vmem:[%s7686_s11 + $0x150] sm:$0xff] }
 0x877   : > { %5250 = vst [vmem:[%s7686_s11 + $0x118] sm:$0xff] %v5202_v28  ;;  %v5306_v28 = vld [vmem:[%s7691_s19 + $0x158] sm:$0xff] }
 0x878   : > { %5653 = vst [vmem:[%s7691_s19 + $0x120] sm:$0xff] %v5605_v17 }
 0x87a   : > { %v5137_v58 = vpop.f32.mrf.mxu2  ;;  %v5541_v49 = vpop.f32.mrf.mxu0 }
 0x87b   : > { %v5138_v37 = vadd.f32 %v5137_v58, %v5008_v16  ;;  %v5542_v55 = vadd.f32 %v5541_v49, %v5412_v48  ;;  %v5422_v50 = vpop.f32.mrf.mxu3  ;;  %v5020_v16 = vpop.f32.mrf.mxu1  ;;  %v4824_v49 = vld [vmem:[%s7686_s11 + $0x158] sm:$0xff] }
 0x87d   : > { %v5203_v20 = vadd.f32 %v5138_v37, %v4817_v12  ;;  %v5606_v63 = vadd.f32 %v5542_v55, %v5300_v23  ;;  %v5307_v55 = vld [vmem:[%s7691_s19 + $0x160] sm:$0xff] }
 0x87f   : > { %5251 = vst [vmem:[%s7686_s11 + $0x120] sm:$0xff] %v5203_v20 }
 0x880   : > { %5654 = vst [vmem:[%s7691_s19 + $0x128] sm:$0xff] %v5606_v63 }
 0x882   : > { %v5139_v22 = vpop.f32.mrf.mxu2  ;;  %v5544_v21 = vpop.f32.mrf.mxu0 }
 0x883   : > { %v5140_v31 = vadd.f32 %v5139_v22, %v5010_v24  ;;  %v5545_v4 = vadd.f32 %v5544_v21, %v5415_v25  ;;  %v5425_v61 = vpop.f32.mrf.mxu3  ;;  %v5023_v0 = vpop.f32.mrf.mxu1  ;;  %v5305_v24 = vld [vmem:[%s7691_s19 + $0x150] sm:$0xff] }
 0x885   : > { %v5204_v8 = vadd.f32 %v5140_v31, %v4818_v13  ;;  %v5607_v2 = vadd.f32 %v5545_v4, %v5301_v29  ;;  %v4825_v29 = vld [vmem:[%s7686_s11 + $0x160] sm:$0xff]  ;;  %v5308_v31 = vld [vmem:[%s7691_s19 + $0x168] sm:$0xff] }
 0x887   : > { %5252 = vst [vmem:[%s7686_s11 + $0x128] sm:$0xff] %v5204_v8 }
 0x888   : > { %5655 = vst [vmem:[%s7691_s19 + $0x130] sm:$0xff] %v5607_v2 }
 0x88a   : > { %v5142_v10 = vpop.f32.mrf.mxu2  ;;  %v5546_v38 = vpop.f32.mrf.mxu0 }
 0x88b   : > { %v5143_v59 = vadd.f32 %v5142_v10, %v5013_v32  ;;  %v5547_v62 = vadd.f32 %v5546_v38, %v5417_v52  ;;  %v5427_v40 = vpop.f32.mrf.mxu3  ;;  %v5025_v26 = vpop.f32.mrf.mxu1  ;;  %v4826_v38 = vld [vmem:[%s7686_s11 + $0x168] sm:$0xff] }
 0x88d   : > { %v5205_v45 = vadd.f32 %v5143_v59, %v4819_v1  ;;  %v5608_v43 = vadd.f32 %v5547_v62, %v5302_v3  ;;  %v5309_v62 = vld [vmem:[%s7691_s19 + $0x170] sm:$0xff] }
 0x88f   : > { %5253 = vst [vmem:[%s7686_s11 + $0x130] sm:$0xff] %v5205_v45 }
 0x890   : > { %5656 = vst [vmem:[%s7691_s19 + $0x138] sm:$0xff] %v5608_v43 }
 0x892   : > { %v5144_v42 = vpop.f32.mrf.mxu2  ;;  %v5549_v56 = vpop.f32.mrf.mxu0 }
 0x893   : > { %v5145_v6 = vadd.f32 %v5144_v42, %v5015_v57  ;;  %v5550_v34 = vadd.f32 %v5549_v56, %v5420_v7  ;;  %v5430_v36 = vpop.f32.mrf.mxu3  ;;  %v5028_v23 = vpop.f32.mrf.mxu1 }
 0x895   : > { %v5206_v27 = vadd.f32 %v5145_v6, %v4820_v5  ;;  %v5609_v30 = vadd.f32 %v5550_v34, %v5303_v53  ;;  %v4827_v6 = vld [vmem:[%s7686_s11 + $0x170] sm:$0xff] }
 0x897   : > { %5254 = vst [vmem:[%s7686_s11 + $0x138] sm:$0xff] %v5206_v27 }
 0x898   : > { %5657 = vst [vmem:[%s7691_s19 + $0x140] sm:$0xff] %v5609_v30 }
 0x89a   : > { %v5147_v33 = vpop.f32.mrf.mxu2  ;;  %v5551_v48 = vpop.f32.mrf.mxu0 }
 0x89b   : > { %v5148_v51 = vadd.f32 %v5147_v33, %v5018_v9  ;;  %v5552_v14 = vadd.f32 %v5551_v48, %v5422_v50  ;;  %v5432_v7 = vpop.f32.mrf.mxu3  ;;  %v5030_v9 = vpop.f32.mrf.mxu1  ;;  %v4828_v48 = vld [vmem:[%s7686_s11 + $0x178] sm:$0xff] }
 0x89d   : > { %v5207_v19 = vadd.f32 %v5148_v51, %v4821_v47  ;;  %v5610_v11 = vadd.f32 %v5552_v14, %v5304_v44 }
 0x89f   : > { %5255 = vst [vmem:[%s7686_s11 + $0x140] sm:$0xff] %v5207_v19 }
 0x8a0   : > { %5658 = vst [vmem:[%s7691_s19 + $0x148] sm:$0xff] %v5610_v11 }
 0x8a2   : > { %v5149_v54 = vpop.f32.mrf.mxu2  ;;  %v5554_v18 = vpop.f32.mrf.mxu0 }
 0x8a3   : > { %v5150_v35 = vadd.f32 %v5149_v54, %v5020_v16  ;;  %v5555_v25 = vadd.f32 %v5554_v18, %v5425_v61  ;;  %v5435_v3 = vpop.f32.mrf.mxu3  ;;  %v5033_v53 = vpop.f32.mrf.mxu1  ;;  %v5310_v16 = vld [vmem:[%s7691_s19 + $0x178] sm:$0xff] }
 0x8a5   : > { %v5208_v60 = vadd.f32 %v5150_v35, %v4822_v41  ;;  %v5611_v15 = vadd.f32 %v5555_v25, %v5305_v24 }
 0x8a7   : > { %5256 = vst [vmem:[%s7686_s11 + $0x148] sm:$0xff] %v5208_v60 }
 0x8a8   : > { %5659 = vst [vmem:[%s7691_s19 + $0x150] sm:$0xff] %v5611_v15 }
 0x8aa   : > { %v5152_v39 = vpop.f32.mrf.mxu2  ;;  %v5556_v17 = vpop.f32.mrf.mxu0 }
 0x8ab   : > { %v5153_v32 = vadd.f32 %v5152_v39, %v5023_v0  ;;  %v5557_v52 = vadd.f32 %v5556_v17, %v5427_v40  ;;  %v5437_v56 = vpop.f32.mrf.mxu3  ;;  %v5035_v44 = vpop.f32.mrf.mxu1 }
 0x8ad   : > { %v5209_v12 = vadd.f32 %v5153_v32, %v4823_v46  ;;  %v5612_v58 = vadd.f32 %v5557_v52, %v5306_v28 }
 0x8af   : > { %5257 = vst [vmem:[%s7686_s11 + $0x150] sm:$0xff] %v5209_v12 }
 0x8b0   : > { %5660 = vst [vmem:[%s7691_s19 + $0x158] sm:$0xff] %v5612_v58 }
 0x8b2   : > { %v5154_v37 = vpop.f32.mrf.mxu2  ;;  %v5559_v20 = vpop.f32.mrf.mxu0 }
 0x8b3   : > { %v5155_v63 = vadd.f32 %v5154_v37, %v5025_v26  ;;  %v5560_v57 = vadd.f32 %v5559_v20, %v5430_v36 }
 0x8b5   : > { %v5210_v13 = vadd.f32 %v5155_v63, %v4824_v49  ;;  %v5613_v22 = vadd.f32 %v5560_v57, %v5307_v55 }
 0x8b7   : > { %5258 = vst [vmem:[%s7686_s11 + $0x158] sm:$0xff] %v5210_v13 }
 0x8b8   : > { %5661 = vst [vmem:[%s7691_s19 + $0x160] sm:$0xff] %v5613_v22 }
 0x8ba   : > { %v5157_v21 = vpop.f32.mrf.mxu2  ;;  %v5561_v4 = vpop.f32.mrf.mxu0 }
 0x8bb   : > { %v5158_v8 = vadd.f32 %v5157_v21, %v5028_v23  ;;  %v5562_v2 = vadd.f32 %v5561_v4, %v5432_v7 }
 0x8bd   : > { %v5211_v1 = vadd.f32 %v5158_v8, %v4825_v29  ;;  %v5614_v10 = vadd.f32 %v5562_v2, %v5308_v31 }
 0x8bf   : > { %5259 = vst [vmem:[%s7686_s11 + $0x160] sm:$0xff] %v5211_v1 }
 0x8c0   : > { %5662 = vst [vmem:[%s7691_s19 + $0x168] sm:$0xff] %v5614_v10 }
 0x8c2   : > { %v5159_v59 = vpop.f32.mrf.mxu2  ;;  %v5564_v50 = vpop.f32.mrf.mxu0 }
 0x8c3   : > { %v5160_v45 = vadd.f32 %v5159_v59, %v5030_v9  ;;  %v5565_v43 = vadd.f32 %v5564_v50, %v5435_v3 }
 0x8c5   : > { %v5212_v5 = vadd.f32 %v5160_v45, %v4826_v38  ;;  %v5615_v42 = vadd.f32 %v5565_v43, %v5309_v62 }
 0x8c7   : > { %5260 = vst [vmem:[%s7686_s11 + $0x168] sm:$0xff] %v5212_v5 }
 0x8c8   : > { %5663 = vst [vmem:[%s7691_s19 + $0x170] sm:$0xff] %v5615_v42 }
 0x8ca   : > { %v5162_v34 = vpop.f32.mrf.mxu2  ;;  %v5566_v27 = vpop.f32.mrf.mxu0 }
 0x8cb   : > { %v5163_v30 = vadd.f32 %v5162_v34, %v5033_v53  ;;  %v5567_v61 = vadd.f32 %v5566_v27, %v5437_v56 }
 0x8cd   : > { %v5213_v47 = vadd.f32 %v5163_v30, %v4827_v6  ;;  %v5616_v33 = vadd.f32 %v5567_v61, %v5310_v16 }
 0x8cf   : > { %5261 = vst [vmem:[%s7686_s11 + $0x170] sm:$0xff] %v5213_v47 }
 0x8d0   : > { %5664 = vst [vmem:[%s7691_s19 + $0x178] sm:$0xff] %v5616_v33 }
 0x8d2   : > { %v5164_v51 = vpop.f32.mrf.mxu2 }
 0x8d3   : > { %v5165_v14 = vadd.f32 %v5164_v51, %v5035_v44 }
 0x8d5   : > { %v5214_v19 = vadd.f32 %v5165_v14, %v4828_v48 }
 0x8d7   : > { %5262 = vst [vmem:[%s7686_s11 + $0x178] sm:$0xff] %v5214_v19 }
 0x8d8 PF: > { %s21_s17 = sadd.s32 1, %s7551_s17   ;;  %s14996_s25 = sld [smem:[#allocation2_spill]] }
 0x8d9   : > { %p18_p8 = scmp.ge.s32.totalorder %s21_s17, 6   ;;  %s14997_s28 = sld [smem:[#allocation3_spill]] }
 0x8da   : > { %s14998_s13 = smov %s7543_s15  ;;  %s14999_s14 = smov %s7547_s16 }
 0x8db   :  { %20 = sbr.rel (!%p18_p8) target bundleno = 4 (0x4), region = 132 }
 0x8de   : > { %s15000_s15 = smov %s14996_s25 }
 0x8df   : > { %s15001_s16 = smov %s14997_s28 }

</bundles_post_ra>
